<compile_context>
chip_gen: v7x
topology: tpu7x:2x2x1
jax: 0.10.0
libtpu: 0.0.40
codegen_flags: <defaults>
</compile_context>

<pallas_src>
import functools

import jax
import jax.numpy as jnp
from jax.experimental import pallas as pl
from jax.experimental.pallas import tpu as pltpu


# ---------------------------------------------------------------------------
# Pallas kernel 1: single-step conv GEMM (full K in one block) + bias + ReLU.
# Grid: (num M blocks,).  No accumulator scratch needed.
# ---------------------------------------------------------------------------
def _conv_gemm_kernel(x_ref, w_ref, b_ref, o_ref, *, relu):
    out = jnp.dot(x_ref[...], w_ref[...], preferred_element_type=jnp.float32)
    out = out + b_ref[...]
    if relu:
        out = jnp.maximum(out, 0.0)
    o_ref[...] = out.astype(o_ref.dtype)


def conv_gemm(x_patches, w_mat, b_row, *, bm, relu=True):
    """act(x_patches @ w_mat + b_row) for one conv layer.

    x_patches: (M, K) f32 im2col patches, w_mat: (K, N) f32, b_row: (1, N) f32.
    K and N use full-extent blocks (legal even when not multiples of 8/128);
    M is tiled by `bm` with masked edge handling (no explicit padding).
    """
    M, K = x_patches.shape
    K2, N = w_mat.shape
    assert K == K2 and b_row.shape == (1, N)

    grid_m = pl.cdiv(M, bm)
    return pl.pallas_call(
        functools.partial(_conv_gemm_kernel, relu=relu),
        out_shape=jax.ShapeDtypeStruct((M, N), jnp.float32),
        grid_spec=pltpu.PrefetchScalarGridSpec(
            num_scalar_prefetch=0,
            grid=(grid_m,),
            in_specs=[
                pl.BlockSpec((bm, K), lambda i: (i, 0)),
                pl.BlockSpec((K, N), lambda i: (0, 0)),   # resident across grid
                pl.BlockSpec((1, N), lambda i: (0, 0)),
            ],
            out_specs=pl.BlockSpec((bm, N), lambda i: (i, 0)),
        ),
        compiler_params=pltpu.CompilerParams(
            dimension_semantics=("parallel",)
        ),
    )(x_patches, w_mat, b_row)


# ---------------------------------------------------------------------------
# Pallas kernel 2: fused FC1 (accumulate over K) + ReLU + FC2 epilogue.
# Grid: (K // bk,) over the reduction axis only.
# ---------------------------------------------------------------------------
def _fc_fused_kernel(x_ref, w1_ref, b1_ref, w2_ref, b2_ref, o_ref, acc_ref):
    k = pl.program_id(0)

    @pl.when(k == 0)
    def _():
        acc_ref[...] = jnp.zeros_like(acc_ref)

    acc_ref[...] += jnp.dot(
        x_ref[...], w1_ref[...], preferred_element_type=jnp.float32
    )

    @pl.when(k == pl.num_programs(0) - 1)
    def _():
        h = jnp.maximum(acc_ref[...] + b1_ref[...], 0.0)          # FC1 + ReLU
        out = jnp.dot(h, w2_ref[...], preferred_element_type=jnp.float32)
        out = out + b2_ref[...]                                    # FC2
        o_ref[...] = out.astype(o_ref.dtype)


def fc_fused(feat, w1, b1, w2, b2, *, bk=2560):
    """relu(feat @ w1 + b1) @ w2 + b2 in a single pallas_call.

    feat: (Mp, K) with Mp a multiple of 8, K a multiple of bk.
    w1: (K, H), b1: (1, H), w2: (H, N), b2: (1, N).
    """
    Mp, K = feat.shape
    K2, H = w1.shape
    H2, N = w2.shape
    assert K == K2 and H == H2 and Mp % 8 == 0 and K % bk == 0

    grid_k = K // bk
    return pl.pallas_call(
        _fc_fused_kernel,
        out_shape=jax.ShapeDtypeStruct((Mp, N), jnp.float32),
        grid_spec=pltpu.PrefetchScalarGridSpec(
            num_scalar_prefetch=0,
            grid=(grid_k,),
            in_specs=[
                pl.BlockSpec((Mp, bk), lambda k: (0, k)),
                pl.BlockSpec((bk, H), lambda k: (k, 0)),
                pl.BlockSpec((1, H), lambda k: (0, 0)),
                pl.BlockSpec((H, N), lambda k: (0, 0)),
                pl.BlockSpec((1, N), lambda k: (0, 0)),
            ],
            out_specs=pl.BlockSpec((Mp, N), lambda k: (0, 0)),
            scratch_shapes=[pltpu.VMEM((Mp, H), jnp.float32)],
        ),
        compiler_params=pltpu.CompilerParams(
            dimension_semantics=("arbitrary",)
        ),
    )(feat, w1, b1, w2, b2)


# ---------------------------------------------------------------------------
# Glue: im2col patch extraction (pure data movement, stays in XLA).
# TODO(synk): fold patch extraction into the conv kernel (Element/index_map
# gather over (kh, kw)) to avoid the HBM blow-up of the patch matrix.
# ---------------------------------------------------------------------------
def _im2col(x, kh, kw, stride):
    """x: (B, H, W, C) -> patches (B*Ho*Wo, kh*kw*C), ordered (kh, kw, C)."""
    B, H, W, C = x.shape
    Ho = (H - kh) // stride + 1
    Wo = (W - kw) // stride + 1
    cols = []
    for i in range(kh):
        for j in range(kw):
            cols.append(x[:, i:i + stride * Ho:stride, j:j + stride * Wo:stride, :])
    patches = jnp.concatenate(cols, axis=-1)  # (B, Ho, Wo, kh*kw*C)
    return patches.reshape(B * Ho * Wo, kh * kw * C), Ho, Wo


# ---------------------------------------------------------------------------
# Model: deterministic parameter init (PyTorch layout) + one-time GEMM-layout
# preparation (done OUTSIDE the jitted forward) + forward pass.
# ---------------------------------------------------------------------------
def init_params(key, action_dim):
    keys = jax.random.split(key, 10)

    def conv_w(k, oc, ic, kh, kw):
        fan_in = ic * kh * kw
        scale = 1.0 / jnp.sqrt(jnp.float32(fan_in))
        return jax.random.uniform(k, (oc, ic, kh, kw), jnp.float32, -1.0, 1.0) * scale

    def lin_w(k, out_f, in_f):
        scale = 1.0 / jnp.sqrt(jnp.float32(in_f))
        return jax.random.uniform(k, (out_f, in_f), jnp.float32, -1.0, 1.0) * scale

    return {
        "w1": conv_w(keys[0], 32, 3, 5, 5),
        "b1": jax.random.uniform(keys[1], (32,), jnp.float32, -0.01, 0.01),
        "w2": conv_w(keys[2], 64, 32, 5, 5),
        "b2": jax.random.uniform(keys[3], (64,), jnp.float32, -0.01, 0.01),
        "w3": conv_w(keys[4], 128, 64, 3, 3),
        "b3": jax.random.uniform(keys[5], (128,), jnp.float32, -0.01, 0.01),
        "fc1_w": lin_w(keys[6], 128, 128 * 10 * 10),   # PyTorch layout (out, in)
        "fc1_b": jax.random.uniform(keys[7], (128,), jnp.float32, -0.01, 0.01),
        "fc2_w": lin_w(keys[8], action_dim, 128),
        "fc2_b": jax.random.uniform(keys[9], (action_dim,), jnp.float32, -0.01, 0.01),
    }


def prepare_params(params):
    """One-time transform: PyTorch layouts -> GEMM layouts (no per-call .T).

    fc1_w is additionally row-permuted from PyTorch's (C, H, W) flatten order
    to our NHWC (H, W, C) flatten order, so the forward pass can flatten the
    NHWC activation directly (no per-call transpose of the feature map).
    """
    def conv_to_gemm(w):  # (oc, ic, kh, kw) -> (kh*kw*ic, oc), matches im2col order
        oc = w.shape[0]
        return jnp.transpose(w, (2, 3, 1, 0)).reshape(-1, oc)

    fc1_w = params["fc1_w"]                              # (128, 12800) = (out, C*H*W)
    h_out = fc1_w.shape[0]
    fc1_w = fc1_w.reshape(h_out, 128, 10, 10)            # (out, C, H, W)
    fc1_w = jnp.transpose(fc1_w, (2, 3, 1, 0))           # (H, W, C, out)
    fc1_w = fc1_w.reshape(128 * 10 * 10, h_out)          # rows in (H, W, C) order

    return {
        "w1": conv_to_gemm(params["w1"]), "b1": params["b1"].reshape(1, -1),
        "w2": conv_to_gemm(params["w2"]), "b2": params["b2"].reshape(1, -1),
        "w3": conv_to_gemm(params["w3"]), "b3": params["b3"].reshape(1, -1),
        "fc1_w": fc1_w,                                   # (12800, 128), HWC rows
        "fc1_b": params["fc1_b"].reshape(1, -1),          # (1, 128)
        "fc2_w": params["fc2_w"].T,                       # (128, action_dim)
        "fc2_b": params["fc2_b"].reshape(1, -1),          # (1, action_dim)
    }


def imitation_agent_forward(gparams, x_nchw):
    # layout: input is NCHW (PyTorch); convs computed in NHWC via im2col so
    # the channel / patch dimension sits on TPU lanes.
    x = jnp.transpose(x_nchw, (0, 2, 3, 1)).astype(jnp.float32)  # NHWC
    B = x.shape[0]

    # (weight, bias, kernel, stride, M-block size)
    conv_cfg = [("w1", "b1", 5, 2, 512),    # M=4232, K=75,  N=32  -> 9 M blocks
                ("w2", "b2", 5, 2, 448),    # M=882,  K=800, N=64  -> 2 M blocks
                ("w3", "b3", 3, 2, 128)]    # M=200,  K=576, N=128 -> 2 M blocks
    for wname, bname, k, s, bm in conv_cfg:
        patches, Ho, Wo = _im2col(x, k, k, s)
        y = conv_gemm(patches, gparams[wname], gparams[bname], bm=bm, relu=True)
        x = y.reshape(B, Ho, Wo, y.shape[-1])

    # fc1_w rows were permuted to (H, W, C) order, so flatten NHWC directly.
    feat = x.reshape(B, -1)                                 # (B, 12800)

    # Tiny pad of the batch rows to the 8-sublane minimum for the fused FC call.
    Mp = max(8, ((B + 7) // 8) * 8)
    featp = jnp.pad(feat, ((0, Mp - B), (0, 0))) if Mp != B else feat

    out = fc_fused(featp, gparams["fc1_w"], gparams["fc1_b"],
                   gparams["fc2_w"], gparams["fc2_b"], bk=2560)
    return out[:B]


if __name__ == "__main__":
    ACTION_DIM = 3  # actions_tensor.shape[1]; synthetic choice (steer/gas/brake)
    key = jax.random.PRNGKey(0)
    pkey, xkey = jax.random.split(key)

    params = init_params(pkey, ACTION_DIM)
    gparams = prepare_params(params)   # one-time, outside the jitted forward
    # Input spatial size 96x96 is forced by the Linear(128*10*10, .) layer.
    x = jax.random.normal(xkey, (2, 3, 96, 96), dtype=jnp.float32)

    fwd = jax.jit(imitation_agent_forward)
    out = fwd(gparams, x)
    jax.block_until_ready(out)

    assert out.shape == (2, ACTION_DIM), out.shape
    assert jnp.all(jnp.isfinite(out))
    print("KERNEL_OK")
</pallas_src>

<mosaic_0001>
module attributes {stable_mosaic.version = 11 : i64} {
  func.func @_conv_gemm_kernel(%arg0: i32, %arg1: memref<512x75xf32, #tpu.memory_space<vmem>>, %arg2: memref<75x32xf32, #tpu.memory_space<vmem>>, %arg3: memref<1x32xf32, #tpu.memory_space<vmem>>, %arg4: memref<512x32xf32, #tpu.memory_space<vmem>>) attributes {dimension_semantics = [#tpu.dimension_semantics<parallel>], iteration_bounds = array<i64: 9>, scalar_prefetch = 0 : i64, scratch_operands = 0 : i64, tpu.core_type = #tpu.core_type<tc>, window_params = [{transform_indices = @transform_0, window_bounds = array<i64: 512, 75>}, {pipeline_mode = #tpu.pipeline_mode<synchronous>, transform_indices = @transform_1, window_bounds = array<i64: 75, 32>}, {pipeline_mode = #tpu.pipeline_mode<synchronous>, transform_indices = @transform_2, window_bounds = array<i64: 1, 32>}, {transform_indices = @transform_3, window_bounds = array<i64: 512, 32>}]} {
    %c0 = arith.constant 0 : index
    %c0_0 = arith.constant 0 : index
    %0 = vector.load %arg1[%c0, %c0_0] : memref<512x75xf32, #tpu.memory_space<vmem>>, vector<512x75xf32>
    %c0_1 = arith.constant 0 : index
    %c0_2 = arith.constant 0 : index
    %1 = vector.load %arg2[%c0_1, %c0_2] : memref<75x32xf32, #tpu.memory_space<vmem>>, vector<75x32xf32>
    %cst = arith.constant dense<0.000000e+00> : vector<512x32xf32>
    %2 = tpu.matmul %0, %1, %cst {dimension_numbers = #tpu.dot_dimension_numbers<[1], [0], [0], [1], [0, 0, 1, 1], [], []>} : vector<512x75xf32>, vector<75x32xf32>, vector<512x32xf32> -> vector<512x32xf32>
    %c0_3 = arith.constant 0 : index
    %c0_4 = arith.constant 0 : index
    %3 = vector.load %arg3[%c0_3, %c0_4] : memref<1x32xf32, #tpu.memory_space<vmem>>, vector<1x32xf32>
    %4 = vector.broadcast %3 : vector<1x32xf32> to vector<512x32xf32>
    %5 = arith.addf %2, %4 : vector<512x32xf32>
    %cst_5 = arith.constant 0.000000e+00 : f32
    %6 = vector.broadcast %cst_5 : f32 to vector<512x32xf32>
    %7 = arith.maximumf %5, %6 : vector<512x32xf32>
    %c0_6 = arith.constant 0 : index
    %c0_7 = arith.constant 0 : index
    %8 = vector.load %arg4[%c0_6, %c0_7] : memref<512x32xf32, #tpu.memory_space<vmem>>, vector<512x32xf32>
    tpu.vector_store %arg4[%c0_6, %c0_7], %7 {strides = array<i32>} : memref<512x32xf32, #tpu.memory_space<vmem>>, vector<512x32xf32>,
    return
  }
  func.func @transform_0(%arg0: i32) -> (i32, i32) {
    %c0_i32 = arith.constant 0 : i32
    %c0_i32_0 = arith.constant 0 : i32
    return %arg0, %c0_i32 : i32, i32
  }
  func.func @transform_1(%arg0: i32) -> (i32, i32) {
    %c0_i32 = arith.constant 0 : i32
    %c0_i32_0 = arith.constant 0 : i32
    %c0_i32_1 = arith.constant 0 : i32
    return %c0_i32, %c0_i32_0 : i32, i32
  }
  func.func @transform_2(%arg0: i32) -> (i32, i32) {
    %c0_i32 = arith.constant 0 : i32
    %c0_i32_0 = arith.constant 0 : i32
    %c0_i32_1 = arith.constant 0 : i32
    return %c0_i32, %c0_i32_0 : i32, i32
  }
  func.func @transform_3(%arg0: i32) -> (i32, i32) {
    %c0_i32 = arith.constant 0 : i32
    %c0_i32_0 = arith.constant 0 : i32
    return %arg0, %c0_i32 : i32, i32
  }
}

module attributes {stable_mosaic.version = 11 : i64} {
  func.func @_conv_gemm_kernel(%arg0: i32, %arg1: memref<448x800xf32, #tpu.memory_space<vmem>>, %arg2: memref<800x64xf32, #tpu.memory_space<vmem>>, %arg3: memref<1x64xf32, #tpu.memory_space<vmem>>, %arg4: memref<448x64xf32, #tpu.memory_space<vmem>>) attributes {dimension_semantics = [#tpu.dimension_semantics<parallel>], iteration_bounds = array<i64: 2>, scalar_prefetch = 0 : i64, scratch_operands = 0 : i64, tpu.core_type = #tpu.core_type<tc>, window_params = [{transform_indices = @transform_0, window_bounds = array<i64: 448, 800>}, {pipeline_mode = #tpu.pipeline_mode<synchronous>, transform_indices = @transform_1, window_bounds = array<i64: 800, 64>}, {pipeline_mode = #tpu.pipeline_mode<synchronous>, transform_indices = @transform_2, window_bounds = array<i64: 1, 64>}, {transform_indices = @transform_3, window_bounds = array<i64: 448, 64>}]} {
    %c0 = arith.constant 0 : index
    %c0_0 = arith.constant 0 : index
    %0 = vector.load %arg1[%c0, %c0_0] : memref<448x800xf32, #tpu.memory_space<vmem>>, vector<448x800xf32>
    %c0_1 = arith.constant 0 : index
    %c0_2 = arith.constant 0 : index
    %1 = vector.load %arg2[%c0_1, %c0_2] : memref<800x64xf32, #tpu.memory_space<vmem>>, vector<800x64xf32>
    %cst = arith.constant dense<0.000000e+00> : vector<448x64xf32>
    %2 = tpu.matmul %0, %1, %cst {dimension_numbers = #tpu.dot_dimension_numbers<[1], [0], [0], [1], [0, 0, 1, 1], [], []>} : vector<448x800xf32>, vector<800x64xf32>, vector<448x64xf32> -> vector<448x64xf32>
    %c0_3 = arith.constant 0 : index
    %c0_4 = arith.constant 0 : index
    %3 = vector.load %arg3[%c0_3, %c0_4] : memref<1x64xf32, #tpu.memory_space<vmem>>, vector<1x64xf32>
    %4 = vector.broadcast %3 : vector<1x64xf32> to vector<448x64xf32>
    %5 = arith.addf %2, %4 : vector<448x64xf32>
    %cst_5 = arith.constant 0.000000e+00 : f32
    %6 = vector.broadcast %cst_5 : f32 to vector<448x64xf32>
    %7 = arith.maximumf %5, %6 : vector<448x64xf32>
    %c0_6 = arith.constant 0 : index
    %c0_7 = arith.constant 0 : index
    %8 = vector.load %arg4[%c0_6, %c0_7] : memref<448x64xf32, #tpu.memory_space<vmem>>, vector<448x64xf32>
    tpu.vector_store %arg4[%c0_6, %c0_7], %7 {strides = array<i32>} : memref<448x64xf32, #tpu.memory_space<vmem>>, vector<448x64xf32>,
    return
  }
  func.func @transform_0(%arg0: i32) -> (i32, i32) {
    %c0_i32 = arith.constant 0 : i32
    %c0_i32_0 = arith.constant 0 : i32
    return %arg0, %c0_i32 : i32, i32
  }
  func.func @transform_1(%arg0: i32) -> (i32, i32) {
    %c0_i32 = arith.constant 0 : i32
    %c0_i32_0 = arith.constant 0 : i32
    %c0_i32_1 = arith.constant 0 : i32
    return %c0_i32, %c0_i32_0 : i32, i32
  }
  func.func @transform_2(%arg0: i32) -> (i32, i32) {
    %c0_i32 = arith.constant 0 : i32
    %c0_i32_0 = arith.constant 0 : i32
    %c0_i32_1 = arith.constant 0 : i32
    return %c0_i32, %c0_i32_0 : i32, i32
  }
  func.func @transform_3(%arg0: i32) -> (i32, i32) {
    %c0_i32 = arith.constant 0 : i32
    %c0_i32_0 = arith.constant 0 : i32
    return %arg0, %c0_i32 : i32, i32
  }
}

module attributes {stable_mosaic.version = 11 : i64} {
  func.func @_conv_gemm_kernel(%arg0: i32, %arg1: memref<128x576xf32, #tpu.memory_space<vmem>>, %arg2: memref<576x128xf32, #tpu.memory_space<vmem>>, %arg3: memref<1x128xf32, #tpu.memory_space<vmem>>, %arg4: memref<128x128xf32, #tpu.memory_space<vmem>>) attributes {dimension_semantics = [#tpu.dimension_semantics<parallel>], iteration_bounds = array<i64: 2>, scalar_prefetch = 0 : i64, scratch_operands = 0 : i64, tpu.core_type = #tpu.core_type<tc>, window_params = [{transform_indices = @transform_0, window_bounds = array<i64: 128, 576>}, {pipeline_mode = #tpu.pipeline_mode<synchronous>, transform_indices = @transform_1, window_bounds = array<i64: 576, 128>}, {pipeline_mode = #tpu.pipeline_mode<synchronous>, transform_indices = @transform_2, window_bounds = array<i64: 1, 128>}, {transform_indices = @transform_3, window_bounds = array<i64: 128, 128>}]} {
    %c0 = arith.constant 0 : index
    %c0_0 = arith.constant 0 : index
    %0 = vector.load %arg1[%c0, %c0_0] : memref<128x576xf32, #tpu.memory_space<vmem>>, vector<128x576xf32>
    %c0_1 = arith.constant 0 : index
    %c0_2 = arith.constant 0 : index
    %1 = vector.load %arg2[%c0_1, %c0_2] : memref<576x128xf32, #tpu.memory_space<vmem>>, vector<576x128xf32>
    %cst = arith.constant dense<0.000000e+00> : vector<128x128xf32>
    %2 = tpu.matmul %0, %1, %cst {dimension_numbers = #tpu.dot_dimension_numbers<[1], [0], [0], [1], [0, 0, 1, 1], [], []>} : vector<128x576xf32>, vector<576x128xf32>, vector<128x128xf32> -> vector<128x128xf32>
    %c0_3 = arith.constant 0 : index
    %c0_4 = arith.constant 0 : index
    %3 = vector.load %arg3[%c0_3, %c0_4] : memref<1x128xf32, #tpu.memory_space<vmem>>, vector<1x128xf32>
    %4 = vector.broadcast %3 : vector<1x128xf32> to vector<128x128xf32>
    %5 = arith.addf %2, %4 : vector<128x128xf32>
    %cst_5 = arith.constant 0.000000e+00 : f32
    %6 = vector.broadcast %cst_5 : f32 to vector<128x128xf32>
    %7 = arith.maximumf %5, %6 : vector<128x128xf32>
    %c0_6 = arith.constant 0 : index
    %c0_7 = arith.constant 0 : index
    %8 = vector.load %arg4[%c0_6, %c0_7] : memref<128x128xf32, #tpu.memory_space<vmem>>, vector<128x128xf32>
    tpu.vector_store %arg4[%c0_6, %c0_7], %7 {strides = array<i32>} : memref<128x128xf32, #tpu.memory_space<vmem>>, vector<128x128xf32>,
    return
  }
  func.func @transform_0(%arg0: i32) -> (i32, i32) {
    %c0_i32 = arith.constant 0 : i32
    %c0_i32_0 = arith.constant 0 : i32
    return %arg0, %c0_i32 : i32, i32
  }
  func.func @transform_1(%arg0: i32) -> (i32, i32) {
    %c0_i32 = arith.constant 0 : i32
    %c0_i32_0 = arith.constant 0 : i32
    %c0_i32_1 = arith.constant 0 : i32
    return %c0_i32, %c0_i32_0 : i32, i32
  }
  func.func @transform_2(%arg0: i32) -> (i32, i32) {
    %c0_i32 = arith.constant 0 : i32
    %c0_i32_0 = arith.constant 0 : i32
    %c0_i32_1 = arith.constant 0 : i32
    return %c0_i32, %c0_i32_0 : i32, i32
  }
  func.func @transform_3(%arg0: i32) -> (i32, i32) {
    %c0_i32 = arith.constant 0 : i32
    %c0_i32_0 = arith.constant 0 : i32
    return %arg0, %c0_i32 : i32, i32
  }
}

module attributes {stable_mosaic.version = 11 : i64} {
  func.func @_fc_fused_kernel(%arg0: i32, %arg1: memref<8x2560xf32, #tpu.memory_space<vmem>>, %arg2: memref<2560x128xf32, #tpu.memory_space<vmem>>, %arg3: memref<1x128xf32, #tpu.memory_space<vmem>>, %arg4: memref<128x3xf32, #tpu.memory_space<vmem>>, %arg5: memref<1x3xf32, #tpu.memory_space<vmem>>, %arg6: memref<8x3xf32, #tpu.memory_space<vmem>>, %arg7: memref<8x128xf32, #tpu.memory_space<vmem>>) attributes {dimension_semantics = [#tpu.dimension_semantics<arbitrary>], iteration_bounds = array<i64: 5>, scalar_prefetch = 0 : i64, scratch_operands = 1 : i64, tpu.core_type = #tpu.core_type<tc>, window_params = [{transform_indices = @transform_0, window_bounds = array<i64: 8, 2560>}, {transform_indices = @transform_1, window_bounds = array<i64: 2560, 128>}, {pipeline_mode = #tpu.pipeline_mode<synchronous>, transform_indices = @transform_2, window_bounds = array<i64: 1, 128>}, {pipeline_mode = #tpu.pipeline_mode<synchronous>, transform_indices = @transform_3, window_bounds = array<i64: 128, 3>}, {pipeline_mode = #tpu.pipeline_mode<synchronous>, transform_indices = @transform_4, window_bounds = array<i64: 1, 3>}, {pipeline_mode = #tpu.pipeline_mode<synchronous>, transform_indices = @transform_5, window_bounds = array<i64: 8, 3>}]} {
    %c0_i32 = arith.constant 0 : i32
    %0 = arith.cmpi eq, %arg0, %c0_i32 : i32
    %1 = arith.extui %0 : i1 to i32
    %c0_i32_0 = arith.constant 0 : i32
    %2 = arith.cmpi ne, %1, %c0_i32_0 : i32
    scf.if %2 {
      %cst_9 = arith.constant 0.000000e+00 : f32
      %12 = vector.broadcast %cst_9 : f32 to vector<8x128xf32>
      %c0_10 = arith.constant 0 : index
      %c0_11 = arith.constant 0 : index
      %13 = vector.load %arg7[%c0_10, %c0_11] : memref<8x128xf32, #tpu.memory_space<vmem>>, vector<8x128xf32>
      tpu.vector_store %arg7[%c0_10, %c0_11], %12 {strides = array<i32>} : memref<8x128xf32, #tpu.memory_space<vmem>>, vector<8x128xf32>,
    } else {
    }
    %c0 = arith.constant 0 : index
    %c0_1 = arith.constant 0 : index
    %3 = vector.load %arg7[%c0, %c0_1] : memref<8x128xf32, #tpu.memory_space<vmem>>, vector<8x128xf32>
    %c0_2 = arith.constant 0 : index
    %c0_3 = arith.constant 0 : index
    %4 = vector.load %arg1[%c0_2, %c0_3] : memref<8x2560xf32, #tpu.memory_space<vmem>>, vector<8x2560xf32>
    %c0_4 = arith.constant 0 : index
    %c0_5 = arith.constant 0 : index
    %5 = vector.load %arg2[%c0_4, %c0_5] : memref<2560x128xf32, #tpu.memory_space<vmem>>, vector<2560x128xf32>
    %cst = arith.constant dense<0.000000e+00> : vector<8x128xf32>
    %6 = tpu.matmul %4, %5, %cst {dimension_numbers = #tpu.dot_dimension_numbers<[1], [0], [0], [1], [0, 0, 1, 1], [], []>} : vector<8x2560xf32>, vector<2560x128xf32>, vector<8x128xf32> -> vector<8x128xf32>
    %7 = arith.addf %3, %6 : vector<8x128xf32>
    %c0_6 = arith.constant 0 : index
    %c0_7 = arith.constant 0 : index
    %8 = vector.load %arg7[%c0_6, %c0_7] : memref<8x128xf32, #tpu.memory_space<vmem>>, vector<8x128xf32>
    tpu.vector_store %arg7[%c0_6, %c0_7], %7 {strides = array<i32>} : memref<8x128xf32, #tpu.memory_space<vmem>>, vector<8x128xf32>,
    %c4_i32 = arith.constant 4 : i32
    %9 = arith.cmpi eq, %arg0, %c4_i32 : i32
    %10 = arith.extui %9 : i1 to i32
    %c0_i32_8 = arith.constant 0 : i32
    %11 = arith.cmpi ne, %10, %c0_i32_8 : i32
    scf.if %11 {
      %c0_9 = arith.constant 0 : index
      %c0_10 = arith.constant 0 : index
      %12 = vector.load %arg7[%c0_9, %c0_10] : memref<8x128xf32, #tpu.memory_space<vmem>>, vector<8x128xf32>
      %c0_11 = arith.constant 0 : index
      %c0_12 = arith.constant 0 : index
      %13 = vector.load %arg3[%c0_11, %c0_12] : memref<1x128xf32, #tpu.memory_space<vmem>>, vector<1x128xf32>
      %14 = vector.broadcast %13 : vector<1x128xf32> to vector<8x128xf32>
      %15 = arith.addf %12, %14 : vector<8x128xf32>
      %cst_13 = arith.constant 0.000000e+00 : f32
      %16 = vector.broadcast %cst_13 : f32 to vector<8x128xf32>
      %17 = arith.maximumf %15, %16 : vector<8x128xf32>
      %c0_14 = arith.constant 0 : index
      %c0_15 = arith.constant 0 : index
      %18 = vector.load %arg4[%c0_14, %c0_15] : memref<128x3xf32, #tpu.memory_space<vmem>>, vector<128x3xf32>
      %cst_16 = arith.constant dense<0.000000e+00> : vector<8x3xf32>
      %19 = tpu.matmul %17, %18, %cst_16 {dimension_numbers = #tpu.dot_dimension_numbers<[1], [0], [0], [1], [0, 0, 1, 1], [], []>} : vector<8x128xf32>, vector<128x3xf32>, vector<8x3xf32> -> vector<8x3xf32>
      %c0_17 = arith.constant 0 : index
      %c0_18 = arith.constant 0 : index
      %20 = vector.load %arg5[%c0_17, %c0_18] : memref<1x3xf32, #tpu.memory_space<vmem>>, vector<1x3xf32>
      %21 = vector.broadcast %20 : vector<1x3xf32> to vector<8x3xf32>
      %22 = arith.addf %19, %21 : vector<8x3xf32>
      %c0_19 = arith.constant 0 : index
      %c0_20 = arith.constant 0 : index
      %23 = vector.load %arg6[%c0_19, %c0_20] : memref<8x3xf32, #tpu.memory_space<vmem>>, vector<8x3xf32>
      tpu.vector_store %arg6[%c0_19, %c0_20], %22 {strides = array<i32>} : memref<8x3xf32, #tpu.memory_space<vmem>>, vector<8x3xf32>,
    } else {
    }
    return
  }
  func.func @transform_0(%arg0: i32) -> (i32, i32) {
    %c0_i32 = arith.constant 0 : i32
    %c0_i32_0 = arith.constant 0 : i32
    return %c0_i32, %arg0 : i32, i32
  }
  func.func @transform_1(%arg0: i32) -> (i32, i32) {
    %c0_i32 = arith.constant 0 : i32
    %c0_i32_0 = arith.constant 0 : i32
    return %arg0, %c0_i32 : i32, i32
  }
  func.func @transform_2(%arg0: i32) -> (i32, i32) {
    %c0_i32 = arith.constant 0 : i32
    %c0_i32_0 = arith.constant 0 : i32
    %c0_i32_1 = arith.constant 0 : i32
    return %c0_i32, %c0_i32_0 : i32, i32
  }
  func.func @transform_3(%arg0: i32) -> (i32, i32) {
    %c0_i32 = arith.constant 0 : i32
    %c0_i32_0 = arith.constant 0 : i32
    %c0_i32_1 = arith.constant 0 : i32
    return %c0_i32, %c0_i32_0 : i32, i32
  }
  func.func @transform_4(%arg0: i32) -> (i32, i32) {
    %c0_i32 = arith.constant 0 : i32
    %c0_i32_0 = arith.constant 0 : i32
    %c0_i32_1 = arith.constant 0 : i32
    return %c0_i32, %c0_i32_0 : i32, i32
  }
  func.func @transform_5(%arg0: i32) -> (i32, i32) {
    %c0_i32 = arith.constant 0 : i32
    %c0_i32_0 = arith.constant 0 : i32
    %c0_i32_1 = arith.constant 0 : i32
    return %c0_i32, %c0_i32_0 : i32, i32
  }
}

</mosaic_0001>

<bundles_post_ra>
// kernel: imitation_agent_forward.4
= control target key start
LH: loop header
LB: loop body
LE: loop exit
PB: predicated region body
PF: predicated region fallthrough
CT: control target
= control target key end

     0   :  { %s1964_s12 = smov 0   ;;  %s1966_s13 = smov 0   ;;  %s2567_s0 = inlined_call_operand.vmem [shape: f32[4232,75], index: 0, kind: input, shape index: {}]   ;;  %s2568_s1 = inlined_call_operand.vmem [shape: f32[75,32], index: 1, kind: input, shape index: {}]   ;;  %s2569_s2 = inlined_call_operand.vmem [shape: f32[1,32], index: 2, kind: input, shape index: {}]   ;;  %s2570_s3 = inlined_call_operand.vmem [shape: f32[4232,32], index: 3, kind: output, shape index: {}]  }
   0x1   :  { %s1968_s14 = smov 0  }
   0x2 LB: > { %s1977_s15 = sadd.s32 4294967295, %s1909_s14   ;;  %s1979_s16 = sadd.s32 1, %s1909_s14   ;;  %s1909_s14 = sphi %s1968_s14, %s2579_s14   ;;  %s1905_s13 = sphi %s1966_s13, %s2578_s13   ;;  %s1901_s12 = sphi %s1964_s12, %s2577_s12  }
   0x3   : > { %s85_s17 = ssub.s32 %s1909_s14, %s1979_s16  ;;  %s88_s18 = sadd.s32 1, %s1905_s13 }
   0x4   : > { %p86_p0 = scmp.eq.s32.totalorder %s85_s17, 0  ;;  %p98_p1 = scmp.ne.s32.totalorder %s1905_s13, %s1901_s12 }
   0x5   : > { %p99_p2 = scmp.eq.s32.totalorder %s1977_s15, 8  ;;  %p1454_p3 = scmp.ge.s32.totalorder %s1909_s14, 1 }
   0x6   : > { %s1987_s19 = scalar_select %p86_p0, %s1905_s13, %s88_s18  }
   0x7   : > { %p1989_p4 = por %p99_p2, %p98_p1  ;;  %p146_p5 = scmp.lt.s32.totalorder %s1909_s14, 10 }
   0x9   : > { %p147_p6 = pnand %p1454_p3, %p146_p5 }
   0xa   : > { %v256_v0 = vld [vmem:[%s2568_s1] sm:$0xff] (!%p147_p6)  ;;  %v257_v1 = vld [vmem:[%s2568_s1 + $0x8] sm:$0xff] (!%p147_p6)  ;;  %v258_v2 = vld [vmem:[%s2568_s1 + $0x10] sm:$0xff] (!%p147_p6)  ;;  %s2003_s27 = sshll.u32 (!%p147_p6), %s1977_s15, 6  ;;  %vm273_vm0 = vcmask (!%p147_p6), 613376   ;;  %vm466_vm1 = vcmask (!%p147_p6), 1042432  }
   0xb   : > { %150 = sbr.rel (%p147_p6) target bundleno = 383 (0x17f), region = 32  ;;  %v1734_v3 = vpack.c.bf16 (!%p147_p6), %v257_v1, %v256_v0  ;;  %v259_v4 = vld [vmem:[%s2568_s1 + $0x18] sm:$0xff] (!%p147_p6)  ;;  %p178_p7 = scmp.lt.s32.totalorder (!%p147_p6), %s2003_s27, 528  ;;  %v260_v6 = vld [vmem:[%s2568_s1 + $0x20] sm:$0xff] (!%p147_p6)  ;;  %v261_v7 = vld [vmem:[%s2568_s1 + $0x28] sm:$0xff] (!%p147_p6)  ;;  %vm1943_vm2 = vmmov (!%p147_p6), 1  }
   0xc   : > { %v1738_v5 = vpack.c.bf16 (!%p147_p6), %v259_v4, %v258_v2  ;;  %v1742_v8 = vpack.c.bf16 (!%p147_p6), %v261_v7, %v260_v6  ;;  %v262_v9 = vld [vmem:[%s2568_s1 + $0x30] sm:$0xff] (!%p147_p6)  ;;  %v263_v10 = vld [vmem:[%s2568_s1 + $0x38] sm:$0xff] (!%p147_p6)  ;;  %v264_v14 = vld [vmem:[%s2568_s1 + $0x40] sm:$0xff] (!%p147_p6)  ;;  %s170_s26 = sand.u32 (!%p147_p6), 1, %s1901_s12   ;;  %vm919_vm4 = vcmask (!%p147_p6), 261120  }
   0xd   : > { %1735 = vmatprep.subr.bf16.mxu0 (!%p147_p6), %v1734_v3  ;;  %1756 = vmatprep.subr.bf16.mxu1 (!%p147_p6), %v1734_v3  ;;  %v1746_v13 = vpack.c.bf16 (!%p147_p6), %v263_v10, %v262_v9  ;;  %v265_v15 = vld [vmem:[%s2568_s1 + $0x48] sm:$0x7] (!%p147_p6)  ;;  %vm1751_vm3 = vmpackc.low (!%p147_p6), %vm466_vm1, %vm1943_vm2  ;;  %s1455_s30 = sshll.u32 (!%p147_p6), %s170_s26, 9 }
   0xe   : > { %1737 = vmatpush3.bf16.msra.mxu0 (!%p147_p6), %v1734_v3  ;;  %1761 = vmatpush3.bf16.msra.mxu1 (!%p147_p6), %v1734_v3  ;;  %v1750_v16 = vpack.c.bf16 (!%p147_p6), %v265_v15, %v264_v14  ;;  %v2165_v15 = vld [vmem:[%s2569_s2] ss:$0 sm:$0xff] (!%p147_p6)  ;;  %s2171_s12 = scalar_lea.vmem (!%p147_p6), [#allocation2], %s1455_s30  }
   0xf   : > { %1739 = vmatprep.subr.bf16.mxu0 (!%p147_p6), %v1738_v5  ;;  %1757 = vmatprep.subr.bf16.mxu1 (!%p147_p6), %v1738_v5 }
  0x12   : > { %s179_s7 = scalar_select %p178_p7, %s2003_s27, 528  ;;  %1741 = vmatpush3.bf16.msra.mxu0 %v1738_v5  ;;  %1762 = vmatpush3.bf16.msra.mxu1 %v1738_v5 }
  0x13   : > { %1743 = vmatprep.subr.bf16.mxu0 %v1742_v8  ;;  %1758 = vmatprep.subr.bf16.mxu1 %v1742_v8  ;;  %s992_s4 = ssub.s32 (%p1989_p4), 529, %s2003_s27  ;;  %s1541_s5 = sshll.u32 (%p1989_p4), %s1977_s15, 9 }
  0x14   : > { %s1457_s8 = sshll.u32 %s179_s7, 3  ;;  %p993_p8 = scmp.lt.s32.totalorder (%p1989_p4), %s992_s4, 64 }
  0x15   : > { %s2025_s21 = scalar_lea.vmem %s2567_s0, %s1457_s8  ;;  %s2368_s8 = scalar_lea.vmem (%p1989_p4), %s2570_s3, %s1541_s5  }
  0x16   : > { %v192_v11 = vld [vmem:[%s2025_s21] sm:$0xff]  ;;  %1745 = vmatpush3.bf16.msra.mxu0 %v1742_v8  ;;  %1763 = vmatpush3.bf16.msra.mxu1 %v1742_v8  ;;  %v193_v17 = vld [vmem:[%s2025_s21 + $0x8] sm:$0xff]  ;;  %v194_v19 = vld [vmem:[%s2025_s21 + $0x10] sm:$0xff] }
  0x17   : > { %v224_v12 = vld [vmem:[%s2025_s21 + $0x100] sm:$0xff]  ;;  %1638 = vmatprep.mubr.msk.f32.mxu0 %vm273_vm0, %v192_v11  ;;  %1747 = vmatprep.subr.bf16.mxu0 %v1746_v13  ;;  %v225_v18 = vld [vmem:[%s2025_s21 + $0x108] sm:$0xff]  ;;  %v226_v20 = vld [vmem:[%s2025_s21 + $0x110] sm:$0xff] }
  0x18   : > { %1686 = vmatprep.mubr.msk.f32.mxu1 %vm273_vm0, %v224_v12  ;;  %1759 = vmatprep.subr.bf16.mxu1 %v1746_v13  ;;  %v195_v21 = vld [vmem:[%s2025_s21 + $0x18] sm:$0xff]  ;;  %v196_v23 = vld [vmem:[%s2025_s21 + $0x20] sm:$0xff]  ;;  %v197_v25 = vld [vmem:[%s2025_s21 + $0x28] sm:$0xff] }
  0x19   : > { %v227_v22 = vld [vmem:[%s2025_s21 + $0x118] sm:$0xff]  ;;  %v228_v24 = vld [vmem:[%s2025_s21 + $0x120] sm:$0xff]  ;;  %v229_v26 = vld [vmem:[%s2025_s21 + $0x128] sm:$0xff] }
  0x1a   : > { %1749 = vmatpush3.bf16.msra.mxu0 %v1746_v13  ;;  %1764 = vmatpush3.bf16.msra.mxu1 %v1746_v13  ;;  %v198_v27 = vld [vmem:[%s2025_s21 + $0x30] sm:$0xff]  ;;  %v199_v29 = vld [vmem:[%s2025_s21 + $0x38] sm:$0xff]  ;;  %v200_v31 = vld [vmem:[%s2025_s21 + $0x40] sm:$0xff] }
  0x1b   : > { %1752 = vmatprep.subr.msk.bf16.mxu0 %vm1751_vm3, %v1750_v16  ;;  %1760 = vmatprep.subr.msk.bf16.mxu1 %vm1751_vm3, %v1750_v16  ;;  %v230_v28 = vld [vmem:[%s2025_s21 + $0x130] sm:$0xff]  ;;  %v231_v30 = vld [vmem:[%s2025_s21 + $0x138] sm:$0xff]  ;;  %v232_v32 = vld [vmem:[%s2025_s21 + $0x140] sm:$0xff] }
  0x1c   : > { %v201_v33 = vld [vmem:[%s2025_s21 + $0x48] sm:$0xff]  ;;  %v202_v35 = vld [vmem:[%s2025_s21 + $0x50] sm:$0xff]  ;;  %v203_v37 = vld [vmem:[%s2025_s21 + $0x58] sm:$0xff] }
  0x1d   : > { %v233_v34 = vld [vmem:[%s2025_s21 + $0x148] sm:$0xff]  ;;  %v234_v36 = vld [vmem:[%s2025_s21 + $0x150] sm:$0xff]  ;;  %v235_v38 = vld [vmem:[%s2025_s21 + $0x158] sm:$0xff] }
  0x1e   : > { %1755 = vmatpush3.bf16.msk.msra.mxu0 %vm1751_vm3, %v1750_v16  ;;  %1765 = vmatpush3.bf16.msk.msra.mxu1 %vm1751_vm3, %v1750_v16  ;;  %v204_v39 = vld [vmem:[%s2025_s21 + $0x60] sm:$0xff]  ;;  %v205_v41 = vld [vmem:[%s2025_s21 + $0x68] sm:$0xff]  ;;  %v206_v43 = vld [vmem:[%s2025_s21 + $0x70] sm:$0xff] }
  0x1f   : > { %v236_v40 = vld [vmem:[%s2025_s21 + $0x160] sm:$0xff]  ;;  %v237_v42 = vld [vmem:[%s2025_s21 + $0x168] sm:$0xff]  ;;  %v238_v44 = vld [vmem:[%s2025_s21 + $0x170] sm:$0xff] }
  0x20   : > { %v207_v45 = vld [vmem:[%s2025_s21 + $0x78] sm:$0xff]  ;;  %v208_v47 = vld [vmem:[%s2025_s21 + $0x80] sm:$0xff]  ;;  %v209_v49 = vld [vmem:[%s2025_s21 + $0x88] sm:$0xff] }
  0x21   : > { %1639 = vmatmul.mubr.msk.f32.vlgmr.msra.gmra.mrb[0].mxu0 %vm273_vm0, %v193_v17  ;;  %1687 = vmatmul.mubr.msk.f32.vlgmr.msra.gmra.mrb[0].mxu1 %vm273_vm0, %v225_v18  ;;  %v239_v46 = vld [vmem:[%s2025_s21 + $0x178] sm:$0xff]  ;;  %v240_v48 = vld [vmem:[%s2025_s21 + $0x180] sm:$0xff]  ;;  %v241_v50 = vld [vmem:[%s2025_s21 + $0x188] sm:$0xff] }
  0x22   : > { %1641 = vmatprep.mubr.msk.f32.mxu0 %vm273_vm0, %v194_v19  ;;  %1689 = vmatprep.mubr.msk.f32.mxu1 %vm273_vm0, %v226_v20  ;;  %v210_v51 = vld [vmem:[%s2025_s21 + $0x90] sm:$0xff]  ;;  %v211_v53 = vld [vmem:[%s2025_s21 + $0x98] sm:$0xff]  ;;  %v212_v55 = vld [vmem:[%s2025_s21 + $0xa0] sm:$0xff] }
  0x23   : > { %v242_v52 = vld [vmem:[%s2025_s21 + $0x190] sm:$0xff]  ;;  %v243_v54 = vld [vmem:[%s2025_s21 + $0x198] sm:$0xff]  ;;  %v244_v56 = vld [vmem:[%s2025_s21 + $0x1a0] sm:$0xff] }
  0x24   : > { %v213_v57 = vld [vmem:[%s2025_s21 + $0xa8] sm:$0xff]  ;;  %v214_v59 = vld [vmem:[%s2025_s21 + $0xb0] sm:$0xff]  ;;  %v215_v61 = vld [vmem:[%s2025_s21 + $0xb8] sm:$0xff] }
  0x25   : > { %1642 = vmatmul.mubr.msk.f32.gmra.mrb[2].mxu0 %vm273_vm0, %v195_v21  ;;  %1690 = vmatmul.mubr.msk.f32.gmra.mrb[2].mxu1 %vm273_vm0, %v227_v22  ;;  %v245_v58 = vld [vmem:[%s2025_s21 + $0x1a8] sm:$0xff]  ;;  %v246_v60 = vld [vmem:[%s2025_s21 + $0x1b0] sm:$0xff]  ;;  %v247_v62 = vld [vmem:[%s2025_s21 + $0x1b8] sm:$0xff] }
  0x26   : > { %1644 = vmatprep.mubr.msk.f32.mxu0 %vm273_vm0, %v196_v23  ;;  %1692 = vmatprep.mubr.msk.f32.mxu1 %vm273_vm0, %v228_v24  ;;  %v216_v63 = vld [vmem:[%s2025_s21 + $0xc0] sm:$0xff]  ;;  %v217_v1 = vld [vmem:[%s2025_s21 + $0xc8] sm:$0xff]  ;;  %v218_v3 = vld [vmem:[%s2025_s21 + $0xd0] sm:$0xff] }
  0x27   : > { %v248_v0 = vld [vmem:[%s2025_s21 + $0x1c0] sm:$0xff]  ;;  %v249_v2 = vld [vmem:[%s2025_s21 + $0x1c8] sm:$0xff]  ;;  %v250_v4 = vld [vmem:[%s2025_s21 + $0x1d0] sm:$0xff] }
  0x28   : > { %v219_v5 = vld [vmem:[%s2025_s21 + $0xd8] sm:$0xff]  ;;  %v220_v7 = vld [vmem:[%s2025_s21 + $0xe0] sm:$0xff]  ;;  %v221_v9 = vld [vmem:[%s2025_s21 + $0xe8] sm:$0xff] }
  0x29   : > { %1645 = vmatmul.mubr.msk.f32.gmra.mrb[4].mxu0 %vm273_vm0, %v197_v25  ;;  %1693 = vmatmul.mubr.msk.f32.gmra.mrb[4].mxu1 %vm273_vm0, %v229_v26  ;;  %v251_v6 = vld [vmem:[%s2025_s21 + $0x1d8] sm:$0xff]  ;;  %v252_v8 = vld [vmem:[%s2025_s21 + $0x1e0] sm:$0xff]  ;;  %v253_v10 = vld [vmem:[%s2025_s21 + $0x1e8] sm:$0xff] }
  0x2a   : > { %1647 = vmatprep.mubr.msk.f32.mxu0 %vm273_vm0, %v198_v27  ;;  %1695 = vmatprep.mubr.msk.f32.mxu1 %vm273_vm0, %v230_v28  ;;  %v222_v11 = vld [vmem:[%s2025_s21 + $0xf0] sm:$0xff]  ;;  %v223_v13 = vld [vmem:[%s2025_s21 + $0xf8] sm:$0xff] }
  0x2b   : > { %v254_v12 = vld [vmem:[%s2025_s21 + $0x1f0] sm:$0xff]  ;;  %v255_v14 = vld [vmem:[%s2025_s21 + $0x1f8] sm:$0xff] }
  0x2d   : > { %1648 = vmatmul.mubr.msk.f32.gmra.mrb[6].mxu0 %vm273_vm0, %v199_v29  ;;  %1696 = vmatmul.mubr.msk.f32.gmra.mrb[6].mxu1 %vm273_vm0, %v231_v30 }
  0x2e   : > { %1650 = vmatprep.mubr.msk.f32.mxu0 %vm273_vm0, %v200_v31  ;;  %1698 = vmatprep.mubr.msk.f32.mxu1 %vm273_vm0, %v232_v32 }
  0x31   : > { %1651 = vmatmul.mubr.msk.f32.gmra.mrb[8].mxu0 %vm273_vm0, %v201_v33  ;;  %1699 = vmatmul.mubr.msk.f32.gmra.mrb[8].mxu1 %vm273_vm0, %v233_v34 }
  0x32   : > { %1653 = vmatprep.mubr.msk.f32.mxu0 %vm273_vm0, %v202_v35  ;;  %1701 = vmatprep.mubr.msk.f32.mxu1 %vm273_vm0, %v234_v36 }
  0x35   : > { %1654 = vmatmul.mubr.msk.f32.gmra.mrb[10].mxu0 %vm273_vm0, %v203_v37  ;;  %1702 = vmatmul.mubr.msk.f32.gmra.mrb[10].mxu1 %vm273_vm0, %v235_v38 }
  0x36   : > { %1656 = vmatprep.mubr.msk.f32.mxu0 %vm273_vm0, %v204_v39  ;;  %1704 = vmatprep.mubr.msk.f32.mxu1 %vm273_vm0, %v236_v40 }
  0x39   : > { %1657 = vmatmul.mubr.msk.f32.gmra.mrb[12].mxu0 %vm273_vm0, %v205_v41  ;;  %1705 = vmatmul.mubr.msk.f32.gmra.mrb[12].mxu1 %vm273_vm0, %v237_v42 }
  0x3a   : > { %1659 = vmatprep.mubr.msk.f32.mxu0 %vm273_vm0, %v206_v43  ;;  %1707 = vmatprep.mubr.msk.f32.mxu1 %vm273_vm0, %v238_v44 }
  0x3d   : > { %1660 = vmatmul.mubr.msk.f32.gmra.mrb[14].mxu0 %vm273_vm0, %v207_v45  ;;  %1708 = vmatmul.mubr.msk.f32.gmra.mrb[14].mxu1 %vm273_vm0, %v239_v46 }
  0x3e   : > { %1662 = vmatprep.mubr.msk.f32.mxu0 %vm273_vm0, %v208_v47  ;;  %1710 = vmatprep.mubr.msk.f32.mxu1 %vm273_vm0, %v240_v48 }
  0x41   : > { %1663 = vmatmul.mubr.msk.f32.gmra.mrb[16].mxu0 %vm273_vm0, %v209_v49  ;;  %1711 = vmatmul.mubr.msk.f32.gmra.mrb[16].mxu1 %vm273_vm0, %v241_v50 }
  0x42   : > { %1665 = vmatprep.mubr.msk.f32.mxu0 %vm273_vm0, %v210_v51  ;;  %1713 = vmatprep.mubr.msk.f32.mxu1 %vm273_vm0, %v242_v52 }
  0x45   : > { %1666 = vmatmul.mubr.msk.f32.gmra.mrb[18].mxu0 %vm273_vm0, %v211_v53  ;;  %1714 = vmatmul.mubr.msk.f32.gmra.mrb[18].mxu1 %vm273_vm0, %v243_v54 }
  0x46   : > { %1668 = vmatprep.mubr.msk.f32.mxu0 %vm273_vm0, %v212_v55  ;;  %1716 = vmatprep.mubr.msk.f32.mxu1 %vm273_vm0, %v244_v56 }
  0x49   : > { %1669 = vmatmul.mubr.msk.f32.gmra.mrb[20].mxu0 %vm273_vm0, %v213_v57  ;;  %1717 = vmatmul.mubr.msk.f32.gmra.mrb[20].mxu1 %vm273_vm0, %v245_v58 }
  0x4a   : > { %1671 = vmatprep.mubr.msk.f32.mxu0 %vm273_vm0, %v214_v59  ;;  %1719 = vmatprep.mubr.msk.f32.mxu1 %vm273_vm0, %v246_v60 }
  0x4d   : > { %1672 = vmatmul.mubr.msk.f32.gmra.mrb[22].mxu0 %vm273_vm0, %v215_v61  ;;  %1720 = vmatmul.mubr.msk.f32.gmra.mrb[22].mxu1 %vm273_vm0, %v247_v62 }
  0x4e   : > { %1674 = vmatprep.mubr.msk.f32.mxu0 %vm273_vm0, %v216_v63  ;;  %1722 = vmatprep.mubr.msk.f32.mxu1 %vm273_vm0, %v248_v0 }
  0x51   : > { %1675 = vmatmul.mubr.msk.f32.gmra.mrb[24].mxu0 %vm273_vm0, %v217_v1  ;;  %1723 = vmatmul.mubr.msk.f32.gmra.mrb[24].mxu1 %vm273_vm0, %v249_v2 }
  0x52   : > { %1677 = vmatprep.mubr.msk.f32.mxu0 %vm273_vm0, %v218_v3  ;;  %1725 = vmatprep.mubr.msk.f32.mxu1 %vm273_vm0, %v250_v4 }
  0x55   : > { %1678 = vmatmul.mubr.msk.f32.gmra.mrb[26].mxu0 %vm273_vm0, %v219_v5  ;;  %1726 = vmatmul.mubr.msk.f32.gmra.mrb[26].mxu1 %vm273_vm0, %v251_v6 }
  0x56   : > { %1680 = vmatprep.mubr.msk.f32.mxu0 %vm273_vm0, %v220_v7  ;;  %1728 = vmatprep.mubr.msk.f32.mxu1 %vm273_vm0, %v252_v8 }
  0x59   : > { %1681 = vmatmul.mubr.msk.f32.gmra.mrb[28].mxu0 %vm273_vm0, %v221_v9  ;;  %1729 = vmatmul.mubr.msk.f32.gmra.mrb[28].mxu1 %vm273_vm0, %v253_v10 }
  0x5a   : > { %1683 = vmatprep.mubr.msk.f32.mxu0 %vm273_vm0, %v222_v11  ;;  %1731 = vmatprep.mubr.msk.f32.mxu1 %vm273_vm0, %v254_v12 }
  0x5d   : > { %1684 = vmatmul.mubr.msk.f32.gmra.mrb[30].mxu0 %vm273_vm0, %v223_v13  ;;  %1732 = vmatmul.mubr.msk.f32.gmra.mrb[30].mxu1 %vm273_vm0, %v255_v14 }
  0xf4   : > { %v1640_v16 = vpop.f32.mrb[0].mxu0  ;;  %v1688_v17 = vpop.f32.mrb[0].mxu1 }
  0xf5   : > { %v542_v18 = vadd.f32 %v1640_v16, %v2165_v15  ;;  %v702_v19 = vadd.f32 %v1688_v17, %v2165_v15  ;;  %v536_v20 = vpop.f32.mrb[1].mxu0  ;;  %v696_v21 = vpop.f32.mrb[1].mxu1 }
  0xf6   : > { %v537_v22 = vadd.f32 %v2165_v15, %v536_v20  ;;  %v697_v23 = vadd.f32 %v2165_v15, %v696_v21 }
  0xf7   : > { %v856_v24 = vmax.f32 %v542_v18, 0.0  ;;  %v888_v25 = vmax.f32 %v702_v19, 0.0 }
  0xf8   : > { %v855_v26 = vmax.f32 %v537_v22, 0.0  ;;  %v887_v27 = vmax.f32 %v697_v23, 0.0  ;;  %v1643_v28 = vpop.f32.mrb[2].mxu0  ;;  %v1691_v29 = vpop.f32.mrb[2].mxu1 }
  0xf9   : > { %921 = vst.msk [vmem:[%s2171_s12 + $0x8] sm:$0xff] %vm919_vm4, %v856_v24  ;;  %953 = vst.msk [vmem:[%s2171_s12 + $0x108] sm:$0xff] %vm919_vm4, %v888_v25  ;;  %v552_v30 = vadd.f32 %v1643_v28, %v2165_v15  ;;  %v712_v31 = vadd.f32 %v1691_v29, %v2165_v15  ;;  %v546_v32 = vpop.f32.mrb[3].mxu0  ;;  %v706_v33 = vpop.f32.mrb[3].mxu1 }
  0xfa   : > { %920 = vst.msk [vmem:[%s2171_s12] sm:$0xff] %vm919_vm4, %v855_v26  ;;  %952 = vst.msk [vmem:[%s2171_s12 + $0x100] sm:$0xff] %vm919_vm4, %v887_v27  ;;  %v547_v34 = vadd.f32 %v2165_v15, %v546_v32  ;;  %v707_v35 = vadd.f32 %v2165_v15, %v706_v33 }
  0xfb   : > { %v858_v36 = vmax.f32 %v552_v30, 0.0  ;;  %v890_v37 = vmax.f32 %v712_v31, 0.0 }
  0xfc   : > { %v857_v38 = vmax.f32 %v547_v34, 0.0  ;;  %v889_v39 = vmax.f32 %v707_v35, 0.0  ;;  %v1646_v40 = vpop.f32.mrb[4].mxu0  ;;  %v1694_v41 = vpop.f32.mrb[4].mxu1 }
  0xfd   : > { %923 = vst.msk [vmem:[%s2171_s12 + $0x18] sm:$0xff] %vm919_vm4, %v858_v36  ;;  %955 = vst.msk [vmem:[%s2171_s12 + $0x118] sm:$0xff] %vm919_vm4, %v890_v37  ;;  %v562_v42 = vadd.f32 %v1646_v40, %v2165_v15  ;;  %v722_v43 = vadd.f32 %v1694_v41, %v2165_v15  ;;  %v556_v44 = vpop.f32.mrb[5].mxu0  ;;  %v716_v45 = vpop.f32.mrb[5].mxu1 }
  0xfe   : > { %922 = vst.msk [vmem:[%s2171_s12 + $0x10] sm:$0xff] %vm919_vm4, %v857_v38  ;;  %954 = vst.msk [vmem:[%s2171_s12 + $0x110] sm:$0xff] %vm919_vm4, %v889_v39  ;;  %v557_v46 = vadd.f32 %v2165_v15, %v556_v44  ;;  %v717_v47 = vadd.f32 %v2165_v15, %v716_v45 }
  0xff   : > { %v860_v48 = vmax.f32 %v562_v42, 0.0  ;;  %v892_v49 = vmax.f32 %v722_v43, 0.0 }
 0x100   : > { %v859_v50 = vmax.f32 %v557_v46, 0.0  ;;  %v891_v51 = vmax.f32 %v717_v47, 0.0  ;;  %v1649_v52 = vpop.f32.mrb[6].mxu0  ;;  %v1697_v53 = vpop.f32.mrb[6].mxu1 }
 0x101   : > { %925 = vst.msk [vmem:[%s2171_s12 + $0x28] sm:$0xff] %vm919_vm4, %v860_v48  ;;  %957 = vst.msk [vmem:[%s2171_s12 + $0x128] sm:$0xff] %vm919_vm4, %v892_v49  ;;  %v572_v54 = vadd.f32 %v1649_v52, %v2165_v15  ;;  %v732_v55 = vadd.f32 %v1697_v53, %v2165_v15  ;;  %v566_v56 = vpop.f32.mrb[7].mxu0  ;;  %v726_v57 = vpop.f32.mrb[7].mxu1 }
 0x102   : > { %924 = vst.msk [vmem:[%s2171_s12 + $0x20] sm:$0xff] %vm919_vm4, %v859_v50  ;;  %956 = vst.msk [vmem:[%s2171_s12 + $0x120] sm:$0xff] %vm919_vm4, %v891_v51  ;;  %v567_v58 = vadd.f32 %v2165_v15, %v566_v56  ;;  %v727_v59 = vadd.f32 %v2165_v15, %v726_v57 }
 0x103   : > { %v862_v60 = vmax.f32 %v572_v54, 0.0  ;;  %v894_v61 = vmax.f32 %v732_v55, 0.0 }
 0x104   : > { %v861_v62 = vmax.f32 %v567_v58, 0.0  ;;  %v893_v63 = vmax.f32 %v727_v59, 0.0  ;;  %v1652_v0 = vpop.f32.mrb[8].mxu0  ;;  %v1700_v1 = vpop.f32.mrb[8].mxu1 }
 0x105   : > { %927 = vst.msk [vmem:[%s2171_s12 + $0x38] sm:$0xff] %vm919_vm4, %v862_v60  ;;  %959 = vst.msk [vmem:[%s2171_s12 + $0x138] sm:$0xff] %vm919_vm4, %v894_v61  ;;  %v582_v2 = vadd.f32 %v1652_v0, %v2165_v15  ;;  %v742_v3 = vadd.f32 %v1700_v1, %v2165_v15  ;;  %v576_v4 = vpop.f32.mrb[9].mxu0  ;;  %v736_v5 = vpop.f32.mrb[9].mxu1 }
 0x106   : > { %926 = vst.msk [vmem:[%s2171_s12 + $0x30] sm:$0xff] %vm919_vm4, %v861_v62  ;;  %958 = vst.msk [vmem:[%s2171_s12 + $0x130] sm:$0xff] %vm919_vm4, %v893_v63  ;;  %v577_v6 = vadd.f32 %v2165_v15, %v576_v4  ;;  %v737_v7 = vadd.f32 %v2165_v15, %v736_v5 }
 0x107   : > { %v864_v8 = vmax.f32 %v582_v2, 0.0  ;;  %v896_v9 = vmax.f32 %v742_v3, 0.0 }
 0x108   : > { %v863_v10 = vmax.f32 %v577_v6, 0.0  ;;  %v895_v11 = vmax.f32 %v737_v7, 0.0  ;;  %v1655_v12 = vpop.f32.mrb[10].mxu0  ;;  %v1703_v13 = vpop.f32.mrb[10].mxu1 }
 0x109   : > { %929 = vst.msk [vmem:[%s2171_s12 + $0x48] sm:$0xff] %vm919_vm4, %v864_v8  ;;  %961 = vst.msk [vmem:[%s2171_s12 + $0x148] sm:$0xff] %vm919_vm4, %v896_v9  ;;  %v592_v14 = vadd.f32 %v1655_v12, %v2165_v15  ;;  %v752_v16 = vadd.f32 %v1703_v13, %v2165_v15  ;;  %v586_v17 = vpop.f32.mrb[11].mxu0  ;;  %v746_v18 = vpop.f32.mrb[11].mxu1 }
 0x10a   : > { %928 = vst.msk [vmem:[%s2171_s12 + $0x40] sm:$0xff] %vm919_vm4, %v863_v10  ;;  %960 = vst.msk [vmem:[%s2171_s12 + $0x140] sm:$0xff] %vm919_vm4, %v895_v11  ;;  %v587_v19 = vadd.f32 %v2165_v15, %v586_v17  ;;  %v747_v20 = vadd.f32 %v2165_v15, %v746_v18 }
 0x10b   : > { %v866_v21 = vmax.f32 %v592_v14, 0.0  ;;  %v898_v22 = vmax.f32 %v752_v16, 0.0 }
 0x10c   : > { %v865_v23 = vmax.f32 %v587_v19, 0.0  ;;  %v897_v24 = vmax.f32 %v747_v20, 0.0  ;;  %v1658_v25 = vpop.f32.mrb[12].mxu0  ;;  %v1706_v26 = vpop.f32.mrb[12].mxu1 }
 0x10d   : > { %931 = vst.msk [vmem:[%s2171_s12 + $0x58] sm:$0xff] %vm919_vm4, %v866_v21  ;;  %963 = vst.msk [vmem:[%s2171_s12 + $0x158] sm:$0xff] %vm919_vm4, %v898_v22  ;;  %v602_v27 = vadd.f32 %v1658_v25, %v2165_v15  ;;  %v762_v28 = vadd.f32 %v1706_v26, %v2165_v15  ;;  %v596_v29 = vpop.f32.mrb[13].mxu0  ;;  %v756_v30 = vpop.f32.mrb[13].mxu1 }
 0x10e   : > { %930 = vst.msk [vmem:[%s2171_s12 + $0x50] sm:$0xff] %vm919_vm4, %v865_v23  ;;  %962 = vst.msk [vmem:[%s2171_s12 + $0x150] sm:$0xff] %vm919_vm4, %v897_v24  ;;  %v597_v31 = vadd.f32 %v2165_v15, %v596_v29  ;;  %v757_v32 = vadd.f32 %v2165_v15, %v756_v30 }
 0x10f   : > { %v868_v33 = vmax.f32 %v602_v27, 0.0  ;;  %v900_v34 = vmax.f32 %v762_v28, 0.0 }
 0x110   : > { %v867_v35 = vmax.f32 %v597_v31, 0.0  ;;  %v899_v36 = vmax.f32 %v757_v32, 0.0  ;;  %v1661_v37 = vpop.f32.mrb[14].mxu0  ;;  %v1709_v38 = vpop.f32.mrb[14].mxu1 }
 0x111   : > { %933 = vst.msk [vmem:[%s2171_s12 + $0x68] sm:$0xff] %vm919_vm4, %v868_v33  ;;  %965 = vst.msk [vmem:[%s2171_s12 + $0x168] sm:$0xff] %vm919_vm4, %v900_v34  ;;  %v612_v39 = vadd.f32 %v1661_v37, %v2165_v15  ;;  %v772_v40 = vadd.f32 %v1709_v38, %v2165_v15  ;;  %v606_v41 = vpop.f32.mrb[15].mxu0  ;;  %v766_v42 = vpop.f32.mrb[15].mxu1 }
 0x112   : > { %932 = vst.msk [vmem:[%s2171_s12 + $0x60] sm:$0xff] %vm919_vm4, %v867_v35  ;;  %964 = vst.msk [vmem:[%s2171_s12 + $0x160] sm:$0xff] %vm919_vm4, %v899_v36  ;;  %v607_v43 = vadd.f32 %v2165_v15, %v606_v41  ;;  %v767_v44 = vadd.f32 %v2165_v15, %v766_v42 }
 0x113   : > { %v870_v45 = vmax.f32 %v612_v39, 0.0  ;;  %v902_v46 = vmax.f32 %v772_v40, 0.0 }
 0x114   : > { %v869_v47 = vmax.f32 %v607_v43, 0.0  ;;  %v901_v48 = vmax.f32 %v767_v44, 0.0  ;;  %v1664_v49 = vpop.f32.mrb[16].mxu0  ;;  %v1712_v50 = vpop.f32.mrb[16].mxu1 }
 0x115   : > { %935 = vst.msk [vmem:[%s2171_s12 + $0x78] sm:$0xff] %vm919_vm4, %v870_v45  ;;  %967 = vst.msk [vmem:[%s2171_s12 + $0x178] sm:$0xff] %vm919_vm4, %v902_v46  ;;  %v622_v51 = vadd.f32 %v1664_v49, %v2165_v15  ;;  %v782_v52 = vadd.f32 %v1712_v50, %v2165_v15  ;;  %v616_v53 = vpop.f32.mrb[17].mxu0  ;;  %v776_v54 = vpop.f32.mrb[17].mxu1 }
 0x116   : > { %934 = vst.msk [vmem:[%s2171_s12 + $0x70] sm:$0xff] %vm919_vm4, %v869_v47  ;;  %966 = vst.msk [vmem:[%s2171_s12 + $0x170] sm:$0xff] %vm919_vm4, %v901_v48  ;;  %v617_v55 = vadd.f32 %v2165_v15, %v616_v53  ;;  %v777_v56 = vadd.f32 %v2165_v15, %v776_v54 }
 0x117   : > { %v872_v57 = vmax.f32 %v622_v51, 0.0  ;;  %v904_v58 = vmax.f32 %v782_v52, 0.0 }
 0x118   : > { %v871_v59 = vmax.f32 %v617_v55, 0.0  ;;  %v903_v60 = vmax.f32 %v777_v56, 0.0  ;;  %v1667_v61 = vpop.f32.mrb[18].mxu0  ;;  %v1715_v62 = vpop.f32.mrb[18].mxu1 }
 0x119   : > { %937 = vst.msk [vmem:[%s2171_s12 + $0x88] sm:$0xff] %vm919_vm4, %v872_v57  ;;  %969 = vst.msk [vmem:[%s2171_s12 + $0x188] sm:$0xff] %vm919_vm4, %v904_v58  ;;  %v632_v63 = vadd.f32 %v1667_v61, %v2165_v15  ;;  %v792_v0 = vadd.f32 %v1715_v62, %v2165_v15  ;;  %v626_v1 = vpop.f32.mrb[19].mxu0  ;;  %v786_v2 = vpop.f32.mrb[19].mxu1 }
 0x11a   : > { %936 = vst.msk [vmem:[%s2171_s12 + $0x80] sm:$0xff] %vm919_vm4, %v871_v59  ;;  %968 = vst.msk [vmem:[%s2171_s12 + $0x180] sm:$0xff] %vm919_vm4, %v903_v60  ;;  %v627_v3 = vadd.f32 %v2165_v15, %v626_v1  ;;  %v787_v4 = vadd.f32 %v2165_v15, %v786_v2 }
 0x11b   : > { %v874_v5 = vmax.f32 %v632_v63, 0.0  ;;  %v906_v6 = vmax.f32 %v792_v0, 0.0 }
 0x11c   : > { %v873_v7 = vmax.f32 %v627_v3, 0.0  ;;  %v905_v8 = vmax.f32 %v787_v4, 0.0  ;;  %v1670_v9 = vpop.f32.mrb[20].mxu0  ;;  %v1718_v10 = vpop.f32.mrb[20].mxu1 }
 0x11d   : > { %939 = vst.msk [vmem:[%s2171_s12 + $0x98] sm:$0xff] %vm919_vm4, %v874_v5  ;;  %971 = vst.msk [vmem:[%s2171_s12 + $0x198] sm:$0xff] %vm919_vm4, %v906_v6  ;;  %v642_v11 = vadd.f32 %v1670_v9, %v2165_v15  ;;  %v802_v12 = vadd.f32 %v1718_v10, %v2165_v15  ;;  %v636_v13 = vpop.f32.mrb[21].mxu0  ;;  %v796_v14 = vpop.f32.mrb[21].mxu1 }
 0x11e   : > { %938 = vst.msk [vmem:[%s2171_s12 + $0x90] sm:$0xff] %vm919_vm4, %v873_v7  ;;  %970 = vst.msk [vmem:[%s2171_s12 + $0x190] sm:$0xff] %vm919_vm4, %v905_v8  ;;  %v637_v16 = vadd.f32 %v2165_v15, %v636_v13  ;;  %v797_v17 = vadd.f32 %v2165_v15, %v796_v14 }
 0x11f   : > { %v876_v18 = vmax.f32 %v642_v11, 0.0  ;;  %v908_v19 = vmax.f32 %v802_v12, 0.0 }
 0x120   : > { %v875_v20 = vmax.f32 %v637_v16, 0.0  ;;  %v907_v21 = vmax.f32 %v797_v17, 0.0  ;;  %v1673_v22 = vpop.f32.mrb[22].mxu0  ;;  %v1721_v23 = vpop.f32.mrb[22].mxu1 }
 0x121   : > { %941 = vst.msk [vmem:[%s2171_s12 + $0xa8] sm:$0xff] %vm919_vm4, %v876_v18  ;;  %973 = vst.msk [vmem:[%s2171_s12 + $0x1a8] sm:$0xff] %vm919_vm4, %v908_v19  ;;  %v652_v24 = vadd.f32 %v1673_v22, %v2165_v15  ;;  %v812_v25 = vadd.f32 %v1721_v23, %v2165_v15  ;;  %v646_v26 = vpop.f32.mrb[23].mxu0  ;;  %v806_v27 = vpop.f32.mrb[23].mxu1 }
 0x122   : > { %940 = vst.msk [vmem:[%s2171_s12 + $0xa0] sm:$0xff] %vm919_vm4, %v875_v20  ;;  %972 = vst.msk [vmem:[%s2171_s12 + $0x1a0] sm:$0xff] %vm919_vm4, %v907_v21  ;;  %v647_v28 = vadd.f32 %v2165_v15, %v646_v26  ;;  %v807_v29 = vadd.f32 %v2165_v15, %v806_v27 }
 0x123   : > { %v878_v30 = vmax.f32 %v652_v24, 0.0  ;;  %v910_v31 = vmax.f32 %v812_v25, 0.0 }
 0x124   : > { %v877_v32 = vmax.f32 %v647_v28, 0.0  ;;  %v909_v33 = vmax.f32 %v807_v29, 0.0  ;;  %v1676_v34 = vpop.f32.mrb[24].mxu0  ;;  %v1724_v35 = vpop.f32.mrb[24].mxu1 }
 0x125   : > { %943 = vst.msk [vmem:[%s2171_s12 + $0xb8] sm:$0xff] %vm919_vm4, %v878_v30  ;;  %975 = vst.msk [vmem:[%s2171_s12 + $0x1b8] sm:$0xff] %vm919_vm4, %v910_v31  ;;  %v662_v36 = vadd.f32 %v1676_v34, %v2165_v15  ;;  %v822_v37 = vadd.f32 %v1724_v35, %v2165_v15  ;;  %v656_v38 = vpop.f32.mrb[25].mxu0  ;;  %v816_v39 = vpop.f32.mrb[25].mxu1 }
 0x126   : > { %942 = vst.msk [vmem:[%s2171_s12 + $0xb0] sm:$0xff] %vm919_vm4, %v877_v32  ;;  %974 = vst.msk [vmem:[%s2171_s12 + $0x1b0] sm:$0xff] %vm919_vm4, %v909_v33  ;;  %v657_v40 = vadd.f32 %v2165_v15, %v656_v38  ;;  %v817_v41 = vadd.f32 %v2165_v15, %v816_v39 }
 0x127   : > { %v880_v42 = vmax.f32 %v662_v36, 0.0  ;;  %v912_v43 = vmax.f32 %v822_v37, 0.0 }
 0x128   : > { %v879_v44 = vmax.f32 %v657_v40, 0.0  ;;  %v911_v45 = vmax.f32 %v817_v41, 0.0  ;;  %v1679_v46 = vpop.f32.mrb[26].mxu0  ;;  %v1727_v47 = vpop.f32.mrb[26].mxu1 }
 0x129   : > { %945 = vst.msk [vmem:[%s2171_s12 + $0xc8] sm:$0xff] %vm919_vm4, %v880_v42  ;;  %977 = vst.msk [vmem:[%s2171_s12 + $0x1c8] sm:$0xff] %vm919_vm4, %v912_v43  ;;  %v672_v48 = vadd.f32 %v1679_v46, %v2165_v15  ;;  %v832_v49 = vadd.f32 %v1727_v47, %v2165_v15  ;;  %v666_v50 = vpop.f32.mrb[27].mxu0  ;;  %v826_v51 = vpop.f32.mrb[27].mxu1 }
 0x12a   : > { %944 = vst.msk [vmem:[%s2171_s12 + $0xc0] sm:$0xff] %vm919_vm4, %v879_v44  ;;  %976 = vst.msk [vmem:[%s2171_s12 + $0x1c0] sm:$0xff] %vm919_vm4, %v911_v45  ;;  %v667_v52 = vadd.f32 %v2165_v15, %v666_v50  ;;  %v827_v53 = vadd.f32 %v2165_v15, %v826_v51 }
 0x12b   : > { %v882_v54 = vmax.f32 %v672_v48, 0.0  ;;  %v914_v55 = vmax.f32 %v832_v49, 0.0 }
 0x12c   : > { %v881_v56 = vmax.f32 %v667_v52, 0.0  ;;  %v913_v57 = vmax.f32 %v827_v53, 0.0  ;;  %v1682_v58 = vpop.f32.mrb[28].mxu0  ;;  %v1730_v59 = vpop.f32.mrb[28].mxu1 }
 0x12d   : > { %947 = vst.msk [vmem:[%s2171_s12 + $0xd8] sm:$0xff] %vm919_vm4, %v882_v54  ;;  %979 = vst.msk [vmem:[%s2171_s12 + $0x1d8] sm:$0xff] %vm919_vm4, %v914_v55  ;;  %v682_v60 = vadd.f32 %v1682_v58, %v2165_v15  ;;  %v842_v61 = vadd.f32 %v1730_v59, %v2165_v15  ;;  %v676_v62 = vpop.f32.mrb[29].mxu0  ;;  %v836_v63 = vpop.f32.mrb[29].mxu1 }
 0x12e   : > { %946 = vst.msk [vmem:[%s2171_s12 + $0xd0] sm:$0xff] %vm919_vm4, %v881_v56  ;;  %978 = vst.msk [vmem:[%s2171_s12 + $0x1d0] sm:$0xff] %vm919_vm4, %v913_v57  ;;  %v677_v0 = vadd.f32 %v2165_v15, %v676_v62  ;;  %v837_v1 = vadd.f32 %v2165_v15, %v836_v63 }
 0x12f   : > { %v884_v2 = vmax.f32 %v682_v60, 0.0  ;;  %v916_v3 = vmax.f32 %v842_v61, 0.0 }
 0x130   : > { %v883_v4 = vmax.f32 %v677_v0, 0.0  ;;  %v915_v5 = vmax.f32 %v837_v1, 0.0  ;;  %v1685_v6 = vpop.f32.mrb[30].mxu0  ;;  %v1733_v7 = vpop.f32.mrb[30].mxu1  ;;  %990 = sbr.rel (!%p1989_p4) target bundleno = 383 (0x17f), region = 36 }
 0x131   : > { %949 = vst.msk [vmem:[%s2171_s12 + $0xe8] sm:$0xff] %vm919_vm4, %v884_v2  ;;  %981 = vst.msk [vmem:[%s2171_s12 + $0x1e8] sm:$0xff] %vm919_vm4, %v916_v3  ;;  %v692_v8 = vadd.f32 %v1685_v6, %v2165_v15  ;;  %v852_v9 = vadd.f32 %v1733_v7, %v2165_v15  ;;  %v686_v10 = vpop.f32.mrb[31].mxu0  ;;  %v846_v11 = vpop.f32.mrb[31].mxu1 }
 0x132   : > { %948 = vst.msk [vmem:[%s2171_s12 + $0xe0] sm:$0xff] %vm919_vm4, %v883_v4  ;;  %980 = vst.msk [vmem:[%s2171_s12 + $0x1e0] sm:$0xff] %vm919_vm4, %v915_v5  ;;  %v687_v12 = vadd.f32 %v2165_v15, %v686_v10  ;;  %v847_v13 = vadd.f32 %v2165_v15, %v846_v11 }
 0x133   : > { %v886_v14 = vmax.f32 %v692_v8, 0.0  ;;  %v918_v16 = vmax.f32 %v852_v9, 0.0 }
 0x134   : > { %v885_v17 = vmax.f32 %v687_v12, 0.0  ;;  %v917_v18 = vmax.f32 %v847_v13, 0.0 }
 0x135   : > { %951 = vst.msk [vmem:[%s2171_s12 + $0xf8] sm:$0xff] %vm919_vm4, %v886_v14  ;;  %983 = vst.msk [vmem:[%s2171_s12 + $0x1f8] sm:$0xff] %vm919_vm4, %v918_v16 }
 0x136   : > { %950 = vst.msk [vmem:[%s2171_s12 + $0xf0] sm:$0xff] %vm919_vm4, %v885_v17  ;;  %982 = vst.msk [vmem:[%s2171_s12 + $0x1f0] sm:$0xff] %vm919_vm4, %v917_v18 }
 0x137   : > { %s2581_s4 = smov (!%p993_p8, %s992_s4), 64 }
 0x138   : > { %s1526_s9 = sshll.u32 %s2581_s4, 7 }
 0x139   : > { %p1529_p9 = scmp.eq.s32.totalorder %s1526_s9, 0 }
 0x13a   : > { %s2374_s10 = sshrl.u32 (!%p1529_p9), %s2581_s4, 6 }
 0x13b   : > { %1001 = sbr.rel (%p1529_p9) target bundleno = 383 (0x17f), region = 40  ;;  %p1530_p10 = scmp.le.s32.totalorder (!%p1529_p9), %s2374_s10, 0 }
 0x142   : > { %1407 = sbr.rel (%p1530_p10) target bundleno = 362 (0x16a), region = 116  ;;  %s2572_s15 = smov (!%p1530_p10), %s2368_s8 }
 0x143   : > { %s2573_s20 = smov (!%p1530_p10), %s2171_s12  ;;  %s2383_s27 = smov (!%p1530_p10), 0  }
 0x144   : > { %s2385_s11 = smov (!%p1530_p10), 0  }
 0x149 LB: >> { %v1189_v15 = vld [vmem:[%s1917_s20] sm:$0xff]  ;;  %v1191_v19 = vld [vmem:[%s1917_s20 + $0x8] sm:$0xff]  ;;  %v1193_v20 = vld [vmem:[%s1917_s20 + $0x10] sm:$0xff]  ;;  %s1317_s14 = sadd.s32 1, %s1921_s27  ;;  %s1183_s11 = sadd.s32 1, %s1925_s11   ;;  %s1925_s11 = sphi %s2385_s11, %s1183_s11   ;;  %s1921_s27 = sphi %s2383_s27, %s2576_s27   ;;  %s1917_s20 = sphi %s2573_s20, %s2575_s20   ;;  %s1913_s15 = sphi %s2572_s15, %s2574_s15  }
 0x14a   : >> { %1190 = vst [vmem:[%s1913_s15] sm:$0xff] %v1189_v15  ;;  %1192 = vst [vmem:[%s1913_s15 + $0x8] sm:$0xff] %v1191_v19  ;;  %v1195_v21 = vld [vmem:[%s1917_s20 + $0x18] sm:$0xff]  ;;  %v1197_v22 = vld [vmem:[%s1917_s20 + $0x20] sm:$0xff]  ;;  %p1318_p11 = scmp.ge.s32.totalorder %s1317_s14, %s2374_s10  ;;  %p1182_p12 = scmp.ge.s32.totalorder %s1183_s11, %s2374_s10 }
 0x14b   : >> { %1194 = vst [vmem:[%s1913_s15 + $0x10] sm:$0xff] %v1193_v20  ;;  %v1199_v23 = vld [vmem:[%s1917_s20 + $0x28] sm:$0xff]  ;;  %1196 = vst [vmem:[%s1913_s15 + $0x18] sm:$0xff] %v1195_v21  ;;  %v1201_v24 = vld [vmem:[%s1917_s20 + $0x30] sm:$0xff] }
 0x14c   : >> { %1198 = vst [vmem:[%s1913_s15 + $0x20] sm:$0xff] %v1197_v22  ;;  %1200 = vst [vmem:[%s1913_s15 + $0x28] sm:$0xff] %v1199_v23  ;;  %v1203_v25 = vld [vmem:[%s1917_s20 + $0x38] sm:$0xff]  ;;  %v1205_v26 = vld [vmem:[%s1917_s20 + $0x40] sm:$0xff]  ;;  %s2583_s14 = smov (%p1318_p11, %s1317_s14), 0 }
 0x14d   : >> { %1202 = vst [vmem:[%s1913_s15 + $0x30] sm:$0xff] %v1201_v24  ;;  %1204 = vst [vmem:[%s1913_s15 + $0x38] sm:$0xff] %v1203_v25  ;;  %v1207_v27 = vld [vmem:[%s1917_s20 + $0x48] sm:$0xff]  ;;  %v1209_v28 = vld [vmem:[%s1917_s20 + $0x50] sm:$0xff]  ;;  %s1531_s17 = sshll.u32 %s2583_s14, 9  ;;  %s2576_s27 = smov %s2583_s14 }
 0x14e   : >> { %1206 = vst [vmem:[%s1913_s15 + $0x40] sm:$0xff] %v1205_v26  ;;  %v1211_v29 = vld [vmem:[%s1917_s20 + $0x58] sm:$0xff]  ;;  %1208 = vst [vmem:[%s1913_s15 + $0x48] sm:$0xff] %v1207_v27  ;;  %v1213_v30 = vld [vmem:[%s1917_s20 + $0x60] sm:$0xff]  ;;  %s2441_s18 = scalar_lea.vmem %s2171_s12, %s1531_s17 [#allocation2]   ;;  %s2444_s21 = scalar_lea.vmem %s2368_s8, %s1531_s17  }
 0x14f   : >> { %1210 = vst [vmem:[%s1913_s15 + $0x50] sm:$0xff] %v1209_v28  ;;  %1212 = vst [vmem:[%s1913_s15 + $0x58] sm:$0xff] %v1211_v29  ;;  %v1215_v31 = vld [vmem:[%s1917_s20 + $0x68] sm:$0xff]  ;;  %v1217_v32 = vld [vmem:[%s1917_s20 + $0x70] sm:$0xff] }
 0x150   : >> { %1214 = vst [vmem:[%s1913_s15 + $0x60] sm:$0xff] %v1213_v30  ;;  %1216 = vst [vmem:[%s1913_s15 + $0x68] sm:$0xff] %v1215_v31  ;;  %v1219_v33 = vld [vmem:[%s1917_s20 + $0x78] sm:$0xff]  ;;  %v1221_v34 = vld [vmem:[%s1917_s20 + $0x80] sm:$0xff] }
 0x151   : >> { %1218 = vst [vmem:[%s1913_s15 + $0x70] sm:$0xff] %v1217_v32  ;;  %v1223_v35 = vld [vmem:[%s1917_s20 + $0x88] sm:$0xff]  ;;  %1220 = vst [vmem:[%s1913_s15 + $0x78] sm:$0xff] %v1219_v33  ;;  %v1225_v36 = vld [vmem:[%s1917_s20 + $0x90] sm:$0xff] }
 0x152   : >> { %1222 = vst [vmem:[%s1913_s15 + $0x80] sm:$0xff] %v1221_v34  ;;  %1224 = vst [vmem:[%s1913_s15 + $0x88] sm:$0xff] %v1223_v35  ;;  %v1227_v37 = vld [vmem:[%s1917_s20 + $0x98] sm:$0xff]  ;;  %v1229_v38 = vld [vmem:[%s1917_s20 + $0xa0] sm:$0xff] }
 0x153   : >> { %1226 = vst [vmem:[%s1913_s15 + $0x90] sm:$0xff] %v1225_v36  ;;  %1228 = vst [vmem:[%s1913_s15 + $0x98] sm:$0xff] %v1227_v37  ;;  %v1231_v39 = vld [vmem:[%s1917_s20 + $0xa8] sm:$0xff]  ;;  %v1233_v40 = vld [vmem:[%s1917_s20 + $0xb0] sm:$0xff] }
 0x154   : >> { %1230 = vst [vmem:[%s1913_s15 + $0xa0] sm:$0xff] %v1229_v38  ;;  %v1235_v41 = vld [vmem:[%s1917_s20 + $0xb8] sm:$0xff]  ;;  %1232 = vst [vmem:[%s1913_s15 + $0xa8] sm:$0xff] %v1231_v39  ;;  %v1237_v42 = vld [vmem:[%s1917_s20 + $0xc0] sm:$0xff] }
 0x155   : >> { %1234 = vst [vmem:[%s1913_s15 + $0xb0] sm:$0xff] %v1233_v40  ;;  %1236 = vst [vmem:[%s1913_s15 + $0xb8] sm:$0xff] %v1235_v41  ;;  %v1239_v43 = vld [vmem:[%s1917_s20 + $0xc8] sm:$0xff]  ;;  %v1241_v44 = vld [vmem:[%s1917_s20 + $0xd0] sm:$0xff] }
 0x156   : >> { %1238 = vst [vmem:[%s1913_s15 + $0xc0] sm:$0xff] %v1237_v42  ;;  %1240 = vst [vmem:[%s1913_s15 + $0xc8] sm:$0xff] %v1239_v43  ;;  %v1243_v45 = vld [vmem:[%s1917_s20 + $0xd8] sm:$0xff]  ;;  %v1245_v46 = vld [vmem:[%s1917_s20 + $0xe0] sm:$0xff] }
 0x157   : >> { %1242 = vst [vmem:[%s1913_s15 + $0xd0] sm:$0xff] %v1241_v44  ;;  %v1247_v47 = vld [vmem:[%s1917_s20 + $0xe8] sm:$0xff]  ;;  %1244 = vst [vmem:[%s1913_s15 + $0xd8] sm:$0xff] %v1243_v45  ;;  %v1249_v48 = vld [vmem:[%s1917_s20 + $0xf0] sm:$0xff] }
 0x158   : >> { %1246 = vst [vmem:[%s1913_s15 + $0xe0] sm:$0xff] %v1245_v46  ;;  %1248 = vst [vmem:[%s1913_s15 + $0xe8] sm:$0xff] %v1247_v47  ;;  %v1251_v49 = vld [vmem:[%s1917_s20 + $0xf8] sm:$0xff]  ;;  %v1253_v50 = vld [vmem:[%s1917_s20 + $0x100] sm:$0xff] }
 0x159   : >> { %1250 = vst [vmem:[%s1913_s15 + $0xf0] sm:$0xff] %v1249_v48  ;;  %1252 = vst [vmem:[%s1913_s15 + $0xf8] sm:$0xff] %v1251_v49  ;;  %v1255_v51 = vld [vmem:[%s1917_s20 + $0x108] sm:$0xff]  ;;  %v1257_v52 = vld [vmem:[%s1917_s20 + $0x110] sm:$0xff] }
 0x15a   : >> { %1254 = vst [vmem:[%s1913_s15 + $0x100] sm:$0xff] %v1253_v50  ;;  %v1259_v53 = vld [vmem:[%s1917_s20 + $0x118] sm:$0xff]  ;;  %1256 = vst [vmem:[%s1913_s15 + $0x108] sm:$0xff] %v1255_v51  ;;  %v1261_v54 = vld [vmem:[%s1917_s20 + $0x120] sm:$0xff] }
 0x15b   : >> { %1258 = vst [vmem:[%s1913_s15 + $0x110] sm:$0xff] %v1257_v52  ;;  %1260 = vst [vmem:[%s1913_s15 + $0x118] sm:$0xff] %v1259_v53  ;;  %v1263_v55 = vld [vmem:[%s1917_s20 + $0x128] sm:$0xff]  ;;  %v1265_v56 = vld [vmem:[%s1917_s20 + $0x130] sm:$0xff] }
 0x15c   : >> { %1262 = vst [vmem:[%s1913_s15 + $0x120] sm:$0xff] %v1261_v54  ;;  %1264 = vst [vmem:[%s1913_s15 + $0x128] sm:$0xff] %v1263_v55  ;;  %v1267_v57 = vld [vmem:[%s1917_s20 + $0x138] sm:$0xff]  ;;  %v1269_v58 = vld [vmem:[%s1917_s20 + $0x140] sm:$0xff] }
 0x15d   : >> { %1266 = vst [vmem:[%s1913_s15 + $0x130] sm:$0xff] %v1265_v56  ;;  %v1271_v59 = vld [vmem:[%s1917_s20 + $0x148] sm:$0xff]  ;;  %1268 = vst [vmem:[%s1913_s15 + $0x138] sm:$0xff] %v1267_v57  ;;  %v1273_v60 = vld [vmem:[%s1917_s20 + $0x150] sm:$0xff] }
 0x15e   : >> { %1270 = vst [vmem:[%s1913_s15 + $0x140] sm:$0xff] %v1269_v58  ;;  %1272 = vst [vmem:[%s1913_s15 + $0x148] sm:$0xff] %v1271_v59  ;;  %v1275_v61 = vld [vmem:[%s1917_s20 + $0x158] sm:$0xff]  ;;  %v1277_v62 = vld [vmem:[%s1917_s20 + $0x160] sm:$0xff] }
 0x15f   : >> { %1274 = vst [vmem:[%s1913_s15 + $0x150] sm:$0xff] %v1273_v60  ;;  %1276 = vst [vmem:[%s1913_s15 + $0x158] sm:$0xff] %v1275_v61  ;;  %v1279_v63 = vld [vmem:[%s1917_s20 + $0x168] sm:$0xff]  ;;  %v1281_v0 = vld [vmem:[%s1917_s20 + $0x170] sm:$0xff] }
 0x160   : >> { %1278 = vst [vmem:[%s1913_s15 + $0x160] sm:$0xff] %v1277_v62  ;;  %v1283_v1 = vld [vmem:[%s1917_s20 + $0x178] sm:$0xff]  ;;  %1280 = vst [vmem:[%s1913_s15 + $0x168] sm:$0xff] %v1279_v63  ;;  %v1285_v2 = vld [vmem:[%s1917_s20 + $0x180] sm:$0xff] }
 0x161   : >> { %1282 = vst [vmem:[%s1913_s15 + $0x170] sm:$0xff] %v1281_v0  ;;  %1284 = vst [vmem:[%s1913_s15 + $0x178] sm:$0xff] %v1283_v1  ;;  %v1287_v3 = vld [vmem:[%s1917_s20 + $0x188] sm:$0xff]  ;;  %v1289_v4 = vld [vmem:[%s1917_s20 + $0x190] sm:$0xff] }
 0x162   : >> { %1286 = vst [vmem:[%s1913_s15 + $0x180] sm:$0xff] %v1285_v2  ;;  %1288 = vst [vmem:[%s1913_s15 + $0x188] sm:$0xff] %v1287_v3  ;;  %v1291_v5 = vld [vmem:[%s1917_s20 + $0x198] sm:$0xff]  ;;  %v1293_v6 = vld [vmem:[%s1917_s20 + $0x1a0] sm:$0xff] }
 0x163   : >> { %1290 = vst [vmem:[%s1913_s15 + $0x190] sm:$0xff] %v1289_v4  ;;  %v1295_v7 = vld [vmem:[%s1917_s20 + $0x1a8] sm:$0xff]  ;;  %1292 = vst [vmem:[%s1913_s15 + $0x198] sm:$0xff] %v1291_v5  ;;  %v1297_v8 = vld [vmem:[%s1917_s20 + $0x1b0] sm:$0xff]  ;;  %1185 = sbr.rel (!%p1182_p12) target bundleno = 329 (0x149), region = 122 }
 0x164   : >> { %1294 = vst [vmem:[%s1913_s15 + $0x1a0] sm:$0xff] %v1293_v6  ;;  %1296 = vst [vmem:[%s1913_s15 + $0x1a8] sm:$0xff] %v1295_v7  ;;  %v1299_v9 = vld [vmem:[%s1917_s20 + $0x1b8] sm:$0xff]  ;;  %v1301_v10 = vld [vmem:[%s1917_s20 + $0x1c0] sm:$0xff] }
 0x165   : >> { %1298 = vst [vmem:[%s1913_s15 + $0x1b0] sm:$0xff] %v1297_v8  ;;  %1300 = vst [vmem:[%s1913_s15 + $0x1b8] sm:$0xff] %v1299_v9  ;;  %v1303_v11 = vld [vmem:[%s1917_s20 + $0x1c8] sm:$0xff]  ;;  %v1305_v12 = vld [vmem:[%s1917_s20 + $0x1d0] sm:$0xff] }
 0x166   : >> { %1302 = vst [vmem:[%s1913_s15 + $0x1c0] sm:$0xff] %v1301_v10  ;;  %v1307_v13 = vld [vmem:[%s1917_s20 + $0x1d8] sm:$0xff]  ;;  %1304 = vst [vmem:[%s1913_s15 + $0x1c8] sm:$0xff] %v1303_v11  ;;  %v1309_v14 = vld [vmem:[%s1917_s20 + $0x1e0] sm:$0xff] }
 0x167   : >> { %1306 = vst [vmem:[%s1913_s15 + $0x1d0] sm:$0xff] %v1305_v12  ;;  %1308 = vst [vmem:[%s1913_s15 + $0x1d8] sm:$0xff] %v1307_v13  ;;  %v1311_v16 = vld [vmem:[%s1917_s20 + $0x1e8] sm:$0xff]  ;;  %v1313_v17 = vld [vmem:[%s1917_s20 + $0x1f0] sm:$0xff] }
 0x168   : >> { %1310 = vst [vmem:[%s1913_s15 + $0x1e0] sm:$0xff] %v1309_v14  ;;  %1312 = vst [vmem:[%s1913_s15 + $0x1e8] sm:$0xff] %v1311_v16  ;;  %v1315_v18 = vld [vmem:[%s1917_s20 + $0x1f8] sm:$0xff]  ;;  %s2575_s20 = smov %s2441_s18 }
 0x169   : >> { %1314 = vst [vmem:[%s1913_s15 + $0x1f0] sm:$0xff] %v1313_v17  ;;  %1316 = vst [vmem:[%s1913_s15 + $0x1f8] sm:$0xff] %v1315_v18  ;;  %s2574_s15 = smov %s2444_s21 }
 0x16a PF: > { %s2549_s22 = sand.u32 63, %s2581_s4   ;;  %s1542_s23 = sshll.u32 %s2374_s10, 9 }
 0x16b   : > { %s1328_s24 = scalar_lea.vmem %s2171_s12, %s1542_s23 [#allocation2]   ;;  %s1330_s25 = scalar_lea.vmem %s2368_s8, %s1542_s23  }
 0x16c   : > { %p1536_p13 = scmp.le.s32.totalorder %s2549_s22, 0 }
 0x16d   : > { %s1927_s26 = smov (!%p1536_p13), %s1330_s25   ;;  %s1931_s28 = smov (!%p1536_p13), %s1328_s24  }
 0x16e   : > { %1421 = sbr.rel (%p1536_p13) target bundleno = 383 (0x17f), region = 127  ;;  %s1935_s29 = smov (!%p1536_p13), 0  }
 0x16f   : > { %s1939_s30 = smov (!%p1536_p13), 0  }
 0x175 LB: >> { %v1340_v15 = vld [vmem:[%s1933_s28] sm:$0xff]  ;;  %s1342_s4 = sadd.s32 1, %s1937_s29  ;;  %s1334_s30 = sadd.s32 1, %s1941_s30   ;;  %s1941_s30 = sphi %s1939_s30, %s1334_s30   ;;  %s1937_s29 = sphi %s1935_s29, %s1936_s29   ;;  %s1933_s28 = sphi %s1931_s28, %s1347_s28   ;;  %s1929_s26 = sphi %s1927_s26, %s1348_s26  }
 0x176   : >> { %1341 = vst [vmem:[%s1929_s26] sm:$0xff] %v1340_v15  ;;  %p1343_p0 = scmp.ge.s32.totalorder %s1342_s4, %s2549_s22  ;;  %p1333_p1 = scmp.ge.s32.totalorder %s1334_s30, %s2549_s22 }
 0x178   : >> { %s2585_s4 = smov (%p1343_p0, %s1342_s4), 0  ;;  %1336 = sbr.rel (!%p1333_p1) target bundleno = 373 (0x175), region = 133 }
 0x179   : >> { %s1537_s12 = sshll.u32 %s2585_s4, 3  ;;  %s1936_s29 = smov %s2585_s4  }
 0x17a   : >> { %s1347_s28 = scalar_lea.vmem %s1328_s24, %s1537_s12 [#allocation2]   ;;  %s1348_s26 = scalar_lea.vmem %s1330_s25, %s1537_s12  }
 0x17f PF: > { %p10_p2 = scmp.ge.s32.totalorder %s1979_s16, 11   ;;  %s2577_s12 = smov %s1905_s13 }
 0x180   : > { %s2578_s13 = smov %s1987_s19  ;;  %s2579_s14 = smov %s1979_s16 }
 0x181   :  { %12 = sbr.rel (!%p10_p2) target bundleno = 2 (0x2), region = 144 }

// kernel: imitation_agent_forward.5
= control target key start
LH: loop header
LB: loop body
LE: loop exit
PB: predicated region body
PF: predicated region fallthrough
CT: control target
= control target key end

     0   :  { %s3638_s12 = smov 0   ;;  %s3640_s13 = smov 0   ;;  %s5221_s0 = inlined_call_operand.vmem [shape: f32[882,800], index: 0, kind: input, shape index: {}]   ;;  %s5222_s1 = inlined_call_operand.vmem [shape: f32[800,64], index: 1, kind: input, shape index: {}]   ;;  %s5223_s2 = inlined_call_operand.vmem [shape: f32[1,64], index: 2, kind: input, shape index: {}]   ;;  %s5224_s3 = inlined_call_operand.vmem [shape: f32[882,64], index: 3, kind: output, shape index: {}]  }
   0x1   :  { %s3642_s14 = smov 0  }
   0x2 LB: > { %s3651_s15 = sadd.s32 4294967295, %s3583_s14   ;;  %s3653_s16 = sadd.s32 1, %s3583_s14   ;;  %s3583_s14 = sphi %s3642_s14, %s5245_s14   ;;  %s3579_s13 = sphi %s3640_s13, %s5244_s13   ;;  %s3575_s12 = sphi %s3638_s12, %s5243_s12  }
   0x3   : > { %s85_s17 = ssub.s32 %s3583_s14, %s3653_s16  ;;  %s88_s18 = sadd.s32 1, %s3579_s13 }
   0x4   : > { %p86_p0 = scmp.eq.s32.totalorder %s85_s17, 0  ;;  %p98_p1 = scmp.ne.s32.totalorder %s3579_s13, %s3575_s12 }
   0x5   : > { %p99_p2 = scmp.eq.s32.totalorder %s3651_s15, 1  ;;  %p2801_p3 = scmp.ge.s32.totalorder %s3583_s14, 1 }
   0x6   : > { %s3661_s19 = scalar_select %p86_p0, %s3579_s13, %s88_s18  }
   0x7   : > { %p3663_p4 = por %p99_p2, %p98_p1  ;;  %p149_p5 = scmp.lt.s32.totalorder %s3583_s14, 3 }
   0x9   : > { %p150_p6 = pnand %p2801_p3, %p149_p5 }
   0xb   : > { %153 = sbr.rel (%p150_p6) target bundleno = 772 (0x304), region = 32 }
  0x12   : > { %v592_v0 = vld [vmem:[%s5222_s1] sm:$0xff]  ;;  %v593_v1 = vld [vmem:[%s5222_s1 + $0x8] sm:$0xff]  ;;  %v3617_v3 = vmov 0.0|0.0   ;;  %v594_v6 = vld [vmem:[%s5222_s1 + $0x10] sm:$0xff]  ;;  %s3696_s10 = smul.u32 56, %s3651_s15  ;;  %vm699_vm0 = vcmask 261120  }
  0x13   : > { %v624_v2 = vld [vmem:[%s5222_s1 + $0x100] sm:$0xff]  ;;  %3025 = vmatprep.subr.bf16.mxu1 %v3617_v3  ;;  %3073 = vmatprep.subr.bf16.mxu0 %v3617_v3  ;;  %v3026_v4 = vpack.c.bf16 %v593_v1, %v592_v0  ;;  %v625_v5 = vld [vmem:[%s5222_s1 + $0x108] sm:$0xff]  ;;  %v595_v7 = vld [vmem:[%s5222_s1 + $0x18] sm:$0xff]  ;;  %vm2304_vm1 = vcmask 523264   ;;  %s2872_s14 = smul.u32 (%p3663_p4), 448, %s3651_s15 }
  0x14   : > { %v3687_v8 = vpack.c.bf16 %v625_v5, %v624_v2  ;;  %v626_v9 = vld [vmem:[%s5222_s1 + $0x110] sm:$0xff]  ;;  %v627_v10 = vld [vmem:[%s5222_s1 + $0x118] sm:$0xff]  ;;  %v3029_v11 = vpack.c.bf16 %v595_v7, %v594_v6  ;;  %v596_v13 = vld [vmem:[%s5222_s1 + $0x20] sm:$0xff]  ;;  %p184_p7 = scmp.lt.s32.totalorder %s3696_s10, 110  ;;  %s2369_s11 = ssub.s32 (%p3663_p4), 111, %s3696_s10 }
  0x15   : > { %3027 = vmatpush1.bf16.msra.mxu1 %v3026_v4  ;;  %v3700_v12 = vpack.c.bf16 %v627_v10, %v626_v9  ;;  %v597_v14 = vld [vmem:[%s5222_s1 + $0x28] sm:$0xff]  ;;  %v628_v15 = vld [vmem:[%s5222_s1 + $0x120] sm:$0xff]  ;;  %v598_v19 = vld [vmem:[%s5222_s1 + $0x30] sm:$0xff]  ;;  %p2370_p8 = scmp.lt.s32.totalorder (%p3663_p4), %s2369_s11, 56  ;;  %s5043_s21 = scalar_lea.vmem (%p3663_p4), %s5224_s3, %s2872_s14  }
  0x16   : > { %3075 = vmatpush1.bf16.msra.mxu0 %v3687_v8  ;;  %3028 = vmatprep.subr.bf16.mxu1 %v3617_v3  ;;  %v629_v16 = vld [vmem:[%s5222_s1 + $0x128] sm:$0xff]  ;;  %v3032_v17 = vpack.c.bf16 %v597_v14, %v596_v13  ;;  %v599_v20 = vld [vmem:[%s5222_s1 + $0x38] sm:$0xff]  ;;  %v630_v21 = vld [vmem:[%s5222_s1 + $0x130] sm:$0xff]  ;;  %s185_s6 = scalar_select %p184_p7, %s3696_s10, 110 }
  0x17   : > { %3076 = vmatprep.subr.bf16.mxu0 %v3617_v3  ;;  %v3718_v18 = vpack.c.bf16 %v629_v16, %v628_v15  ;;  %v631_v22 = vld [vmem:[%s5222_s1 + $0x138] sm:$0xff]  ;;  %v3035_v23 = vpack.c.bf16 %v599_v20, %v598_v19  ;;  %v600_v25 = vld [vmem:[%s5222_s1 + $0x40] sm:$0xff]  ;;  %v601_v26 = vld [vmem:[%s5222_s1 + $0x48] sm:$0xff] }
  0x18   : > { %v3736_v24 = vpack.c.bf16 %v631_v22, %v630_v21  ;;  %v632_v27 = vld [vmem:[%s5222_s1 + $0x140] sm:$0xff]  ;;  %v633_v28 = vld [vmem:[%s5222_s1 + $0x148] sm:$0xff]  ;;  %s3434_s22 = smul.u32 56, %s185_s6  ;;  %v3038_v29 = vpack.c.bf16 %v601_v26, %v600_v25  ;;  %v602_v31 = vld [vmem:[%s5222_s1 + $0x50] sm:$0xff] }
  0x19   : > { %3030 = vmatpush1.bf16.msra.mxu1 %v3029_v11  ;;  %v3753_v30 = vpack.c.bf16 %v633_v28, %v632_v27  ;;  %v603_v32 = vld [vmem:[%s5222_s1 + $0x58] sm:$0xff]  ;;  %v634_v33 = vld [vmem:[%s5222_s1 + $0x150] sm:$0xff]  ;;  %v604_v37 = vld [vmem:[%s5222_s1 + $0x60] sm:$0xff] }
  0x1a   : > { %3078 = vmatpush1.bf16.msra.mxu0 %v3700_v12  ;;  %3031 = vmatprep.subr.bf16.mxu1 %v3617_v3  ;;  %v635_v34 = vld [vmem:[%s5222_s1 + $0x158] sm:$0xff]  ;;  %s3771_s6 = scalar_lea.vmem %s5221_s0, %s3434_s22  ;;  %v3041_v35 = vpack.c.bf16 %v603_v32, %v602_v31  ;;  %v605_v38 = vld [vmem:[%s5222_s1 + $0x68] sm:$0xff]  ;;  %v636_v39 = vld [vmem:[%s5222_s1 + $0x160] sm:$0xff] }
  0x1b   : > { %3079 = vmatprep.subr.bf16.mxu0 %v3617_v3  ;;  %v3775_v36 = vpack.c.bf16 %v635_v34, %v634_v33  ;;  %v637_v40 = vld [vmem:[%s5222_s1 + $0x168] sm:$0xff]  ;;  %v203_v42 = vld [vmem:[%s3771_s6 + $0x18] sm:$0xff]  ;;  %v3044_v43 = vpack.c.bf16 %v605_v38, %v604_v37  ;;  %v606_v45 = vld [vmem:[%s5222_s1 + $0x70] sm:$0xff] }
  0x1c   : > { %v201_v41 = vld [vmem:[%s3771_s6 + $0x8] sm:$0xff]  ;;  %1277 = vmatprep.mubr.f32.mxu0 %v203_v42  ;;  %v3794_v44 = vpack.c.bf16 %v637_v40, %v636_v39  ;;  %v607_v46 = vld [vmem:[%s5222_s1 + $0x78] sm:$0xff]  ;;  %v638_v47 = vld [vmem:[%s5222_s1 + $0x170] sm:$0xff] }
  0x1d   : > { %3033 = vmatpush1.bf16.msra.mxu1 %v3032_v17  ;;  %932 = vmatprep.mubr.f32.mxu1 %v201_v41  ;;  %v639_v48 = vld [vmem:[%s5222_s1 + $0x178] sm:$0xff]  ;;  %v3047_v49 = vpack.c.bf16 %v607_v46, %v606_v45  ;;  %v608_v51 = vld [vmem:[%s5222_s1 + $0x80] sm:$0xff]  ;;  %v609_v52 = vld [vmem:[%s5222_s1 + $0x88] sm:$0xff] }
  0x1e   : > { %3081 = vmatpush1.bf16.msra.mxu0 %v3718_v18  ;;  %3034 = vmatprep.subr.bf16.mxu1 %v3617_v3  ;;  %v3811_v50 = vpack.c.bf16 %v639_v48, %v638_v47  ;;  %v640_v53 = vld [vmem:[%s5222_s1 + $0x180] sm:$0xff]  ;;  %v641_v54 = vld [vmem:[%s5222_s1 + $0x188] sm:$0xff]  ;;  %v3050_v55 = vpack.c.bf16 %v609_v52, %v608_v51  ;;  %v610_v57 = vld [vmem:[%s5222_s1 + $0x90] sm:$0xff] }
  0x1f   : > { %3082 = vmatprep.subr.bf16.mxu0 %v3617_v3  ;;  %v3828_v56 = vpack.c.bf16 %v641_v54, %v640_v53  ;;  %v611_v58 = vld [vmem:[%s5222_s1 + $0x98] sm:$0xff]  ;;  %v642_v59 = vld [vmem:[%s5222_s1 + $0x190] sm:$0xff]  ;;  %v612_v63 = vld [vmem:[%s5222_s1 + $0xa0] sm:$0xff] }
  0x20   : > { %v643_v60 = vld [vmem:[%s5222_s1 + $0x198] sm:$0xff]  ;;  %v3053_v61 = vpack.c.bf16 %v611_v58, %v610_v57  ;;  %v613_v0 = vld [vmem:[%s5222_s1 + $0xa8] sm:$0xff]  ;;  %v644_v1 = vld [vmem:[%s5222_s1 + $0x1a0] sm:$0xff] }
  0x21   : > { %3036 = vmatpush1.bf16.msra.mxu1 %v3035_v23  ;;  %v3845_v62 = vpack.c.bf16 %v643_v60, %v642_v59  ;;  %v645_v2 = vld [vmem:[%s5222_s1 + $0x1a8] sm:$0xff]  ;;  %v3056_v4 = vpack.c.bf16 %v613_v0, %v612_v63  ;;  %v614_v6 = vld [vmem:[%s5222_s1 + $0xb0] sm:$0xff]  ;;  %v615_v7 = vld [vmem:[%s5222_s1 + $0xb8] sm:$0xff] }
  0x22   : > { %3084 = vmatpush1.bf16.msra.mxu0 %v3736_v24  ;;  %3037 = vmatprep.subr.bf16.mxu1 %v3617_v3  ;;  %v3862_v5 = vpack.c.bf16 %v645_v2, %v644_v1  ;;  %v646_v9 = vld [vmem:[%s5222_s1 + $0x1b0] sm:$0xff]  ;;  %v647_v10 = vld [vmem:[%s5222_s1 + $0x1b8] sm:$0xff]  ;;  %v3059_v11 = vpack.c.bf16 %v615_v7, %v614_v6  ;;  %v616_v14 = vld [vmem:[%s5222_s1 + $0xc0] sm:$0xff] }
  0x23   : > { %3085 = vmatprep.subr.bf16.mxu0 %v3617_v3  ;;  %v3879_v13 = vpack.c.bf16 %v647_v10, %v646_v9  ;;  %v617_v15 = vld [vmem:[%s5222_s1 + $0xc8] sm:$0xff]  ;;  %v648_v16 = vld [vmem:[%s5222_s1 + $0x1c0] sm:$0xff]  ;;  %v618_v21 = vld [vmem:[%s5222_s1 + $0xd0] sm:$0xff] }
  0x24   : > { %v649_v17 = vld [vmem:[%s5222_s1 + $0x1c8] sm:$0xff]  ;;  %v3062_v19 = vpack.c.bf16 %v617_v15, %v616_v14  ;;  %v619_v22 = vld [vmem:[%s5222_s1 + $0xd8] sm:$0xff]  ;;  %v650_v23 = vld [vmem:[%s5222_s1 + $0x1d0] sm:$0xff] }
  0x25   : > { %3039 = vmatpush1.bf16.msra.mxu1 %v3038_v29  ;;  %v3896_v20 = vpack.c.bf16 %v649_v17, %v648_v16  ;;  %v651_v25 = vld [vmem:[%s5222_s1 + $0x1d8] sm:$0xff]  ;;  %v3065_v26 = vpack.c.bf16 %v619_v22, %v618_v21  ;;  %v620_v28 = vld [vmem:[%s5222_s1 + $0xe0] sm:$0xff]  ;;  %v621_v29 = vld [vmem:[%s5222_s1 + $0xe8] sm:$0xff] }
  0x26   : > { %3087 = vmatpush1.bf16.msra.mxu0 %v3753_v30  ;;  %3040 = vmatprep.subr.bf16.mxu1 %v3617_v3  ;;  %v3913_v27 = vpack.c.bf16 %v651_v25, %v650_v23  ;;  %v652_v31 = vld [vmem:[%s5222_s1 + $0x1e0] sm:$0xff]  ;;  %v653_v32 = vld [vmem:[%s5222_s1 + $0x1e8] sm:$0xff]  ;;  %v3068_v33 = vpack.c.bf16 %v621_v29, %v620_v28  ;;  %v623_v37 = vld [vmem:[%s5222_s1 + $0xf8] sm:$0xff] }
  0x27   : > { %3088 = vmatprep.subr.bf16.mxu0 %v3617_v3  ;;  %v3930_v34 = vpack.c.bf16 %v653_v32, %v652_v31  ;;  %v654_v38 = vld [vmem:[%s5222_s1 + $0x1f0] sm:$0xff]  ;;  %v655_v39 = vld [vmem:[%s5222_s1 + $0x1f8] sm:$0xff]  ;;  %v656_v42 = vld [vmem:[%s5222_s1 + $0x200] sm:$0xff] }
  0x28   : > { %v3947_v41 = vpack.c.bf16 %v655_v39, %v654_v38  ;;  %v200_v45 = vld [vmem:[%s3771_s6] sm:$0xff]  ;;  %v202_v46 = vld [vmem:[%s3771_s6 + $0x10] sm:$0xff]  ;;  %v659_v51 = vld [vmem:[%s5222_s1 + $0x218] sm:$0xff] }
  0x29   : > { %3042 = vmatpush1.bf16.msra.mxu1 %v3041_v35  ;;  %v622_v35 = vld [vmem:[%s5222_s1 + $0xf0] sm:$0xff]  ;;  %v208_v48 = vld [vmem:[%s3771_s6 + $0x40] sm:$0xff]  ;;  %v207_v53 = vld [vmem:[%s3771_s6 + $0x38] sm:$0xff] }
  0x2a   : > { %3090 = vmatpush1.bf16.msra.mxu0 %v3775_v36  ;;  %3043 = vmatprep.subr.bf16.mxu1 %v3617_v3  ;;  %v3071_v40 = vpack.c.bf16 %v623_v37, %v622_v35  ;;  %v210_v52 = vld [vmem:[%s3771_s6 + $0x50] sm:$0xff]  ;;  %v209_v54 = vld [vmem:[%s3771_s6 + $0x48] sm:$0xff]  ;;  %v660_v59 = vld [vmem:[%s5222_s1 + $0x220] sm:$0xff] }
  0x2b   : > { %3091 = vmatprep.subr.bf16.mxu0 %v3617_v3  ;;  %v217_v58 = vld [vmem:[%s3771_s6 + $0x88] sm:$0xff]  ;;  %v214_v60 = vld [vmem:[%s3771_s6 + $0x70] sm:$0xff]  ;;  %v224_v1 = vld [vmem:[%s3771_s6 + $0xc0] sm:$0xff] }
  0x2c   : > { %v222_v63 = vld [vmem:[%s3771_s6 + $0xb0] sm:$0xff]  ;;  %v221_v6 = vld [vmem:[%s3771_s6 + $0xa8] sm:$0xff]  ;;  %v231_v10 = vld [vmem:[%s3771_s6 + $0xf8] sm:$0xff] }
  0x2d   : > { %3045 = vmatpush1.bf16.msra.mxu1 %v3044_v43  ;;  %v657_v43 = vld [vmem:[%s5222_s1 + $0x208] sm:$0xff]  ;;  %v662_v2 = vld [vmem:[%s5222_s1 + $0x230] sm:$0xff]  ;;  %v228_v15 = vld [vmem:[%s3771_s6 + $0xe0] sm:$0xff] }
  0x2e   : > { %3093 = vmatpush1.bf16.msra.mxu0 %v3794_v44  ;;  %3046 = vmatprep.subr.bf16.mxu1 %v3617_v3  ;;  %v3122_v47 = vpack.c.bf16 %v657_v43, %v656_v42  ;;  %v229_v7 = vld [vmem:[%s3771_s6 + $0xe8] sm:$0xff]  ;;  %v236_v16 = vld [vmem:[%s3771_s6 + $0x120] sm:$0xff]  ;;  %v666_v21 = vld [vmem:[%s5222_s1 + $0x250] sm:$0xff] }
  0x2f   : > { %3094 = vmatprep.subr.bf16.mxu0 %v3617_v3  ;;  %v665_v14 = vld [vmem:[%s5222_s1 + $0x248] sm:$0xff]  ;;  %v667_v22 = vld [vmem:[%s5222_s1 + $0x258] sm:$0xff]  ;;  %v668_v29 = vld [vmem:[%s5222_s1 + $0x260] sm:$0xff] }
  0x30   : > { %v235_v23 = vld [vmem:[%s3771_s6 + $0x118] sm:$0xff]  ;;  %v237_v25 = vld [vmem:[%s3771_s6 + $0x128] sm:$0xff]  ;;  %v242_v32 = vld [vmem:[%s3771_s6 + $0x150] sm:$0xff] }
  0x31   : > { %3048 = vmatpush1.bf16.msra.mxu1 %v3047_v49  ;;  %v658_v49 = vld [vmem:[%s5222_s1 + $0x210] sm:$0xff]  ;;  %v245_v28 = vld [vmem:[%s3771_s6 + $0x168] sm:$0xff]  ;;  %v252_v37 = vld [vmem:[%s3771_s6 + $0x1a0] sm:$0xff] }
  0x32   : > { %3096 = vmatpush1.bf16.msra.mxu0 %v3811_v50  ;;  %3049 = vmatprep.subr.bf16.mxu1 %v3617_v3  ;;  %v3125_v57 = vpack.c.bf16 %v659_v51, %v658_v49  ;;  %v669_v31 = vld [vmem:[%s5222_s1 + $0x268] sm:$0xff]  ;;  %v670_v38 = vld [vmem:[%s5222_s1 + $0x270] sm:$0xff]  ;;  %v671_v39 = vld [vmem:[%s5222_s1 + $0x278] sm:$0xff] }
  0x33   : > { %3097 = vmatprep.subr.bf16.mxu0 %v3617_v3  ;;  %v3140_v35 = vpack.c.bf16 %v669_v31, %v668_v29  ;;  %v251_v42 = vld [vmem:[%s3771_s6 + $0x198] sm:$0xff]  ;;  %v3143_v43 = vpack.c.bf16 %v671_v39, %v670_v38  ;;  %v258_v49 = vld [vmem:[%s3771_s6 + $0x1d0] sm:$0xff]  ;;  %v264_v51 = vld [vmem:[%s3771_s6 + $0x200] sm:$0xff] }
  0x34   : > { %v300_v29 = vld [vmem:[%s3771_s6 + $0x320] sm:$0xff]  ;;  %v306_v31 = vld [vmem:[%s3771_s6 + $0x350] sm:$0xff]  ;;  %v313_v38 = vld [vmem:[%s3771_s6 + $0x388] sm:$0xff] }
  0x35   : > { %3051 = vmatpush1.bf16.msra.mxu1 %v3050_v55  ;;  %v215_v55 = vld [vmem:[%s3771_s6 + $0x78] sm:$0xff] }
  0x36   : > { %3099 = vmatpush1.bf16.msra.mxu0 %v3828_v56  ;;  %3052 = vmatprep.subr.bf16.mxu1 %v3617_v3 }
  0x37   : > { %3100 = vmatprep.subr.bf16.mxu0 %v3617_v3 }
  0x39   : > { %3054 = vmatpush1.bf16.msra.mxu1 %v3053_v61  ;;  %v216_v61 = vld [vmem:[%s3771_s6 + $0x80] sm:$0xff] }
  0x3a   : > { %3102 = vmatpush1.bf16.msra.mxu0 %v3845_v62  ;;  %3055 = vmatprep.subr.bf16.mxu1 %v3617_v3 }
  0x3b   : > { %3103 = vmatprep.subr.bf16.mxu0 %v3617_v3 }
  0x3d   : > { %3057 = vmatpush1.bf16.msra.mxu1 %v3056_v4  ;;  %v663_v4 = vld [vmem:[%s5222_s1 + $0x238] sm:$0xff] }
  0x3e   : > { %3105 = vmatpush1.bf16.msra.mxu0 %v3862_v5  ;;  %3058 = vmatprep.subr.bf16.mxu1 %v3617_v3  ;;  %v3131_v9 = vpack.c.bf16 %v663_v4, %v662_v2  ;;  %v280_v2 = vld [vmem:[%s3771_s6 + $0x280] sm:$0xff]  ;;  %v679_v4 = vld [vmem:[%s5222_s1 + $0x2b8] sm:$0xff] }
  0x3f   : > { %3106 = vmatprep.subr.bf16.mxu0 %v3617_v3 }
  0x41   : > { %3060 = vmatpush1.bf16.msra.mxu1 %v3059_v11  ;;  %v664_v11 = vld [vmem:[%s5222_s1 + $0x240] sm:$0xff] }
  0x42   : > { %3108 = vmatpush1.bf16.msra.mxu0 %v3879_v13  ;;  %3061 = vmatprep.subr.bf16.mxu1 %v3617_v3  ;;  %v3134_v17 = vpack.c.bf16 %v665_v14, %v664_v11  ;;  %v681_v11 = vld [vmem:[%s5222_s1 + $0x2c8] sm:$0xff]  ;;  %v284_v14 = vld [vmem:[%s3771_s6 + $0x2a0] sm:$0xff] }
  0x43   : > { %3109 = vmatprep.subr.bf16.mxu0 %v3617_v3 }
  0x45   : > { %3063 = vmatpush1.bf16.msra.mxu1 %v3062_v19  ;;  %v238_v19 = vld [vmem:[%s3771_s6 + $0x130] sm:$0xff] }
  0x46   : > { %3111 = vmatpush1.bf16.msra.mxu0 %v3896_v20  ;;  %3064 = vmatprep.subr.bf16.mxu1 %v3617_v3 }
  0x47   : > { %3112 = vmatprep.subr.bf16.mxu0 %v3617_v3 }
  0x49   : > { %3066 = vmatpush1.bf16.msra.mxu1 %v3065_v26  ;;  %v3137_v26 = vpack.c.bf16 %v667_v22, %v666_v21  ;;  %v291_v21 = vld [vmem:[%s3771_s6 + $0x2d8] sm:$0xff]  ;;  %v293_v22 = vld [vmem:[%s3771_s6 + $0x2e8] sm:$0xff] }
  0x4a   : > { %3114 = vmatpush1.bf16.msra.mxu0 %v3913_v27  ;;  %3067 = vmatprep.subr.bf16.mxu1 %v3617_v3 }
  0x4b   : > { %3115 = vmatprep.subr.bf16.mxu0 %v3617_v3 }
  0x4d   : > { %3069 = vmatpush1.bf16.msra.mxu1 %v3068_v33  ;;  %v244_v33 = vld [vmem:[%s3771_s6 + $0x160] sm:$0xff] }
  0x4e   : > { %3117 = vmatpush1.bf16.msra.mxu0 %v3930_v34  ;;  %3070 = vmatprep.subr.bf16.mxu1 %v3617_v3 }
  0x4f   : > { %3118 = vmatprep.subr.bf16.mxu0 %v3617_v3 }
  0x51   : > { %3072 = vmatpush1.bf16.msra.mxu1 %v3071_v40  ;;  %v249_v40 = vld [vmem:[%s3771_s6 + $0x188] sm:$0xff] }
  0x52   : > { %3120 = vmatpush1.bf16.msra.mxu0 %v3947_v41  ;;  %3177 = vmatprep.subr.bf16.mxu1 %v3617_v3 }
  0x53   : > { %3121 = vmatprep.subr.bf16.mxu0 %v3617_v3 }
  0x54   : > { %933 = vmatmul.mubr.f32.vlgmr.msra.gmra.mrb[0].mxu1 %v200_v45  ;;  %v259_v45 = vld [vmem:[%s3771_s6 + $0x1d8] sm:$0xff] }
  0x55   : > { %1278 = vmatmul.mubr.f32.vlgmr.msra.gmra.mrb[0].mxu0 %v202_v46  ;;  %3193 = vmatpush1.bf16.msra.mxu1 %v3687_v8  ;;  %v661_v8 = vld [vmem:[%s5222_s1 + $0x228] sm:$0xff]  ;;  %v672_v46 = vld [vmem:[%s5222_s1 + $0x280] sm:$0xff] }
  0x56   : > { %3123 = vmatpush1.bf16.msra.mxu0 %v3122_v47  ;;  %937 = vmatprep.mubr.f32.mxu1 %v208_v48  ;;  %v3128_v0 = vpack.c.bf16 %v661_v8, %v660_v59  ;;  %v673_v47 = vld [vmem:[%s5222_s1 + $0x288] sm:$0xff]  ;;  %v256_v48 = vld [vmem:[%s3771_s6 + $0x1c0] sm:$0xff] }
  0x57   : > { %1282 = vmatprep.mubr.f32.mxu0 %v210_v52  ;;  %3124 = vmatprep.subr.bf16.mxu0 %v3617_v3  ;;  %v3146_v52 = vpack.c.bf16 %v673_v47, %v672_v46  ;;  %v273_v8 = vld [vmem:[%s3771_s6 + $0x248] sm:$0xff]  ;;  %v326_v47 = vld [vmem:[%s3771_s6 + $0x3f0] sm:$0xff] }
  0x58   : > { %938 = vmatmul.mubr.f32.gmra.mrb[2].mxu1 %v207_v53  ;;  %3178 = vmatprep.subr.bf16.mxu1 %v3617_v3  ;;  %v266_v53 = vld [vmem:[%s3771_s6 + $0x210] sm:$0xff]  ;;  %v329_v46 = vld [vmem:[%s3771_s6 + $0x408] sm:$0xff] }
  0x59   : > { %1283 = vmatmul.mubr.f32.gmra.mrb[2].mxu0 %v209_v54  ;;  %942 = vmatprep.mubr.f32.mxu1 %v215_v55  ;;  %v675_v54 = vld [vmem:[%s5222_s1 + $0x298] sm:$0xff] }
  0x5a   : > { %1287 = vmatprep.mubr.f32.mxu0 %v217_v58  ;;  %3126 = vmatpush1.bf16.msra.mxu0 %v3125_v57  ;;  %v263_v55 = vld [vmem:[%s3771_s6 + $0x1f8] sm:$0xff]  ;;  %v265_v57 = vld [vmem:[%s3771_s6 + $0x208] sm:$0xff] }
  0x5b   : > { %3194 = vmatpush1.bf16.msra.mxu1 %v3700_v12  ;;  %3127 = vmatprep.subr.bf16.mxu0 %v3617_v3  ;;  %v223_v12 = vld [vmem:[%s3771_s6 + $0xb8] sm:$0xff] }
  0x5c   : > { %943 = vmatmul.mubr.f32.gmra.mrb[4].mxu1 %v214_v60  ;;  %3179 = vmatprep.subr.bf16.mxu1 %v3617_v3  ;;  %v271_v58 = vld [vmem:[%s3771_s6 + $0x238] sm:$0xff]  ;;  %v677_v60 = vld [vmem:[%s5222_s1 + $0x2a8] sm:$0xff] }
  0x5d   : > { %1288 = vmatmul.mubr.f32.gmra.mrb[4].mxu0 %v216_v61  ;;  %947 = vmatprep.mubr.f32.mxu1 %v222_v63  ;;  %v270_v61 = vld [vmem:[%s3771_s6 + $0x230] sm:$0xff]  ;;  %v272_v63 = vld [vmem:[%s3771_s6 + $0x240] sm:$0xff] }
  0x5e   : > { %1292 = vmatprep.mubr.f32.mxu0 %v224_v1  ;;  %3129 = vmatpush1.bf16.msra.mxu0 %v3128_v0  ;;  %v278_v0 = vld [vmem:[%s3771_s6 + $0x270] sm:$0xff] }
  0x5f   : > { %3195 = vmatpush1.bf16.msra.mxu1 %v3718_v18  ;;  %3130 = vmatprep.subr.bf16.mxu0 %v3617_v3  ;;  %v230_v18 = vld [vmem:[%s3771_s6 + $0xf0] sm:$0xff] }
  0x60   : > { %948 = vmatmul.mubr.f32.gmra.mrb[6].mxu1 %v221_v6  ;;  %3180 = vmatprep.subr.bf16.mxu1 %v3617_v3  ;;  %v277_v6 = vld [vmem:[%s3771_s6 + $0x268] sm:$0xff] }
  0x61   : > { %1293 = vmatmul.mubr.f32.gmra.mrb[6].mxu0 %v223_v12  ;;  %952 = vmatprep.mubr.f32.mxu1 %v229_v7  ;;  %v279_v12 = vld [vmem:[%s3771_s6 + $0x278] sm:$0xff]  ;;  %v285_v7 = vld [vmem:[%s3771_s6 + $0x2a8] sm:$0xff] }
  0x62   : > { %1297 = vmatprep.mubr.f32.mxu0 %v231_v10  ;;  %3132 = vmatpush1.bf16.msra.mxu0 %v3131_v9  ;;  %v287_v10 = vld [vmem:[%s3771_s6 + $0x2b8] sm:$0xff] }
  0x63   : > { %3133 = vmatprep.subr.bf16.mxu0 %v3617_v3  ;;  %3196 = vmatpush1.bf16.msra.mxu1 %v3736_v24  ;;  %v243_v24 = vld [vmem:[%s3771_s6 + $0x158] sm:$0xff] }
  0x64   : > { %953 = vmatmul.mubr.f32.gmra.mrb[8].mxu1 %v228_v15  ;;  %3181 = vmatprep.subr.bf16.mxu1 %v3617_v3  ;;  %v286_v15 = vld [vmem:[%s3771_s6 + $0x2b0] sm:$0xff] }
  0x65   : > { %1298 = vmatmul.mubr.f32.gmra.mrb[8].mxu0 %v230_v18  ;;  %957 = vmatprep.mubr.f32.mxu1 %v236_v16  ;;  %v292_v18 = vld [vmem:[%s3771_s6 + $0x2e0] sm:$0xff] }
  0x66   : > { %1302 = vmatprep.mubr.f32.mxu0 %v238_v19  ;;  %3135 = vmatpush1.bf16.msra.mxu0 %v3134_v17  ;;  %v294_v17 = vld [vmem:[%s3771_s6 + $0x2f0] sm:$0xff]  ;;  %v683_v19 = vld [vmem:[%s5222_s1 + $0x2d8] sm:$0xff] }
  0x67   : > { %3136 = vmatprep.subr.bf16.mxu0 %v3617_v3  ;;  %3197 = vmatpush1.bf16.msra.mxu1 %v3753_v30  ;;  %v250_v30 = vld [vmem:[%s3771_s6 + $0x190] sm:$0xff] }
  0x68   : > { %958 = vmatmul.mubr.f32.gmra.mrb[10].mxu1 %v235_v23  ;;  %3182 = vmatprep.subr.bf16.mxu1 %v3617_v3  ;;  %v299_v23 = vld [vmem:[%s3771_s6 + $0x318] sm:$0xff] }
  0x69   : > { %1303 = vmatmul.mubr.f32.gmra.mrb[10].mxu0 %v237_v25  ;;  %962 = vmatprep.mubr.f32.mxu1 %v243_v24  ;;  %v301_v24 = vld [vmem:[%s3771_s6 + $0x328] sm:$0xff] }
  0x6a   : > { %1307 = vmatprep.mubr.f32.mxu0 %v245_v28  ;;  %3138 = vmatpush1.bf16.msra.mxu0 %v3137_v26  ;;  %v685_v26 = vld [vmem:[%s5222_s1 + $0x2e8] sm:$0xff]  ;;  %v298_v28 = vld [vmem:[%s3771_s6 + $0x310] sm:$0xff] }
  0x6b   : > { %3139 = vmatprep.subr.bf16.mxu0 %v3617_v3  ;;  %3198 = vmatpush1.bf16.msra.mxu1 %v3775_v36  ;;  %v257_v36 = vld [vmem:[%s3771_s6 + $0x1c8] sm:$0xff] }
  0x6c   : > { %963 = vmatmul.mubr.f32.gmra.mrb[12].mxu1 %v242_v32  ;;  %3183 = vmatprep.subr.bf16.mxu1 %v3617_v3 }
  0x6d   : > { %1308 = vmatmul.mubr.f32.gmra.mrb[12].mxu0 %v244_v33  ;;  %967 = vmatprep.mubr.f32.mxu1 %v250_v30  ;;  %v308_v33 = vld [vmem:[%s3771_s6 + $0x360] sm:$0xff]  ;;  %v687_v30 = vld [vmem:[%s5222_s1 + $0x2f8] sm:$0xff] }
  0x6e   : > { %1312 = vmatprep.mubr.f32.mxu0 %v252_v37  ;;  %3141 = vmatpush1.bf16.msra.mxu0 %v3140_v35  ;;  %v305_v35 = vld [vmem:[%s3771_s6 + $0x348] sm:$0xff]  ;;  %v307_v37 = vld [vmem:[%s3771_s6 + $0x358] sm:$0xff] }
  0x6f   : > { %3142 = vmatprep.subr.bf16.mxu0 %v3617_v3  ;;  %3199 = vmatpush1.bf16.msra.mxu1 %v3794_v44  ;;  %v674_v44 = vld [vmem:[%s5222_s1 + $0x290] sm:$0xff] }
  0x70   : > { %968 = vmatmul.mubr.f32.gmra.mrb[14].mxu1 %v249_v40  ;;  %3184 = vmatprep.subr.bf16.mxu1 %v3617_v3  ;;  %v3149_v59 = vpack.c.bf16 %v675_v54, %v674_v44  ;;  %v315_v40 = vld [vmem:[%s3771_s6 + $0x398] sm:$0xff]  ;;  %v340_v54 = vld [vmem:[%s3771_s6 + $0x460] sm:$0xff] }
  0x71   : > { %1313 = vmatmul.mubr.f32.gmra.mrb[14].mxu0 %v251_v42  ;;  %972 = vmatprep.mubr.f32.mxu1 %v257_v36  ;;  %v314_v42 = vld [vmem:[%s3771_s6 + $0x390] sm:$0xff]  ;;  %v320_v36 = vld [vmem:[%s3771_s6 + $0x3c0] sm:$0xff]  ;;  %v343_v44 = vld [vmem:[%s3771_s6 + $0x478] sm:$0xff] }
  0x72   : > { %1317 = vmatprep.mubr.f32.mxu0 %v259_v45  ;;  %3144 = vmatpush1.bf16.msra.mxu0 %v3143_v43  ;;  %v322_v43 = vld [vmem:[%s3771_s6 + $0x3d0] sm:$0xff]  ;;  %v327_v45 = vld [vmem:[%s3771_s6 + $0x3f8] sm:$0xff] }
  0x73   : > { %3145 = vmatprep.subr.bf16.mxu0 %v3617_v3  ;;  %3200 = vmatpush1.bf16.msra.mxu1 %v3811_v50  ;;  %v676_v50 = vld [vmem:[%s5222_s1 + $0x2a0] sm:$0xff] }
  0x74   : > { %973 = vmatmul.mubr.f32.gmra.mrb[16].mxu1 %v256_v48  ;;  %3185 = vmatprep.subr.bf16.mxu1 %v3617_v3  ;;  %v3152_v1 = vpack.c.bf16 %v677_v60, %v676_v50  ;;  %v334_v48 = vld [vmem:[%s3771_s6 + $0x430] sm:$0xff]  ;;  %v355_v50 = vld [vmem:[%s3771_s6 + $0x4d8] sm:$0xff]  ;;  %v357_v60 = vld [vmem:[%s3771_s6 + $0x4e8] sm:$0xff] }
  0x75   : > { %1318 = vmatmul.mubr.f32.gmra.mrb[16].mxu0 %v258_v49  ;;  %977 = vmatprep.mubr.f32.mxu1 %v264_v51  ;;  %v336_v49 = vld [vmem:[%s3771_s6 + $0x440] sm:$0xff]  ;;  %v333_v51 = vld [vmem:[%s3771_s6 + $0x428] sm:$0xff] }
  0x76   : > { %1322 = vmatprep.mubr.f32.mxu0 %v266_v53  ;;  %3147 = vmatpush1.bf16.msra.mxu0 %v3146_v52  ;;  %v335_v52 = vld [vmem:[%s3771_s6 + $0x438] sm:$0xff]  ;;  %v341_v53 = vld [vmem:[%s3771_s6 + $0x468] sm:$0xff] }
  0x77   : > { %3148 = vmatprep.subr.bf16.mxu0 %v3617_v3  ;;  %3201 = vmatpush1.bf16.msra.mxu1 %v3828_v56  ;;  %v678_v56 = vld [vmem:[%s5222_s1 + $0x2b0] sm:$0xff] }
  0x78   : > { %978 = vmatmul.mubr.f32.gmra.mrb[18].mxu1 %v263_v55  ;;  %3186 = vmatprep.subr.bf16.mxu1 %v3617_v3  ;;  %v3155_v9 = vpack.c.bf16 %v679_v4, %v678_v56  ;;  %v342_v55 = vld [vmem:[%s3771_s6 + $0x470] sm:$0xff]  ;;  %v363_v56 = vld [vmem:[%s3771_s6 + $0x518] sm:$0xff]  ;;  %v369_v4 = vld [vmem:[%s3771_s6 + $0x548] sm:$0xff] }
  0x79   : > { %1323 = vmatmul.mubr.f32.gmra.mrb[18].mxu0 %v265_v57  ;;  %982 = vmatprep.mubr.f32.mxu1 %v271_v58  ;;  %v348_v57 = vld [vmem:[%s3771_s6 + $0x4a0] sm:$0xff]  ;;  %v350_v58 = vld [vmem:[%s3771_s6 + $0x4b0] sm:$0xff] }
  0x7a   : > { %1327 = vmatprep.mubr.f32.mxu0 %v273_v8  ;;  %3150 = vmatpush1.bf16.msra.mxu0 %v3149_v59  ;;  %v347_v59 = vld [vmem:[%s3771_s6 + $0x498] sm:$0xff]  ;;  %v349_v8 = vld [vmem:[%s3771_s6 + $0x4a8] sm:$0xff] }
  0x7b   : > { %3151 = vmatprep.subr.bf16.mxu0 %v3617_v3  ;;  %3202 = vmatpush1.bf16.msra.mxu1 %v3845_v62  ;;  %v680_v62 = vld [vmem:[%s5222_s1 + $0x2c0] sm:$0xff] }
  0x7c   : > { %983 = vmatmul.mubr.f32.gmra.mrb[20].mxu1 %v270_v61  ;;  %3187 = vmatprep.subr.bf16.mxu1 %v3617_v3  ;;  %v3158_v16 = vpack.c.bf16 %v681_v11, %v680_v62  ;;  %v354_v61 = vld [vmem:[%s3771_s6 + $0x4d0] sm:$0xff]  ;;  %v375_v62 = vld [vmem:[%s3771_s6 + $0x578] sm:$0xff]  ;;  %v688_v11 = vld [vmem:[%s5222_s1 + $0x300] sm:$0xff] }
  0x7d   : > { %1328 = vmatmul.mubr.f32.gmra.mrb[20].mxu0 %v272_v63  ;;  %987 = vmatprep.mubr.f32.mxu1 %v278_v0  ;;  %v356_v63 = vld [vmem:[%s3771_s6 + $0x4e0] sm:$0xff]  ;;  %v362_v0 = vld [vmem:[%s3771_s6 + $0x510] sm:$0xff] }
  0x7e   : > { %1332 = vmatprep.mubr.f32.mxu0 %v280_v2  ;;  %3153 = vmatpush1.bf16.msra.mxu0 %v3152_v1  ;;  %v364_v1 = vld [vmem:[%s3771_s6 + $0x520] sm:$0xff]  ;;  %v361_v2 = vld [vmem:[%s3771_s6 + $0x508] sm:$0xff] }
  0x7f   : > { %3154 = vmatprep.subr.bf16.mxu0 %v3617_v3  ;;  %3203 = vmatpush1.bf16.msra.mxu1 %v3862_v5  ;;  %v682_v5 = vld [vmem:[%s5222_s1 + $0x2d0] sm:$0xff] }
  0x80   : > { %988 = vmatmul.mubr.f32.gmra.mrb[22].mxu1 %v277_v6  ;;  %3188 = vmatprep.subr.bf16.mxu1 %v3617_v3  ;;  %v3161_v25 = vpack.c.bf16 %v683_v19, %v682_v5  ;;  %v371_v6 = vld [vmem:[%s3771_s6 + $0x558] sm:$0xff]  ;;  %v382_v5 = vld [vmem:[%s3771_s6 + $0x5b0] sm:$0xff]  ;;  %v384_v19 = vld [vmem:[%s3771_s6 + $0x5c0] sm:$0xff] }
  0x81   : > { %1333 = vmatmul.mubr.f32.gmra.mrb[22].mxu0 %v279_v12  ;;  %992 = vmatprep.mubr.f32.mxu1 %v285_v7  ;;  %v368_v12 = vld [vmem:[%s3771_s6 + $0x540] sm:$0xff]  ;;  %v370_v7 = vld [vmem:[%s3771_s6 + $0x550] sm:$0xff] }
  0x82   : > { %1337 = vmatprep.mubr.f32.mxu0 %v287_v10  ;;  %3156 = vmatpush1.bf16.msra.mxu0 %v3155_v9  ;;  %v376_v9 = vld [vmem:[%s3771_s6 + $0x580] sm:$0xff]  ;;  %v378_v10 = vld [vmem:[%s3771_s6 + $0x590] sm:$0xff] }
  0x83   : > { %3157 = vmatprep.subr.bf16.mxu0 %v3617_v3  ;;  %3204 = vmatpush1.bf16.msra.mxu1 %v3879_v13  ;;  %v684_v13 = vld [vmem:[%s5222_s1 + $0x2e0] sm:$0xff] }
  0x84   : > { %993 = vmatmul.mubr.f32.gmra.mrb[24].mxu1 %v284_v14  ;;  %3189 = vmatprep.subr.bf16.mxu1 %v3617_v3  ;;  %v3164_v32 = vpack.c.bf16 %v685_v26, %v684_v13  ;;  %v689_v14 = vld [vmem:[%s5222_s1 + $0x308] sm:$0xff]  ;;  %v399_v13 = vld [vmem:[%s3771_s6 + $0x638] sm:$0xff]  ;;  %v396_v26 = vld [vmem:[%s3771_s6 + $0x620] sm:$0xff] }
  0x85   : > { %1338 = vmatmul.mubr.f32.gmra.mrb[24].mxu0 %v286_v15  ;;  %997 = vmatprep.mubr.f32.mxu1 %v292_v18  ;;  %v377_v15 = vld [vmem:[%s3771_s6 + $0x588] sm:$0xff]  ;;  %v383_v18 = vld [vmem:[%s3771_s6 + $0x5b8] sm:$0xff] }
  0x86   : > { %1342 = vmatprep.mubr.f32.mxu0 %v294_v17  ;;  %3159 = vmatpush1.bf16.msra.mxu0 %v3158_v16  ;;  %v4204_v16 = vpack.c.bf16 %v689_v14, %v688_v11  ;;  %v385_v17 = vld [vmem:[%s3771_s6 + $0x5c8] sm:$0xff]  ;;  %v488_v11 = vld [vmem:[%s3771_s6 + $0x900] sm:$0xff]  ;;  %v490_v14 = vld [vmem:[%s3771_s6 + $0x910] sm:$0xff] }
  0x87   : > { %3160 = vmatprep.subr.bf16.mxu0 %v3617_v3  ;;  %3205 = vmatpush1.bf16.msra.mxu1 %v3896_v20  ;;  %v686_v20 = vld [vmem:[%s5222_s1 + $0x2f0] sm:$0xff] }
  0x88   : > { %998 = vmatmul.mubr.f32.gmra.mrb[26].mxu1 %v291_v21  ;;  %3190 = vmatprep.subr.bf16.mxu1 %v3617_v3  ;;  %v3167_v39 = vpack.c.bf16 %v687_v30, %v686_v20  ;;  %v390_v21 = vld [vmem:[%s3771_s6 + $0x5f0] sm:$0xff]  ;;  %v411_v20 = vld [vmem:[%s3771_s6 + $0x698] sm:$0xff]  ;;  %v413_v30 = vld [vmem:[%s3771_s6 + $0x6a8] sm:$0xff] }
  0x89   : > { %1343 = vmatmul.mubr.f32.gmra.mrb[26].mxu0 %v293_v22  ;;  %1002 = vmatprep.mubr.f32.mxu1 %v299_v23  ;;  %v392_v22 = vld [vmem:[%s3771_s6 + $0x600] sm:$0xff]  ;;  %v389_v23 = vld [vmem:[%s3771_s6 + $0x5e8] sm:$0xff] }
  0x8a   : > { %1347 = vmatprep.mubr.f32.mxu0 %v301_v24  ;;  %3162 = vmatpush1.bf16.msra.mxu0 %v3161_v25  ;;  %v391_v25 = vld [vmem:[%s3771_s6 + $0x5f8] sm:$0xff]  ;;  %v397_v24 = vld [vmem:[%s3771_s6 + $0x628] sm:$0xff] }
  0x8b   : > { %3163 = vmatprep.subr.bf16.mxu0 %v3617_v3  ;;  %3206 = vmatpush1.bf16.msra.mxu1 %v3913_v27  ;;  %v312_v27 = vld [vmem:[%s3771_s6 + $0x380] sm:$0xff] }
  0x8c   : > { %1003 = vmatmul.mubr.f32.gmra.mrb[28].mxu1 %v298_v28  ;;  %3191 = vmatprep.subr.bf16.mxu1 %v3617_v3  ;;  %v398_v28 = vld [vmem:[%s3771_s6 + $0x630] sm:$0xff] }
  0x8d   : > { %1348 = vmatmul.mubr.f32.gmra.mrb[28].mxu0 %v300_v29  ;;  %1007 = vmatprep.mubr.f32.mxu1 %v306_v31  ;;  %v404_v29 = vld [vmem:[%s3771_s6 + $0x660] sm:$0xff]  ;;  %v406_v31 = vld [vmem:[%s3771_s6 + $0x670] sm:$0xff] }
  0x8e   : > { %1352 = vmatprep.mubr.f32.mxu0 %v308_v33  ;;  %3165 = vmatpush1.bf16.msra.mxu0 %v3164_v32  ;;  %v403_v32 = vld [vmem:[%s3771_s6 + $0x658] sm:$0xff]  ;;  %v405_v33 = vld [vmem:[%s3771_s6 + $0x668] sm:$0xff] }
  0x8f   : > { %3166 = vmatprep.subr.bf16.mxu0 %v3617_v3  ;;  %3207 = vmatpush1.bf16.msra.mxu1 %v3930_v34  ;;  %v321_v34 = vld [vmem:[%s3771_s6 + $0x3c8] sm:$0xff] }
  0x90   : > { %1008 = vmatmul.mubr.f32.gmra.mrb[30].mxu1 %v305_v35  ;;  %3192 = vmatprep.subr.bf16.mxu1 %v3617_v3  ;;  %v319_v3 = vld [vmem:[%s3771_s6 + $0x3b8] sm:$0xff]  ;;  %v410_v35 = vld [vmem:[%s3771_s6 + $0x690] sm:$0xff] }
  0x91   : > { %1353 = vmatmul.mubr.f32.gmra.mrb[30].mxu0 %v307_v37  ;;  %1012 = vmatprep.mubr.f32.mxu1 %v313_v38  ;;  %v412_v37 = vld [vmem:[%s3771_s6 + $0x6a0] sm:$0xff]  ;;  %v418_v38 = vld [vmem:[%s3771_s6 + $0x6d0] sm:$0xff] }
  0x92   : > { %1357 = vmatprep.mubr.f32.mxu0 %v315_v40  ;;  %3168 = vmatpush1.bf16.msra.mxu0 %v3167_v39  ;;  %v420_v39 = vld [vmem:[%s3771_s6 + $0x6e0] sm:$0xff]  ;;  %v417_v40 = vld [vmem:[%s3771_s6 + $0x6c8] sm:$0xff] }
  0x93   : > { %3208 = vmatpush1.bf16.msra.mxu1 %v3947_v41  ;;  %v328_v41 = vld [vmem:[%s3771_s6 + $0x400] sm:$0xff] }
  0x94   : > { %1013 = vmatmul.mubr.f32.gmra.mrb[32].mxu1 %v312_v27  ;;  %3170 = vmatprep.subr.bf16.mxu1 %v4204_v16  ;;  %v419_v27 = vld [vmem:[%s3771_s6 + $0x6d8] sm:$0xff] }
  0x95   : > { %1358 = vmatmul.mubr.f32.gmra.mrb[32].mxu0 %v314_v42  ;;  %1017 = vmatprep.mubr.f32.mxu1 %v320_v36  ;;  %v425_v42 = vld [vmem:[%s3771_s6 + $0x708] sm:$0xff]  ;;  %v427_v36 = vld [vmem:[%s3771_s6 + $0x718] sm:$0xff] }
  0x96   : > { %1362 = vmatprep.mubr.f32.mxu0 %v322_v43  ;;  %v424_v43 = vld [vmem:[%s3771_s6 + $0x700] sm:$0xff] }
  0x98   : > { %1018 = vmatmul.mubr.f32.gmra.mrb[34].mxu1 %v319_v3  ;;  %v426_v3 = vld [vmem:[%s3771_s6 + $0x710] sm:$0xff] }
  0x99   : > { %1363 = vmatmul.mubr.f32.gmra.mrb[34].mxu0 %v321_v34  ;;  %1022 = vmatprep.mubr.f32.mxu1 %v327_v45  ;;  %v432_v34 = vld [vmem:[%s3771_s6 + $0x740] sm:$0xff]  ;;  %v434_v45 = vld [vmem:[%s3771_s6 + $0x750] sm:$0xff] }
  0x9a   : > { %1367 = vmatprep.mubr.f32.mxu0 %v329_v46  ;;  %v431_v46 = vld [vmem:[%s3771_s6 + $0x738] sm:$0xff] }
  0x9c   : > { %1023 = vmatmul.mubr.f32.gmra.mrb[36].mxu1 %v326_v47  ;;  %v433_v47 = vld [vmem:[%s3771_s6 + $0x748] sm:$0xff] }
  0x9d   : > { %1368 = vmatmul.mubr.f32.gmra.mrb[36].mxu0 %v328_v41  ;;  %1027 = vmatprep.mubr.f32.mxu1 %v334_v48  ;;  %v439_v41 = vld [vmem:[%s3771_s6 + $0x778] sm:$0xff]  ;;  %v441_v48 = vld [vmem:[%s3771_s6 + $0x788] sm:$0xff] }
  0x9e   : > { %1372 = vmatprep.mubr.f32.mxu0 %v336_v49  ;;  %v438_v49 = vld [vmem:[%s3771_s6 + $0x770] sm:$0xff] }
  0xa0   : > { %1028 = vmatmul.mubr.f32.gmra.mrb[38].mxu1 %v333_v51  ;;  %v440_v51 = vld [vmem:[%s3771_s6 + $0x780] sm:$0xff] }
  0xa1   : > { %1373 = vmatmul.mubr.f32.gmra.mrb[38].mxu0 %v335_v52  ;;  %1032 = vmatprep.mubr.f32.mxu1 %v341_v53  ;;  %v446_v52 = vld [vmem:[%s3771_s6 + $0x7b0] sm:$0xff]  ;;  %v448_v53 = vld [vmem:[%s3771_s6 + $0x7c0] sm:$0xff] }
  0xa2   : > { %1377 = vmatprep.mubr.f32.mxu0 %v343_v44  ;;  %v445_v44 = vld [vmem:[%s3771_s6 + $0x7a8] sm:$0xff] }
  0xa4   : > { %1033 = vmatmul.mubr.f32.gmra.mrb[40].mxu1 %v340_v54  ;;  %v447_v54 = vld [vmem:[%s3771_s6 + $0x7b8] sm:$0xff] }
  0xa5   : > { %1378 = vmatmul.mubr.f32.gmra.mrb[40].mxu0 %v342_v55  ;;  %1037 = vmatprep.mubr.f32.mxu1 %v348_v57  ;;  %v453_v55 = vld [vmem:[%s3771_s6 + $0x7e8] sm:$0xff]  ;;  %v455_v57 = vld [vmem:[%s3771_s6 + $0x7f8] sm:$0xff] }
  0xa6   : > { %1382 = vmatprep.mubr.f32.mxu0 %v350_v58  ;;  %v452_v58 = vld [vmem:[%s3771_s6 + $0x7e0] sm:$0xff] }
  0xa8   : > { %1038 = vmatmul.mubr.f32.gmra.mrb[42].mxu1 %v347_v59  ;;  %v454_v59 = vld [vmem:[%s3771_s6 + $0x7f0] sm:$0xff] }
  0xa9   : > { %1383 = vmatmul.mubr.f32.gmra.mrb[42].mxu0 %v349_v8  ;;  %1042 = vmatprep.mubr.f32.mxu1 %v355_v50  ;;  %v460_v8 = vld [vmem:[%s3771_s6 + $0x820] sm:$0xff]  ;;  %v462_v50 = vld [vmem:[%s3771_s6 + $0x830] sm:$0xff] }
  0xaa   : > { %1387 = vmatprep.mubr.f32.mxu0 %v357_v60  ;;  %v459_v60 = vld [vmem:[%s3771_s6 + $0x818] sm:$0xff] }
  0xac   : > { %1043 = vmatmul.mubr.f32.gmra.mrb[44].mxu1 %v354_v61  ;;  %v461_v61 = vld [vmem:[%s3771_s6 + $0x828] sm:$0xff] }
  0xad   : > { %1388 = vmatmul.mubr.f32.gmra.mrb[44].mxu0 %v356_v63  ;;  %1047 = vmatprep.mubr.f32.mxu1 %v362_v0  ;;  %v467_v63 = vld [vmem:[%s3771_s6 + $0x858] sm:$0xff]  ;;  %v469_v0 = vld [vmem:[%s3771_s6 + $0x868] sm:$0xff] }
  0xae   : > { %1392 = vmatprep.mubr.f32.mxu0 %v364_v1  ;;  %v466_v1 = vld [vmem:[%s3771_s6 + $0x850] sm:$0xff] }
  0xb0   : > { %1048 = vmatmul.mubr.f32.gmra.mrb[46].mxu1 %v361_v2  ;;  %v468_v2 = vld [vmem:[%s3771_s6 + $0x860] sm:$0xff] }
  0xb1   : > { %1393 = vmatmul.mubr.f32.gmra.mrb[46].mxu0 %v363_v56  ;;  %1052 = vmatprep.mubr.f32.mxu1 %v369_v4  ;;  %v474_v56 = vld [vmem:[%s3771_s6 + $0x890] sm:$0xff]  ;;  %v476_v4 = vld [vmem:[%s3771_s6 + $0x8a0] sm:$0xff] }
  0xb2   : > { %1397 = vmatprep.mubr.f32.mxu0 %v371_v6  ;;  %v473_v6 = vld [vmem:[%s3771_s6 + $0x888] sm:$0xff] }
  0xb4   : > { %1053 = vmatmul.mubr.f32.gmra.mrb[48].mxu1 %v368_v12  ;;  %v475_v12 = vld [vmem:[%s3771_s6 + $0x898] sm:$0xff] }
  0xb5   : > { %1398 = vmatmul.mubr.f32.gmra.mrb[48].mxu0 %v370_v7  ;;  %1057 = vmatprep.mubr.f32.mxu1 %v376_v9  ;;  %v481_v7 = vld [vmem:[%s3771_s6 + $0x8c8] sm:$0xff]  ;;  %v483_v9 = vld [vmem:[%s3771_s6 + $0x8d8] sm:$0xff] }
  0xb6   : > { %1402 = vmatprep.mubr.f32.mxu0 %v378_v10  ;;  %v480_v10 = vld [vmem:[%s3771_s6 + $0x8c0] sm:$0xff] }
  0xb8   : > { %1058 = vmatmul.mubr.f32.gmra.mrb[50].mxu1 %v375_v62  ;;  %v482_v62 = vld [vmem:[%s3771_s6 + $0x8d0] sm:$0xff] }
  0xb9   : > { %1403 = vmatmul.mubr.f32.gmra.mrb[50].mxu0 %v377_v15  ;;  %1062 = vmatprep.mubr.f32.mxu1 %v383_v18  ;;  %v487_v15 = vld [vmem:[%s3771_s6 + $0x8f8] sm:$0xff]  ;;  %v489_v18 = vld [vmem:[%s3771_s6 + $0x908] sm:$0xff] }
  0xba   : > { %1407 = vmatprep.mubr.f32.mxu0 %v385_v17  ;;  %v495_v17 = vld [vmem:[%s3771_s6 + $0x938] sm:$0xff] }
  0xbc   : > { %1063 = vmatmul.mubr.f32.gmra.mrb[52].mxu1 %v382_v5  ;;  %v205_v5 = vld [vmem:[%s3771_s6 + $0x28] sm:$0xff] }
  0xbd   : > { %1408 = vmatmul.mubr.f32.gmra.mrb[52].mxu0 %v384_v19  ;;  %1067 = vmatprep.mubr.f32.mxu1 %v390_v21  ;;  %v494_v19 = vld [vmem:[%s3771_s6 + $0x930] sm:$0xff]  ;;  %v204_v21 = vld [vmem:[%s3771_s6 + $0x20] sm:$0xff] }
  0xbe   : > { %1412 = vmatprep.mubr.f32.mxu0 %v392_v22  ;;  %v502_v22 = vld [vmem:[%s3771_s6 + $0x970] sm:$0xff] }
  0xc0   : > { %1068 = vmatmul.mubr.f32.gmra.mrb[54].mxu1 %v389_v23  ;;  %v212_v23 = vld [vmem:[%s3771_s6 + $0x60] sm:$0xff] }
  0xc1   : > { %1413 = vmatmul.mubr.f32.gmra.mrb[54].mxu0 %v391_v25  ;;  %1072 = vmatprep.mubr.f32.mxu1 %v397_v24  ;;  %v501_v25 = vld [vmem:[%s3771_s6 + $0x968] sm:$0xff]  ;;  %v211_v24 = vld [vmem:[%s3771_s6 + $0x58] sm:$0xff] }
  0xc2   : > { %1417 = vmatprep.mubr.f32.mxu0 %v399_v13  ;;  %v509_v13 = vld [vmem:[%s3771_s6 + $0x9a8] sm:$0xff] }
  0xc4   : > { %1073 = vmatmul.mubr.f32.gmra.mrb[56].mxu1 %v396_v26  ;;  %v219_v26 = vld [vmem:[%s3771_s6 + $0x98] sm:$0xff] }
  0xc5   : > { %1418 = vmatmul.mubr.f32.gmra.mrb[56].mxu0 %v398_v28  ;;  %1077 = vmatprep.mubr.f32.mxu1 %v404_v29  ;;  %v508_v28 = vld [vmem:[%s3771_s6 + $0x9a0] sm:$0xff]  ;;  %v218_v29 = vld [vmem:[%s3771_s6 + $0x90] sm:$0xff] }
  0xc6   : > { %1422 = vmatprep.mubr.f32.mxu0 %v406_v31  ;;  %v516_v31 = vld [vmem:[%s3771_s6 + $0x9e0] sm:$0xff] }
  0xc8   : > { %1078 = vmatmul.mubr.f32.gmra.mrb[58].mxu1 %v403_v32  ;;  %v226_v32 = vld [vmem:[%s3771_s6 + $0xd0] sm:$0xff] }
  0xc9   : > { %1423 = vmatmul.mubr.f32.gmra.mrb[58].mxu0 %v405_v33  ;;  %1082 = vmatprep.mubr.f32.mxu1 %v411_v20  ;;  %v515_v33 = vld [vmem:[%s3771_s6 + $0x9d8] sm:$0xff]  ;;  %v225_v20 = vld [vmem:[%s3771_s6 + $0xc8] sm:$0xff] }
  0xca   : > { %1427 = vmatprep.mubr.f32.mxu0 %v413_v30  ;;  %v523_v30 = vld [vmem:[%s3771_s6 + $0xa18] sm:$0xff] }
  0xcc   : > { %1083 = vmatmul.mubr.f32.gmra.mrb[60].mxu1 %v410_v35  ;;  %v233_v35 = vld [vmem:[%s3771_s6 + $0x108] sm:$0xff] }
  0xcd   : > { %1428 = vmatmul.mubr.f32.gmra.mrb[60].mxu0 %v412_v37  ;;  %1087 = vmatprep.mubr.f32.mxu1 %v418_v38  ;;  %v522_v37 = vld [vmem:[%s3771_s6 + $0xa10] sm:$0xff]  ;;  %v232_v38 = vld [vmem:[%s3771_s6 + $0x100] sm:$0xff] }
  0xce   : > { %1432 = vmatprep.mubr.f32.mxu0 %v420_v39  ;;  %v530_v39 = vld [vmem:[%s3771_s6 + $0xa50] sm:$0xff] }
  0xd0   : > { %1088 = vmatmul.mubr.f32.gmra.mrb[62].mxu1 %v417_v40  ;;  %v240_v40 = vld [vmem:[%s3771_s6 + $0x140] sm:$0xff] }
  0xd1   : > { %1433 = vmatmul.mubr.f32.gmra.mrb[62].mxu0 %v419_v27  ;;  %1092 = vmatprep.mubr.f32.mxu1 %v425_v42  ;;  %v529_v27 = vld [vmem:[%s3771_s6 + $0xa48] sm:$0xff]  ;;  %v239_v42 = vld [vmem:[%s3771_s6 + $0x138] sm:$0xff] }
  0xd2   : > { %1437 = vmatprep.mubr.f32.mxu0 %v427_v36  ;;  %v537_v36 = vld [vmem:[%s3771_s6 + $0xa88] sm:$0xff] }
  0xd4   : > { %1093 = vmatmul.mubr.f32.gmra.mrb[64].mxu1 %v424_v43  ;;  %v247_v43 = vld [vmem:[%s3771_s6 + $0x178] sm:$0xff] }
  0xd5   : > { %1438 = vmatmul.mubr.f32.gmra.mrb[64].mxu0 %v426_v3  ;;  %1097 = vmatprep.mubr.f32.mxu1 %v432_v34  ;;  %v536_v3 = vld [vmem:[%s3771_s6 + $0xa80] sm:$0xff]  ;;  %v246_v34 = vld [vmem:[%s3771_s6 + $0x170] sm:$0xff] }
  0xd6   : > { %1442 = vmatprep.mubr.f32.mxu0 %v434_v45  ;;  %v544_v45 = vld [vmem:[%s3771_s6 + $0xac0] sm:$0xff] }
  0xd8   : > { %1098 = vmatmul.mubr.f32.gmra.mrb[66].mxu1 %v431_v46  ;;  %v254_v46 = vld [vmem:[%s3771_s6 + $0x1b0] sm:$0xff] }
  0xd9   : > { %1443 = vmatmul.mubr.f32.gmra.mrb[66].mxu0 %v433_v47  ;;  %1102 = vmatprep.mubr.f32.mxu1 %v439_v41  ;;  %v543_v47 = vld [vmem:[%s3771_s6 + $0xab8] sm:$0xff]  ;;  %v253_v41 = vld [vmem:[%s3771_s6 + $0x1a8] sm:$0xff] }
  0xda   : > { %1447 = vmatprep.mubr.f32.mxu0 %v441_v48  ;;  %v551_v48 = vld [vmem:[%s3771_s6 + $0xaf8] sm:$0xff] }
  0xdc   : > { %1103 = vmatmul.mubr.f32.gmra.mrb[68].mxu1 %v438_v49  ;;  %v261_v49 = vld [vmem:[%s3771_s6 + $0x1e8] sm:$0xff] }
  0xdd   : > { %1448 = vmatmul.mubr.f32.gmra.mrb[68].mxu0 %v440_v51  ;;  %1107 = vmatprep.mubr.f32.mxu1 %v446_v52  ;;  %v550_v51 = vld [vmem:[%s3771_s6 + $0xaf0] sm:$0xff]  ;;  %v260_v52 = vld [vmem:[%s3771_s6 + $0x1e0] sm:$0xff] }
  0xde   : > { %1452 = vmatprep.mubr.f32.mxu0 %v448_v53  ;;  %v558_v53 = vld [vmem:[%s3771_s6 + $0xb30] sm:$0xff] }
  0xe0   : > { %1108 = vmatmul.mubr.f32.gmra.mrb[70].mxu1 %v445_v44  ;;  %v268_v44 = vld [vmem:[%s3771_s6 + $0x220] sm:$0xff] }
  0xe1   : > { %1453 = vmatmul.mubr.f32.gmra.mrb[70].mxu0 %v447_v54  ;;  %1112 = vmatprep.mubr.f32.mxu1 %v453_v55  ;;  %v557_v54 = vld [vmem:[%s3771_s6 + $0xb28] sm:$0xff]  ;;  %v267_v55 = vld [vmem:[%s3771_s6 + $0x218] sm:$0xff] }
  0xe2   : > { %1457 = vmatprep.mubr.f32.mxu0 %v455_v57  ;;  %v565_v57 = vld [vmem:[%s3771_s6 + $0xb68] sm:$0xff] }
  0xe4   : > { %1113 = vmatmul.mubr.f32.gmra.mrb[72].mxu1 %v452_v58  ;;  %v275_v58 = vld [vmem:[%s3771_s6 + $0x258] sm:$0xff] }
  0xe5   : > { %1458 = vmatmul.mubr.f32.gmra.mrb[72].mxu0 %v454_v59  ;;  %1117 = vmatprep.mubr.f32.mxu1 %v460_v8  ;;  %v564_v59 = vld [vmem:[%s3771_s6 + $0xb60] sm:$0xff]  ;;  %v274_v8 = vld [vmem:[%s3771_s6 + $0x250] sm:$0xff] }
  0xe6   : > { %1462 = vmatprep.mubr.f32.mxu0 %v462_v50  ;;  %v572_v50 = vld [vmem:[%s3771_s6 + $0xba0] sm:$0xff] }
  0xe8   : > { %1118 = vmatmul.mubr.f32.gmra.mrb[74].mxu1 %v459_v60  ;;  %v282_v60 = vld [vmem:[%s3771_s6 + $0x290] sm:$0xff] }
  0xe9   : > { %1463 = vmatmul.mubr.f32.gmra.mrb[74].mxu0 %v461_v61  ;;  %1122 = vmatprep.mubr.f32.mxu1 %v467_v63  ;;  %v571_v61 = vld [vmem:[%s3771_s6 + $0xb98] sm:$0xff]  ;;  %v281_v63 = vld [vmem:[%s3771_s6 + $0x288] sm:$0xff] }
  0xea   : > { %1467 = vmatprep.mubr.f32.mxu0 %v469_v0  ;;  %v579_v0 = vld [vmem:[%s3771_s6 + $0xbd8] sm:$0xff] }
  0xec   : > { %1123 = vmatmul.mubr.f32.gmra.mrb[76].mxu1 %v466_v1 }
  0xed   : > { %1468 = vmatmul.mubr.f32.gmra.mrb[76].mxu0 %v468_v2  ;;  %1127 = vmatprep.mubr.f32.mxu1 %v474_v56  ;;  %v289_v2 = vld [vmem:[%s3771_s6 + $0x2c8] sm:$0xff] }
  0xee   : > { %1472 = vmatprep.mubr.f32.mxu0 %v476_v4  ;;  %v578_v4 = vld [vmem:[%s3771_s6 + $0xbd0] sm:$0xff] }
  0xf0   : > { %1128 = vmatmul.mubr.f32.gmra.mrb[78].mxu1 %v473_v6  ;;  %v288_v6 = vld [vmem:[%s3771_s6 + $0x2c0] sm:$0xff] }
  0xf1   : > { %1473 = vmatmul.mubr.f32.gmra.mrb[78].mxu0 %v475_v12  ;;  %1132 = vmatprep.mubr.f32.mxu1 %v481_v7  ;;  %v586_v12 = vld [vmem:[%s3771_s6 + $0xc10] sm:$0xff] }
  0xf2   : > { %1477 = vmatprep.mubr.f32.mxu0 %v483_v9  ;;  %v296_v9 = vld [vmem:[%s3771_s6 + $0x300] sm:$0xff] }
  0xf4   : > { %1133 = vmatmul.mubr.f32.gmra.mrb[80].mxu1 %v480_v10 }
  0xf5   : > { %1478 = vmatmul.mubr.f32.gmra.mrb[80].mxu0 %v482_v62  ;;  %1137 = vmatprep.mubr.f32.mxu1 %v488_v11  ;;  %v585_v62 = vld [vmem:[%s3771_s6 + $0xc08] sm:$0xff]  ;;  %v295_v11 = vld [vmem:[%s3771_s6 + $0x2f8] sm:$0xff] }
  0xf6   : > { %1482 = vmatprep.mubr.f32.mxu0 %v490_v14  ;;  %v497_v14 = vld [vmem:[%s3771_s6 + $0x948] sm:$0xff] }
  0xf8   : > { %1138 = vmatmul.mubr.f32.gmra.mrb[82].mxu1 %v487_v15 }
  0xf9   : > { %1483 = vmatmul.mubr.f32.gmra.mrb[82].mxu0 %v489_v18  ;;  %1142 = vmatprep.mubr.f32.mxu1 %v495_v17  ;;  %v303_v18 = vld [vmem:[%s3771_s6 + $0x338] sm:$0xff] }
  0xfa   : > { %1622 = vmatprep.mubr.f32.mxu0 %v205_v5  ;;  %v690_v5 = vld [vmem:[%s5222_s1 + $0x310] sm:$0xff] }
  0xfc   : > { %1143 = vmatmul.mubr.f32.gmra.mrb[84].mxu1 %v494_v19  ;;  %v691_v19 = vld [vmem:[%s5222_s1 + $0x318] sm:$0xff] }
  0xfd   : > { %1623 = vmatmul.mubr.f32.vlgmr.msra.gmra.mrb[0].mxu0 %v204_v21  ;;  %1147 = vmatprep.mubr.f32.mxu1 %v502_v22  ;;  %v496_v21 = vld [vmem:[%s3771_s6 + $0x940] sm:$0xff]  ;;  %v302_v22 = vld [vmem:[%s3771_s6 + $0x330] sm:$0xff] }
  0xfe   : > { %1627 = vmatprep.mubr.f32.mxu0 %v212_v23 }
 0x100   : > { %1148 = vmatmul.mubr.f32.gmra.mrb[86].mxu1 %v501_v25  ;;  %v504_v25 = vld [vmem:[%s3771_s6 + $0x980] sm:$0xff] }
 0x101   : > { %1628 = vmatmul.mubr.f32.gmra.mrb[2].mxu0 %v211_v24  ;;  %1152 = vmatprep.mubr.f32.mxu1 %v509_v13  ;;  %v310_v24 = vld [vmem:[%s3771_s6 + $0x370] sm:$0xff]  ;;  %v3173_v13 = vpack.c.bf16 %v691_v19, %v690_v5  ;;  %v373_v5 = vld [vmem:[%s3771_s6 + $0x568] sm:$0xff] }
 0x102   : > { %1632 = vmatprep.mubr.f32.mxu0 %v219_v26 }
 0x104   : > { %1153 = vmatmul.mubr.f32.gmra.mrb[88].mxu1 %v508_v28  ;;  %v503_v28 = vld [vmem:[%s3771_s6 + $0x978] sm:$0xff] }
 0x105   : > { %1633 = vmatmul.mubr.f32.gmra.mrb[4].mxu0 %v218_v29  ;;  %1157 = vmatprep.mubr.f32.mxu1 %v516_v31  ;;  %v309_v29 = vld [vmem:[%s3771_s6 + $0x368] sm:$0xff]  ;;  %v511_v31 = vld [vmem:[%s3771_s6 + $0x9b8] sm:$0xff] }
 0x106   : > { %1637 = vmatprep.mubr.f32.mxu0 %v226_v32 }
 0x108   : > { %1158 = vmatmul.mubr.f32.gmra.mrb[90].mxu1 %v515_v33  ;;  %v317_v33 = vld [vmem:[%s3771_s6 + $0x3a8] sm:$0xff] }
 0x109   : > { %1638 = vmatmul.mubr.f32.gmra.mrb[6].mxu0 %v225_v20  ;;  %1162 = vmatprep.mubr.f32.mxu1 %v523_v30  ;;  %v510_v30 = vld [vmem:[%s3771_s6 + $0x9b0] sm:$0xff] }
 0x10a   : > { %1642 = vmatprep.mubr.f32.mxu0 %v233_v35  ;;  %v518_v35 = vld [vmem:[%s3771_s6 + $0x9f0] sm:$0xff] }
 0x10c   : > { %1163 = vmatmul.mubr.f32.gmra.mrb[92].mxu1 %v522_v37 }
 0x10d   : > { %1643 = vmatmul.mubr.f32.gmra.mrb[8].mxu0 %v232_v38  ;;  %1167 = vmatprep.mubr.f32.mxu1 %v530_v39  ;;  %v324_v38 = vld [vmem:[%s3771_s6 + $0x3e0] sm:$0xff] }
 0x10e   : > { %1647 = vmatprep.mubr.f32.mxu0 %v240_v40  ;;  %v517_v40 = vld [vmem:[%s3771_s6 + $0x9e8] sm:$0xff] }
 0x110   : > { %1168 = vmatmul.mubr.f32.gmra.mrb[94].mxu1 %v529_v27  ;;  %v323_v27 = vld [vmem:[%s3771_s6 + $0x3d8] sm:$0xff] }
 0x111   : > { %1648 = vmatmul.mubr.f32.gmra.mrb[10].mxu0 %v239_v42  ;;  %1172 = vmatprep.mubr.f32.mxu1 %v537_v36  ;;  %v525_v42 = vld [vmem:[%s3771_s6 + $0xa28] sm:$0xff] }
 0x112   : > { %1652 = vmatprep.mubr.f32.mxu0 %v247_v43  ;;  %v331_v43 = vld [vmem:[%s3771_s6 + $0x418] sm:$0xff] }
 0x114   : > { %1173 = vmatmul.mubr.f32.gmra.mrb[96].mxu1 %v536_v3 }
 0x115   : > { %1653 = vmatmul.mubr.f32.gmra.mrb[12].mxu0 %v246_v34  ;;  %1177 = vmatprep.mubr.f32.mxu1 %v544_v45  ;;  %v524_v34 = vld [vmem:[%s3771_s6 + $0xa20] sm:$0xff]  ;;  %v330_v45 = vld [vmem:[%s3771_s6 + $0x410] sm:$0xff] }
 0x116   : > { %1657 = vmatprep.mubr.f32.mxu0 %v254_v46  ;;  %v532_v46 = vld [vmem:[%s3771_s6 + $0xa60] sm:$0xff] }
 0x118   : > { %1178 = vmatmul.mubr.f32.gmra.mrb[98].mxu1 %v543_v47 }
 0x119   : > { %1658 = vmatmul.mubr.f32.gmra.mrb[14].mxu0 %v253_v41  ;;  %1182 = vmatprep.mubr.f32.mxu1 %v551_v48  ;;  %v338_v41 = vld [vmem:[%s3771_s6 + $0x450] sm:$0xff] }
 0x11a   : > { %1662 = vmatprep.mubr.f32.mxu0 %v261_v49  ;;  %v531_v49 = vld [vmem:[%s3771_s6 + $0xa58] sm:$0xff] }
 0x11c   : > { %1183 = vmatmul.mubr.f32.gmra.mrb[100].mxu1 %v550_v51  ;;  %v337_v51 = vld [vmem:[%s3771_s6 + $0x448] sm:$0xff] }
 0x11d   : > { %1663 = vmatmul.mubr.f32.gmra.mrb[16].mxu0 %v260_v52  ;;  %1187 = vmatprep.mubr.f32.mxu1 %v558_v53  ;;  %v539_v52 = vld [vmem:[%s3771_s6 + $0xa98] sm:$0xff] }
 0x11e   : > { %1667 = vmatprep.mubr.f32.mxu0 %v268_v44  ;;  %v345_v44 = vld [vmem:[%s3771_s6 + $0x488] sm:$0xff] }
 0x120   : > { %1188 = vmatmul.mubr.f32.gmra.mrb[102].mxu1 %v557_v54 }
 0x121   : > { %1668 = vmatmul.mubr.f32.gmra.mrb[18].mxu0 %v267_v55  ;;  %1192 = vmatprep.mubr.f32.mxu1 %v565_v57  ;;  %v538_v55 = vld [vmem:[%s3771_s6 + $0xa90] sm:$0xff]  ;;  %v344_v57 = vld [vmem:[%s3771_s6 + $0x480] sm:$0xff] }
 0x122   : > { %1672 = vmatprep.mubr.f32.mxu0 %v275_v58  ;;  %v546_v58 = vld [vmem:[%s3771_s6 + $0xad0] sm:$0xff] }
 0x124   : > { %1193 = vmatmul.mubr.f32.gmra.mrb[104].mxu1 %v564_v59 }
 0x125   : > { %1673 = vmatmul.mubr.f32.gmra.mrb[20].mxu0 %v274_v8  ;;  %1197 = vmatprep.mubr.f32.mxu1 %v572_v50  ;;  %v352_v8 = vld [vmem:[%s3771_s6 + $0x4c0] sm:$0xff] }
 0x126   : > { %1677 = vmatprep.mubr.f32.mxu0 %v282_v60  ;;  %v545_v60 = vld [vmem:[%s3771_s6 + $0xac8] sm:$0xff] }
 0x127   : > { %v4319_v1 = vpop.f32.mrb[0].mxu1 }
 0x128   : > { %1198 = vmatmul.mubr.f32.gmra.mrb[106].mxu1 %v571_v61  ;;  %v936_v56 = vpop.f32.mrb[1].mxu1  ;;  %v351_v61 = vld [vmem:[%s3771_s6 + $0x4b8] sm:$0xff] }
 0x129   : > { %1678 = vmatmul.mubr.f32.gmra.mrb[22].mxu0 %v281_v63  ;;  %1202 = vmatprep.mubr.f32.mxu1 %v579_v0  ;;  %v553_v63 = vld [vmem:[%s3771_s6 + $0xb08] sm:$0xff] }
 0x12a   : > { %1682 = vmatprep.mubr.f32.mxu0 %v289_v2  ;;  %v359_v2 = vld [vmem:[%s3771_s6 + $0x4f8] sm:$0xff] }
 0x12b   : > { %v4325_v7 = vpop.f32.mrb[2].mxu1 }
 0x12c   : > { %1203 = vmatmul.mubr.f32.gmra.mrb[108].mxu1 %v578_v4  ;;  %v941_v10 = vpop.f32.mrb[3].mxu1  ;;  %v552_v4 = vld [vmem:[%s3771_s6 + $0xb00] sm:$0xff] }
 0x12d   : > { %1683 = vmatmul.mubr.f32.gmra.mrb[24].mxu0 %v288_v6  ;;  %1207 = vmatprep.mubr.f32.mxu1 %v586_v12  ;;  %v358_v6 = vld [vmem:[%s3771_s6 + $0x4f0] sm:$0xff]  ;;  %v560_v12 = vld [vmem:[%s3771_s6 + $0xb40] sm:$0xff] }
 0x12e   : > { %1687 = vmatprep.mubr.f32.mxu0 %v296_v9  ;;  %v366_v10 = vld [vmem:[%s3771_s6 + $0x530] sm:$0xff] }
 0x12f   : > { %v4331_v15 = vpop.f32.mrb[4].mxu1 }
 0x130   : > { %1208 = vmatmul.mubr.f32.gmra.mrb[110].mxu1 %v585_v62  ;;  %v946_v17 = vpop.f32.mrb[5].mxu1 }
 0x131   : > { %1688 = vmatmul.mubr.f32.gmra.mrb[26].mxu0 %v295_v11  ;;  %1487 = vmatprep.mubr.f32.mxu1 %v497_v14  ;;  %v559_v11 = vld [vmem:[%s3771_s6 + $0xb38] sm:$0xff]  ;;  %v365_v14 = vld [vmem:[%s3771_s6 + $0x528] sm:$0xff] }
 0x132   : > { %1692 = vmatprep.mubr.f32.mxu0 %v303_v18  ;;  %v567_v18 = vld [vmem:[%s3771_s6 + $0xb78] sm:$0xff] }
 0x133   : > { %v4342_v23 = vpop.f32.mrb[6].mxu1 }
 0x134   : > { %1488 = vmatmul.mubr.f32.vlgmr.msra.gmra.mrb[84].mxu1 %v496_v21  ;;  %v951_v26 = vpop.f32.mrb[7].mxu1  ;;  %v566_v21 = vld [vmem:[%s3771_s6 + $0xb70] sm:$0xff] }
 0x135   : > { %1693 = vmatmul.mubr.f32.gmra.mrb[28].mxu0 %v302_v22  ;;  %3172 = vmatpush3.bf16.msra.mxu1 %v4204_v16  ;;  %v316_v16 = vld [vmem:[%s3771_s6 + $0x3a0] sm:$0xff] }
 0x136   : > { %1492 = vmatprep.mubr.f32.mxu1 %v504_v25  ;;  %1697 = vmatprep.mubr.f32.mxu0 %v310_v24  ;;  %v372_v22 = vld [vmem:[%s3771_s6 + $0x560] sm:$0xff]  ;;  %v574_v25 = vld [vmem:[%s3771_s6 + $0xbb0] sm:$0xff] }
 0x137   : > { %v4350_v32 = vpop.f32.mrb[8].mxu1  ;;  %3174 = vmatprep.subr.bf16.mxu1 %v3173_v13 }
 0x138   : > { %1493 = vmatmul.mubr.f32.gmra.mrb[86].mxu1 %v503_v28  ;;  %v956_v20 = vpop.f32.mrb[9].mxu1  ;;  %v573_v28 = vld [vmem:[%s3771_s6 + $0xba8] sm:$0xff] }
 0x139   : > { %1698 = vmatmul.mubr.f32.gmra.mrb[30].mxu0 %v309_v29  ;;  %1497 = vmatprep.mubr.f32.mxu1 %v511_v31  ;;  %v379_v29 = vld [vmem:[%s3771_s6 + $0x598] sm:$0xff]  ;;  %v581_v31 = vld [vmem:[%s3771_s6 + $0xbe8] sm:$0xff] }
 0x13a   : > { %1702 = vmatprep.mubr.f32.mxu0 %v317_v33  ;;  %3176 = vmatpush3.bf16.msra.mxu1 %v3173_v13  ;;  %v380_v13 = vld [vmem:[%s3771_s6 + $0x5a0] sm:$0xff]  ;;  %v387_v20 = vld [vmem:[%s3771_s6 + $0x5d8] sm:$0xff] }
 0x13b   : > { %v4356_v37 = vpop.f32.mrb[10].mxu1 }
 0x13c   : > { %1498 = vmatmul.mubr.f32.gmra.mrb[88].mxu1 %v510_v30  ;;  %v961_v39 = vpop.f32.mrb[11].mxu1 }
 0x13d   : > { %1703 = vmatmul.mubr.f32.gmra.mrb[32].mxu0 %v316_v16  ;;  %1502 = vmatprep.mubr.f32.mxu1 %v518_v35  ;;  %v580_v16 = vld [vmem:[%s3771_s6 + $0xbe0] sm:$0xff]  ;;  %v386_v35 = vld [vmem:[%s3771_s6 + $0x5d0] sm:$0xff] }
 0x13e   : > { %1707 = vmatprep.mubr.f32.mxu0 %v324_v38  ;;  %v588_v38 = vld [vmem:[%s3771_s6 + $0xc20] sm:$0xff] }
 0x13f   : > { %v4362_v36 = vpop.f32.mrb[12].mxu1 }
 0x140   : > { %1503 = vmatmul.mubr.f32.gmra.mrb[90].mxu1 %v517_v40  ;;  %v966_v3 = vpop.f32.mrb[13].mxu1  ;;  %v394_v40 = vld [vmem:[%s3771_s6 + $0x610] sm:$0xff] }
 0x141   : > { %1708 = vmatmul.mubr.f32.gmra.mrb[34].mxu0 %v323_v27  ;;  %1507 = vmatprep.mubr.f32.mxu1 %v525_v42  ;;  %v587_v42 = vld [vmem:[%s3771_s6 + $0xc18] sm:$0xff]  ;;  %v206_v3 = vld [vmem:[%s3771_s6 + $0x30] sm:$0xff] }
 0x142   : > { %1712 = vmatprep.mubr.f32.mxu0 %v331_v43  ;;  %v393_v43 = vld [vmem:[%s3771_s6 + $0x608] sm:$0xff] }
 0x143   : > { %v4368_v47 = vpop.f32.mrb[14].mxu1 }
 0x144   : > { %1508 = vmatmul.mubr.f32.gmra.mrb[92].mxu1 %v524_v34  ;;  %v971_v48 = vpop.f32.mrb[15].mxu1 }
 0x145   : > { %1713 = vmatmul.mubr.f32.gmra.mrb[36].mxu0 %v330_v45  ;;  %1512 = vmatprep.mubr.f32.mxu1 %v532_v46  ;;  %v401_v45 = vld [vmem:[%s3771_s6 + $0x648] sm:$0xff]  ;;  %v400_v48 = vld [vmem:[%s3771_s6 + $0x640] sm:$0xff] }
 0x146   : > { %1717 = vmatprep.mubr.f32.mxu0 %v338_v41  ;;  %v213_v41 = vld [vmem:[%s3771_s6 + $0x68] sm:$0xff] }
 0x147   : > { %v4374_v53 = vpop.f32.mrb[16].mxu1 }
 0x148   : > { %1513 = vmatmul.mubr.f32.gmra.mrb[94].mxu1 %v531_v49  ;;  %v976_v54 = vpop.f32.mrb[17].mxu1  ;;  %v220_v49 = vld [vmem:[%s3771_s6 + $0xa0] sm:$0xff] }
 0x149   : > { %1718 = vmatmul.mubr.f32.gmra.mrb[38].mxu0 %v337_v51  ;;  %1517 = vmatprep.mubr.f32.mxu1 %v539_v52  ;;  %v408_v52 = vld [vmem:[%s3771_s6 + $0x680] sm:$0xff]  ;;  %v227_v54 = vld [vmem:[%s3771_s6 + $0xd8] sm:$0xff] }
 0x14a   : > { %1722 = vmatprep.mubr.f32.mxu0 %v345_v44 }
 0x14b   : > { %v4380_v59 = vpop.f32.mrb[18].mxu1 }
 0x14c   : > { %1518 = vmatmul.mubr.f32.gmra.mrb[96].mxu1 %v538_v55  ;;  %v981_v50 = vpop.f32.mrb[19].mxu1  ;;  %v407_v55 = vld [vmem:[%s3771_s6 + $0x678] sm:$0xff] }
 0x14d   : > { %1723 = vmatmul.mubr.f32.gmra.mrb[40].mxu0 %v344_v57  ;;  %1522 = vmatprep.mubr.f32.mxu1 %v546_v58  ;;  %v234_v57 = vld [vmem:[%s3771_s6 + $0x110] sm:$0xff] }
 0x14e   : > { %1727 = vmatprep.mubr.f32.mxu0 %v352_v8  ;;  %v415_v8 = vld [vmem:[%s3771_s6 + $0x6b8] sm:$0xff] }
 0x14f   : > { %v4386_v0 = vpop.f32.mrb[20].mxu1 }
 0x150   : > { %1523 = vmatmul.mubr.f32.gmra.mrb[98].mxu1 %v545_v60  ;;  %v986_v56 = vpop.f32.mrb[21].mxu1  ;;  %v241_v60 = vld [vmem:[%s3771_s6 + $0x148] sm:$0xff] }
 0x151   : > { %1728 = vmatmul.mubr.f32.gmra.mrb[42].mxu0 %v351_v61  ;;  %1527 = vmatprep.mubr.f32.mxu1 %v553_v63  ;;  %v414_v61 = vld [vmem:[%s3771_s6 + $0x6b0] sm:$0xff]  ;;  %v248_v63 = vld [vmem:[%s3771_s6 + $0x180] sm:$0xff] }
 0x152   : > { %1732 = vmatprep.mubr.f32.mxu0 %v359_v2  ;;  %v422_v56 = vld [vmem:[%s3771_s6 + $0x6f0] sm:$0xff] }
 0x153   : > { %v4392_v9 = vpop.f32.mrb[22].mxu1 }
 0x154   : > { %1528 = vmatmul.mubr.f32.gmra.mrb[100].mxu1 %v552_v4  ;;  %v991_v62 = vpop.f32.mrb[23].mxu1 }
 0x155   : > { %1733 = vmatmul.mubr.f32.gmra.mrb[44].mxu0 %v358_v6  ;;  %1532 = vmatprep.mubr.f32.mxu1 %v560_v12  ;;  %v255_v6 = vld [vmem:[%s3771_s6 + $0x1b8] sm:$0xff]  ;;  %v421_v12 = vld [vmem:[%s3771_s6 + $0x6e8] sm:$0xff] }
 0x156   : > { %1737 = vmatprep.mubr.f32.mxu0 %v366_v10  ;;  %v262_v10 = vld [vmem:[%s3771_s6 + $0x1f0] sm:$0xff] }
 0x157   : > { %v4398_v17 = vpop.f32.mrb[24].mxu1 }
 0x158   : > { %1533 = vmatmul.mubr.f32.gmra.mrb[102].mxu1 %v559_v11  ;;  %v996_v19 = vpop.f32.mrb[25].mxu1  ;;  %v429_v11 = vld [vmem:[%s3771_s6 + $0x728] sm:$0xff] }
 0x159   : > { %1738 = vmatmul.mubr.f32.gmra.mrb[46].mxu0 %v365_v14  ;;  %1537 = vmatprep.mubr.f32.mxu1 %v567_v18  ;;  %v269_v18 = vld [vmem:[%s3771_s6 + $0x228] sm:$0xff]  ;;  %v276_v19 = vld [vmem:[%s3771_s6 + $0x260] sm:$0xff] }
 0x15a   : > { %1742 = vmatprep.mubr.f32.mxu0 %v373_v5  ;;  %v428_v5 = vld [vmem:[%s3771_s6 + $0x720] sm:$0xff] }
 0x15b   : > { %v4404_v24 = vpop.f32.mrb[26].mxu1 }
 0x15c   : > { %1538 = vmatmul.mubr.f32.gmra.mrb[104].mxu1 %v566_v21  ;;  %v1001_v26 = vpop.f32.mrb[27].mxu1 }
 0x15d   : > { %1743 = vmatmul.mubr.f32.gmra.mrb[48].mxu0 %v372_v22  ;;  %1542 = vmatprep.mubr.f32.mxu1 %v574_v25  ;;  %v436_v22 = vld [vmem:[%s3771_s6 + $0x760] sm:$0xff]  ;;  %v435_v26 = vld [vmem:[%s3771_s6 + $0x758] sm:$0xff] }
 0x15e   : > { %1747 = vmatprep.mubr.f32.mxu0 %v380_v13  ;;  %v283_v13 = vld [vmem:[%s3771_s6 + $0x298] sm:$0xff] }
 0x15f   : > { %v4410_v33 = vpop.f32.mrb[28].mxu1 }
 0x160   : > { %1543 = vmatmul.mubr.f32.gmra.mrb[106].mxu1 %v573_v28  ;;  %v1006_v30 = vpop.f32.mrb[29].mxu1  ;;  %v290_v28 = vld [vmem:[%s3771_s6 + $0x2d0] sm:$0xff] }
 0x161   : > { %1748 = vmatmul.mubr.f32.gmra.mrb[50].mxu0 %v379_v29  ;;  %1547 = vmatprep.mubr.f32.mxu1 %v581_v31  ;;  %v443_v31 = vld [vmem:[%s3771_s6 + $0x798] sm:$0xff]  ;;  %v297_v30 = vld [vmem:[%s3771_s6 + $0x308] sm:$0xff] }
 0x162   : > { %1752 = vmatprep.mubr.f32.mxu0 %v387_v20 }
 0x163   : > { %v4416_v39 = vpop.f32.mrb[30].mxu1 }
 0x164   : > { %1548 = vmatmul.mubr.f32.gmra.mrb[108].mxu1 %v580_v16  ;;  %v1011_v27 = vpop.f32.mrb[31].mxu1  ;;  %v442_v16 = vld [vmem:[%s3771_s6 + $0x790] sm:$0xff] }
 0x165   : > { %1753 = vmatmul.mubr.f32.gmra.mrb[52].mxu0 %v386_v35  ;;  %1552 = vmatprep.mubr.f32.mxu1 %v588_v38  ;;  %v304_v35 = vld [vmem:[%s3771_s6 + $0x340] sm:$0xff] }
 0x166   : > { %1757 = vmatprep.mubr.f32.mxu0 %v394_v40  ;;  %v450_v40 = vld [vmem:[%s3771_s6 + $0x7d0] sm:$0xff] }
 0x167   : > { %v4422_v34 = vpop.f32.mrb[32].mxu1 }
 0x168   : > { %1553 = vmatmul.mubr.f32.gmra.mrb[110].mxu1 %v587_v42  ;;  %v1016_v46 = vpop.f32.mrb[33].mxu1  ;;  %v311_v42 = vld [vmem:[%s3771_s6 + $0x378] sm:$0xff] }
 0x169   : > { %1758 = vmatmul.mubr.f32.gmra.mrb[54].mxu0 %v393_v43  ;;  %2941 = vmatprep.mubr.msk.f32.mxu1 %vm699_vm0, %v206_v3  ;;  %v449_v43 = vld [vmem:[%s3771_s6 + $0x7c8] sm:$0xff]  ;;  %v318_v3 = vld [vmem:[%s3771_s6 + $0x3b0] sm:$0xff] }
 0x16a   : > { %1762 = vmatprep.mubr.f32.mxu0 %v401_v45  ;;  %v457_v46 = vld [vmem:[%s3771_s6 + $0x808] sm:$0xff] }
 0x16b   : > { %v4429_v51 = vpop.f32.mrb[34].mxu1 }
 0x16c   : > { %2942 = vmatmul.mubr.msk.f32.vlgmr.msra.gmra.mrb[112].mxu1 %vm699_vm0, %v213_v41  ;;  %v1021_v44 = vpop.f32.mrb[35].mxu1 }
 0x16d   : > { %1763 = vmatmul.mubr.f32.gmra.mrb[56].mxu0 %v400_v48  ;;  %2944 = vmatprep.mubr.msk.f32.mxu1 %vm699_vm0, %v220_v49  ;;  %v325_v48 = vld [vmem:[%s3771_s6 + $0x3e8] sm:$0xff]  ;;  %v456_v49 = vld [vmem:[%s3771_s6 + $0x800] sm:$0xff] }
 0x16e   : > { %1767 = vmatprep.mubr.f32.mxu0 %v408_v52  ;;  %v332_v52 = vld [vmem:[%s3771_s6 + $0x420] sm:$0xff] }
 0x16f   : > { %v4437_v58 = vpop.f32.mrb[36].mxu1 }
 0x170   : > { %2945 = vmatmul.mubr.msk.f32.gmra.mrb[114].mxu1 %vm699_vm0, %v227_v54  ;;  %v1026_v50 = vpop.f32.mrb[37].mxu1  ;;  %v464_v54 = vld [vmem:[%s3771_s6 + $0x840] sm:$0xff] }
 0x171   : > { %1768 = vmatmul.mubr.f32.gmra.mrb[58].mxu0 %v407_v55  ;;  %2947 = vmatprep.mubr.msk.f32.mxu1 %vm699_vm0, %v234_v57  ;;  %v339_v57 = vld [vmem:[%s3771_s6 + $0x458] sm:$0xff]  ;;  %v346_v50 = vld [vmem:[%s3771_s6 + $0x490] sm:$0xff] }
 0x172   : > { %1772 = vmatprep.mubr.f32.mxu0 %v415_v8  ;;  %v463_v8 = vld [vmem:[%s3771_s6 + $0x838] sm:$0xff] }
 0x173   : > { %v4445_v2 = vpop.f32.mrb[38].mxu1 }
 0x174   : > { %2948 = vmatmul.mubr.msk.f32.gmra.mrb[116].mxu1 %vm699_vm0, %v241_v60  ;;  %v1031_v4 = vpop.f32.mrb[39].mxu1 }
 0x175   : > { %1773 = vmatmul.mubr.f32.gmra.mrb[60].mxu0 %v414_v61  ;;  %2950 = vmatprep.mubr.msk.f32.mxu1 %vm699_vm0, %v248_v63  ;;  %v471_v61 = vld [vmem:[%s3771_s6 + $0x878] sm:$0xff]  ;;  %v470_v4 = vld [vmem:[%s3771_s6 + $0x870] sm:$0xff] }
 0x176   : > { %1777 = vmatprep.mubr.f32.mxu0 %v422_v56  ;;  %v353_v56 = vld [vmem:[%s3771_s6 + $0x4c8] sm:$0xff] }
 0x177   : > { %v4453_v62 = vpop.f32.mrb[40].mxu1 }
 0x178   : > { %2951 = vmatmul.mubr.msk.f32.gmra.mrb[118].mxu1 %vm699_vm0, %v255_v6  ;;  %v1036_v14 = vpop.f32.mrb[41].mxu1  ;;  %v360_v6 = vld [vmem:[%s3771_s6 + $0x500] sm:$0xff] }
 0x179   : > { %1778 = vmatmul.mubr.f32.gmra.mrb[62].mxu0 %v421_v12  ;;  %2953 = vmatprep.mubr.msk.f32.mxu1 %vm699_vm0, %v262_v10  ;;  %v478_v10 = vld [vmem:[%s3771_s6 + $0x8b0] sm:$0xff]  ;;  %v367_v14 = vld [vmem:[%s3771_s6 + $0x538] sm:$0xff] }
 0x17a   : > { %1782 = vmatprep.mubr.f32.mxu0 %v429_v11 }
 0x17b   : > { %v4461_v21 = vpop.f32.mrb[42].mxu1 }
 0x17c   : > { %2954 = vmatmul.mubr.msk.f32.gmra.mrb[120].mxu1 %vm699_vm0, %v269_v18  ;;  %v1041_v25 = vpop.f32.mrb[43].mxu1  ;;  %v477_v18 = vld [vmem:[%s3771_s6 + $0x8a8] sm:$0xff] }
 0x17d   : > { %1783 = vmatmul.mubr.f32.gmra.mrb[64].mxu0 %v428_v5  ;;  %2956 = vmatprep.mubr.msk.f32.mxu1 %vm699_vm0, %v276_v19  ;;  %v374_v5 = vld [vmem:[%s3771_s6 + $0x570] sm:$0xff] }
 0x17e   : > { %1787 = vmatprep.mubr.f32.mxu0 %v436_v22  ;;  %v485_v22 = vld [vmem:[%s3771_s6 + $0x8e8] sm:$0xff] }
 0x17f   : > { %v4469_v29 = vpop.f32.mrb[44].mxu1 }
 0x180   : > { %2957 = vmatmul.mubr.msk.f32.gmra.mrb[122].mxu1 %vm699_vm0, %v283_v13  ;;  %v1046_v20 = vpop.f32.mrb[45].mxu1  ;;  %v381_v13 = vld [vmem:[%s3771_s6 + $0x5a8] sm:$0xff] }
 0x181   : > { %1788 = vmatmul.mubr.f32.gmra.mrb[66].mxu0 %v435_v26  ;;  %2959 = vmatprep.mubr.msk.f32.mxu1 %vm699_vm0, %v290_v28  ;;  %v484_v26 = vld [vmem:[%s3771_s6 + $0x8e0] sm:$0xff] }
 0x182   : > { %1792 = vmatprep.mubr.f32.mxu0 %v443_v31  ;;  %v388_v28 = vld [vmem:[%s3771_s6 + $0x5e0] sm:$0xff] }
 0x183   : > { %v4477_v38 = vpop.f32.mrb[46].mxu1  ;;  %v492_v20 = vld [vmem:[%s3771_s6 + $0x920] sm:$0xff] }
 0x184   : > { %2960 = vmatmul.mubr.msk.f32.gmra.mrb[124].mxu1 %vm699_vm0, %v297_v30  ;;  %v1051_v27 = vpop.f32.mrb[47].mxu1 }
 0x185   : > { %1793 = vmatmul.mubr.f32.gmra.mrb[68].mxu0 %v442_v16  ;;  %2962 = vmatprep.mubr.msk.f32.mxu1 %vm699_vm0, %v304_v35  ;;  %v395_v16 = vld [vmem:[%s3771_s6 + $0x618] sm:$0xff] }
 0x186   : > { %1797 = vmatprep.mubr.f32.mxu0 %v450_v40  ;;  %v491_v35 = vld [vmem:[%s3771_s6 + $0x918] sm:$0xff]  ;;  %v402_v40 = vld [vmem:[%s3771_s6 + $0x650] sm:$0xff] }
 0x187   : > { %v4485_v45 = vpop.f32.mrb[48].mxu1 }
 0x188   : > { %2963 = vmatmul.mubr.msk.f32.gmra.mrb[126].mxu1 %vm699_vm0, %v311_v42  ;;  %v1056_v41 = vpop.f32.mrb[49].mxu1  ;;  %v499_v42 = vld [vmem:[%s3771_s6 + $0x958] sm:$0xff] }
 0x189   : > { %1798 = vmatmul.mubr.f32.gmra.mrb[70].mxu0 %v449_v43  ;;  %2965 = vmatprep.mubr.msk.f32.mxu1 %vm699_vm0, %v318_v3  ;;  %v409_v3 = vld [vmem:[%s3771_s6 + $0x688] sm:$0xff]  ;;  %v416_v41 = vld [vmem:[%s3771_s6 + $0x6c0] sm:$0xff] }
 0x18a   : > { %1802 = vmatprep.mubr.f32.mxu0 %v457_v46  ;;  %v498_v46 = vld [vmem:[%s3771_s6 + $0x950] sm:$0xff] }
 0x18b   : > { %v4493_v44 = vpop.f32.mrb[50].mxu1 }
 0x18c   : > { %2966 = vmatmul.mubr.msk.f32.gmra.mrb[128].mxu1 %vm699_vm0, %v325_v48  ;;  %v1061_v55 = vpop.f32.mrb[51].mxu1 }
 0x18d   : > { %1803 = vmatmul.mubr.f32.gmra.mrb[72].mxu0 %v456_v49  ;;  %2968 = vmatprep.mubr.msk.f32.mxu1 %vm699_vm0, %v332_v52  ;;  %v506_v49 = vld [vmem:[%s3771_s6 + $0x990] sm:$0xff]  ;;  %v505_v55 = vld [vmem:[%s3771_s6 + $0x988] sm:$0xff] }
 0x18e   : > { %1807 = vmatprep.mubr.f32.mxu0 %v464_v54  ;;  %v423_v54 = vld [vmem:[%s3771_s6 + $0x6f8] sm:$0xff] }
 0x18f   : > { %v4501_v60 = vpop.f32.mrb[52].mxu1 }
 0x190   : > { %2969 = vmatmul.mubr.msk.f32.gmra.mrb[130].mxu1 %vm699_vm0, %v339_v57  ;;  %v1066_v63 = vpop.f32.mrb[53].mxu1  ;;  %v430_v57 = vld [vmem:[%s3771_s6 + $0x730] sm:$0xff] }
 0x191   : > { %1808 = vmatmul.mubr.f32.gmra.mrb[74].mxu0 %v463_v8  ;;  %2971 = vmatprep.mubr.msk.f32.mxu1 %vm699_vm0, %v346_v50  ;;  %v513_v50 = vld [vmem:[%s3771_s6 + $0x9c8] sm:$0xff] }
 0x192   : > { %1812 = vmatprep.mubr.f32.mxu0 %v471_v61  ;;  %v437_v63 = vld [vmem:[%s3771_s6 + $0x768] sm:$0xff] }
 0x193   : > { %v4509_v12 = vpop.f32.mrb[54].mxu1 }
 0x194   : > { %2972 = vmatmul.mubr.msk.f32.gmra.mrb[132].mxu1 %vm699_vm0, %v353_v56  ;;  %v1071_v11 = vpop.f32.mrb[55].mxu1  ;;  %v512_v56 = vld [vmem:[%s3771_s6 + $0x9c0] sm:$0xff] }
 0x195   : > { %1813 = vmatmul.mubr.f32.gmra.mrb[76].mxu0 %v470_v4  ;;  %2974 = vmatprep.mubr.msk.f32.mxu1 %vm699_vm0, %v360_v6  ;;  %v444_v4 = vld [vmem:[%s3771_s6 + $0x7a0] sm:$0xff] }
 0x196   : > { %1817 = vmatprep.mubr.f32.mxu0 %v478_v10  ;;  %v520_v10 = vld [vmem:[%s3771_s6 + $0xa00] sm:$0xff] }
 0x197   : > { %v4517_v19 = vpop.f32.mrb[56].mxu1 }
 0x198   : > { %2975 = vmatmul.mubr.msk.f32.gmra.mrb[134].mxu1 %vm699_vm0, %v367_v14  ;;  %v1076_v25 = vpop.f32.mrb[57].mxu1  ;;  %v451_v14 = vld [vmem:[%s3771_s6 + $0x7d8] sm:$0xff] }
 0x199   : > { %1818 = vmatmul.mubr.f32.gmra.mrb[78].mxu0 %v477_v18  ;;  %2977 = vmatprep.mubr.msk.f32.mxu1 %vm699_vm0, %v374_v5  ;;  %v519_v18 = vld [vmem:[%s3771_s6 + $0x9f8] sm:$0xff]  ;;  %v458_v5 = vld [vmem:[%s3771_s6 + $0x810] sm:$0xff] }
 0x19a   : > { %1822 = vmatprep.mubr.f32.mxu0 %v485_v22  ;;  %v527_v25 = vld [vmem:[%s3771_s6 + $0xa38] sm:$0xff] }
 0x19b   : > { %v4525_v31 = vpop.f32.mrb[58].mxu1 }
 0x19c   : > { %2978 = vmatmul.mubr.msk.f32.gmra.mrb[136].mxu1 %vm699_vm0, %v381_v13  ;;  %v1081_v30 = vpop.f32.mrb[59].mxu1 }
 0x19d   : > { %1823 = vmatmul.mubr.f32.gmra.mrb[80].mxu0 %v484_v26  ;;  %2980 = vmatprep.mubr.msk.f32.mxu1 %vm699_vm0, %v388_v28  ;;  %v465_v26 = vld [vmem:[%s3771_s6 + $0x848] sm:$0xff]  ;;  %v526_v28 = vld [vmem:[%s3771_s6 + $0xa30] sm:$0xff] }
 0x19e   : > { %1827 = vmatprep.mubr.f32.mxu0 %v492_v20  ;;  %v472_v20 = vld [vmem:[%s3771_s6 + $0x880] sm:$0xff] }
 0x19f   : > { %v4533_v27 = vpop.f32.mrb[60].mxu1 }
 0x1a0   : > { %2981 = vmatmul.mubr.msk.f32.gmra.mrb[138].mxu1 %vm699_vm0, %v395_v16  ;;  %v1086_v43 = vpop.f32.mrb[61].mxu1  ;;  %v534_v16 = vld [vmem:[%s3771_s6 + $0xa70] sm:$0xff] }
 0x1a1   : > { %1828 = vmatmul.mubr.f32.gmra.mrb[82].mxu0 %v491_v35  ;;  %2983 = vmatprep.mubr.msk.f32.mxu1 %vm699_vm0, %v402_v40  ;;  %v479_v40 = vld [vmem:[%s3771_s6 + $0x8b8] sm:$0xff]  ;;  %v486_v43 = vld [vmem:[%s3771_s6 + $0x8f0] sm:$0xff] }
 0x1a2   : > { %1832 = vmatprep.mubr.f32.mxu0 %v499_v42  ;;  %v533_v42 = vld [vmem:[%s3771_s6 + $0xa68] sm:$0xff] }
 0x1a3   : > { %v4541_v48 = vpop.f32.mrb[62].mxu1 }
 0x1a4   : > { %2984 = vmatmul.mubr.msk.f32.gmra.mrb[140].mxu1 %vm699_vm0, %v409_v3  ;;  %v1091_v52 = vpop.f32.mrb[63].mxu1 }
 0x1a5   : > { %1833 = vmatmul.mubr.f32.gmra.mrb[84].mxu0 %v498_v46  ;;  %2986 = vmatprep.mubr.msk.f32.mxu1 %vm699_vm0, %v416_v41  ;;  %v541_v46 = vld [vmem:[%s3771_s6 + $0xaa8] sm:$0xff]  ;;  %v540_v52 = vld [vmem:[%s3771_s6 + $0xaa0] sm:$0xff] }
 0x1a6   : > { %1837 = vmatprep.mubr.f32.mxu0 %v506_v49  ;;  %v493_v49 = vld [vmem:[%s3771_s6 + $0x928] sm:$0xff] }
 0x1a7   : > { %v4549_v8 = vpop.f32.mrb[64].mxu1 }
 0x1a8   : > { %2987 = vmatmul.mubr.msk.f32.gmra.mrb[142].mxu1 %vm699_vm0, %v423_v54  ;;  %v1096_v61 = vpop.f32.mrb[65].mxu1  ;;  %v500_v54 = vld [vmem:[%s3771_s6 + $0x960] sm:$0xff] }
 0x1a9   : > { %1838 = vmatmul.mubr.f32.gmra.mrb[86].mxu0 %v505_v55  ;;  %2989 = vmatprep.mubr.msk.f32.mxu1 %vm699_vm0, %v430_v57  ;;  %v548_v57 = vld [vmem:[%s3771_s6 + $0xae0] sm:$0xff]  ;;  %v507_v61 = vld [vmem:[%s3771_s6 + $0x998] sm:$0xff] }
 0x1aa   : > { %1842 = vmatprep.mubr.f32.mxu0 %v513_v50 }
 0x1ab   : > { %v4557_v6 = vpop.f32.mrb[66].mxu1 }
 0x1ac   : > { %2990 = vmatmul.mubr.msk.f32.gmra.mrb[144].mxu1 %vm699_vm0, %v437_v63  ;;  %v1101_v11 = vpop.f32.mrb[67].mxu1  ;;  %v547_v63 = vld [vmem:[%s3771_s6 + $0xad8] sm:$0xff] }
 0x1ad   : > { %1843 = vmatmul.mubr.f32.gmra.mrb[88].mxu0 %v512_v56  ;;  %2992 = vmatprep.mubr.msk.f32.mxu1 %vm699_vm0, %v444_v4  ;;  %v514_v56 = vld [vmem:[%s3771_s6 + $0x9d0] sm:$0xff] }
 0x1ae   : > { %1847 = vmatprep.mubr.f32.mxu0 %v520_v10  ;;  %v555_v10 = vld [vmem:[%s3771_s6 + $0xb18] sm:$0xff] }
 0x1af   : > { %v4565_v22 = vpop.f32.mrb[68].mxu1 }
 0x1b0   : > { %2993 = vmatmul.mubr.msk.f32.gmra.mrb[146].mxu1 %vm699_vm0, %v451_v14  ;;  %v1106_v13 = vpop.f32.mrb[69].mxu1  ;;  %v521_v14 = vld [vmem:[%s3771_s6 + $0xa08] sm:$0xff] }
 0x1b1   : > { %1848 = vmatmul.mubr.f32.gmra.mrb[90].mxu0 %v519_v18  ;;  %2995 = vmatprep.mubr.msk.f32.mxu1 %vm699_vm0, %v458_v5  ;;  %v554_v18 = vld [vmem:[%s3771_s6 + $0xb10] sm:$0xff]  ;;  %v528_v5 = vld [vmem:[%s3771_s6 + $0xa40] sm:$0xff] }
 0x1b2   : > { %1852 = vmatprep.mubr.f32.mxu0 %v527_v25  ;;  %v562_v13 = vld [vmem:[%s3771_s6 + $0xb50] sm:$0xff] }
 0x1b3   : > { %v4573_v30 = vpop.f32.mrb[70].mxu1 }
 0x1b4   : > { %2996 = vmatmul.mubr.msk.f32.gmra.mrb[148].mxu1 %vm699_vm0, %v465_v26  ;;  %v1111_v35 = vpop.f32.mrb[71].mxu1 }
 0x1b5   : > { %1853 = vmatmul.mubr.f32.gmra.mrb[92].mxu0 %v526_v28  ;;  %2998 = vmatprep.mubr.msk.f32.mxu1 %vm699_vm0, %v472_v20  ;;  %v535_v28 = vld [vmem:[%s3771_s6 + $0xa78] sm:$0xff]  ;;  %v561_v20 = vld [vmem:[%s3771_s6 + $0xb48] sm:$0xff] }
 0x1b6   : > { %1857 = vmatprep.mubr.f32.mxu0 %v534_v16  ;;  %v542_v16 = vld [vmem:[%s3771_s6 + $0xab0] sm:$0xff] }
 0x1b7   : > { %v4581_v3 = vpop.f32.mrb[72].mxu1 }
 0x1b8   : > { %2999 = vmatmul.mubr.msk.f32.gmra.mrb[150].mxu1 %vm699_vm0, %v479_v40  ;;  %v1116_v41 = vpop.f32.mrb[73].mxu1  ;;  %v569_v40 = vld [vmem:[%s3771_s6 + $0xb88] sm:$0xff] }
 0x1b9   : > { %1858 = vmatmul.mubr.f32.gmra.mrb[94].mxu0 %v533_v42  ;;  %3001 = vmatprep.mubr.msk.f32.mxu1 %vm699_vm0, %v486_v43  ;;  %v549_v43 = vld [vmem:[%s3771_s6 + $0xae8] sm:$0xff]  ;;  %v556_v41 = vld [vmem:[%s3771_s6 + $0xb20] sm:$0xff] }
 0x1ba   : > { %1862 = vmatprep.mubr.f32.mxu0 %v541_v46  ;;  %v568_v46 = vld [vmem:[%s3771_s6 + $0xb80] sm:$0xff] }
 0x1bb   : > { %v4589_v55 = vpop.f32.mrb[74].mxu1 }
 0x1bc   : > { %3002 = vmatmul.mubr.msk.f32.gmra.mrb[152].mxu1 %vm699_vm0, %v493_v49  ;;  %v1121_v50 = vpop.f32.mrb[75].mxu1 }
 0x1bd   : > { %1863 = vmatmul.mubr.f32.gmra.mrb[96].mxu0 %v540_v52  ;;  %3004 = vmatprep.mubr.msk.f32.mxu1 %vm699_vm0, %v500_v54  ;;  %v576_v52 = vld [vmem:[%s3771_s6 + $0xbc0] sm:$0xff]  ;;  %v563_v50 = vld [vmem:[%s3771_s6 + $0xb58] sm:$0xff] }
 0x1be   : > { %1867 = vmatprep.mubr.f32.mxu0 %v548_v57  ;;  %v4627_v54 = vld [vmem:[%s5223_s2] ss:$0 sm:$0xff] }
 0x1bf   : > { %v4597_v4 = vpop.f32.mrb[76].mxu1 }
 0x1c0   : > { %3005 = vmatmul.mubr.msk.f32.gmra.mrb[154].mxu1 %vm699_vm0, %v507_v61  ;;  %v1126_v11 = vpop.f32.mrb[77].mxu1  ;;  %v575_v61 = vld [vmem:[%s3771_s6 + $0xbb8] sm:$0xff] }
 0x1c1   : > { %1868 = vmatmul.mubr.f32.gmra.mrb[98].mxu0 %v547_v63  ;;  %3007 = vmatprep.mubr.msk.f32.mxu1 %vm699_vm0, %v514_v56  ;;  %v570_v63 = vld [vmem:[%s3771_s6 + $0xb90] sm:$0xff]  ;;  %v935_v56 = vadd.f32 %v4627_v54, %v4319_v1 }
 0x1c2   : > { %1872 = vmatprep.mubr.f32.mxu0 %v555_v10  ;;  %v583_v10 = vld [vmem:[%s3771_s6 + $0xbf8] sm:$0xff]  ;;  %v590_v1 = vld [vmem:[%s3771_s6 + $0xc30] sm:$0xff] }
 0x1c3   : > { %v4605_v25 = vpop.f32.mrb[78].mxu1 }
 0x1c4   : > { %3008 = vmatmul.mubr.msk.f32.gmra.mrb[156].mxu1 %vm699_vm0, %v521_v14  ;;  %v1131_v26 = vpop.f32.mrb[79].mxu1 }
 0x1c5   : > { %1873 = vmatmul.mubr.f32.gmra.mrb[100].mxu0 %v554_v18  ;;  %3010 = vmatprep.mubr.msk.f32.mxu1 %vm699_vm0, %v528_v5  ;;  %v577_v5 = vld [vmem:[%s3771_s6 + $0xbc8] sm:$0xff]  ;;  %v584_v26 = vld [vmem:[%s3771_s6 + $0xc00] sm:$0xff] }
 0x1c6   : > { %1877 = vmatprep.mubr.f32.mxu0 %v562_v13  ;;  %v582_v13 = vld [vmem:[%s3771_s6 + $0xbf0] sm:$0xff] }
 0x1c7   : > { %v4613_v35 = vpop.f32.mrb[80].mxu1 }
 0x1c8   : > { %3011 = vmatmul.mubr.msk.f32.gmra.mrb[158].mxu1 %vm699_vm0, %v535_v28  ;;  %v1136_v42 = vpop.f32.mrb[81].mxu1  ;;  %v940_v28 = vadd.f32 %v4627_v54, %v4325_v7 }
 0x1c9   : > { %1878 = vmatmul.mubr.f32.gmra.mrb[102].mxu0 %v561_v20  ;;  %3013 = vmatprep.mubr.msk.f32.mxu1 %vm699_vm0, %v542_v16  ;;  %v591_v42 = vld [vmem:[%s3771_s6 + $0xc38] sm:$0xff] }
 0x1ca   : > { %1882 = vmatprep.mubr.f32.mxu0 %v569_v40 }
 0x1cb   : > { %v4621_v49 = vpop.f32.mrb[82].mxu1 }
 0x1cc   : > { %3014 = vmatmul.mubr.msk.f32.gmra.mrb[160].mxu1 %vm699_vm0, %v549_v43  ;;  %v1141_v57 = vpop.f32.mrb[83].mxu1  ;;  %v589_v43 = vld [vmem:[%s3771_s6 + $0xc28] sm:$0xff]  ;;  %s175_s6 = sand.u32 1, %s3575_s12  }
 0x1cd   : > { %1883 = vmatmul.mubr.f32.gmra.mrb[104].mxu0 %v568_v46  ;;  %3016 = vmatprep.mubr.msk.f32.mxu1 %vm699_vm0, %v556_v41  ;;  %v945_v46 = vadd.f32 %v4627_v54, %v4331_v15  ;;  %v950_v57 = vadd.f32 %v4627_v54, %v4342_v23  ;;  %v965_v23 = vadd.f32 %v4627_v54, %v4362_v36  ;;  %s3433_s9 = smul.u32 448, %s175_s6 }
 0x1ce   : > { %1887 = vmatprep.mubr.f32.mxu0 %v576_v52  ;;  %v980_v36 = vadd.f32 %v4627_v54, %v4380_v59  ;;  %v995_v59 = vadd.f32 %v4627_v54, %v4398_v17 }
 0x1cf   : > { %s4795_s12 = scalar_lea.vmem [#allocation2], %s3433_s9  }
 0x1d0   : > { %v1624_v11 = vpop.f32.mrb[0].mxu0  ;;  %3017 = vmatmul.mubr.msk.f32.gmra.mrb[162].mxu1 %vm699_vm0, %v563_v50 }
 0x1d1   : > { %v4638_v14 = vadd.f32 %v1624_v11, %v935_v56  ;;  %v1626_v18 = vpop.f32.mrb[1].mxu0  ;;  %1888 = vmatmul.mubr.f32.gmra.mrb[106].mxu0 %v575_v61  ;;  %3019 = vmatprep.mubr.msk.f32.mxu1 %vm699_vm0, %v570_v63  ;;  %v955_v56 = vadd.f32 %v4627_v54, %v4350_v32  ;;  %v970_v32 = vadd.f32 %v4627_v54, %v4368_v47 }
 0x1d2   : > { %1892 = vmatprep.mubr.f32.mxu0 %v583_v10  ;;  %v960_v18 = vadd.f32 %v4627_v54, %v4356_v37  ;;  %v975_v37 = vadd.f32 %v4627_v54, %v4374_v53  ;;  %v985_v47 = vadd.f32 %v4627_v54, %v4386_v0  ;;  %v990_v53 = vadd.f32 %v4627_v54, %v4392_v9 }
 0x1d3   : > { %v1000_v0 = vadd.f32 %v4627_v54, %v4404_v24  ;;  %v1005_v9 = vadd.f32 %v4627_v54, %v4410_v33  ;;  %v1015_v33 = vadd.f32 %v4627_v54, %v4422_v34  ;;  %v1025_v34 = vadd.f32 %v4627_v54, %v4437_v58 }
 0x1d4   : > { %v1629_v20 = vpop.f32.mrb[2].mxu0  ;;  %3020 = vmatmul.mubr.msk.f32.gmra.mrb[164].mxu1 %vm699_vm0, %v577_v5  ;;  %v1035_v58 = vadd.f32 %v4627_v54, %v4453_v62  ;;  %v1045_v62 = vadd.f32 %v4627_v54, %v4469_v29  ;;  %v1055_v29 = vadd.f32 %v4627_v54, %v4485_v45  ;;  %v1065_v45 = vadd.f32 %v4627_v54, %v4501_v60 }
 0x1d5   : > { %v4648_v16 = vadd.f32 %v1629_v20, %v940_v28  ;;  %v1631_v40 = vpop.f32.mrb[3].mxu0  ;;  %1893 = vmatmul.mubr.f32.gmra.mrb[108].mxu0 %v582_v13  ;;  %3022 = vmatprep.mubr.msk.f32.mxu1 %vm699_vm0, %v584_v26  ;;  %v1075_v60 = vadd.f32 %v4627_v54, %v4517_v19 }
 0x1d6   : > { %1897 = vmatprep.mubr.f32.mxu0 %v590_v1 }
 0x1d8   : > { %v1634_v41 = vpop.f32.mrb[4].mxu0  ;;  %3023 = vmatmul.mubr.msk.f32.gmra.mrb[166].mxu1 %vm699_vm0, %v591_v42 }
 0x1d9   : > { %v4656_v7 = vadd.f32 %v1634_v41, %v945_v46  ;;  %v1636_v52 = vpop.f32.mrb[5].mxu0  ;;  %1898 = vmatmul.mubr.f32.gmra.mrb[110].mxu0 %v589_v43 }
 0x1dc   : > { %v1639_v50 = vpop.f32.mrb[6].mxu0 }
 0x1dd   : > { %v4660_v61 = vadd.f32 %v1639_v50, %v950_v57  ;;  %v1641_v63 = vpop.f32.mrb[7].mxu0 }
 0x1e0   : > { %v1644_v10 = vpop.f32.mrb[8].mxu0 }
 0x1e1   : > { %v4664_v11 = vadd.f32 %v1644_v10, %v955_v56  ;;  %v1646_v15 = vpop.f32.mrb[9].mxu0 }
 0x1e4   : > { %v1649_v5 = vpop.f32.mrb[10].mxu0 }
 0x1e5   : > { %v4668_v13 = vadd.f32 %v1649_v5, %v960_v18  ;;  %v1651_v26 = vpop.f32.mrb[11].mxu0 }
 0x1e8   : > { %v1654_v28 = vpop.f32.mrb[12].mxu0 }
 0x1e9   : > { %v4672_v1 = vadd.f32 %v1654_v28, %v965_v23  ;;  %v1656_v20 = vpop.f32.mrb[13].mxu0 }
 0x1ec   : > { %v1659_v40 = vpop.f32.mrb[14].mxu0 }
 0x1ed   : > { %v4676_v42 = vadd.f32 %v1659_v40, %v970_v32  ;;  %v1661_v43 = vpop.f32.mrb[15].mxu0 }
 0x1f0   : > { %v1664_v46 = vpop.f32.mrb[16].mxu0 }
 0x1f1   : > { %v4680_v41 = vadd.f32 %v1664_v46, %v975_v37  ;;  %v1666_v52 = vpop.f32.mrb[17].mxu0 }
 0x1f4   : > { %v1669_v57 = vpop.f32.mrb[18].mxu0 }
 0x1f5   : > { %v4684_v50 = vadd.f32 %v1669_v57, %v980_v36  ;;  %v1671_v63 = vpop.f32.mrb[19].mxu0  ;;  %v1010_v57 = vadd.f32 %v4627_v54, %v4416_v39  ;;  %v1020_v39 = vadd.f32 %v4627_v54, %v4429_v51  ;;  %v1030_v51 = vadd.f32 %v4627_v54, %v4445_v2 }
 0x1f6   : > { %v1040_v2 = vadd.f32 %v4627_v54, %v4461_v21  ;;  %v1050_v21 = vadd.f32 %v4627_v54, %v4477_v38  ;;  %v1060_v38 = vadd.f32 %v4627_v54, %v4493_v44  ;;  %v1070_v44 = vadd.f32 %v4627_v54, %v4509_v12 }
 0x1f8   : > { %v1674_v56 = vpop.f32.mrb[20].mxu0 }
 0x1f9   : > { %v4688_v10 = vadd.f32 %v1674_v56, %v985_v47  ;;  %v1676_v15 = vpop.f32.mrb[21].mxu0 }
 0x1fc   : > { %v1679_v18 = vpop.f32.mrb[22].mxu0 }
 0x1fd   : > { %v4692_v5 = vadd.f32 %v1679_v18, %v990_v53  ;;  %v1681_v26 = vpop.f32.mrb[23].mxu0 }
 0x200   : > { %v1684_v23 = vpop.f32.mrb[24].mxu0 }
 0x201   : > { %v4696_v28 = vadd.f32 %v1684_v23, %v995_v59  ;;  %v1686_v20 = vpop.f32.mrb[25].mxu0 }
 0x204   : > { %v1689_v32 = vpop.f32.mrb[26].mxu0 }
 0x205   : > { %v4700_v40 = vadd.f32 %v1689_v32, %v1000_v0  ;;  %v1691_v43 = vpop.f32.mrb[27].mxu0 }
 0x207   : > { %v4704_v37 = vpop.f32.mrb[84].mxu1 }
 0x208   : > { %v1694_v46 = vpop.f32.mrb[28].mxu0  ;;  %v1491_v52 = vpop.f32.mrb[85].mxu1 }
 0x209   : > { %v4706_v36 = vadd.f32 %v1694_v46, %v1005_v9  ;;  %v1696_v17 = vpop.f32.mrb[29].mxu0 }
 0x20b   : > { %v4710_v63 = vpop.f32.mrb[86].mxu1 }
 0x20c   : > { %v1699_v24 = vpop.f32.mrb[30].mxu0  ;;  %v1496_v47 = vpop.f32.mrb[87].mxu1 }
 0x20d   : > { %v4712_v56 = vadd.f32 %v1699_v24, %v1010_v57  ;;  %v1701_v15 = vpop.f32.mrb[31].mxu0 }
 0x20f   : > { %v4716_v53 = vpop.f32.mrb[88].mxu1 }
 0x210   : > { %v1704_v18 = vpop.f32.mrb[32].mxu0  ;;  %v1501_v26 = vpop.f32.mrb[89].mxu1 }
 0x211   : > { %v4718_v59 = vadd.f32 %v1704_v18, %v1015_v33  ;;  %v1706_v23 = vpop.f32.mrb[33].mxu0 }
 0x213   : > { %v4722_v20 = vpop.f32.mrb[90].mxu1 }
 0x214   : > { %v1709_v0 = vpop.f32.mrb[34].mxu0  ;;  %v1506_v32 = vpop.f32.mrb[91].mxu1 }
 0x215   : > { %v4724_v43 = vadd.f32 %v1709_v0, %v1020_v39  ;;  %v1711_v9 = vpop.f32.mrb[35].mxu0 }
 0x217   : > { %v4728_v46 = vpop.f32.mrb[92].mxu1 }
 0x218   : > { %v1714_v52 = vpop.f32.mrb[36].mxu0  ;;  %v1511_v17 = vpop.f32.mrb[93].mxu1 }
 0x219   : > { %v4730_v57 = vadd.f32 %v1714_v52, %v1025_v34  ;;  %v1716_v24 = vpop.f32.mrb[37].mxu0 }
 0x21b   : > { %v4734_v47 = vpop.f32.mrb[94].mxu1 }
 0x21c   : > { %v1719_v15 = vpop.f32.mrb[38].mxu0  ;;  %v1516_v33 = vpop.f32.mrb[95].mxu1 }
 0x21d   : > { %v4736_v18 = vadd.f32 %v1719_v15, %v1030_v51  ;;  %v1721_v26 = vpop.f32.mrb[39].mxu0 }
 0x21f   : > { %v4740_v23 = vpop.f32.mrb[96].mxu1 }
 0x220   : > { %v1724_v39 = vpop.f32.mrb[40].mxu0  ;;  %v1521_v0 = vpop.f32.mrb[97].mxu1 }
 0x221   : > { %v4742_v32 = vadd.f32 %v1724_v39, %v1035_v58  ;;  %v1726_v9 = vpop.f32.mrb[41].mxu0 }
 0x223   : > { %v4746_v34 = vpop.f32.mrb[98].mxu1 }
 0x224   : > { %v1729_v52 = vpop.f32.mrb[42].mxu0  ;;  %v1526_v17 = vpop.f32.mrb[99].mxu1 }
 0x225   : > { %v4748_v24 = vadd.f32 %v1729_v52, %v1040_v2  ;;  %v1731_v51 = vpop.f32.mrb[43].mxu0 }
 0x227   : > { %v4752_v15 = vpop.f32.mrb[100].mxu1 }
 0x228   : > { %5226 = vst [vmem:[#allocation3_spill] sm:$0xff] %v4752_v15  ;;  %v1734_v33 = vpop.f32.mrb[44].mxu0  ;;  %v1531_v26 = vpop.f32.mrb[101].mxu1 }
 0x229   : > { %v4754_v58 = vadd.f32 %v1734_v33, %v1045_v62  ;;  %v1736_v39 = vpop.f32.mrb[45].mxu0 }
 0x22b   : > { %v4758_v0 = vpop.f32.mrb[102].mxu1 }
 0x22c   : > { %5227 = vst [vmem:[#allocation4_spill] sm:$0xff] %v4758_v0  ;;  %v1739_v9 = vpop.f32.mrb[46].mxu0  ;;  %v1536_v17 = vpop.f32.mrb[103].mxu1 }
 0x22d   : > { %v4760_v2 = vadd.f32 %v1739_v9, %v1050_v21  ;;  %v1741_v52 = vpop.f32.mrb[47].mxu0 }
 0x22f   : > { %v4764_v51 = vpop.f32.mrb[104].mxu1 }
 0x230   : > { %5228 = vst [vmem:[#allocation5_spill] sm:$0xff] %v4764_v51  ;;  %v1744_v15 = vpop.f32.mrb[48].mxu0  ;;  %v1541_v62 = vpop.f32.mrb[105].mxu1 }
 0x231   : > { %v4766_v33 = vadd.f32 %v1744_v15, %v1055_v29  ;;  %v1746_v26 = vpop.f32.mrb[49].mxu0 }
 0x233   : > { %v4770_v39 = vpop.f32.mrb[106].mxu1 }
 0x234   : > { %5229 = vst [vmem:[#allocation6_spill] sm:$0xff] %v4770_v39  ;;  %v1749_v17 = vpop.f32.mrb[50].mxu0  ;;  %v1546_v21 = vpop.f32.mrb[107].mxu1 }
 0x235   : > { %v4772_v9 = vadd.f32 %v1749_v17, %v1060_v38  ;;  %v1751_v52 = vpop.f32.mrb[51].mxu0 }
 0x237   : > { %v4776_v51 = vpop.f32.mrb[108].mxu1 }
 0x238   : > { %5230 = vst [vmem:[#allocation7_spill] sm:$0xff] %v4776_v51  ;;  %v1754_v0 = vpop.f32.mrb[52].mxu0  ;;  %v1551_v62 = vpop.f32.mrb[109].mxu1 }
 0x239   : > { %v4778_v15 = vadd.f32 %v1754_v0, %v1065_v45  ;;  %v1756_v29 = vpop.f32.mrb[53].mxu0 }
 0x23b   : > { %v4783_v26 = vpop.f32.mrb[110].mxu1 }
 0x23c   : > { %5231 = vst [vmem:[#allocation8_spill] sm:$0xff] %v4783_v26  ;;  %v1759_v21 = vpop.f32.mrb[54].mxu0  ;;  %v1556_v38 = vpop.f32.mrb[111].mxu1 }
 0x23d   : > { %v4785_v17 = vadd.f32 %v1759_v21, %v1070_v44  ;;  %v1761_v52 = vpop.f32.mrb[55].mxu0  ;;  %v1080_v44 = vadd.f32 %v4627_v54, %v4525_v31 }
 0x23f   : > { %v2943_v51 = vpop.f32.mrb[112].mxu1 }
 0x240   : > { %v1764_v62 = vpop.f32.mrb[56].mxu0  ;;  %v1975_v0 = vadd.f32 %v4648_v16, %v2943_v51  ;;  %v1969_v45 = vpop.f32.mrb[113].mxu1 }
 0x241   : > { %v4790_v29 = vadd.f32 %v1764_v62, %v1075_v60  ;;  %v1766_v12 = vpop.f32.mrb[57].mxu0  ;;  %v1970_v26 = vadd.f32 %v4638_v14, %v1969_v45  ;;  %v1085_v60 = vadd.f32 %v4627_v54, %v4533_v27  ;;  %v1090_v27 = vadd.f32 %v4627_v54, %v4541_v48 }
 0x242   : > { %v2249_v39 = vmax.f32 %v1975_v0, 0.0  ;;  %v1095_v48 = vadd.f32 %v4627_v54, %v4549_v8  ;;  %v1100_v8 = vadd.f32 %v4627_v54, %v4557_v6  ;;  %v1105_v6 = vadd.f32 %v4627_v54, %v4565_v22 }
 0x243   : > { %v2248_v21 = vmax.f32 %v1970_v26, 0.0  ;;  %v2946_v38 = vpop.f32.mrb[114].mxu1  ;;  %v1110_v22 = vadd.f32 %v4627_v54, %v4573_v30  ;;  %v1115_v30 = vadd.f32 %v4627_v54, %v4581_v3  ;;  %v1120_v3 = vadd.f32 %v4627_v54, %v4589_v55 }
 0x244   : > { %2306 = vst.msk [vmem:[%s4795_s12 + $0x8] sm:$0xff] %vm2304_vm1, %v2249_v39  ;;  %v1769_v19 = vpop.f32.mrb[58].mxu0  ;;  %v1985_v16 = vadd.f32 %v4660_v61, %v2946_v38  ;;  %v1979_v51 = vpop.f32.mrb[115].mxu1  ;;  %v1125_v55 = vadd.f32 %v4627_v54, %v4597_v4  ;;  %v1130_v4 = vadd.f32 %v4627_v54, %v4605_v25  ;;  %v1135_v25 = vadd.f32 %v4627_v54, %v4613_v35 }
 0x245   : > { %2305 = vst.msk [vmem:[%s4795_s12] sm:$0xff] %vm2304_vm1, %v2248_v21  ;;  %v4802_v14 = vadd.f32 %v1769_v19, %v1080_v44  ;;  %v1771_v52 = vpop.f32.mrb[59].mxu0  ;;  %v1980_v31 = vadd.f32 %v4656_v7, %v1979_v51  ;;  %v1140_v35 = vadd.f32 %v4627_v54, %v4621_v49  ;;  %v3293_v49 = vadd.f32 %v4627_v54, %v4704_v37 }
 0x246   : > { %v2251_v26 = vmax.f32 %v1985_v16, 0.0  ;;  %v3295_v37 = vadd.f32 %v4627_v54, %v4710_v63  ;;  %v3297_v63 = vadd.f32 %v4627_v54, %v4716_v53  ;;  %v3299_v53 = vadd.f32 %v4627_v54, %v4722_v20 }
 0x247   : > { %v2250_v62 = vmax.f32 %v1980_v31, 0.0  ;;  %v2949_v0 = vpop.f32.mrb[116].mxu1  ;;  %v3301_v20 = vadd.f32 %v4627_v54, %v4728_v46  ;;  %v3303_v46 = vadd.f32 %v4627_v54, %v4734_v47  ;;  %v3305_v47 = vadd.f32 %v4627_v54, %v4740_v23 }
 0x248   : > { %2308 = vst.msk [vmem:[%s4795_s12 + $0x18] sm:$0xff] %vm2304_vm1, %v2251_v26  ;;  %v1774_v39 = vpop.f32.mrb[60].mxu0  ;;  %v1995_v61 = vadd.f32 %v4668_v13, %v2949_v0  ;;  %v1989_v45 = vpop.f32.mrb[117].mxu1  ;;  %v3307_v23 = vadd.f32 %v4627_v54, %v4746_v34 }
 0x249   : > { %2307 = vst.msk [vmem:[%s4795_s12 + $0x10] sm:$0xff] %vm2304_vm1, %v2250_v62  ;;  %v4812_v12 = vadd.f32 %v1774_v39, %v1085_v60  ;;  %v1776_v44 = vpop.f32.mrb[61].mxu0  ;;  %v1990_v7 = vadd.f32 %v4664_v11, %v1989_v45 }
 0x24a   : > { %v2253_v21 = vmax.f32 %v1995_v61, 0.0 }
 0x24b   : > { %v2252_v38 = vmax.f32 %v1990_v7, 0.0  ;;  %v2952_v19 = vpop.f32.mrb[118].mxu1 }
 0x24c   : > { %2310 = vst.msk [vmem:[%s4795_s12 + $0x28] sm:$0xff] %vm2304_vm1, %v2253_v21  ;;  %v1779_v16 = vpop.f32.mrb[62].mxu0  ;;  %v2005_v13 = vadd.f32 %v4676_v42, %v2952_v19  ;;  %v1999_v51 = vpop.f32.mrb[119].mxu1 }
 0x24d   : > { %2309 = vst.msk [vmem:[%s4795_s12 + $0x20] sm:$0xff] %vm2304_vm1, %v2252_v38  ;;  %v4822_v52 = vadd.f32 %v1779_v16, %v1090_v27  ;;  %v1781_v31 = vpop.f32.mrb[63].mxu0  ;;  %v2000_v11 = vadd.f32 %v4672_v1, %v1999_v51 }
 0x24e   : > { %v2255_v26 = vmax.f32 %v2005_v13, 0.0 }
 0x24f   : > { %v2254_v60 = vmax.f32 %v2000_v11, 0.0  ;;  %v2955_v62 = vpop.f32.mrb[120].mxu1 }
 0x250   : > { %2312 = vst.msk [vmem:[%s4795_s12 + $0x38] sm:$0xff] %vm2304_vm1, %v2255_v26  ;;  %v1784_v0 = vpop.f32.mrb[64].mxu0  ;;  %v2015_v42 = vadd.f32 %v4684_v50, %v2955_v62  ;;  %v2009_v39 = vpop.f32.mrb[121].mxu1 }
 0x251   : > { %2311 = vst.msk [vmem:[%s4795_s12 + $0x30] sm:$0xff] %vm2304_vm1, %v2254_v60  ;;  %v4832_v61 = vadd.f32 %v1784_v0, %v1095_v48  ;;  %v1786_v45 = vpop.f32.mrb[65].mxu0  ;;  %v2010_v1 = vadd.f32 %v4680_v41, %v2009_v39 }
 0x252   : > { %v2257_v44 = vmax.f32 %v2015_v42, 0.0 }
 0x253   : > { %v2256_v7 = vmax.f32 %v2010_v1, 0.0  ;;  %v2958_v21 = vpop.f32.mrb[122].mxu1 }
 0x254   : > { %2314 = vst.msk [vmem:[%s4795_s12 + $0x48] sm:$0xff] %vm2304_vm1, %v2257_v44  ;;  %v1789_v27 = vpop.f32.mrb[66].mxu0  ;;  %v2025_v50 = vadd.f32 %v4692_v5, %v2958_v21  ;;  %v2019_v38 = vpop.f32.mrb[123].mxu1 }
 0x255   : > { %2313 = vst.msk [vmem:[%s4795_s12 + $0x40] sm:$0xff] %vm2304_vm1, %v2256_v7  ;;  %v4842_v19 = vadd.f32 %v1789_v27, %v1100_v8  ;;  %v1791_v16 = vpop.f32.mrb[67].mxu0  ;;  %v2020_v41 = vadd.f32 %v4688_v10, %v2019_v38 }
 0x256   : > { %v2259_v13 = vmax.f32 %v2025_v50, 0.0 }
 0x257   : > { %v2258_v51 = vmax.f32 %v2020_v41, 0.0  ;;  %v2961_v31 = vpop.f32.mrb[124].mxu1 }
 0x258   : > { %2316 = vst.msk [vmem:[%s4795_s12 + $0x58] sm:$0xff] %vm2304_vm1, %v2259_v13  ;;  %v1794_v11 = vpop.f32.mrb[68].mxu0  ;;  %v2035_v5 = vadd.f32 %v4700_v40, %v2961_v31  ;;  %v2029_v26 = vpop.f32.mrb[125].mxu1 }
 0x259   : > { %2315 = vst.msk [vmem:[%s4795_s12 + $0x50] sm:$0xff] %vm2304_vm1, %v2258_v51  ;;  %v4852_v48 = vadd.f32 %v1794_v11, %v1105_v6  ;;  %v1796_v60 = vpop.f32.mrb[69].mxu0  ;;  %v2030_v10 = vadd.f32 %v4696_v28, %v2029_v26 }
 0x25a   : > { %v2261_v62 = vmax.f32 %v2035_v5, 0.0 }
 0x25b   : > { %v2260_v0 = vmax.f32 %v2030_v10, 0.0  ;;  %v2964_v42 = vpop.f32.mrb[126].mxu1 }
 0x25c   : > { %2318 = vst.msk [vmem:[%s4795_s12 + $0x68] sm:$0xff] %vm2304_vm1, %v2261_v62  ;;  %v1799_v39 = vpop.f32.mrb[70].mxu0  ;;  %v2045_v40 = vadd.f32 %v4712_v56, %v2964_v42  ;;  %v2039_v45 = vpop.f32.mrb[127].mxu1 }
 0x25d   : > { %2317 = vst.msk [vmem:[%s4795_s12 + $0x60] sm:$0xff] %vm2304_vm1, %v2260_v0  ;;  %v4862_v1 = vadd.f32 %v1799_v39, %v1110_v22  ;;  %v1801_v44 = vpop.f32.mrb[71].mxu0  ;;  %v2040_v28 = vadd.f32 %v4706_v36, %v2039_v45 }
 0x25e   : > { %v2263_v8 = vmax.f32 %v2045_v40, 0.0 }
 0x25f   : > { %v2262_v7 = vmax.f32 %v2040_v28, 0.0  ;;  %v2967_v21 = vpop.f32.mrb[128].mxu1 }
 0x260   : > { %2320 = vst.msk [vmem:[%s4795_s12 + $0x78] sm:$0xff] %vm2304_vm1, %v2263_v8  ;;  %v1804_v27 = vpop.f32.mrb[72].mxu0  ;;  %v2055_v56 = vadd.f32 %v4724_v43, %v2967_v21  ;;  %v2049_v50 = vpop.f32.mrb[129].mxu1 }
 0x261   : > { %2319 = vst.msk [vmem:[%s4795_s12 + $0x70] sm:$0xff] %vm2304_vm1, %v2262_v7  ;;  %v4872_v38 = vadd.f32 %v1804_v27, %v1115_v30  ;;  %v1806_v16 = vpop.f32.mrb[73].mxu0  ;;  %v2050_v36 = vadd.f32 %v4718_v59, %v2049_v50 }
 0x262   : > { %v2265_v41 = vmax.f32 %v2055_v56, 0.0 }
 0x263   : > { %v2264_v13 = vmax.f32 %v2050_v36, 0.0  ;;  %v2970_v6 = vpop.f32.mrb[130].mxu1 }
 0x264   : > { %2322 = vst.msk [vmem:[%s4795_s12 + $0x88] sm:$0xff] %vm2304_vm1, %v2265_v41  ;;  %v1809_v51 = vpop.f32.mrb[74].mxu0  ;;  %v2065_v43 = vadd.f32 %v4736_v18, %v2970_v6  ;;  %v2059_v31 = vpop.f32.mrb[131].mxu1 }
 0x265   : > { %2321 = vst.msk [vmem:[%s4795_s12 + $0x80] sm:$0xff] %vm2304_vm1, %v2264_v13  ;;  %v4882_v11 = vadd.f32 %v1809_v51, %v1120_v3  ;;  %v1811_v5 = vpop.f32.mrb[75].mxu0  ;;  %v2060_v59 = vadd.f32 %v4730_v57, %v2059_v31 }
 0x266   : > { %v2267_v26 = vmax.f32 %v2065_v43, 0.0 }
 0x267   : > { %v2266_v60 = vmax.f32 %v2060_v59, 0.0  ;;  %v2973_v10 = vpop.f32.mrb[132].mxu1 }
 0x268   : > { %2324 = vst.msk [vmem:[%s4795_s12 + $0x98] sm:$0xff] %vm2304_vm1, %v2267_v26  ;;  %v1814_v62 = vpop.f32.mrb[76].mxu0  ;;  %v2075_v18 = vadd.f32 %v4748_v24, %v2973_v10  ;;  %v2069_v22 = vpop.f32.mrb[133].mxu1 }
 0x269   : > { %2323 = vst.msk [vmem:[%s4795_s12 + $0x90] sm:$0xff] %vm2304_vm1, %v2266_v60  ;;  %v4892_v0 = vadd.f32 %v1814_v62, %v1125_v55  ;;  %v1816_v42 = vpop.f32.mrb[77].mxu0  ;;  %v2070_v57 = vadd.f32 %v4742_v32, %v2069_v22 }
 0x26a   : > { %v2269_v39 = vmax.f32 %v2075_v18, 0.0 }
 0x26b   : > { %v2268_v40 = vmax.f32 %v2070_v57, 0.0  ;;  %v2976_v45 = vpop.f32.mrb[134].mxu1 }
 0x26c   : > { %2326 = vst.msk [vmem:[%s4795_s12 + $0xa8] sm:$0xff] %vm2304_vm1, %v2269_v39  ;;  %v1819_v44 = vpop.f32.mrb[78].mxu0  ;;  %v2085_v24 = vadd.f32 %v4760_v2, %v2976_v45  ;;  %v2079_v28 = vpop.f32.mrb[135].mxu1 }
 0x26d   : > { %2325 = vst.msk [vmem:[%s4795_s12 + $0xa0] sm:$0xff] %vm2304_vm1, %v2268_v40  ;;  %v4902_v8 = vadd.f32 %v1819_v44, %v1130_v4  ;;  %v1821_v30 = vpop.f32.mrb[79].mxu0  ;;  %v2080_v32 = vadd.f32 %v4754_v58, %v2079_v28 }
 0x26e   : > { %v2271_v7 = vmax.f32 %v2085_v24, 0.0 }
 0x26f   : > { %v2270_v21 = vmax.f32 %v2080_v32, 0.0  ;;  %v2979_v27 = vpop.f32.mrb[136].mxu1 }
 0x270   : > { %2328 = vst.msk [vmem:[%s4795_s12 + $0xb8] sm:$0xff] %vm2304_vm1, %v2271_v7  ;;  %v1824_v56 = vpop.f32.mrb[80].mxu0  ;;  %v2095_v2 = vadd.f32 %v4772_v9, %v2979_v27  ;;  %v2089_v50 = vpop.f32.mrb[137].mxu1 }
 0x271   : > { %2327 = vst.msk [vmem:[%s4795_s12 + $0xb0] sm:$0xff] %vm2304_vm1, %v2270_v21  ;;  %v4912_v16 = vadd.f32 %v1824_v56, %v1135_v25  ;;  %v1826_v36 = vpop.f32.mrb[81].mxu0  ;;  %v2090_v58 = vadd.f32 %v4766_v33, %v2089_v50 }
 0x272   : > { %v2273_v41 = vmax.f32 %v2095_v2, 0.0 }
 0x273   : > { %v2272_v3 = vmax.f32 %v2090_v58, 0.0  ;;  %v2982_v13 = vpop.f32.mrb[138].mxu1 }
 0x274   : > { %2330 = vst.msk [vmem:[%s4795_s12 + $0xc8] sm:$0xff] %vm2304_vm1, %v2273_v41  ;;  %v1829_v6 = vpop.f32.mrb[82].mxu0  ;;  %v2105_v9 = vadd.f32 %v4785_v17, %v2982_v13  ;;  %v2099_v51 = vpop.f32.mrb[139].mxu1 }
 0x275   : > { %2329 = vst.msk [vmem:[%s4795_s12 + $0xc0] sm:$0xff] %vm2304_vm1, %v2272_v3  ;;  %v4922_v43 = vadd.f32 %v1829_v6, %v1140_v35  ;;  %v1831_v31 = vpop.f32.mrb[83].mxu0  ;;  %v2100_v33 = vadd.f32 %v4778_v15, %v2099_v51 }
 0x276   : > { %v2275_v5 = vmax.f32 %v2105_v9, 0.0 }
 0x277   : > { %v2274_v59 = vmax.f32 %v2100_v33, 0.0  ;;  %v2985_v26 = vpop.f32.mrb[140].mxu1 }
 0x278   : > { %2332 = vst.msk [vmem:[%s4795_s12 + $0xd8] sm:$0xff] %vm2304_vm1, %v2275_v5  ;;  %v1834_v55 = vpop.f32.mrb[84].mxu0  ;;  %v2115_v17 = vadd.f32 %v4802_v14, %v2985_v26  ;;  %v2109_v60 = vpop.f32.mrb[141].mxu1 }
 0x279   : > { %2331 = vst.msk [vmem:[%s4795_s12 + $0xd0] sm:$0xff] %vm2304_vm1, %v2274_v59  ;;  %v4932_v10 = vadd.f32 %v3293_v49, %v1834_v55  ;;  %v1836_v62 = vpop.f32.mrb[85].mxu0  ;;  %v2110_v15 = vadd.f32 %v4790_v29, %v2109_v60 }
 0x27a   : > { %v2277_v18 = vmax.f32 %v2115_v17, 0.0 }
 0x27b   : > { %v2276_v22 = vmax.f32 %v2110_v15, 0.0  ;;  %v2988_v42 = vpop.f32.mrb[142].mxu1 }
 0x27c   : > { %2334 = vst.msk [vmem:[%s4795_s12 + $0xe8] sm:$0xff] %vm2304_vm1, %v2277_v18  ;;  %v1839_v57 = vpop.f32.mrb[86].mxu0  ;;  %v2125_v14 = vadd.f32 %v4822_v52, %v2988_v42  ;;  %v2119_v39 = vpop.f32.mrb[143].mxu1 }
 0x27d   : > { %2333 = vst.msk [vmem:[%s4795_s12 + $0xe0] sm:$0xff] %vm2304_vm1, %v2276_v22  ;;  %v4942_v4 = vadd.f32 %v3295_v37, %v1839_v57  ;;  %v1841_v40 = vpop.f32.mrb[87].mxu0  ;;  %v2120_v29 = vadd.f32 %v4812_v12, %v2119_v39 }
 0x27e   : > { %v2279_v45 = vmax.f32 %v2125_v14, 0.0 }
 0x27f   : > { %v2278_v44 = vmax.f32 %v2120_v29, 0.0  ;;  %v2991_v24 = vpop.f32.mrb[144].mxu1 }
 0x280   : > { %2336 = vst.msk [vmem:[%s4795_s12 + $0xf8] sm:$0xff] %vm2304_vm1, %v2279_v45  ;;  %v1844_v28 = vpop.f32.mrb[88].mxu0  ;;  %v2135_v52 = vadd.f32 %v4842_v19, %v2991_v24  ;;  %v2129_v30 = vpop.f32.mrb[145].mxu1 }
 0x281   : > { %2335 = vst.msk [vmem:[%s4795_s12 + $0xf0] sm:$0xff] %vm2304_vm1, %v2278_v44  ;;  %v4952_v32 = vadd.f32 %v3297_v63, %v1844_v28  ;;  %v1846_v7 = vpop.f32.mrb[89].mxu0  ;;  %v2130_v12 = vadd.f32 %v4832_v61, %v2129_v30  ;;  %v5232_v63 = vld [vmem:[#allocation3_spill] sm:$0xff] }
 0x282   : > { %v2281_v25 = vmax.f32 %v2135_v52, 0.0  ;;  %v3309_v34 = vadd.f32 %v4627_v54, %v5232_v63 }
 0x283   : > { %v2280_v21 = vmax.f32 %v2130_v12, 0.0  ;;  %v2994_v27 = vpop.f32.mrb[146].mxu1 }
 0x284   : > { %2338 = vst.msk [vmem:[%s4795_s12 + $0x108] sm:$0xff] %vm2304_vm1, %v2281_v25  ;;  %v1849_v56 = vpop.f32.mrb[90].mxu0  ;;  %v2145_v19 = vadd.f32 %v4862_v1, %v2994_v27  ;;  %v2139_v2 = vpop.f32.mrb[147].mxu1  ;;  %v5233_v25 = vld [vmem:[#allocation4_spill] sm:$0xff] }
 0x285   : > { %2337 = vst.msk [vmem:[%s4795_s12 + $0x100] sm:$0xff] %vm2304_vm1, %v2280_v21  ;;  %v3300_v50 = vadd.f32 %v3299_v53, %v1849_v56  ;;  %v1851_v36 = vpop.f32.mrb[91].mxu0  ;;  %v2140_v61 = vadd.f32 %v4852_v48, %v2139_v2  ;;  %v3311_v53 = vadd.f32 %v4627_v54, %v5233_v25 }
 0x286   : > { %v2283_v58 = vmax.f32 %v2145_v19, 0.0 }
 0x287   : > { %v2282_v41 = vmax.f32 %v2140_v61, 0.0  ;;  %v2997_v35 = vpop.f32.mrb[148].mxu1 }
 0x288   : > { %2340 = vst.msk [vmem:[%s4795_s12 + $0x118] sm:$0xff] %vm2304_vm1, %v2283_v58  ;;  %v1854_v3 = vpop.f32.mrb[92].mxu0  ;;  %v2155_v1 = vadd.f32 %v4882_v11, %v2997_v35  ;;  %v2149_v13 = vpop.f32.mrb[149].mxu1 }
 0x289   : > { %2339 = vst.msk [vmem:[%s4795_s12 + $0x110] sm:$0xff] %vm2304_vm1, %v2282_v41  ;;  %v3302_v6 = vadd.f32 %v3301_v20, %v1854_v3  ;;  %v1856_v9 = vpop.f32.mrb[93].mxu0  ;;  %v2150_v48 = vadd.f32 %v4872_v38, %v2149_v13 }
 0x28a   : > { %v2285_v51 = vmax.f32 %v2155_v1, 0.0 }
 0x28b   : > { %v2284_v31 = vmax.f32 %v2150_v48, 0.0  ;;  %v3000_v33 = vpop.f32.mrb[150].mxu1 }
 0x28c   : > { %2342 = vst.msk [vmem:[%s4795_s12 + $0x128] sm:$0xff] %vm2304_vm1, %v2285_v51  ;;  %v1859_v5 = vpop.f32.mrb[94].mxu0  ;;  %v2165_v11 = vadd.f32 %v4902_v8, %v3000_v33  ;;  %v2159_v49 = vpop.f32.mrb[151].mxu1 }
 0x28d   : > { %2341 = vst.msk [vmem:[%s4795_s12 + $0x120] sm:$0xff] %vm2304_vm1, %v2284_v31  ;;  %v3304_v59 = vadd.f32 %v3303_v46, %v1859_v5  ;;  %v1861_v26 = vpop.f32.mrb[95].mxu0  ;;  %v2160_v38 = vadd.f32 %v4892_v0, %v2159_v49 }
 0x28e   : > { %v2287_v55 = vmax.f32 %v2165_v11, 0.0 }
 0x28f   : > { %v2286_v17 = vmax.f32 %v2160_v38, 0.0  ;;  %v3003_v60 = vpop.f32.mrb[152].mxu1 }
 0x290   : > { %2344 = vst.msk [vmem:[%s4795_s12 + $0x138] sm:$0xff] %vm2304_vm1, %v2287_v55  ;;  %v1864_v62 = vpop.f32.mrb[96].mxu0  ;;  %v2175_v8 = vadd.f32 %v4922_v43, %v3003_v60  ;;  %v2169_v15 = vpop.f32.mrb[153].mxu1 }
 0x291   : > { %2343 = vst.msk [vmem:[%s4795_s12 + $0x130] sm:$0xff] %vm2304_vm1, %v2286_v17  ;;  %v3306_v18 = vadd.f32 %v3305_v47, %v1864_v62  ;;  %v1866_v37 = vpop.f32.mrb[97].mxu0  ;;  %v2170_v0 = vadd.f32 %v4912_v16, %v2169_v15  ;;  %v5236_v17 = vld [vmem:[#allocation7_spill] sm:$0xff] }
 0x292   : > { %v2289_v22 = vmax.f32 %v2175_v8, 0.0  ;;  %v3317_v60 = vadd.f32 %v4627_v54, %v5236_v17 }
 0x293   : > { %v2288_v42 = vmax.f32 %v2170_v0, 0.0  ;;  %v3006_v57 = vpop.f32.mrb[154].mxu1 }
 0x294   : > { %2346 = vst.msk [vmem:[%s4795_s12 + $0x148] sm:$0xff] %vm2304_vm1, %v2289_v22  ;;  %v1869_v14 = vpop.f32.mrb[98].mxu0  ;;  %v2185_v43 = vadd.f32 %v4942_v4, %v3006_v57  ;;  %v2179_v39 = vpop.f32.mrb[155].mxu1  ;;  %v5237_v57 = vld [vmem:[#allocation8_spill] sm:$0xff] }
 0x295   : > { %2345 = vst.msk [vmem:[%s4795_s12 + $0x140] sm:$0xff] %vm2304_vm1, %v2288_v42  ;;  %v3308_v40 = vadd.f32 %v3307_v23, %v1869_v14  ;;  %v1871_v29 = vpop.f32.mrb[99].mxu0  ;;  %v2180_v16 = vadd.f32 %v4932_v10, %v2179_v39  ;;  %v3319_v14 = vadd.f32 %v4627_v54, %v5237_v57 }
 0x296   : > { %v2291_v45 = vmax.f32 %v2185_v43, 0.0 }
 0x297   : > { %v2290_v44 = vmax.f32 %v2180_v16, 0.0  ;;  %v3009_v24 = vpop.f32.mrb[156].mxu1 }
 0x298   : > { %2348 = vst.msk [vmem:[%s4795_s12 + $0x158] sm:$0xff] %vm2304_vm1, %v2291_v45  ;;  %v1874_v28 = vpop.f32.mrb[100].mxu0  ;;  %v2195_v52 = vadd.f32 %v3300_v50, %v3009_v24  ;;  %v2189_v4 = vpop.f32.mrb[157].mxu1 }
 0x299   : > { %2347 = vst.msk [vmem:[%s4795_s12 + $0x150] sm:$0xff] %vm2304_vm1, %v2290_v44  ;;  %v3310_v30 = vadd.f32 %v3309_v34, %v1874_v28  ;;  %v1876_v7 = vpop.f32.mrb[101].mxu0  ;;  %v2190_v12 = vadd.f32 %v4952_v32, %v2189_v4  ;;  %v5234_v32 = vld [vmem:[#allocation5_spill] sm:$0xff] }
 0x29a   : > { %v2293_v10 = vmax.f32 %v2195_v52, 0.0  ;;  %v3313_v20 = vadd.f32 %v4627_v54, %v5234_v32 }
 0x29b   : > { %v2292_v21 = vmax.f32 %v2190_v12, 0.0  ;;  %v3012_v27 = vpop.f32.mrb[158].mxu1 }
 0x29c   : > { %2350 = vst.msk [vmem:[%s4795_s12 + $0x168] sm:$0xff] %vm2304_vm1, %v2293_v10  ;;  %v1879_v56 = vpop.f32.mrb[102].mxu0  ;;  %v2205_v19 = vadd.f32 %v3304_v59, %v3012_v27  ;;  %v2199_v2 = vpop.f32.mrb[159].mxu1 }
 0x29d   : > { %2349 = vst.msk [vmem:[%s4795_s12 + $0x160] sm:$0xff] %vm2304_vm1, %v2292_v21  ;;  %v3312_v50 = vadd.f32 %v3311_v53, %v1879_v56  ;;  %v1881_v36 = vpop.f32.mrb[103].mxu0  ;;  %v2200_v61 = vadd.f32 %v3302_v6, %v2199_v2  ;;  %v5235_v6 = vld [vmem:[#allocation6_spill] sm:$0xff] }
 0x29e   : > { %v2295_v58 = vmax.f32 %v2205_v19, 0.0  ;;  %v3315_v31 = vadd.f32 %v4627_v54, %v5235_v6 }
 0x29f   : > { %v2294_v41 = vmax.f32 %v2200_v61, 0.0  ;;  %v3015_v35 = vpop.f32.mrb[160].mxu1 }
 0x2a0   : > { %2352 = vst.msk [vmem:[%s4795_s12 + $0x178] sm:$0xff] %vm2304_vm1, %v2295_v58  ;;  %v1884_v3 = vpop.f32.mrb[104].mxu0  ;;  %v2215_v1 = vadd.f32 %v3308_v40, %v3015_v35  ;;  %v2209_v13 = vpop.f32.mrb[161].mxu1 }
 0x2a1   : > { %2351 = vst.msk [vmem:[%s4795_s12 + $0x170] sm:$0xff] %vm2304_vm1, %v2294_v41  ;;  %v3314_v9 = vadd.f32 %v3313_v20, %v1884_v3  ;;  %v1886_v48 = vpop.f32.mrb[105].mxu0  ;;  %v2210_v51 = vadd.f32 %v3306_v18, %v2209_v13 }
 0x2a2   : > { %v2297_v46 = vmax.f32 %v2215_v1, 0.0 }
 0x2a3   : > { %v2296_v33 = vmax.f32 %v2210_v51, 0.0  ;;  %v3018_v5 = vpop.f32.mrb[162].mxu1 }
 0x2a4   : > { %2354 = vst.msk [vmem:[%s4795_s12 + $0x188] sm:$0xff] %vm2304_vm1, %v2297_v46  ;;  %v1889_v11 = vpop.f32.mrb[106].mxu0  ;;  %v2225_v49 = vadd.f32 %v3312_v50, %v3018_v5  ;;  %v2219_v59 = vpop.f32.mrb[163].mxu1 }
 0x2a5   : > { %2353 = vst.msk [vmem:[%s4795_s12 + $0x180] sm:$0xff] %vm2304_vm1, %v2296_v33  ;;  %v3316_v26 = vadd.f32 %v3315_v31, %v1889_v11  ;;  %v1891_v38 = vpop.f32.mrb[107].mxu0  ;;  %v2220_v55 = vadd.f32 %v3310_v30, %v2219_v59 }
 0x2a6   : > { %v2299_v47 = vmax.f32 %v2225_v49, 0.0 }
 0x2a7   : > { %v2298_v62 = vmax.f32 %v2220_v55, 0.0  ;;  %v3021_v8 = vpop.f32.mrb[164].mxu1 }
 0x2a8   : > { %2356 = vst.msk [vmem:[%s4795_s12 + $0x198] sm:$0xff] %vm2304_vm1, %v2299_v47  ;;  %v1894_v15 = vpop.f32.mrb[108].mxu0  ;;  %v2235_v18 = vadd.f32 %v3316_v26, %v3021_v8  ;;  %v2229_v37 = vpop.f32.mrb[165].mxu1 }
 0x2a9   : > { %2355 = vst.msk [vmem:[%s4795_s12 + $0x190] sm:$0xff] %vm2304_vm1, %v2298_v62  ;;  %v3318_v0 = vadd.f32 %v3317_v60, %v1894_v15  ;;  %v1896_v22 = vpop.f32.mrb[109].mxu0  ;;  %v2230_v23 = vadd.f32 %v3314_v9, %v2229_v37 }
 0x2aa   : > { %v2301_v42 = vmax.f32 %v2235_v18, 0.0 }
 0x2ab   : > { %v2300_v43 = vmax.f32 %v2230_v23, 0.0  ;;  %v3024_v39 = vpop.f32.mrb[166].mxu1 }
 0x2ac   : > { %2358 = vst.msk [vmem:[%s4795_s12 + $0x1a8] sm:$0xff] %vm2304_vm1, %v2301_v42  ;;  %v1899_v40 = vpop.f32.mrb[110].mxu0  ;;  %v2239_v29 = vpop.f32.mrb[167].mxu1 }
 0x2ad   : > { %2357 = vst.msk [vmem:[%s4795_s12 + $0x1a0] sm:$0xff] %vm2304_vm1, %v2300_v43  ;;  %v3320_v16 = vadd.f32 %v3319_v14, %v1899_v40  ;;  %v1901_v45 = vpop.f32.mrb[111].mxu0  ;;  %v2240_v63 = vadd.f32 %v3318_v0, %v2239_v29  ;;  %2367 = sbr.rel (!%p3663_p4) target bundleno = 772 (0x304), region = 36 }
 0x2af   : > { %v2245_v34 = vadd.f32 %v3320_v16, %v3024_v39  ;;  %v2302_v44 = vmax.f32 %v2240_v63, 0.0 }
 0x2b1   : > { %v2303_v24 = vmax.f32 %v2245_v34, 0.0  ;;  %2359 = vst.msk [vmem:[%s4795_s12 + $0x1b0] sm:$0xff] %vm2304_vm1, %v2302_v44 }
 0x2b3   : > { %2360 = vst.msk [vmem:[%s4795_s12 + $0x1b8] sm:$0xff] %vm2304_vm1, %v2303_v24 }
 0x2b4   : > { %s5247_s11 = smov (!%p2370_p8, %s2369_s11), 56 }
 0x2b5   : > { %s2860_s22 = sshll.u32 %s5247_s11, 7 }
 0x2b6   : > { %p2863_p9 = scmp.eq.s32.totalorder %s2860_s22, 0 }
 0x2b7   : > { %3525 = sdivrem.u32 (!%p2863_p9), %s5247_s11, 56 }
 0x2b8   : > { %2378 = sbr.rel (%p2863_p9) target bundleno = 772 (0x304), region = 40 }
 0x2c0   : > { %s5049_s20 = spop.drf %3525 }
 0x2c1   : > { %p2864_p10 = scmp.le.s32.totalorder %s5049_s20, 0 }
 0x2c2   : > { %s5238_s15 = smov (!%p2864_p10), %s5043_s21  ;;  %s5239_s10 = smov (!%p2864_p10), %s4795_s12 }
 0x2c3   : > { %2754 = sbr.rel (%p2864_p10) target bundleno = 743 (0x2e7), region = 116  ;;  %s5058_s23 = smov (!%p2864_p10), 0  }
 0x2c4   : > { %s5060_s24 = smov (!%p2864_p10), 0  }
 0x2ca LB: >> { %v2552_v54 = vld [vmem:[%s3591_s10] sm:$0xff]  ;;  %v2554_v28 = vld [vmem:[%s3591_s10 + $0x8] sm:$0xff]  ;;  %v2556_v52 = vld [vmem:[%s3591_s10 + $0x10] sm:$0xff]  ;;  %s2664_s25 = sadd.s32 1, %s3595_s23  ;;  %s2546_s24 = sadd.s32 1, %s3599_s24   ;;  %s3599_s24 = sphi %s5060_s24, %s2546_s24   ;;  %s3595_s23 = sphi %s5058_s23, %s5242_s23   ;;  %s3591_s10 = sphi %s5239_s10, %s5241_s10   ;;  %s3587_s15 = sphi %s5238_s15, %s5240_s15  }
 0x2cb   : >> { %2553 = vst [vmem:[%s3587_s15] sm:$0xff] %v2552_v54  ;;  %2555 = vst [vmem:[%s3587_s15 + $0x8] sm:$0xff] %v2554_v28  ;;  %v2558_v4 = vld [vmem:[%s3591_s10 + $0x18] sm:$0xff]  ;;  %v2560_v30 = vld [vmem:[%s3591_s10 + $0x20] sm:$0xff]  ;;  %p2665_p11 = scmp.ge.s32.totalorder %s2664_s25, %s5049_s20  ;;  %p2545_p12 = scmp.ge.s32.totalorder %s2546_s24, %s5049_s20 }
 0x2cc   : >> { %2557 = vst [vmem:[%s3587_s15 + $0x10] sm:$0xff] %v2556_v52  ;;  %v2562_v7 = vld [vmem:[%s3591_s10 + $0x28] sm:$0xff]  ;;  %2559 = vst [vmem:[%s3587_s15 + $0x18] sm:$0xff] %v2558_v4  ;;  %v2564_v12 = vld [vmem:[%s3591_s10 + $0x30] sm:$0xff] }
 0x2cd   : >> { %2561 = vst [vmem:[%s3587_s15 + $0x20] sm:$0xff] %v2560_v30  ;;  %2563 = vst [vmem:[%s3587_s15 + $0x28] sm:$0xff] %v2562_v7  ;;  %v2566_v10 = vld [vmem:[%s3591_s10 + $0x38] sm:$0xff]  ;;  %v2568_v25 = vld [vmem:[%s3591_s10 + $0x40] sm:$0xff]  ;;  %s5249_s25 = smov (%p2665_p11, %s2664_s25), 0 }
 0x2ce   : >> { %2565 = vst [vmem:[%s3587_s15 + $0x30] sm:$0xff] %v2564_v12  ;;  %2567 = vst [vmem:[%s3587_s15 + $0x38] sm:$0xff] %v2566_v10  ;;  %v2570_v53 = vld [vmem:[%s3591_s10 + $0x48] sm:$0xff]  ;;  %v2572_v21 = vld [vmem:[%s3591_s10 + $0x50] sm:$0xff]  ;;  %s2667_s26 = smul.u32 448, %s5249_s25  ;;  %s5242_s23 = smov %s5249_s25 }
 0x2cf   : >> { %2569 = vst [vmem:[%s3587_s15 + $0x40] sm:$0xff] %v2568_v25  ;;  %v2574_v27 = vld [vmem:[%s3591_s10 + $0x58] sm:$0xff]  ;;  %2571 = vst [vmem:[%s3587_s15 + $0x48] sm:$0xff] %v2570_v53  ;;  %v2576_v56 = vld [vmem:[%s3591_s10 + $0x60] sm:$0xff] }
 0x2d0   : >> { %2573 = vst [vmem:[%s3587_s15 + $0x50] sm:$0xff] %v2572_v21  ;;  %2575 = vst [vmem:[%s3587_s15 + $0x58] sm:$0xff] %v2574_v27  ;;  %v2578_v19 = vld [vmem:[%s3591_s10 + $0x68] sm:$0xff]  ;;  %v2580_v2 = vld [vmem:[%s3591_s10 + $0x70] sm:$0xff]  ;;  %s5122_s27 = scalar_lea.vmem %s4795_s12, %s2667_s26 [#allocation2]   ;;  %s5125_s28 = scalar_lea.vmem %s5043_s21, %s2667_s26  }
 0x2d1   : >> { %2577 = vst [vmem:[%s3587_s15 + $0x60] sm:$0xff] %v2576_v56  ;;  %2579 = vst [vmem:[%s3587_s15 + $0x68] sm:$0xff] %v2578_v19  ;;  %v2582_v50 = vld [vmem:[%s3591_s10 + $0x78] sm:$0xff]  ;;  %v2584_v36 = vld [vmem:[%s3591_s10 + $0x80] sm:$0xff] }
 0x2d2   : >> { %2581 = vst [vmem:[%s3587_s15 + $0x70] sm:$0xff] %v2580_v2  ;;  %v2586_v61 = vld [vmem:[%s3591_s10 + $0x88] sm:$0xff]  ;;  %2583 = vst [vmem:[%s3587_s15 + $0x78] sm:$0xff] %v2582_v50  ;;  %v2588_v58 = vld [vmem:[%s3591_s10 + $0x90] sm:$0xff] }
 0x2d3   : >> { %2585 = vst [vmem:[%s3587_s15 + $0x80] sm:$0xff] %v2584_v36  ;;  %2587 = vst [vmem:[%s3587_s15 + $0x88] sm:$0xff] %v2586_v61  ;;  %v2590_v32 = vld [vmem:[%s3591_s10 + $0x98] sm:$0xff]  ;;  %v2592_v20 = vld [vmem:[%s3591_s10 + $0xa0] sm:$0xff] }
 0x2d4   : >> { %2589 = vst [vmem:[%s3587_s15 + $0x90] sm:$0xff] %v2588_v58  ;;  %2591 = vst [vmem:[%s3587_s15 + $0x98] sm:$0xff] %v2590_v32  ;;  %v2594_v41 = vld [vmem:[%s3591_s10 + $0xa8] sm:$0xff]  ;;  %v2596_v35 = vld [vmem:[%s3591_s10 + $0xb0] sm:$0xff] }
 0x2d5   : >> { %2593 = vst [vmem:[%s3587_s15 + $0xa0] sm:$0xff] %v2592_v20  ;;  %v2598_v3 = vld [vmem:[%s3591_s10 + $0xb8] sm:$0xff]  ;;  %2595 = vst [vmem:[%s3587_s15 + $0xa8] sm:$0xff] %v2594_v41  ;;  %v2600_v1 = vld [vmem:[%s3591_s10 + $0xc0] sm:$0xff] }
 0x2d6   : >> { %2597 = vst [vmem:[%s3587_s15 + $0xb0] sm:$0xff] %v2596_v35  ;;  %2599 = vst [vmem:[%s3587_s15 + $0xb8] sm:$0xff] %v2598_v3  ;;  %v2602_v13 = vld [vmem:[%s3591_s10 + $0xc8] sm:$0xff]  ;;  %v2604_v9 = vld [vmem:[%s3591_s10 + $0xd0] sm:$0xff] }
 0x2d7   : >> { %2601 = vst [vmem:[%s3587_s15 + $0xc0] sm:$0xff] %v2600_v1  ;;  %2603 = vst [vmem:[%s3587_s15 + $0xc8] sm:$0xff] %v2602_v13  ;;  %v2606_v48 = vld [vmem:[%s3591_s10 + $0xd8] sm:$0xff]  ;;  %v2608_v51 = vld [vmem:[%s3591_s10 + $0xe0] sm:$0xff] }
 0x2d8   : >> { %2605 = vst [vmem:[%s3587_s15 + $0xd0] sm:$0xff] %v2604_v9  ;;  %v2610_v46 = vld [vmem:[%s3591_s10 + $0xe8] sm:$0xff]  ;;  %2607 = vst [vmem:[%s3587_s15 + $0xd8] sm:$0xff] %v2606_v48  ;;  %v2612_v6 = vld [vmem:[%s3591_s10 + $0xf0] sm:$0xff] }
 0x2d9   : >> { %2609 = vst [vmem:[%s3587_s15 + $0xe0] sm:$0xff] %v2608_v51  ;;  %2611 = vst [vmem:[%s3587_s15 + $0xe8] sm:$0xff] %v2610_v46  ;;  %v2614_v31 = vld [vmem:[%s3591_s10 + $0xf8] sm:$0xff]  ;;  %v2616_v33 = vld [vmem:[%s3591_s10 + $0x100] sm:$0xff] }
 0x2da   : >> { %2613 = vst [vmem:[%s3587_s15 + $0xf0] sm:$0xff] %v2612_v6  ;;  %2615 = vst [vmem:[%s3587_s15 + $0xf8] sm:$0xff] %v2614_v31  ;;  %v2618_v5 = vld [vmem:[%s3591_s10 + $0x108] sm:$0xff]  ;;  %v2620_v11 = vld [vmem:[%s3591_s10 + $0x110] sm:$0xff] }
 0x2db   : >> { %2617 = vst [vmem:[%s3587_s15 + $0x100] sm:$0xff] %v2616_v33  ;;  %v2622_v49 = vld [vmem:[%s3591_s10 + $0x118] sm:$0xff]  ;;  %2619 = vst [vmem:[%s3587_s15 + $0x108] sm:$0xff] %v2618_v5  ;;  %v2624_v59 = vld [vmem:[%s3591_s10 + $0x120] sm:$0xff] }
 0x2dc   : >> { %2621 = vst [vmem:[%s3587_s15 + $0x110] sm:$0xff] %v2620_v11  ;;  %2623 = vst [vmem:[%s3587_s15 + $0x118] sm:$0xff] %v2622_v49  ;;  %v2626_v26 = vld [vmem:[%s3591_s10 + $0x128] sm:$0xff]  ;;  %v2628_v38 = vld [vmem:[%s3591_s10 + $0x130] sm:$0xff] }
 0x2dd   : >> { %2625 = vst [vmem:[%s3587_s15 + $0x120] sm:$0xff] %v2624_v59  ;;  %2627 = vst [vmem:[%s3587_s15 + $0x128] sm:$0xff] %v2626_v26  ;;  %v2630_v55 = vld [vmem:[%s3591_s10 + $0x138] sm:$0xff]  ;;  %v2632_v47 = vld [vmem:[%s3591_s10 + $0x140] sm:$0xff] }
 0x2de   : >> { %2629 = vst [vmem:[%s3587_s15 + $0x130] sm:$0xff] %v2628_v38  ;;  %v2634_v17 = vld [vmem:[%s3591_s10 + $0x148] sm:$0xff]  ;;  %2631 = vst [vmem:[%s3587_s15 + $0x138] sm:$0xff] %v2630_v55  ;;  %v2636_v60 = vld [vmem:[%s3591_s10 + $0x150] sm:$0xff] }
 0x2df   : >> { %2633 = vst [vmem:[%s3587_s15 + $0x140] sm:$0xff] %v2632_v47  ;;  %2635 = vst [vmem:[%s3587_s15 + $0x148] sm:$0xff] %v2634_v17  ;;  %v2638_v62 = vld [vmem:[%s3591_s10 + $0x158] sm:$0xff]  ;;  %v2640_v8 = vld [vmem:[%s3591_s10 + $0x160] sm:$0xff] }
 0x2e0   : >> { %2637 = vst [vmem:[%s3587_s15 + $0x150] sm:$0xff] %v2636_v60  ;;  %2639 = vst [vmem:[%s3587_s15 + $0x158] sm:$0xff] %v2638_v62  ;;  %v2642_v15 = vld [vmem:[%s3591_s10 + $0x168] sm:$0xff]  ;;  %v2644_v18 = vld [vmem:[%s3591_s10 + $0x170] sm:$0xff]  ;;  %2548 = sbr.rel (!%p2545_p12) target bundleno = 714 (0x2ca), region = 122 }
 0x2e1   : >> { %2641 = vst [vmem:[%s3587_s15 + $0x160] sm:$0xff] %v2640_v8  ;;  %v2646_v37 = vld [vmem:[%s3591_s10 + $0x178] sm:$0xff]  ;;  %2643 = vst [vmem:[%s3587_s15 + $0x168] sm:$0xff] %v2642_v15  ;;  %v2648_v0 = vld [vmem:[%s3591_s10 + $0x180] sm:$0xff] }
 0x2e2   : >> { %2645 = vst [vmem:[%s3587_s15 + $0x170] sm:$0xff] %v2644_v18  ;;  %2647 = vst [vmem:[%s3587_s15 + $0x178] sm:$0xff] %v2646_v37  ;;  %v2650_v22 = vld [vmem:[%s3591_s10 + $0x188] sm:$0xff]  ;;  %v2652_v23 = vld [vmem:[%s3591_s10 + $0x190] sm:$0xff] }
 0x2e3   : >> { %2649 = vst [vmem:[%s3587_s15 + $0x180] sm:$0xff] %v2648_v0  ;;  %2651 = vst [vmem:[%s3587_s15 + $0x188] sm:$0xff] %v2650_v22  ;;  %v2654_v42 = vld [vmem:[%s3591_s10 + $0x198] sm:$0xff]  ;;  %v2656_v57 = vld [vmem:[%s3591_s10 + $0x1a0] sm:$0xff] }
 0x2e4   : >> { %2653 = vst [vmem:[%s3587_s15 + $0x190] sm:$0xff] %v2652_v23  ;;  %v2658_v14 = vld [vmem:[%s3591_s10 + $0x1a8] sm:$0xff]  ;;  %2655 = vst [vmem:[%s3587_s15 + $0x198] sm:$0xff] %v2654_v42  ;;  %v2660_v43 = vld [vmem:[%s3591_s10 + $0x1b0] sm:$0xff] }
 0x2e5   : >> { %2657 = vst [vmem:[%s3587_s15 + $0x1a0] sm:$0xff] %v2656_v57  ;;  %2659 = vst [vmem:[%s3587_s15 + $0x1a8] sm:$0xff] %v2658_v14  ;;  %v2662_v39 = vld [vmem:[%s3591_s10 + $0x1b8] sm:$0xff]  ;;  %s5241_s10 = smov %s5122_s27 }
 0x2e6   : >> { %2661 = vst [vmem:[%s3587_s15 + $0x1b0] sm:$0xff] %v2660_v43  ;;  %2663 = vst [vmem:[%s3587_s15 + $0x1b8] sm:$0xff] %v2662_v39  ;;  %s5240_s15 = smov %s5125_s28 }
 0x2e7 PF: > { %3527 = sdivrem.u32 %s5247_s11, 56 }
 0x2e8   : > { %s2865_s29 = smul.u32 448, %s5049_s20 }
 0x2ea   : > { %s2675_s30 = scalar_lea.vmem %s4795_s12, %s2865_s29 [#allocation2]   ;;  %s2677_s4 = scalar_lea.vmem %s5043_s21, %s2865_s29  }
 0x2f0   : > { %s3528_s5 = spop.drf %3527 }
 0x2f1   : > { %p2867_p13 = scmp.le.s32.totalorder %s3528_s5, 0 }
 0x2f2   : > { %s3601_s7 = smov (!%p2867_p13), %s2677_s4   ;;  %s3605_s8 = smov (!%p2867_p13), %s2675_s30  }
 0x2f3   : > { %2768 = sbr.rel (%p2867_p13) target bundleno = 772 (0x304), region = 127  ;;  %s3609_s6 = smov (!%p2867_p13), 0  }
 0x2f4   : > { %s3613_s9 = smov (!%p2867_p13), 0  }
 0x2fa LB: >> { %v2687_v40 = vld [vmem:[%s3607_s8] sm:$0xff]  ;;  %s2689_s14 = sadd.s32 1, %s3611_s6  ;;  %s2681_s9 = sadd.s32 1, %s3615_s9   ;;  %s3615_s9 = sphi %s3613_s9, %s2681_s9   ;;  %s3611_s6 = sphi %s3609_s6, %s3610_s6   ;;  %s3607_s8 = sphi %s3605_s8, %s2694_s8   ;;  %s3603_s7 = sphi %s3601_s7, %s2695_s7  }
 0x2fb   : >> { %2688 = vst [vmem:[%s3603_s7] sm:$0xff] %v2687_v40  ;;  %p2690_p0 = scmp.ge.s32.totalorder %s2689_s14, %s3528_s5  ;;  %p2680_p1 = scmp.ge.s32.totalorder %s2681_s9, %s3528_s5 }
 0x2fd   : >> { %s5251_s14 = smov (%p2690_p0, %s2689_s14), 0  ;;  %2683 = sbr.rel (!%p2680_p1) target bundleno = 762 (0x2fa), region = 133 }
 0x2fe   : >> { %s2868_s12 = sshll.u32 %s5251_s14, 3  ;;  %s3610_s6 = smov %s5251_s14  }
 0x2ff   : >> { %s2694_s8 = scalar_lea.vmem %s2675_s30, %s2868_s12 [#allocation2]   ;;  %s2695_s7 = scalar_lea.vmem %s2677_s4, %s2868_s12  }
 0x304 PF: > { %p10_p2 = scmp.ge.s32.totalorder %s3653_s16, 4   ;;  %s5243_s12 = smov %s3579_s13 }
 0x305   : > { %s5244_s13 = smov %s3661_s19  ;;  %s5245_s14 = smov %s3653_s16 }
 0x306   :  { %12 = sbr.rel (!%p10_p2) target bundleno = 2 (0x2), region = 144 }

// kernel: imitation_agent_forward.6
= control target key start
LH: loop header
LB: loop body
LE: loop exit
PB: predicated region body
PF: predicated region fallthrough
CT: control target
= control target key end

     0   :  { %s1703_s12 = smov 0   ;;  %s1705_s13 = smov 0   ;;  %s2229_s0 = inlined_call_operand.vmem [shape: f32[200,576], index: 0, kind: input, shape index: {}]   ;;  %s2230_s1 = inlined_call_operand.vmem [shape: f32[576,128], index: 1, kind: input, shape index: {}]   ;;  %s2231_s2 = inlined_call_operand.vmem [shape: f32[1,128], index: 2, kind: input, shape index: {}]   ;;  %s2232_s3 = inlined_call_operand.vmem [shape: f32[200,128], index: 3, kind: output, shape index: {}]  }
   0x1   :  { %s1707_s14 = smov 0  }
   0x2 LB: > { %s1716_s15 = sadd.s32 4294967295, %s1649_s14   ;;  %s1718_s16 = sadd.s32 1, %s1649_s14   ;;  %s1649_s14 = sphi %s1707_s14, %s2239_s14   ;;  %s1645_s13 = sphi %s1705_s13, %s2238_s13   ;;  %s1641_s12 = sphi %s1703_s12, %s2237_s12  }
   0x3   : > { %s85_s17 = ssub.s32 %s1649_s14, %s1718_s16  ;;  %s88_s18 = sadd.s32 1, %s1645_s13 }
   0x4   : > { %p86_p0 = scmp.eq.s32.totalorder %s85_s17, 0  ;;  %p98_p1 = scmp.ne.s32.totalorder %s1645_s13, %s1641_s12 }
   0x5   : > { %p99_p2 = scmp.eq.s32.totalorder %s1716_s15, 1  ;;  %p1153_p3 = scmp.ge.s32.totalorder %s1649_s14, 1 }
   0x6   : > { %s1726_s19 = scalar_select %p86_p0, %s1645_s13, %s88_s18  }
   0x7   : > { %p1728_p4 = por %p99_p2, %p98_p1  ;;  %p149_p5 = scmp.lt.s32.totalorder %s1649_s14, 3 }
   0x9   : > { %p150_p6 = pnand %p1153_p3, %p149_p5 }
   0xa   : > { %v296_v0 = vld [vmem:[%s2230_s1 + $0x80] sm:$0xff] (!%p150_p6)  ;;  %v297_v1 = vld [vmem:[%s2230_s1 + $0x88] sm:$0xff] (!%p150_p6)  ;;  %v298_v11 = vld [vmem:[%s2230_s1 + $0x90] sm:$0xff] (!%p150_p6)  ;;  %s1769_s24 = sshll.u32 (!%p150_p6), %s1716_s15, 4  ;;  %vm359_vm0 = vcmask (!%p150_p6), 523264  }
   0xb   : > { %153 = sbr.rel (%p150_p6) target bundleno = 390 (0x186), region = 32  ;;  %v328_v2 = vld [vmem:[%s2230_s1 + $0x180] sm:$0xff] (!%p150_p6)  ;;  %v1418_v3 = vpack.c.bf16 (!%p150_p6), %v297_v1, %v296_v0  ;;  %v329_v4 = vld [vmem:[%s2230_s1 + $0x188] sm:$0xff] (!%p150_p6)  ;;  %v299_v13 = vld [vmem:[%s2230_s1 + $0x98] sm:$0xff] (!%p150_p6)  ;;  %p184_p7 = scmp.lt.s32.totalorder (!%p150_p6), %s1769_s24, 24 }
   0xc   : > { %v280_v5 = vld [vmem:[%s2230_s1] sm:$0xff] (!%p150_p6)  ;;  %v281_v6 = vld [vmem:[%s2230_s1 + $0x8] sm:$0xff] (!%p150_p6)  ;;  %v1450_v7 = vpack.c.bf16 (!%p150_p6), %v329_v4, %v328_v2  ;;  %v330_v14 = vld [vmem:[%s2230_s1 + $0x190] sm:$0xff] (!%p150_p6)  ;;  %v1422_v16 = vpack.c.bf16 (!%p150_p6), %v299_v13, %v298_v11 }
   0xd   : > { %v1420_v8 = vpack.c.bf16 (!%p150_p6), %v281_v6, %v280_v5  ;;  %v312_v9 = vld [vmem:[%s2230_s1 + $0x100] sm:$0xff] (!%p150_p6)  ;;  %v313_v10 = vld [vmem:[%s2230_s1 + $0x108] sm:$0xff] (!%p150_p6)  ;;  %1419 = vmatprep.subr.bf16.mxu0 (!%p150_p6), %v1418_v3  ;;  %v331_v15 = vld [vmem:[%s2230_s1 + $0x198] sm:$0xff] (!%p150_p6) }
   0xe   : > { %v1452_v12 = vpack.c.bf16 (!%p150_p6), %v313_v10, %v312_v9  ;;  %1451 = vmatprep.subr.bf16.mxu1 (!%p150_p6), %v1450_v7  ;;  %v1454_v17 = vpack.c.bf16 (!%p150_p6), %v331_v15, %v330_v14  ;;  %v282_v18 = vld [vmem:[%s2230_s1 + $0x10] sm:$0xff] (!%p150_p6)  ;;  %v283_v19 = vld [vmem:[%s2230_s1 + $0x18] sm:$0xff] (!%p150_p6)  ;;  %v300_v23 = vld [vmem:[%s2230_s1 + $0xa0] sm:$0xff] (!%p150_p6) }
   0xf   : > { %1421 = vmatpush3.bf16.msra.mxu0 (!%p150_p6), %v1420_v8  ;;  %v314_v20 = vld [vmem:[%s2230_s1 + $0x110] sm:$0xff] (!%p150_p6)  ;;  %v1424_v21 = vpack.c.bf16 (!%p150_p6), %v283_v19, %v282_v18  ;;  %v315_v22 = vld [vmem:[%s2230_s1 + $0x118] sm:$0xff] (!%p150_p6)  ;;  %v301_v24 = vld [vmem:[%s2230_s1 + $0xa8] sm:$0xff] (!%p150_p6) }
  0x10   : > { %1453 = vmatpush3.bf16.msra.mxu1 (!%p150_p6), %v1452_v12  ;;  %1423 = vmatprep.subr.bf16.mxu0 (!%p150_p6), %v1422_v16  ;;  %v1456_v25 = vpack.c.bf16 (!%p150_p6), %v315_v22, %v314_v20  ;;  %v1426_v26 = vpack.c.bf16 (!%p150_p6), %v301_v24, %v300_v23  ;;  %v332_v27 = vld [vmem:[%s2230_s1 + $0x1a0] sm:$0xff] (!%p150_p6)  ;;  %v333_v28 = vld [vmem:[%s2230_s1 + $0x1a8] sm:$0xff] (!%p150_p6)  ;;  %v302_v35 = vld [vmem:[%s2230_s1 + $0xb0] sm:$0xff] (!%p150_p6) }
  0x11   : > { %1455 = vmatprep.subr.bf16.mxu1 (!%p150_p6), %v1454_v17  ;;  %v284_v29 = vld [vmem:[%s2230_s1 + $0x20] sm:$0xff] (!%p150_p6)  ;;  %v1458_v30 = vpack.c.bf16 (!%p150_p6), %v333_v28, %v332_v27  ;;  %v285_v31 = vld [vmem:[%s2230_s1 + $0x28] sm:$0xff] (!%p150_p6)  ;;  %v303_v36 = vld [vmem:[%s2230_s1 + $0xb8] sm:$0xff] (!%p150_p6) }
  0x12   : > { %v316_v32 = vld [vmem:[%s2230_s1 + $0x120] sm:$0xff]  ;;  %v317_v33 = vld [vmem:[%s2230_s1 + $0x128] sm:$0xff]  ;;  %v1428_v34 = vpack.c.bf16 %v285_v31, %v284_v29  ;;  %v334_v37 = vld [vmem:[%s2230_s1 + $0x1b0] sm:$0xff]  ;;  %v1430_v39 = vpack.c.bf16 %v303_v36, %v302_v35  ;;  %s1838_s27 = scalar_select %p184_p7, %s1769_s24, 24 }
  0x13   : > { %1425 = vmatpush3.bf16.msra.mxu0 %v1424_v21  ;;  %v1460_v38 = vpack.c.bf16 %v317_v33, %v316_v32  ;;  %v335_v40 = vld [vmem:[%s2230_s1 + $0x1b8] sm:$0xff]  ;;  %v286_v41 = vld [vmem:[%s2230_s1 + $0x30] sm:$0xff]  ;;  %v304_v46 = vld [vmem:[%s2230_s1 + $0xc0] sm:$0xff]  ;;  %s883_s8 = ssub.s32 (%p1728_p4), 25, %s1769_s24  ;;  %s1191_s9 = sshll.u32 (%p1728_p4), %s1716_s15, 7 }
  0x14   : > { %1457 = vmatpush3.bf16.msra.mxu1 %v1456_v25  ;;  %1427 = vmatprep.subr.bf16.mxu0 %v1426_v26  ;;  %v287_v42 = vld [vmem:[%s2230_s1 + $0x38] sm:$0xff]  ;;  %v1462_v43 = vpack.c.bf16 %v335_v40, %v334_v37  ;;  %v318_v44 = vld [vmem:[%s2230_s1 + $0x130] sm:$0xff]  ;;  %v305_v47 = vld [vmem:[%s2230_s1 + $0xc8] sm:$0xff]  ;;  %s1506_s26 = smul.u32 40, %s1838_s27  ;;  %p884_p8 = scmp.lt.s32.totalorder (%p1728_p4), %s883_s8, 16 }
  0x15   : > { %1459 = vmatprep.subr.bf16.mxu1 %v1458_v30  ;;  %v319_v45 = vld [vmem:[%s2230_s1 + $0x138] sm:$0xff]  ;;  %v336_v48 = vld [vmem:[%s2230_s1 + $0x1c0] sm:$0xff]  ;;  %v337_v49 = vld [vmem:[%s2230_s1 + $0x1c8] sm:$0xff]  ;;  %v1432_v50 = vpack.c.bf16 %v287_v42, %v286_v41  ;;  %v1434_v52 = vpack.c.bf16 %v305_v47, %v304_v46  ;;  %s2136_s14 = scalar_lea.vmem (%p1728_p4), %s2232_s3, %s1191_s9  }
  0x16   : > { %v1464_v51 = vpack.c.bf16 %v319_v45, %v318_v44  ;;  %v288_v53 = vld [vmem:[%s2230_s1 + $0x40] sm:$0xff]  ;;  %v289_v54 = vld [vmem:[%s2230_s1 + $0x48] sm:$0xff]  ;;  %v1466_v56 = vpack.c.bf16 %v337_v49, %v336_v48  ;;  %v306_v58 = vld [vmem:[%s2230_s1 + $0xd0] sm:$0xff]  ;;  %s1895_s25 = scalar_lea.vmem %s2229_s0, %s1506_s26 }
  0x17   : > { %1429 = vmatpush3.bf16.msra.mxu0 %v1428_v34  ;;  %v320_v55 = vld [vmem:[%s2230_s1 + $0x140] sm:$0xff]  ;;  %v321_v57 = vld [vmem:[%s2230_s1 + $0x148] sm:$0xff]  ;;  %v307_v59 = vld [vmem:[%s2230_s1 + $0xd8] sm:$0xff]  ;;  %v1436_v62 = vpack.c.bf16 %v289_v54, %v288_v53 }
  0x18   : > { %1461 = vmatpush3.bf16.msra.mxu1 %v1460_v38  ;;  %1431 = vmatprep.subr.bf16.mxu0 %v1430_v39  ;;  %v338_v60 = vld [vmem:[%s2230_s1 + $0x1d0] sm:$0xff]  ;;  %v339_v61 = vld [vmem:[%s2230_s1 + $0x1d8] sm:$0xff]  ;;  %v1468_v63 = vpack.c.bf16 %v321_v57, %v320_v55  ;;  %v1438_v0 = vpack.c.bf16 %v307_v59, %v306_v58  ;;  %v308_v6 = vld [vmem:[%s2230_s1 + $0xe0] sm:$0xff] }
  0x19   : > { %1463 = vmatprep.subr.bf16.mxu1 %v1462_v43  ;;  %v290_v1 = vld [vmem:[%s2230_s1 + $0x50] sm:$0xff]  ;;  %v291_v2 = vld [vmem:[%s2230_s1 + $0x58] sm:$0xff]  ;;  %v1470_v4 = vpack.c.bf16 %v339_v61, %v338_v60  ;;  %v309_v7 = vld [vmem:[%s2230_s1 + $0xe8] sm:$0xff] }
  0x1a   : > { %v322_v3 = vld [vmem:[%s2230_s1 + $0x150] sm:$0xff]  ;;  %v323_v5 = vld [vmem:[%s2230_s1 + $0x158] sm:$0xff]  ;;  %v340_v8 = vld [vmem:[%s2230_s1 + $0x1e0] sm:$0xff]  ;;  %v1440_v10 = vpack.c.bf16 %v291_v2, %v290_v1  ;;  %v1442_v14 = vpack.c.bf16 %v309_v7, %v308_v6 }
  0x1b   : > { %1433 = vmatpush3.bf16.msra.mxu0 %v1432_v50  ;;  %v341_v9 = vld [vmem:[%s2230_s1 + $0x1e8] sm:$0xff]  ;;  %v292_v11 = vld [vmem:[%s2230_s1 + $0x60] sm:$0xff]  ;;  %v1472_v13 = vpack.c.bf16 %v323_v5, %v322_v3  ;;  %v203_v17 = vld [vmem:[%s1895_s25 + $0x18] sm:$0xff] }
  0x1c   : > { %1465 = vmatpush3.bf16.msra.mxu1 %v1464_v51  ;;  %1435 = vmatprep.subr.bf16.mxu0 %v1434_v52  ;;  %v293_v12 = vld [vmem:[%s2230_s1 + $0x68] sm:$0xff]  ;;  %v324_v15 = vld [vmem:[%s2230_s1 + $0x160] sm:$0xff]  ;;  %v1474_v18 = vpack.c.bf16 %v341_v9, %v340_v8  ;;  %v310_v20 = vld [vmem:[%s2230_s1 + $0xf0] sm:$0xff] }
  0x1d   : > { %1467 = vmatprep.subr.bf16.mxu1 %v1466_v56  ;;  %v201_v16 = vld [vmem:[%s1895_s25 + $0x8] sm:$0xff]  ;;  %v311_v21 = vld [vmem:[%s2230_s1 + $0xf8] sm:$0xff]  ;;  %v342_v22 = vld [vmem:[%s2230_s1 + $0x1f0] sm:$0xff]  ;;  %617 = vmatprep.mubr.f32.mxu1 %v203_v17  ;;  %v1444_v24 = vpack.c.bf16 %v293_v12, %v292_v11 }
  0x1e   : > { %v325_v19 = vld [vmem:[%s2230_s1 + $0x168] sm:$0xff]  ;;  %472 = vmatprep.mubr.f32.mxu0 %v201_v16  ;;  %v343_v23 = vld [vmem:[%s2230_s1 + $0x1f8] sm:$0xff]  ;;  %v1446_v26 = vpack.c.bf16 %v311_v21, %v310_v20  ;;  %v294_v27 = vld [vmem:[%s2230_s1 + $0x70] sm:$0xff] }
  0x1f   : > { %1437 = vmatpush3.bf16.msra.mxu0 %v1436_v62  ;;  %v1476_v25 = vpack.c.bf16 %v325_v19, %v324_v15  ;;  %v295_v28 = vld [vmem:[%s2230_s1 + $0x78] sm:$0xff]  ;;  %v326_v29 = vld [vmem:[%s2230_s1 + $0x170] sm:$0xff]  ;;  %v1478_v30 = vpack.c.bf16 %v343_v23, %v342_v22  ;;  %v344_v32 = vld [vmem:[%s2230_s1 + $0x200] sm:$0xff] }
  0x20   : > { %1469 = vmatpush3.bf16.msra.mxu1 %v1468_v63  ;;  %1439 = vmatprep.subr.bf16.mxu0 %v1438_v0  ;;  %v327_v31 = vld [vmem:[%s2230_s1 + $0x178] sm:$0xff]  ;;  %v345_v33 = vld [vmem:[%s2230_s1 + $0x208] sm:$0xff]  ;;  %v1448_v34 = vpack.c.bf16 %v295_v28, %v294_v27  ;;  %v346_v37 = vld [vmem:[%s2230_s1 + $0x210] sm:$0xff] }
  0x21   : > { %1471 = vmatprep.subr.bf16.mxu1 %v1470_v4  ;;  %v1480_v35 = vpack.c.bf16 %v327_v31, %v326_v29  ;;  %v1482_v36 = vpack.c.bf16 %v345_v33, %v344_v32  ;;  %v347_v38 = vld [vmem:[%s2230_s1 + $0x218] sm:$0xff]  ;;  %v200_v39 = vld [vmem:[%s1895_s25] sm:$0xff]  ;;  %v202_v40 = vld [vmem:[%s1895_s25 + $0x10] sm:$0xff] }
  0x22   : > { %v206_v41 = vld [vmem:[%s1895_s25 + $0x30] sm:$0xff]  ;;  %v1486_v42 = vpack.c.bf16 %v347_v38, %v346_v37  ;;  %v208_v43 = vld [vmem:[%s1895_s25 + $0x40] sm:$0xff]  ;;  %v349_v45 = vld [vmem:[%s2230_s1 + $0x228] sm:$0xff] }
  0x23   : > { %1441 = vmatpush3.bf16.msra.mxu0 %v1440_v10  ;;  %v348_v44 = vld [vmem:[%s2230_s1 + $0x220] sm:$0xff]  ;;  %v205_v46 = vld [vmem:[%s1895_s25 + $0x28] sm:$0xff]  ;;  %v207_v47 = vld [vmem:[%s1895_s25 + $0x38] sm:$0xff] }
  0x24   : > { %1473 = vmatpush3.bf16.msra.mxu1 %v1472_v13  ;;  %1443 = vmatprep.subr.bf16.mxu0 %v1442_v14  ;;  %v211_v48 = vld [vmem:[%s1895_s25 + $0x58] sm:$0xff]  ;;  %v213_v49 = vld [vmem:[%s1895_s25 + $0x68] sm:$0xff]  ;;  %v1490_v50 = vpack.c.bf16 %v349_v45, %v348_v44  ;;  %v210_v51 = vld [vmem:[%s1895_s25 + $0x50] sm:$0xff] }
  0x25   : > { %1475 = vmatprep.subr.bf16.mxu1 %v1474_v18  ;;  %v350_v52 = vld [vmem:[%s2230_s1 + $0x230] sm:$0xff]  ;;  %v212_v53 = vld [vmem:[%s1895_s25 + $0x60] sm:$0xff]  ;;  %v351_v55 = vld [vmem:[%s2230_s1 + $0x238] sm:$0xff] }
  0x26   : > { %v216_v54 = vld [vmem:[%s1895_s25 + $0x80] sm:$0xff]  ;;  %v218_v56 = vld [vmem:[%s1895_s25 + $0x90] sm:$0xff]  ;;  %v1494_v57 = vpack.c.bf16 %v351_v55, %v350_v52  ;;  %v215_v58 = vld [vmem:[%s1895_s25 + $0x78] sm:$0xff] }
  0x27   : > { %1445 = vmatpush3.bf16.msra.mxu0 %v1444_v24  ;;  %v217_v59 = vld [vmem:[%s1895_s25 + $0x88] sm:$0xff]  ;;  %v223_v61 = vld [vmem:[%s1895_s25 + $0xb8] sm:$0xff]  ;;  %v220_v62 = vld [vmem:[%s1895_s25 + $0xa0] sm:$0xff] }
  0x28   : > { %1477 = vmatpush3.bf16.msra.mxu1 %v1476_v25  ;;  %1447 = vmatprep.subr.bf16.mxu0 %v1446_v26  ;;  %v221_v60 = vld [vmem:[%s1895_s25 + $0xa8] sm:$0xff]  ;;  %v222_v63 = vld [vmem:[%s1895_s25 + $0xb0] sm:$0xff]  ;;  %v228_v1 = vld [vmem:[%s1895_s25 + $0xe0] sm:$0xff] }
  0x29   : > { %1479 = vmatprep.subr.bf16.mxu1 %v1478_v30  ;;  %v226_v0 = vld [vmem:[%s1895_s25 + $0xd0] sm:$0xff]  ;;  %v225_v2 = vld [vmem:[%s1895_s25 + $0xc8] sm:$0xff]  ;;  %v227_v3 = vld [vmem:[%s1895_s25 + $0xd8] sm:$0xff] }
  0x2a   : > { %v231_v4 = vld [vmem:[%s1895_s25 + $0xf8] sm:$0xff]  ;;  %v233_v5 = vld [vmem:[%s1895_s25 + $0x108] sm:$0xff]  ;;  %v230_v6 = vld [vmem:[%s1895_s25 + $0xf0] sm:$0xff] }
  0x2b   : > { %1449 = vmatpush3.bf16.msra.mxu0 %v1448_v34  ;;  %v232_v7 = vld [vmem:[%s1895_s25 + $0x100] sm:$0xff]  ;;  %v238_v9 = vld [vmem:[%s1895_s25 + $0x130] sm:$0xff]  ;;  %v235_v10 = vld [vmem:[%s1895_s25 + $0x118] sm:$0xff] }
  0x2c   : > { %1481 = vmatpush3.bf16.msra.mxu1 %v1480_v35  ;;  %1483 = vmatprep.subr.bf16.mxu0 %v1482_v36  ;;  %v236_v8 = vld [vmem:[%s1895_s25 + $0x120] sm:$0xff]  ;;  %v237_v11 = vld [vmem:[%s1895_s25 + $0x128] sm:$0xff]  ;;  %v243_v13 = vld [vmem:[%s1895_s25 + $0x158] sm:$0xff] }
  0x2d   : > { %1498 = vmatprep.subr.bf16.mxu1 %v1482_v36  ;;  %v241_v12 = vld [vmem:[%s1895_s25 + $0x148] sm:$0xff]  ;;  %v240_v14 = vld [vmem:[%s1895_s25 + $0x140] sm:$0xff]  ;;  %v242_v15 = vld [vmem:[%s1895_s25 + $0x150] sm:$0xff] }
  0x2e   : > { %473 = vmatmul.mubr.f32.vlgmr.msra.gmra.mrb[0].mxu0 %v200_v39  ;;  %v246_v16 = vld [vmem:[%s1895_s25 + $0x170] sm:$0xff]  ;;  %v248_v17 = vld [vmem:[%s1895_s25 + $0x180] sm:$0xff]  ;;  %v245_v18 = vld [vmem:[%s1895_s25 + $0x168] sm:$0xff] }
  0x2f   : > { %618 = vmatmul.mubr.f32.vlgmr.msra.gmra.mrb[0].mxu1 %v202_v40  ;;  %1485 = vmatpush3.bf16.msra.mxu0 %v1482_v36  ;;  %v247_v19 = vld [vmem:[%s1895_s25 + $0x178] sm:$0xff]  ;;  %v253_v21 = vld [vmem:[%s1895_s25 + $0x1a8] sm:$0xff]  ;;  %v250_v22 = vld [vmem:[%s1895_s25 + $0x190] sm:$0xff] }
  0x30   : > { %1502 = vmatpush3.bf16.msra.mxu1 %v1482_v36  ;;  %477 = vmatprep.mubr.f32.mxu0 %v206_v41  ;;  %v251_v20 = vld [vmem:[%s1895_s25 + $0x198] sm:$0xff]  ;;  %v252_v23 = vld [vmem:[%s1895_s25 + $0x1a0] sm:$0xff]  ;;  %v258_v25 = vld [vmem:[%s1895_s25 + $0x1d0] sm:$0xff] }
  0x31   : > { %622 = vmatprep.mubr.f32.mxu1 %v208_v43  ;;  %1487 = vmatprep.subr.bf16.mxu0 %v1486_v42  ;;  %v256_v24 = vld [vmem:[%s1895_s25 + $0x1c0] sm:$0xff]  ;;  %v255_v26 = vld [vmem:[%s1895_s25 + $0x1b8] sm:$0xff]  ;;  %v257_v27 = vld [vmem:[%s1895_s25 + $0x1c8] sm:$0xff] }
  0x32   : > { %478 = vmatmul.mubr.f32.gmra.mrb[2].mxu0 %v205_v46  ;;  %1499 = vmatprep.subr.bf16.mxu1 %v1486_v42  ;;  %v261_v28 = vld [vmem:[%s1895_s25 + $0x1e8] sm:$0xff]  ;;  %v263_v29 = vld [vmem:[%s1895_s25 + $0x1f8] sm:$0xff]  ;;  %v260_v30 = vld [vmem:[%s1895_s25 + $0x1e0] sm:$0xff] }
  0x33   : > { %623 = vmatmul.mubr.f32.gmra.mrb[2].mxu1 %v207_v47  ;;  %482 = vmatprep.mubr.f32.mxu0 %v211_v48  ;;  %v262_v31 = vld [vmem:[%s1895_s25 + $0x1f0] sm:$0xff]  ;;  %v268_v33 = vld [vmem:[%s1895_s25 + $0x220] sm:$0xff]  ;;  %v265_v34 = vld [vmem:[%s1895_s25 + $0x208] sm:$0xff] }
  0x34   : > { %627 = vmatprep.mubr.f32.mxu1 %v213_v49  ;;  %1489 = vmatpush3.bf16.msra.mxu0 %v1486_v42  ;;  %v266_v32 = vld [vmem:[%s1895_s25 + $0x210] sm:$0xff]  ;;  %v267_v35 = vld [vmem:[%s1895_s25 + $0x218] sm:$0xff]  ;;  %v273_v37 = vld [vmem:[%s1895_s25 + $0x248] sm:$0xff] }
  0x35   : > { %1503 = vmatpush3.bf16.msra.mxu1 %v1486_v42  ;;  %1491 = vmatprep.subr.bf16.mxu0 %v1490_v50  ;;  %v271_v36 = vld [vmem:[%s1895_s25 + $0x238] sm:$0xff]  ;;  %v270_v38 = vld [vmem:[%s1895_s25 + $0x230] sm:$0xff]  ;;  %v272_v39 = vld [vmem:[%s1895_s25 + $0x240] sm:$0xff] }
  0x36   : > { %483 = vmatmul.mubr.f32.gmra.mrb[4].mxu0 %v210_v51  ;;  %1500 = vmatprep.subr.bf16.mxu1 %v1490_v50  ;;  %v276_v40 = vld [vmem:[%s1895_s25 + $0x260] sm:$0xff]  ;;  %v278_v41 = vld [vmem:[%s1895_s25 + $0x270] sm:$0xff]  ;;  %v275_v42 = vld [vmem:[%s1895_s25 + $0x258] sm:$0xff] }
  0x37   : > { %628 = vmatmul.mubr.f32.gmra.mrb[4].mxu1 %v212_v53  ;;  %487 = vmatprep.mubr.f32.mxu0 %v216_v54  ;;  %v277_v43 = vld [vmem:[%s1895_s25 + $0x268] sm:$0xff]  ;;  %v204_v44 = vld [vmem:[%s1895_s25 + $0x20] sm:$0xff]  ;;  %v214_v48 = vld [vmem:[%s1895_s25 + $0x70] sm:$0xff] }
  0x38   : > { %632 = vmatprep.mubr.f32.mxu1 %v218_v56  ;;  %1493 = vmatpush3.bf16.msra.mxu0 %v1490_v50  ;;  %v244_v45 = vld [vmem:[%s1895_s25 + $0x160] sm:$0xff]  ;;  %v209_v46 = vld [vmem:[%s1895_s25 + $0x48] sm:$0xff]  ;;  %v254_v49 = vld [vmem:[%s1895_s25 + $0x1b0] sm:$0xff] }
  0x39   : > { %1504 = vmatpush3.bf16.msra.mxu1 %v1490_v50  ;;  %1495 = vmatprep.subr.bf16.mxu0 %v1494_v57  ;;  %v249_v47 = vld [vmem:[%s1895_s25 + $0x188] sm:$0xff]  ;;  %v219_v50 = vld [vmem:[%s1895_s25 + $0x98] sm:$0xff]  ;;  %v224_v52 = vld [vmem:[%s1895_s25 + $0xc0] sm:$0xff] }
  0x3a   : > { %488 = vmatmul.mubr.f32.gmra.mrb[6].mxu0 %v215_v58  ;;  %1501 = vmatprep.subr.bf16.mxu1 %v1494_v57  ;;  %v259_v51 = vld [vmem:[%s1895_s25 + $0x1d8] sm:$0xff]  ;;  %v264_v53 = vld [vmem:[%s1895_s25 + $0x200] sm:$0xff]  ;;  %v229_v54 = vld [vmem:[%s1895_s25 + $0xe8] sm:$0xff] }
  0x3b   : > { %633 = vmatmul.mubr.f32.gmra.mrb[6].mxu1 %v217_v59  ;;  %492 = vmatprep.mubr.f32.mxu0 %v221_v60  ;;  %v269_v55 = vld [vmem:[%s1895_s25 + $0x228] sm:$0xff]  ;;  %v234_v56 = vld [vmem:[%s1895_s25 + $0x110] sm:$0xff]  ;;  %v239_v58 = vld [vmem:[%s1895_s25 + $0x138] sm:$0xff] }
  0x3c   : > { %637 = vmatprep.mubr.f32.mxu1 %v223_v61  ;;  %1497 = vmatpush3.bf16.msra.mxu0 %v1494_v57  ;;  %v279_v59 = vld [vmem:[%s1895_s25 + $0x278] sm:$0xff] }
  0x3d   : > { %1505 = vmatpush3.bf16.msra.mxu1 %v1494_v57  ;;  %v274_v57 = vld [vmem:[%s1895_s25 + $0x250] sm:$0xff]  ;;  %s175_s25 = sand.u32 1, %s1641_s12  }
  0x3e   : > { %493 = vmatmul.mubr.f32.gmra.mrb[8].mxu0 %v220_v62  ;;  %v2062_v62 = vld [vmem:[%s2231_s2] ss:$0 sm:$0xff]  ;;  %s1154_s26 = sshll.u32 %s175_s25, 7 }
  0x3f   : > { %638 = vmatmul.mubr.f32.gmra.mrb[8].mxu1 %v222_v63  ;;  %497 = vmatprep.mubr.f32.mxu0 %v226_v0  ;;  %s2103_s12 = scalar_lea.vmem [#allocation2], %s1154_s26  }
  0x40   : > { %642 = vmatprep.mubr.f32.mxu1 %v228_v1 }
  0x42   : > { %498 = vmatmul.mubr.f32.gmra.mrb[10].mxu0 %v225_v2 }
  0x43   : > { %643 = vmatmul.mubr.f32.gmra.mrb[10].mxu1 %v227_v3  ;;  %502 = vmatprep.mubr.f32.mxu0 %v231_v4 }
  0x44   : > { %647 = vmatprep.mubr.f32.mxu1 %v233_v5 }
  0x46   : > { %503 = vmatmul.mubr.f32.gmra.mrb[12].mxu0 %v230_v6 }
  0x47   : > { %648 = vmatmul.mubr.f32.gmra.mrb[12].mxu1 %v232_v7  ;;  %507 = vmatprep.mubr.f32.mxu0 %v236_v8 }
  0x48   : > { %652 = vmatprep.mubr.f32.mxu1 %v238_v9 }
  0x4a   : > { %508 = vmatmul.mubr.f32.gmra.mrb[14].mxu0 %v235_v10 }
  0x4b   : > { %653 = vmatmul.mubr.f32.gmra.mrb[14].mxu1 %v237_v11  ;;  %512 = vmatprep.mubr.f32.mxu0 %v241_v12 }
  0x4c   : > { %657 = vmatprep.mubr.f32.mxu1 %v243_v13 }
  0x4e   : > { %513 = vmatmul.mubr.f32.gmra.mrb[16].mxu0 %v240_v14 }
  0x4f   : > { %658 = vmatmul.mubr.f32.gmra.mrb[16].mxu1 %v242_v15  ;;  %517 = vmatprep.mubr.f32.mxu0 %v246_v16 }
  0x50   : > { %662 = vmatprep.mubr.f32.mxu1 %v248_v17 }
  0x52   : > { %518 = vmatmul.mubr.f32.gmra.mrb[18].mxu0 %v245_v18 }
  0x53   : > { %663 = vmatmul.mubr.f32.gmra.mrb[18].mxu1 %v247_v19  ;;  %522 = vmatprep.mubr.f32.mxu0 %v251_v20 }
  0x54   : > { %667 = vmatprep.mubr.f32.mxu1 %v253_v21 }
  0x56   : > { %523 = vmatmul.mubr.f32.gmra.mrb[20].mxu0 %v250_v22 }
  0x57   : > { %668 = vmatmul.mubr.f32.gmra.mrb[20].mxu1 %v252_v23  ;;  %527 = vmatprep.mubr.f32.mxu0 %v256_v24 }
  0x58   : > { %672 = vmatprep.mubr.f32.mxu1 %v258_v25 }
  0x5a   : > { %528 = vmatmul.mubr.f32.gmra.mrb[22].mxu0 %v255_v26 }
  0x5b   : > { %673 = vmatmul.mubr.f32.gmra.mrb[22].mxu1 %v257_v27  ;;  %532 = vmatprep.mubr.f32.mxu0 %v261_v28 }
  0x5c   : > { %677 = vmatprep.mubr.f32.mxu1 %v263_v29 }
  0x5e   : > { %533 = vmatmul.mubr.f32.gmra.mrb[24].mxu0 %v260_v30 }
  0x5f   : > { %678 = vmatmul.mubr.f32.gmra.mrb[24].mxu1 %v262_v31  ;;  %537 = vmatprep.mubr.f32.mxu0 %v266_v32 }
  0x60   : > { %682 = vmatprep.mubr.f32.mxu1 %v268_v33 }
  0x62   : > { %538 = vmatmul.mubr.f32.gmra.mrb[26].mxu0 %v265_v34 }
  0x63   : > { %683 = vmatmul.mubr.f32.gmra.mrb[26].mxu1 %v267_v35  ;;  %542 = vmatprep.mubr.f32.mxu0 %v271_v36 }
  0x64   : > { %687 = vmatprep.mubr.f32.mxu1 %v273_v37 }
  0x66   : > { %543 = vmatmul.mubr.f32.gmra.mrb[28].mxu0 %v270_v38 }
  0x67   : > { %688 = vmatmul.mubr.f32.gmra.mrb[28].mxu1 %v272_v39  ;;  %547 = vmatprep.mubr.f32.mxu0 %v276_v40 }
  0x68   : > { %692 = vmatprep.mubr.f32.mxu1 %v278_v41 }
  0x6a   : > { %548 = vmatmul.mubr.f32.gmra.mrb[30].mxu0 %v275_v42 }
  0x6b   : > { %693 = vmatmul.mubr.f32.gmra.mrb[30].mxu1 %v277_v43  ;;  %1394 = vmatprep.mubr.msk.f32.mxu0 %vm359_vm0, %v204_v44 }
  0x6c   : > { %1406 = vmatprep.mubr.msk.f32.mxu1 %vm359_vm0, %v244_v45 }
  0x6e   : > { %1395 = vmatmul.mubr.msk.f32.vlgmr.msra.gmra.mrb[32].mxu0 %vm359_vm0, %v209_v46 }
  0x6f   : > { %1407 = vmatmul.mubr.msk.f32.vlgmr.msra.gmra.mrb[32].mxu1 %vm359_vm0, %v249_v47  ;;  %1397 = vmatprep.mubr.msk.f32.mxu0 %vm359_vm0, %v214_v48 }
  0x70   : > { %1409 = vmatprep.mubr.msk.f32.mxu1 %vm359_vm0, %v254_v49 }
  0x72   : > { %1398 = vmatmul.mubr.msk.f32.gmra.mrb[34].mxu0 %vm359_vm0, %v219_v50 }
  0x73   : > { %1410 = vmatmul.mubr.msk.f32.gmra.mrb[34].mxu1 %vm359_vm0, %v259_v51  ;;  %1400 = vmatprep.mubr.msk.f32.mxu0 %vm359_vm0, %v224_v52 }
  0x74   : > { %1412 = vmatprep.mubr.msk.f32.mxu1 %vm359_vm0, %v264_v53 }
  0x76   : > { %1401 = vmatmul.mubr.msk.f32.gmra.mrb[36].mxu0 %vm359_vm0, %v229_v54 }
  0x77   : > { %1413 = vmatmul.mubr.msk.f32.gmra.mrb[36].mxu1 %vm359_vm0, %v269_v55  ;;  %1403 = vmatprep.mubr.msk.f32.mxu0 %vm359_vm0, %v234_v56 }
  0x78   : > { %1415 = vmatprep.mubr.msk.f32.mxu1 %vm359_vm0, %v274_v57 }
  0x7a   : > { %1404 = vmatmul.mubr.msk.f32.gmra.mrb[38].mxu0 %vm359_vm0, %v239_v58 }
  0x7b   : > { %1416 = vmatmul.mubr.msk.f32.gmra.mrb[38].mxu1 %vm359_vm0, %v279_v59 }
 0x101   : > { %v1226_v60 = vpop.f32.mrb[0].mxu0 }
 0x102   : > { %v1306_v61 = vpop.f32.mrb[0].mxu1  ;;  %v1227_v63 = vpop.f32.mrb[1].mxu0 }
 0x103   : > { %v1228_v0 = vadd.f32 %v1227_v63, %v1226_v60  ;;  %v1307_v1 = vpop.f32.mrb[1].mxu1 }
 0x104   : > { %v1308_v2 = vadd.f32 %v1307_v1, %v1306_v61 }
 0x105   : > { %v475_v3 = vadd.f32 %v1228_v0, %v2062_v62  ;;  %v1229_v4 = vpop.f32.mrb[2].mxu0 }
 0x106   : > { %v1309_v5 = vpop.f32.mrb[2].mxu1  ;;  %v1230_v6 = vpop.f32.mrb[3].mxu0 }
 0x107   : > { %v1231_v7 = vadd.f32 %v1230_v6, %v1229_v4  ;;  %v1310_v8 = vpop.f32.mrb[3].mxu1  ;;  %v2065_v9 = vadd.f32 %v1308_v2, %v475_v3 }
 0x108   : > { %v1311_v10 = vadd.f32 %v1310_v8, %v1309_v5 }
 0x109   : > { %v480_v11 = vadd.f32 %v1231_v7, %v2062_v62  ;;  %v1232_v12 = vpop.f32.mrb[4].mxu0 }
 0x10a   : > { %v1312_v13 = vpop.f32.mrb[4].mxu1  ;;  %v1233_v14 = vpop.f32.mrb[5].mxu0 }
 0x10b   : > { %v1234_v15 = vadd.f32 %v1233_v14, %v1232_v12  ;;  %v1313_v16 = vpop.f32.mrb[5].mxu1  ;;  %v2068_v17 = vadd.f32 %v1311_v10, %v480_v11 }
 0x10c   : > { %v1314_v18 = vadd.f32 %v1313_v16, %v1312_v13 }
 0x10d   : > { %v485_v19 = vadd.f32 %v1234_v15, %v2062_v62  ;;  %v1235_v20 = vpop.f32.mrb[6].mxu0 }
 0x10e   : > { %v1315_v21 = vpop.f32.mrb[6].mxu1  ;;  %v1236_v22 = vpop.f32.mrb[7].mxu0 }
 0x10f   : > { %v1237_v23 = vadd.f32 %v1236_v22, %v1235_v20  ;;  %v1316_v24 = vpop.f32.mrb[7].mxu1  ;;  %v2071_v25 = vadd.f32 %v1314_v18, %v485_v19 }
 0x110   : > { %v1317_v26 = vadd.f32 %v1316_v24, %v1315_v21 }
 0x111   : > { %v490_v27 = vadd.f32 %v1237_v23, %v2062_v62  ;;  %v1238_v28 = vpop.f32.mrb[8].mxu0 }
 0x112   : > { %v1318_v29 = vpop.f32.mrb[8].mxu1  ;;  %v1239_v30 = vpop.f32.mrb[9].mxu0 }
 0x113   : > { %v1240_v31 = vadd.f32 %v1239_v30, %v1238_v28  ;;  %v1319_v32 = vpop.f32.mrb[9].mxu1  ;;  %v2074_v33 = vadd.f32 %v1317_v26, %v490_v27 }
 0x114   : > { %v1320_v34 = vadd.f32 %v1319_v32, %v1318_v29 }
 0x115   : > { %v495_v35 = vadd.f32 %v1240_v31, %v2062_v62  ;;  %v1241_v36 = vpop.f32.mrb[10].mxu0 }
 0x116   : > { %v1321_v37 = vpop.f32.mrb[10].mxu1  ;;  %v1242_v38 = vpop.f32.mrb[11].mxu0 }
 0x117   : > { %v1243_v39 = vadd.f32 %v1242_v38, %v1241_v36  ;;  %v1322_v40 = vpop.f32.mrb[11].mxu1  ;;  %v2077_v41 = vadd.f32 %v1320_v34, %v495_v35 }
 0x118   : > { %v1323_v42 = vadd.f32 %v1322_v40, %v1321_v37 }
 0x119   : > { %v500_v43 = vadd.f32 %v1243_v39, %v2062_v62  ;;  %v1244_v44 = vpop.f32.mrb[12].mxu0 }
 0x11a   : > { %v1324_v45 = vpop.f32.mrb[12].mxu1  ;;  %v1245_v46 = vpop.f32.mrb[13].mxu0 }
 0x11b   : > { %v1246_v47 = vadd.f32 %v1245_v46, %v1244_v44  ;;  %v1325_v48 = vpop.f32.mrb[13].mxu1  ;;  %v2080_v49 = vadd.f32 %v1323_v42, %v500_v43 }
 0x11c   : > { %v1326_v50 = vadd.f32 %v1325_v48, %v1324_v45 }
 0x11d   : > { %v505_v51 = vadd.f32 %v1246_v47, %v2062_v62  ;;  %v1247_v52 = vpop.f32.mrb[14].mxu0 }
 0x11e   : > { %v1327_v53 = vpop.f32.mrb[14].mxu1  ;;  %v1248_v54 = vpop.f32.mrb[15].mxu0 }
 0x11f   : > { %v1249_v55 = vadd.f32 %v1248_v54, %v1247_v52  ;;  %v1328_v56 = vpop.f32.mrb[15].mxu1  ;;  %v2083_v57 = vadd.f32 %v1326_v50, %v505_v51 }
 0x120   : > { %v1329_v58 = vadd.f32 %v1328_v56, %v1327_v53 }
 0x121   : > { %v510_v59 = vadd.f32 %v1249_v55, %v2062_v62  ;;  %v1250_v60 = vpop.f32.mrb[16].mxu0 }
 0x122   : > { %v1330_v61 = vpop.f32.mrb[16].mxu1  ;;  %v1251_v63 = vpop.f32.mrb[17].mxu0 }
 0x123   : > { %v1252_v0 = vadd.f32 %v1251_v63, %v1250_v60  ;;  %v1331_v1 = vpop.f32.mrb[17].mxu1  ;;  %v2086_v2 = vadd.f32 %v1329_v58, %v510_v59 }
 0x124   : > { %v1332_v3 = vadd.f32 %v1331_v1, %v1330_v61 }
 0x125   : > { %v515_v4 = vadd.f32 %v1252_v0, %v2062_v62  ;;  %v1253_v5 = vpop.f32.mrb[18].mxu0 }
 0x126   : > { %v1333_v6 = vpop.f32.mrb[18].mxu1  ;;  %v1254_v7 = vpop.f32.mrb[19].mxu0 }
 0x127   : > { %v1255_v8 = vadd.f32 %v1254_v7, %v1253_v5  ;;  %v1334_v10 = vpop.f32.mrb[19].mxu1  ;;  %v660_v11 = vadd.f32 %v1332_v3, %v515_v4 }
 0x128   : > { %v1335_v12 = vadd.f32 %v1334_v10, %v1333_v6 }
 0x129   : > { %v520_v13 = vadd.f32 %v1255_v8, %v2062_v62  ;;  %v1256_v14 = vpop.f32.mrb[20].mxu0 }
 0x12a   : > { %v1336_v15 = vpop.f32.mrb[20].mxu1  ;;  %v1257_v16 = vpop.f32.mrb[21].mxu0 }
 0x12b   : > { %v1258_v18 = vadd.f32 %v1257_v16, %v1256_v14  ;;  %v1337_v19 = vpop.f32.mrb[21].mxu1  ;;  %v665_v20 = vadd.f32 %v1335_v12, %v520_v13 }
 0x12c   : > { %v1338_v21 = vadd.f32 %v1337_v19, %v1336_v15 }
 0x12d   : > { %v525_v22 = vadd.f32 %v1258_v18, %v2062_v62  ;;  %v1259_v23 = vpop.f32.mrb[22].mxu0 }
 0x12e   : > { %v1339_v24 = vpop.f32.mrb[22].mxu1  ;;  %v1260_v26 = vpop.f32.mrb[23].mxu0 }
 0x12f   : > { %v1261_v27 = vadd.f32 %v1260_v26, %v1259_v23  ;;  %v1340_v28 = vpop.f32.mrb[23].mxu1  ;;  %v2091_v29 = vadd.f32 %v1338_v21, %v525_v22 }
 0x130   : > { %v1341_v30 = vadd.f32 %v1340_v28, %v1339_v24 }
 0x131   : > { %v530_v31 = vadd.f32 %v1261_v27, %v2062_v62  ;;  %v1262_v32 = vpop.f32.mrb[24].mxu0 }
 0x132   : > { %v1342_v34 = vpop.f32.mrb[24].mxu1  ;;  %v1263_v35 = vpop.f32.mrb[25].mxu0 }
 0x133   : > { %v1264_v36 = vadd.f32 %v1263_v35, %v1262_v32  ;;  %v1343_v37 = vpop.f32.mrb[25].mxu1  ;;  %v675_v38 = vadd.f32 %v1341_v30, %v530_v31 }
 0x134   : > { %v1344_v39 = vadd.f32 %v1343_v37, %v1342_v34 }
 0x135   : > { %v535_v40 = vadd.f32 %v1264_v36, %v2062_v62  ;;  %v1265_v42 = vpop.f32.mrb[26].mxu0 }
 0x136   : > { %v1345_v43 = vpop.f32.mrb[26].mxu1  ;;  %v1266_v44 = vpop.f32.mrb[27].mxu0 }
 0x137   : > { %v1267_v45 = vadd.f32 %v1266_v44, %v1265_v42  ;;  %v1346_v46 = vpop.f32.mrb[27].mxu1  ;;  %v2095_v47 = vadd.f32 %v1344_v39, %v535_v40 }
 0x138   : > { %v1347_v48 = vadd.f32 %v1346_v46, %v1345_v43 }
 0x139   : > { %v540_v50 = vadd.f32 %v1267_v45, %v2062_v62  ;;  %v1268_v51 = vpop.f32.mrb[28].mxu0 }
 0x13a   : > { %v1348_v52 = vpop.f32.mrb[28].mxu1  ;;  %v1269_v53 = vpop.f32.mrb[29].mxu0 }
 0x13b   : > { %v1270_v54 = vadd.f32 %v1269_v53, %v1268_v51  ;;  %v1349_v55 = vpop.f32.mrb[29].mxu1  ;;  %v685_v56 = vadd.f32 %v1347_v48, %v540_v50 }
 0x13c   : > { %v1350_v58 = vadd.f32 %v1349_v55, %v1348_v52 }
 0x13d   : > { %v545_v59 = vadd.f32 %v1270_v54, %v2062_v62  ;;  %v1271_v60 = vpop.f32.mrb[30].mxu0 }
 0x13e   : > { %v1351_v61 = vpop.f32.mrb[30].mxu1  ;;  %v1272_v63 = vpop.f32.mrb[31].mxu0 }
 0x13f   : > { %v1273_v0 = vadd.f32 %v1272_v63, %v1271_v60  ;;  %v1352_v1 = vpop.f32.mrb[31].mxu1  ;;  %v690_v3 = vadd.f32 %v1350_v58, %v545_v59 }
 0x140   : > { %v1353_v4 = vadd.f32 %v1352_v1, %v1351_v61 }
 0x141   : > { %v550_v5 = vadd.f32 %v1273_v0, %v2062_v62  ;;  %v1396_v6 = vpop.f32.mrb[32].mxu0 }
 0x142   : > { %v770_v7 = vadd.f32 %v1396_v6, %v2068_v17  ;;  %v1408_v8 = vpop.f32.mrb[32].mxu1  ;;  %v764_v10 = vpop.f32.mrb[33].mxu0 }
 0x143   : > { %v810_v12 = vadd.f32 %v1408_v8, %v665_v20  ;;  %v765_v13 = vadd.f32 %v764_v10, %v2065_v9  ;;  %v804_v14 = vpop.f32.mrb[33].mxu1  ;;  %v695_v15 = vadd.f32 %v1353_v4, %v550_v5 }
 0x144   : > { %v844_v16 = vmax.f32 %v770_v7, 0.0  ;;  %v805_v18 = vadd.f32 %v804_v14, %v660_v11 }
 0x145   : > { %v852_v19 = vmax.f32 %v810_v12, 0.0  ;;  %v843_v21 = vmax.f32 %v765_v13, 0.0  ;;  %v1399_v22 = vpop.f32.mrb[34].mxu0 }
 0x146   : > { %860 = vst [vmem:[%s2103_s12 + $0x8] sm:$0xff] %v844_v16  ;;  %v851_v62 = vmax.f32 %v805_v18, 0.0  ;;  %v780_v17 = vadd.f32 %v1399_v22, %v2074_v33  ;;  %v1411_v20 = vpop.f32.mrb[34].mxu1  ;;  %v774_v9 = vpop.f32.mrb[35].mxu0 }
 0x147   : > { %868 = vst [vmem:[%s2103_s12 + $0x48] sm:$0xff] %v852_v19  ;;  %859 = vst [vmem:[%s2103_s12] sm:$0xff] %v843_v21  ;;  %v820_v11 = vadd.f32 %v1411_v20, %v675_v38  ;;  %v775_v23 = vadd.f32 %v774_v9, %v2071_v25  ;;  %v814_v24 = vpop.f32.mrb[35].mxu1 }
 0x148   : > { %867 = vst [vmem:[%s2103_s12 + $0x40] sm:$0xff] %v851_v62  ;;  %v846_v26 = vmax.f32 %v780_v17, 0.0  ;;  %v815_v27 = vadd.f32 %v814_v24, %v2091_v29 }
 0x149   : > { %v854_v28 = vmax.f32 %v820_v11, 0.0  ;;  %v845_v30 = vmax.f32 %v775_v23, 0.0  ;;  %v1402_v31 = vpop.f32.mrb[36].mxu0 }
 0x14a   : > { %862 = vst [vmem:[%s2103_s12 + $0x18] sm:$0xff] %v846_v26  ;;  %v853_v33 = vmax.f32 %v815_v27, 0.0  ;;  %v790_v32 = vadd.f32 %v1402_v31, %v2080_v49  ;;  %v1414_v34 = vpop.f32.mrb[36].mxu1  ;;  %v784_v35 = vpop.f32.mrb[37].mxu0 }
 0x14b   : > { %870 = vst [vmem:[%s2103_s12 + $0x58] sm:$0xff] %v854_v28  ;;  %861 = vst [vmem:[%s2103_s12 + $0x10] sm:$0xff] %v845_v30  ;;  %v830_v25 = vadd.f32 %v1414_v34, %v685_v56  ;;  %v785_v36 = vadd.f32 %v784_v35, %v2077_v41  ;;  %v824_v37 = vpop.f32.mrb[37].mxu1 }
 0x14c   : > { %869 = vst [vmem:[%s2103_s12 + $0x50] sm:$0xff] %v853_v33  ;;  %v848_v29 = vmax.f32 %v790_v32, 0.0  ;;  %v825_v38 = vadd.f32 %v824_v37, %v2095_v47 }
 0x14d   : > { %v856_v39 = vmax.f32 %v830_v25, 0.0  ;;  %v847_v40 = vmax.f32 %v785_v36, 0.0  ;;  %v1405_v42 = vpop.f32.mrb[38].mxu0 }
 0x14e   : > { %864 = vst [vmem:[%s2103_s12 + $0x28] sm:$0xff] %v848_v29  ;;  %v855_v49 = vmax.f32 %v825_v38, 0.0  ;;  %v800_v43 = vadd.f32 %v1405_v42, %v2086_v2  ;;  %v1417_v44 = vpop.f32.mrb[38].mxu1  ;;  %v794_v45 = vpop.f32.mrb[39].mxu0  ;;  %881 = sbr.rel (!%p1728_p4) target bundleno = 390 (0x186), region = 36 }
 0x14f   : > { %872 = vst [vmem:[%s2103_s12 + $0x68] sm:$0xff] %v856_v39  ;;  %863 = vst [vmem:[%s2103_s12 + $0x20] sm:$0xff] %v847_v40  ;;  %v840_v41 = vadd.f32 %v1417_v44, %v695_v15  ;;  %v795_v46 = vadd.f32 %v794_v45, %v2083_v57  ;;  %v834_v48 = vpop.f32.mrb[39].mxu1 }
 0x150   : > { %871 = vst [vmem:[%s2103_s12 + $0x60] sm:$0xff] %v855_v49  ;;  %v850_v47 = vmax.f32 %v800_v43, 0.0  ;;  %v835_v50 = vadd.f32 %v834_v48, %v690_v3 }
 0x151   : > { %v858_v51 = vmax.f32 %v840_v41, 0.0  ;;  %v849_v52 = vmax.f32 %v795_v46, 0.0 }
 0x152   : > { %866 = vst [vmem:[%s2103_s12 + $0x38] sm:$0xff] %v850_v47  ;;  %v857_v53 = vmax.f32 %v835_v50, 0.0 }
 0x153   : > { %874 = vst [vmem:[%s2103_s12 + $0x78] sm:$0xff] %v858_v51  ;;  %865 = vst [vmem:[%s2103_s12 + $0x30] sm:$0xff] %v849_v52 }
 0x154   : > { %873 = vst [vmem:[%s2103_s12 + $0x70] sm:$0xff] %v857_v53 }
 0x155   : > { %s2241_s8 = smov (!%p884_p8, %s883_s8), 16 }
 0x156   : > { %s1176_s17 = sshll.u32 %s2241_s8, 7 }
 0x157   : > { %p1179_p9 = scmp.eq.s32.totalorder %s1176_s17, 0 }
 0x158   : > { %s2142_s18 = sshrl.u32 (!%p1179_p9), %s2241_s8, 4 }
 0x159   : > { %892 = sbr.rel (%p1179_p9) target bundleno = 390 (0x186), region = 40  ;;  %p1180_p10 = scmp.le.s32.totalorder (!%p1179_p9), %s2142_s18, 0 }
 0x160   : > { %1106 = sbr.rel (%p1180_p10) target bundleno = 369 (0x171), region = 116  ;;  %s2234_s15 = smov (!%p1180_p10), %s2136_s14 }
 0x161   : > { %s2235_s20 = smov (!%p1180_p10), %s2103_s12  ;;  %s2151_s24 = smov (!%p1180_p10), 0  }
 0x162   : > { %s2153_s21 = smov (!%p1180_p10), 0  }
 0x167 LB: >> { %v984_v57 = vld [vmem:[%s1657_s20] sm:$0xff]  ;;  %v986_v2 = vld [vmem:[%s1657_s20 + $0x8] sm:$0xff]  ;;  %v988_v54 = vld [vmem:[%s1657_s20 + $0x10] sm:$0xff]  ;;  %s1016_s22 = sadd.s32 1, %s1661_s24  ;;  %s978_s21 = sadd.s32 1, %s1665_s21   ;;  %s1665_s21 = sphi %s2153_s21, %s978_s21   ;;  %s1661_s24 = sphi %s2151_s24, %s2236_s24   ;;  %s1657_s20 = sphi %s2235_s20, %s1021_s20   ;;  %s1653_s15 = sphi %s2234_s15, %s1022_s15  }
 0x168   : >> { %985 = vst [vmem:[%s1653_s15] sm:$0xff] %v984_v57  ;;  %987 = vst [vmem:[%s1653_s15 + $0x8] sm:$0xff] %v986_v2  ;;  %v990_v55 = vld [vmem:[%s1657_s20 + $0x18] sm:$0xff]  ;;  %v992_v56 = vld [vmem:[%s1657_s20 + $0x20] sm:$0xff]  ;;  %p1017_p11 = scmp.ge.s32.totalorder %s1016_s22, %s2142_s18  ;;  %p977_p12 = scmp.ge.s32.totalorder %s978_s21, %s2142_s18 }
 0x169   : >> { %989 = vst [vmem:[%s1653_s15 + $0x10] sm:$0xff] %v988_v54  ;;  %v994_v58 = vld [vmem:[%s1657_s20 + $0x28] sm:$0xff]  ;;  %991 = vst [vmem:[%s1653_s15 + $0x18] sm:$0xff] %v990_v55  ;;  %v996_v59 = vld [vmem:[%s1657_s20 + $0x30] sm:$0xff] }
 0x16a   : >> { %993 = vst [vmem:[%s1653_s15 + $0x20] sm:$0xff] %v992_v56  ;;  %995 = vst [vmem:[%s1653_s15 + $0x28] sm:$0xff] %v994_v58  ;;  %v998_v60 = vld [vmem:[%s1657_s20 + $0x38] sm:$0xff]  ;;  %v1000_v61 = vld [vmem:[%s1657_s20 + $0x40] sm:$0xff]  ;;  %s2243_s22 = smov (%p1017_p11, %s1016_s22), 0  ;;  %980 = sbr.rel (!%p977_p12) target bundleno = 359 (0x167), region = 122 }
 0x16b   : >> { %997 = vst [vmem:[%s1653_s15 + $0x30] sm:$0xff] %v996_v59  ;;  %999 = vst [vmem:[%s1653_s15 + $0x38] sm:$0xff] %v998_v60  ;;  %v1002_v63 = vld [vmem:[%s1657_s20 + $0x48] sm:$0xff]  ;;  %v1004_v0 = vld [vmem:[%s1657_s20 + $0x50] sm:$0xff]  ;;  %s1181_s23 = sshll.u32 %s2243_s22, 7  ;;  %s2236_s24 = smov %s2243_s22 }
 0x16c   : >> { %1001 = vst [vmem:[%s1653_s15 + $0x40] sm:$0xff] %v1000_v61  ;;  %v1006_v1 = vld [vmem:[%s1657_s20 + $0x58] sm:$0xff]  ;;  %1003 = vst [vmem:[%s1653_s15 + $0x48] sm:$0xff] %v1002_v63  ;;  %v1008_v3 = vld [vmem:[%s1657_s20 + $0x60] sm:$0xff] }
 0x16d   : >> { %1005 = vst [vmem:[%s1653_s15 + $0x50] sm:$0xff] %v1004_v0  ;;  %1007 = vst [vmem:[%s1653_s15 + $0x58] sm:$0xff] %v1006_v1  ;;  %v1010_v4 = vld [vmem:[%s1657_s20 + $0x68] sm:$0xff]  ;;  %v1012_v5 = vld [vmem:[%s1657_s20 + $0x70] sm:$0xff] }
 0x16e   : >> { %1009 = vst [vmem:[%s1653_s15 + $0x60] sm:$0xff] %v1008_v3  ;;  %1011 = vst [vmem:[%s1653_s15 + $0x68] sm:$0xff] %v1010_v4  ;;  %v1014_v6 = vld [vmem:[%s1657_s20 + $0x78] sm:$0xff]  ;;  %s1021_s20 = scalar_lea.vmem %s2103_s12, %s1181_s23 [#allocation2]  }
 0x16f   : >> { %1013 = vst [vmem:[%s1653_s15 + $0x70] sm:$0xff] %v1012_v5  ;;  %1015 = vst [vmem:[%s1653_s15 + $0x78] sm:$0xff] %v1014_v6  ;;  %s1022_s15 = scalar_lea.vmem %s2136_s14, %s1181_s23  }
 0x171 PF: > { %s2211_s28 = sand.u32 15, %s2241_s8   ;;  %s1192_s29 = sshll.u32 %s2142_s18, 7 }
 0x172   : > { %s1027_s30 = scalar_lea.vmem %s2103_s12, %s1192_s29 [#allocation2]   ;;  %s1029_s4 = scalar_lea.vmem %s2136_s14, %s1192_s29  }
 0x173   : > { %p1186_p13 = scmp.le.s32.totalorder %s2211_s28, 0 }
 0x174   : > { %s1667_s5 = smov (!%p1186_p13), %s1029_s4   ;;  %s1671_s6 = smov (!%p1186_p13), %s1027_s30  }
 0x175   : > { %1120 = sbr.rel (%p1186_p13) target bundleno = 390 (0x186), region = 127  ;;  %s1675_s7 = smov (!%p1186_p13), 0  }
 0x176   : > { %s1679_s27 = smov (!%p1186_p13), 0  }
 0x17c LB: >> { %v1039_v7 = vld [vmem:[%s1673_s6] sm:$0xff]  ;;  %s1041_s25 = sadd.s32 1, %s1677_s7  ;;  %s1033_s27 = sadd.s32 1, %s1681_s27   ;;  %s1681_s27 = sphi %s1679_s27, %s1033_s27   ;;  %s1677_s7 = sphi %s1675_s7, %s1676_s7   ;;  %s1673_s6 = sphi %s1671_s6, %s1046_s6   ;;  %s1669_s5 = sphi %s1667_s5, %s1047_s5  }
 0x17d   : >> { %1040 = vst [vmem:[%s1669_s5] sm:$0xff] %v1039_v7  ;;  %p1042_p0 = scmp.ge.s32.totalorder %s1041_s25, %s2211_s28  ;;  %p1032_p1 = scmp.ge.s32.totalorder %s1033_s27, %s2211_s28 }
 0x17f   : >> { %s2245_s25 = smov (%p1042_p0, %s1041_s25), 0  ;;  %1035 = sbr.rel (!%p1032_p1) target bundleno = 380 (0x17c), region = 133 }
 0x180   : >> { %s1187_s26 = sshll.u32 %s2245_s25, 3  ;;  %s1676_s7 = smov %s2245_s25  }
 0x181   : >> { %s1046_s6 = scalar_lea.vmem %s1027_s30, %s1187_s26 [#allocation2]   ;;  %s1047_s5 = scalar_lea.vmem %s1029_s4, %s1187_s26  }
 0x186 PF: > { %p10_p2 = scmp.ge.s32.totalorder %s1718_s16, 4   ;;  %s2237_s12 = smov %s1645_s13 }
 0x187   : > { %s2238_s13 = smov %s1726_s19  ;;  %s2239_s14 = smov %s1718_s16 }
 0x188   :  { %12 = sbr.rel (!%p10_p2) target bundleno = 2 (0x2), region = 144 }

// kernel: imitation_agent_forward.7
= control target key start
LH: loop header
LB: loop body
LE: loop exit
PB: predicated region body
PF: predicated region fallthrough
CT: control target
= control target key end

     0   :  { %s2243_s18 = smov 0   ;;  %s2667_s0 = inlined_call_operand.vmem [shape: f32[8,12800], index: 0, kind: input, shape index: {}]   ;;  %s2668_s1 = inlined_call_operand.vmem [shape: f32[12800,128], index: 1, kind: input, shape index: {}]   ;;  %s2669_s2 = inlined_call_operand.vmem [shape: f32[1,128], index: 2, kind: input, shape index: {}]   ;;  %s2670_s3 = inlined_call_operand.vmem [shape: f32[128,3], index: 3, kind: input, shape index: {}]   ;;  %s2671_s4 = inlined_call_operand.vmem [shape: f32[1,3], index: 4, kind: input, shape index: {}]   ;;  %s2672_s5 = inlined_call_operand.vmem [shape: f32[8,3], index: 5, kind: output, shape index: {}]  }
   0x1 LB: > { %s2249_s19 = sadd.s32 4294967295, %s2207_s18   ;;  %p1434_p0 = scmp.ge.s32.totalorder %s2207_s18, 1  ;;  %s2207_s18 = sphi %s2243_s18, %s15_s18  }
   0x2   : > { %p194_p1 = scmp.lt.s32.totalorder %s2207_s18, 6 }
   0x4   : > { %p195_p2 = pnand %p1434_p0, %p194_p1 }
   0x5   : > { %s222_s20 = smul.u32 (!%p195_p2), 20, %s2249_s19  ;;  %p1437_p5 = scmp.ne.s32.totalorder (!%p195_p2), %s2249_s19, 0 }
   0x6   : > { %198 = sbr.rel (%p195_p2) target bundleno = 635 (0x27b), region = 40 }
   0x7   : > { %s228_s21 = smul.u32 (!%p195_p2), 320, %s2249_s19  ;;  %p223_p3 = scmp.lt.s32.totalorder (!%p195_p2), %s222_s20, 99 }
   0x9   : > { %p229_p4 = scmp.lt.s32.totalorder (!%p195_p2), %s228_s21, 1599 }
   0xd   : > { %s2674_s20 = smov (!%p223_p3, %s222_s20), 99  ;;  %s2676_s21 = smov (!%p229_p4, %s228_s21), 1599 }
   0xe   : > { %s1435_s22 = sshll.u32 %s2674_s20, 3  ;;  %s1436_s26 = sshll.u32 %s2676_s21, 3  ;;  %v2209_v0 = vmov (!%p1437_p5), 0.0  }
   0xf   : > { %s2258_s25 = scalar_lea.vmem %s2667_s0, %s1435_s22  ;;  %s2263_s29 = scalar_lea.vmem %s2668_s1, %s1436_s26  ;;  %238 = vst [vmem:[#allocation2] sm:$0xff] (!%p1437_p5), %v2209_v0 }
  0x10   : > { %237 = sbr.rel (%p1437_p5) target bundleno = 23 (0x17), region = 44 }
  0x17 PF: > { %v276_v1 = vld [vmem:[%s2263_s29 + $0x80] sm:$0xff]  ;;  %v277_v2 = vld [vmem:[%s2263_s29 + $0x88] sm:$0xff]  ;;  %v278_v12 = vld [vmem:[%s2263_s29 + $0x90] sm:$0xff]  ;;  %p1438_p6 = scmp.ne.s32.totalorder %s2249_s19, 4 }
  0x18   : > { %v308_v3 = vld [vmem:[%s2263_s29 + $0x180] sm:$0xff]  ;;  %v1845_v4 = vpack.c.bf16 %v277_v2, %v276_v1  ;;  %v309_v5 = vld [vmem:[%s2263_s29 + $0x188] sm:$0xff]  ;;  %v279_v14 = vld [vmem:[%s2263_s29 + $0x98] sm:$0xff]  ;;  %vm2211_vm0 = vmmov (!%p1438_p6), 0   ;;  %vm1389_vm1 = vcmask (!%p1438_p6), 23552  }
  0x19   : > { %v260_v6 = vld [vmem:[%s2263_s29] sm:$0xff]  ;;  %v261_v7 = vld [vmem:[%s2263_s29 + $0x8] sm:$0xff]  ;;  %v1877_v8 = vpack.c.bf16 %v309_v5, %v308_v3  ;;  %v310_v15 = vld [vmem:[%s2263_s29 + $0x190] sm:$0xff]  ;;  %v1849_v17 = vpack.c.bf16 %v279_v14, %v278_v12 }
  0x1a   : > { %v1847_v9 = vpack.c.bf16 %v261_v7, %v260_v6  ;;  %v292_v10 = vld [vmem:[%s2263_s29 + $0x100] sm:$0xff]  ;;  %v293_v11 = vld [vmem:[%s2263_s29 + $0x108] sm:$0xff]  ;;  %1846 = vmatprep.subr.bf16.mxu0 %v1845_v4  ;;  %v311_v16 = vld [vmem:[%s2263_s29 + $0x198] sm:$0xff] }
  0x1b   : > { %v1879_v13 = vpack.c.bf16 %v293_v11, %v292_v10  ;;  %1878 = vmatprep.subr.bf16.mxu1 %v1877_v8  ;;  %v1881_v18 = vpack.c.bf16 %v311_v16, %v310_v15  ;;  %v262_v19 = vld [vmem:[%s2263_s29 + $0x10] sm:$0xff]  ;;  %v263_v20 = vld [vmem:[%s2263_s29 + $0x18] sm:$0xff]  ;;  %v280_v24 = vld [vmem:[%s2263_s29 + $0xa0] sm:$0xff] }
  0x1c   : > { %1848 = vmatpush3.bf16.msra.mxu0 %v1847_v9  ;;  %v294_v21 = vld [vmem:[%s2263_s29 + $0x110] sm:$0xff]  ;;  %v1851_v22 = vpack.c.bf16 %v263_v20, %v262_v19  ;;  %v295_v23 = vld [vmem:[%s2263_s29 + $0x118] sm:$0xff]  ;;  %v281_v25 = vld [vmem:[%s2263_s29 + $0xa8] sm:$0xff] }
  0x1d   : > { %1880 = vmatpush3.bf16.msra.mxu1 %v1879_v13  ;;  %1850 = vmatprep.subr.bf16.mxu0 %v1849_v17  ;;  %v1883_v26 = vpack.c.bf16 %v295_v23, %v294_v21  ;;  %v1853_v27 = vpack.c.bf16 %v281_v25, %v280_v24  ;;  %v312_v28 = vld [vmem:[%s2263_s29 + $0x1a0] sm:$0xff]  ;;  %v313_v29 = vld [vmem:[%s2263_s29 + $0x1a8] sm:$0xff]  ;;  %v282_v36 = vld [vmem:[%s2263_s29 + $0xb0] sm:$0xff] }
  0x1e   : > { %1882 = vmatprep.subr.bf16.mxu1 %v1881_v18  ;;  %v264_v30 = vld [vmem:[%s2263_s29 + $0x20] sm:$0xff]  ;;  %v1885_v31 = vpack.c.bf16 %v313_v29, %v312_v28  ;;  %v265_v32 = vld [vmem:[%s2263_s29 + $0x28] sm:$0xff]  ;;  %v283_v37 = vld [vmem:[%s2263_s29 + $0xb8] sm:$0xff] }
  0x1f   : > { %v296_v33 = vld [vmem:[%s2263_s29 + $0x120] sm:$0xff]  ;;  %v297_v34 = vld [vmem:[%s2263_s29 + $0x128] sm:$0xff]  ;;  %v1855_v35 = vpack.c.bf16 %v265_v32, %v264_v30  ;;  %v314_v38 = vld [vmem:[%s2263_s29 + $0x1b0] sm:$0xff]  ;;  %v1857_v40 = vpack.c.bf16 %v283_v37, %v282_v36 }
  0x20   : > { %1852 = vmatpush3.bf16.msra.mxu0 %v1851_v22  ;;  %v1887_v39 = vpack.c.bf16 %v297_v34, %v296_v33  ;;  %v315_v41 = vld [vmem:[%s2263_s29 + $0x1b8] sm:$0xff]  ;;  %v266_v42 = vld [vmem:[%s2263_s29 + $0x30] sm:$0xff]  ;;  %v284_v47 = vld [vmem:[%s2263_s29 + $0xc0] sm:$0xff] }
  0x21   : > { %1884 = vmatpush3.bf16.msra.mxu1 %v1883_v26  ;;  %1854 = vmatprep.subr.bf16.mxu0 %v1853_v27  ;;  %v267_v43 = vld [vmem:[%s2263_s29 + $0x38] sm:$0xff]  ;;  %v1889_v44 = vpack.c.bf16 %v315_v41, %v314_v38  ;;  %v298_v45 = vld [vmem:[%s2263_s29 + $0x130] sm:$0xff]  ;;  %v285_v48 = vld [vmem:[%s2263_s29 + $0xc8] sm:$0xff] }
  0x22   : > { %1886 = vmatprep.subr.bf16.mxu1 %v1885_v31  ;;  %v299_v46 = vld [vmem:[%s2263_s29 + $0x138] sm:$0xff]  ;;  %v316_v49 = vld [vmem:[%s2263_s29 + $0x1c0] sm:$0xff]  ;;  %v317_v50 = vld [vmem:[%s2263_s29 + $0x1c8] sm:$0xff]  ;;  %v1859_v51 = vpack.c.bf16 %v267_v43, %v266_v42  ;;  %v1861_v53 = vpack.c.bf16 %v285_v48, %v284_v47 }
  0x23   : > { %v1891_v52 = vpack.c.bf16 %v299_v46, %v298_v45  ;;  %v268_v54 = vld [vmem:[%s2263_s29 + $0x40] sm:$0xff]  ;;  %v269_v55 = vld [vmem:[%s2263_s29 + $0x48] sm:$0xff]  ;;  %v1893_v57 = vpack.c.bf16 %v317_v50, %v316_v49  ;;  %v286_v59 = vld [vmem:[%s2263_s29 + $0xd0] sm:$0xff] }
  0x24   : > { %1856 = vmatpush3.bf16.msra.mxu0 %v1855_v35  ;;  %v300_v56 = vld [vmem:[%s2263_s29 + $0x140] sm:$0xff]  ;;  %v301_v58 = vld [vmem:[%s2263_s29 + $0x148] sm:$0xff]  ;;  %v287_v60 = vld [vmem:[%s2263_s29 + $0xd8] sm:$0xff]  ;;  %v1863_v63 = vpack.c.bf16 %v269_v55, %v268_v54 }
  0x25   : > { %1888 = vmatpush3.bf16.msra.mxu1 %v1887_v39  ;;  %1858 = vmatprep.subr.bf16.mxu0 %v1857_v40  ;;  %v318_v61 = vld [vmem:[%s2263_s29 + $0x1d0] sm:$0xff]  ;;  %v319_v62 = vld [vmem:[%s2263_s29 + $0x1d8] sm:$0xff]  ;;  %v1895_v0 = vpack.c.bf16 %v301_v58, %v300_v56  ;;  %v1865_v1 = vpack.c.bf16 %v287_v60, %v286_v59  ;;  %v288_v7 = vld [vmem:[%s2263_s29 + $0xe0] sm:$0xff] }
  0x26   : > { %1890 = vmatprep.subr.bf16.mxu1 %v1889_v44  ;;  %v270_v2 = vld [vmem:[%s2263_s29 + $0x50] sm:$0xff]  ;;  %v271_v3 = vld [vmem:[%s2263_s29 + $0x58] sm:$0xff]  ;;  %v1897_v5 = vpack.c.bf16 %v319_v62, %v318_v61  ;;  %v289_v8 = vld [vmem:[%s2263_s29 + $0xe8] sm:$0xff] }
  0x27   : > { %v302_v4 = vld [vmem:[%s2263_s29 + $0x150] sm:$0xff]  ;;  %v303_v6 = vld [vmem:[%s2263_s29 + $0x158] sm:$0xff]  ;;  %v320_v9 = vld [vmem:[%s2263_s29 + $0x1e0] sm:$0xff]  ;;  %v1867_v11 = vpack.c.bf16 %v271_v3, %v270_v2  ;;  %v1869_v15 = vpack.c.bf16 %v289_v8, %v288_v7 }
  0x28   : > { %1860 = vmatpush3.bf16.msra.mxu0 %v1859_v51  ;;  %v321_v10 = vld [vmem:[%s2263_s29 + $0x1e8] sm:$0xff]  ;;  %v272_v12 = vld [vmem:[%s2263_s29 + $0x60] sm:$0xff]  ;;  %v1899_v14 = vpack.c.bf16 %v303_v6, %v302_v4  ;;  %v243_v18 = vld [vmem:[%s2258_s25 + $0x18] sm:$0xff] }
  0x29   : > { %1892 = vmatpush3.bf16.msra.mxu1 %v1891_v52  ;;  %1862 = vmatprep.subr.bf16.mxu0 %v1861_v53  ;;  %v273_v13 = vld [vmem:[%s2263_s29 + $0x68] sm:$0xff]  ;;  %v304_v16 = vld [vmem:[%s2263_s29 + $0x160] sm:$0xff]  ;;  %v1901_v19 = vpack.c.bf16 %v321_v10, %v320_v9  ;;  %v290_v21 = vld [vmem:[%s2263_s29 + $0xf0] sm:$0xff] }
  0x2a   : > { %1894 = vmatprep.subr.bf16.mxu1 %v1893_v57  ;;  %v241_v17 = vld [vmem:[%s2258_s25 + $0x8] sm:$0xff]  ;;  %v291_v22 = vld [vmem:[%s2263_s29 + $0xf8] sm:$0xff]  ;;  %v322_v23 = vld [vmem:[%s2263_s29 + $0x1f0] sm:$0xff]  ;;  %714 = vmatprep.mubr.f32.mxu1 %v243_v18  ;;  %v1871_v25 = vpack.c.bf16 %v273_v13, %v272_v12 }
  0x2b   : > { %v305_v20 = vld [vmem:[%s2263_s29 + $0x168] sm:$0xff]  ;;  %644 = vmatprep.mubr.f32.mxu0 %v241_v17  ;;  %v323_v24 = vld [vmem:[%s2263_s29 + $0x1f8] sm:$0xff]  ;;  %v1873_v27 = vpack.c.bf16 %v291_v22, %v290_v21  ;;  %v274_v28 = vld [vmem:[%s2263_s29 + $0x70] sm:$0xff] }
  0x2c   : > { %1864 = vmatpush3.bf16.msra.mxu0 %v1863_v63  ;;  %v1903_v26 = vpack.c.bf16 %v305_v20, %v304_v16  ;;  %v275_v29 = vld [vmem:[%s2263_s29 + $0x78] sm:$0xff]  ;;  %v306_v30 = vld [vmem:[%s2263_s29 + $0x170] sm:$0xff]  ;;  %v1905_v31 = vpack.c.bf16 %v323_v24, %v322_v23  ;;  %v340_v33 = vld [vmem:[%s2263_s29 + $0x280] sm:$0xff] }
  0x2d   : > { %1896 = vmatpush3.bf16.msra.mxu1 %v1895_v0  ;;  %1866 = vmatprep.subr.bf16.mxu0 %v1865_v1  ;;  %v307_v32 = vld [vmem:[%s2263_s29 + $0x178] sm:$0xff]  ;;  %v341_v34 = vld [vmem:[%s2263_s29 + $0x288] sm:$0xff]  ;;  %v372_v35 = vld [vmem:[%s2263_s29 + $0x380] sm:$0xff]  ;;  %v1875_v37 = vpack.c.bf16 %v275_v29, %v274_v28 }
  0x2e   : > { %1898 = vmatprep.subr.bf16.mxu1 %v1897_v5  ;;  %v373_v36 = vld [vmem:[%s2263_s29 + $0x388] sm:$0xff]  ;;  %v1907_v38 = vpack.c.bf16 %v307_v32, %v306_v30  ;;  %v1909_v39 = vpack.c.bf16 %v341_v34, %v340_v33  ;;  %v324_v40 = vld [vmem:[%s2263_s29 + $0x200] sm:$0xff]  ;;  %v342_v45 = vld [vmem:[%s2263_s29 + $0x290] sm:$0xff] }
  0x2f   : > { %v325_v41 = vld [vmem:[%s2263_s29 + $0x208] sm:$0xff]  ;;  %v356_v42 = vld [vmem:[%s2263_s29 + $0x300] sm:$0xff]  ;;  %v1941_v43 = vpack.c.bf16 %v373_v36, %v372_v35  ;;  %v343_v46 = vld [vmem:[%s2263_s29 + $0x298] sm:$0xff] }
  0x30   : > { %1868 = vmatpush3.bf16.msra.mxu0 %v1867_v11  ;;  %v357_v44 = vld [vmem:[%s2263_s29 + $0x308] sm:$0xff]  ;;  %v374_v47 = vld [vmem:[%s2263_s29 + $0x390] sm:$0xff]  ;;  %v375_v48 = vld [vmem:[%s2263_s29 + $0x398] sm:$0xff]  ;;  %v1911_v51 = vpack.c.bf16 %v325_v41, %v324_v40  ;;  %v1913_v53 = vpack.c.bf16 %v343_v46, %v342_v45 }
  0x31   : > { %1900 = vmatpush3.bf16.msra.mxu1 %v1899_v14  ;;  %1870 = vmatprep.subr.bf16.mxu0 %v1869_v15  ;;  %v240_v49 = vld [vmem:[%s2258_s25] sm:$0xff]  ;;  %v242_v50 = vld [vmem:[%s2258_s25 + $0x10] sm:$0xff]  ;;  %v1943_v52 = vpack.c.bf16 %v357_v44, %v356_v42  ;;  %v327_v55 = vld [vmem:[%s2263_s29 + $0x218] sm:$0xff]  ;;  %v1945_v57 = vpack.c.bf16 %v375_v48, %v374_v47 }
  0x32   : > { %1902 = vmatprep.subr.bf16.mxu1 %v1901_v19  ;;  %v326_v54 = vld [vmem:[%s2263_s29 + $0x210] sm:$0xff]  ;;  %v359_v58 = vld [vmem:[%s2263_s29 + $0x318] sm:$0xff]  ;;  %v344_v59 = vld [vmem:[%s2263_s29 + $0x2a0] sm:$0xff] }
  0x33   : > { %v358_v56 = vld [vmem:[%s2263_s29 + $0x310] sm:$0xff]  ;;  %v345_v60 = vld [vmem:[%s2263_s29 + $0x2a8] sm:$0xff]  ;;  %v376_v61 = vld [vmem:[%s2263_s29 + $0x3a0] sm:$0xff]  ;;  %v1915_v63 = vpack.c.bf16 %v327_v55, %v326_v54 }
  0x34   : > { %1872 = vmatpush3.bf16.msra.mxu0 %v1871_v25  ;;  %v377_v62 = vld [vmem:[%s2263_s29 + $0x3a8] sm:$0xff]  ;;  %v1947_v0 = vpack.c.bf16 %v359_v58, %v358_v56  ;;  %v1917_v1 = vpack.c.bf16 %v345_v60, %v344_v59  ;;  %v328_v2 = vld [vmem:[%s2263_s29 + $0x220] sm:$0xff]  ;;  %v346_v7 = vld [vmem:[%s2263_s29 + $0x2b0] sm:$0xff] }
  0x35   : > { %1904 = vmatpush3.bf16.msra.mxu1 %v1903_v26  ;;  %1874 = vmatprep.subr.bf16.mxu0 %v1873_v27  ;;  %v329_v3 = vld [vmem:[%s2263_s29 + $0x228] sm:$0xff]  ;;  %v360_v4 = vld [vmem:[%s2263_s29 + $0x320] sm:$0xff]  ;;  %v1949_v5 = vpack.c.bf16 %v377_v62, %v376_v61  ;;  %v347_v8 = vld [vmem:[%s2263_s29 + $0x2b8] sm:$0xff] }
  0x36   : > { %1906 = vmatprep.subr.bf16.mxu1 %v1905_v31  ;;  %v361_v6 = vld [vmem:[%s2263_s29 + $0x328] sm:$0xff]  ;;  %v378_v9 = vld [vmem:[%s2263_s29 + $0x3b0] sm:$0xff]  ;;  %v379_v10 = vld [vmem:[%s2263_s29 + $0x3b8] sm:$0xff]  ;;  %v1919_v11 = vpack.c.bf16 %v329_v3, %v328_v2  ;;  %v1921_v13 = vpack.c.bf16 %v347_v8, %v346_v7 }
  0x37   : > { %v1951_v12 = vpack.c.bf16 %v361_v6, %v360_v4  ;;  %v330_v14 = vld [vmem:[%s2263_s29 + $0x230] sm:$0xff]  ;;  %v331_v15 = vld [vmem:[%s2263_s29 + $0x238] sm:$0xff]  ;;  %v1953_v17 = vpack.c.bf16 %v379_v10, %v378_v9  ;;  %v348_v19 = vld [vmem:[%s2263_s29 + $0x2c0] sm:$0xff] }
  0x38   : > { %1876 = vmatpush3.bf16.msra.mxu0 %v1875_v37  ;;  %v362_v16 = vld [vmem:[%s2263_s29 + $0x330] sm:$0xff]  ;;  %v363_v18 = vld [vmem:[%s2263_s29 + $0x338] sm:$0xff]  ;;  %v349_v20 = vld [vmem:[%s2263_s29 + $0x2c8] sm:$0xff]  ;;  %v1923_v23 = vpack.c.bf16 %v331_v15, %v330_v14 }
  0x39   : > { %1908 = vmatpush3.bf16.msra.mxu1 %v1907_v38  ;;  %1910 = vmatprep.subr.bf16.mxu0 %v1909_v39  ;;  %v380_v21 = vld [vmem:[%s2263_s29 + $0x3c0] sm:$0xff]  ;;  %v381_v22 = vld [vmem:[%s2263_s29 + $0x3c8] sm:$0xff]  ;;  %v1955_v26 = vpack.c.bf16 %v363_v18, %v362_v16  ;;  %v1925_v27 = vpack.c.bf16 %v349_v20, %v348_v19  ;;  %v247_v30 = vld [vmem:[%s2258_s25 + $0x38] sm:$0xff] }
  0x3a   : > { %1942 = vmatprep.subr.bf16.mxu1 %v1941_v43  ;;  %v332_v24 = vld [vmem:[%s2263_s29 + $0x240] sm:$0xff]  ;;  %v245_v25 = vld [vmem:[%s2258_s25 + $0x28] sm:$0xff]  ;;  %v1957_v31 = vpack.c.bf16 %v381_v22, %v380_v21  ;;  %v350_v33 = vld [vmem:[%s2263_s29 + $0x2d0] sm:$0xff] }
  0x3b   : > { %645 = vmatmul.mubr.f32.vlgmr.msra.gmra.mrb[0].mxu0 %v240_v49  ;;  %v333_v28 = vld [vmem:[%s2263_s29 + $0x248] sm:$0xff]  ;;  %v364_v29 = vld [vmem:[%s2263_s29 + $0x340] sm:$0xff]  ;;  %v351_v34 = vld [vmem:[%s2263_s29 + $0x2d8] sm:$0xff] }
  0x3c   : > { %715 = vmatmul.mubr.f32.vlgmr.msra.gmra.mrb[0].mxu1 %v242_v50  ;;  %1912 = vmatpush3.bf16.msra.mxu0 %v1911_v51  ;;  %v365_v32 = vld [vmem:[%s2263_s29 + $0x348] sm:$0xff]  ;;  %v382_v35 = vld [vmem:[%s2263_s29 + $0x3d0] sm:$0xff]  ;;  %v383_v36 = vld [vmem:[%s2263_s29 + $0x3d8] sm:$0xff]  ;;  %v1927_v37 = vpack.c.bf16 %v333_v28, %v332_v24  ;;  %v1929_v39 = vpack.c.bf16 %v351_v34, %v350_v33 }
  0x3d   : > { %1944 = vmatpush3.bf16.msra.mxu1 %v1943_v52  ;;  %1914 = vmatprep.subr.bf16.mxu0 %v1913_v53  ;;  %v1959_v38 = vpack.c.bf16 %v365_v32, %v364_v29  ;;  %v334_v40 = vld [vmem:[%s2263_s29 + $0x250] sm:$0xff]  ;;  %v335_v41 = vld [vmem:[%s2263_s29 + $0x258] sm:$0xff]  ;;  %v1961_v43 = vpack.c.bf16 %v383_v36, %v382_v35  ;;  %v352_v45 = vld [vmem:[%s2263_s29 + $0x2e0] sm:$0xff] }
  0x3e   : > { %1946 = vmatprep.subr.bf16.mxu1 %v1945_v57  ;;  %784 = vmatprep.mubr.f32.mxu0 %v245_v25  ;;  %v366_v42 = vld [vmem:[%s2263_s29 + $0x350] sm:$0xff]  ;;  %v367_v44 = vld [vmem:[%s2263_s29 + $0x358] sm:$0xff]  ;;  %v353_v46 = vld [vmem:[%s2263_s29 + $0x2e8] sm:$0xff]  ;;  %v1931_v49 = vpack.c.bf16 %v335_v41, %v334_v40 }
  0x3f   : > { %854 = vmatprep.mubr.f32.mxu1 %v247_v30  ;;  %v384_v47 = vld [vmem:[%s2263_s29 + $0x3e0] sm:$0xff]  ;;  %v385_v48 = vld [vmem:[%s2263_s29 + $0x3e8] sm:$0xff]  ;;  %v1963_v50 = vpack.c.bf16 %v367_v44, %v366_v42  ;;  %v1933_v51 = vpack.c.bf16 %v353_v46, %v352_v45  ;;  %v354_v57 = vld [vmem:[%s2263_s29 + $0x2f0] sm:$0xff] }
  0x40   : > { %1916 = vmatpush3.bf16.msra.mxu0 %v1915_v63  ;;  %v336_v52 = vld [vmem:[%s2263_s29 + $0x260] sm:$0xff]  ;;  %v337_v53 = vld [vmem:[%s2263_s29 + $0x268] sm:$0xff]  ;;  %v1965_v55 = vpack.c.bf16 %v385_v48, %v384_v47  ;;  %v355_v58 = vld [vmem:[%s2263_s29 + $0x2f8] sm:$0xff] }
  0x41   : > { %1948 = vmatpush3.bf16.msra.mxu1 %v1947_v0  ;;  %1918 = vmatprep.subr.bf16.mxu0 %v1917_v1  ;;  %v368_v54 = vld [vmem:[%s2263_s29 + $0x360] sm:$0xff]  ;;  %v369_v56 = vld [vmem:[%s2263_s29 + $0x368] sm:$0xff]  ;;  %v386_v59 = vld [vmem:[%s2263_s29 + $0x3f0] sm:$0xff]  ;;  %v1935_v61 = vpack.c.bf16 %v337_v53, %v336_v52  ;;  %v1937_v63 = vpack.c.bf16 %v355_v58, %v354_v57 }
  0x42   : > { %1950 = vmatprep.subr.bf16.mxu1 %v1949_v5  ;;  %v387_v60 = vld [vmem:[%s2263_s29 + $0x3f8] sm:$0xff]  ;;  %v1967_v62 = vpack.c.bf16 %v369_v56, %v368_v54  ;;  %v338_v0 = vld [vmem:[%s2263_s29 + $0x270] sm:$0xff]  ;;  %v404_v5 = vld [vmem:[%s2263_s29 + $0x480] sm:$0xff] }
  0x43   : > { %v339_v1 = vld [vmem:[%s2263_s29 + $0x278] sm:$0xff]  ;;  %v370_v2 = vld [vmem:[%s2263_s29 + $0x370] sm:$0xff]  ;;  %v1969_v3 = vpack.c.bf16 %v387_v60, %v386_v59  ;;  %v405_v6 = vld [vmem:[%s2263_s29 + $0x488] sm:$0xff] }
  0x44   : > { %1920 = vmatpush3.bf16.msra.mxu0 %v1919_v11  ;;  %v371_v4 = vld [vmem:[%s2263_s29 + $0x378] sm:$0xff]  ;;  %v436_v7 = vld [vmem:[%s2263_s29 + $0x580] sm:$0xff]  ;;  %v437_v8 = vld [vmem:[%s2263_s29 + $0x588] sm:$0xff]  ;;  %v1939_v9 = vpack.c.bf16 %v339_v1, %v338_v0  ;;  %v1973_v11 = vpack.c.bf16 %v405_v6, %v404_v5 }
  0x45   : > { %1952 = vmatpush3.bf16.msra.mxu1 %v1951_v12  ;;  %1922 = vmatprep.subr.bf16.mxu0 %v1921_v13  ;;  %v1971_v10 = vpack.c.bf16 %v371_v4, %v370_v2  ;;  %v388_v12 = vld [vmem:[%s2263_s29 + $0x400] sm:$0xff]  ;;  %v389_v13 = vld [vmem:[%s2263_s29 + $0x408] sm:$0xff]  ;;  %v2005_v15 = vpack.c.bf16 %v437_v8, %v436_v7  ;;  %v407_v18 = vld [vmem:[%s2263_s29 + $0x498] sm:$0xff] }
  0x46   : > { %1954 = vmatprep.subr.bf16.mxu1 %v1953_v17  ;;  %v420_v14 = vld [vmem:[%s2263_s29 + $0x500] sm:$0xff]  ;;  %v421_v16 = vld [vmem:[%s2263_s29 + $0x508] sm:$0xff]  ;;  %v406_v17 = vld [vmem:[%s2263_s29 + $0x490] sm:$0xff]  ;;  %v1975_v22 = vpack.c.bf16 %v389_v13, %v388_v12 }
  0x47   : > { %v438_v19 = vld [vmem:[%s2263_s29 + $0x590] sm:$0xff]  ;;  %v439_v20 = vld [vmem:[%s2263_s29 + $0x598] sm:$0xff]  ;;  %v244_v21 = vld [vmem:[%s2258_s25 + $0x20] sm:$0xff]  ;;  %v2007_v24 = vpack.c.bf16 %v421_v16, %v420_v14  ;;  %v1977_v25 = vpack.c.bf16 %v407_v18, %v406_v17 }
  0x48   : > { %1924 = vmatpush3.bf16.msra.mxu0 %v1923_v23  ;;  %v246_v23 = vld [vmem:[%s2258_s25 + $0x30] sm:$0xff]  ;;  %v2009_v29 = vpack.c.bf16 %v439_v20, %v438_v19  ;;  %v423_v30 = vld [vmem:[%s2263_s29 + $0x518] sm:$0xff]  ;;  %v409_v32 = vld [vmem:[%s2263_s29 + $0x4a8] sm:$0xff] }
  0x49   : > { %1956 = vmatpush3.bf16.msra.mxu1 %v1955_v26  ;;  %1926 = vmatprep.subr.bf16.mxu0 %v1925_v27  ;;  %v390_v26 = vld [vmem:[%s2263_s29 + $0x410] sm:$0xff]  ;;  %v391_v27 = vld [vmem:[%s2263_s29 + $0x418] sm:$0xff]  ;;  %v440_v33 = vld [vmem:[%s2263_s29 + $0x5a0] sm:$0xff] }
  0x4a   : > { %1958 = vmatprep.subr.bf16.mxu1 %v1957_v31  ;;  %v422_v28 = vld [vmem:[%s2263_s29 + $0x510] sm:$0xff]  ;;  %v408_v31 = vld [vmem:[%s2263_s29 + $0x4a0] sm:$0xff]  ;;  %v441_v34 = vld [vmem:[%s2263_s29 + $0x5a8] sm:$0xff]  ;;  %v1979_v36 = vpack.c.bf16 %v391_v27, %v390_v26 }
  0x4b   : > { %v249_v35 = vld [vmem:[%s2258_s25 + $0x48] sm:$0xff]  ;;  %v392_v40 = vld [vmem:[%s2263_s29 + $0x420] sm:$0xff]  ;;  %v410_v45 = vld [vmem:[%s2263_s29 + $0x4b0] sm:$0xff] }
  0x4c   : > { %1928 = vmatpush3.bf16.msra.mxu0 %v1927_v37  ;;  %v251_v37 = vld [vmem:[%s2258_s25 + $0x58] sm:$0xff]  ;;  %v393_v41 = vld [vmem:[%s2263_s29 + $0x428] sm:$0xff]  ;;  %v424_v42 = vld [vmem:[%s2263_s29 + $0x520] sm:$0xff] }
  0x4d   : > { %1960 = vmatpush3.bf16.msra.mxu1 %v1959_v38  ;;  %1930 = vmatprep.subr.bf16.mxu0 %v1929_v39  ;;  %v2011_v38 = vpack.c.bf16 %v423_v30, %v422_v28  ;;  %v1981_v39 = vpack.c.bf16 %v409_v32, %v408_v31  ;;  %v425_v44 = vld [vmem:[%s2263_s29 + $0x528] sm:$0xff]  ;;  %v411_v46 = vld [vmem:[%s2263_s29 + $0x4b8] sm:$0xff]  ;;  %v442_v47 = vld [vmem:[%s2263_s29 + $0x5b0] sm:$0xff] }
  0x4e   : > { %1962 = vmatprep.subr.bf16.mxu1 %v1961_v43  ;;  %v2013_v43 = vpack.c.bf16 %v441_v34, %v440_v33  ;;  %v443_v48 = vld [vmem:[%s2263_s29 + $0x5b8] sm:$0xff]  ;;  %v394_v52 = vld [vmem:[%s2263_s29 + $0x430] sm:$0xff]  ;;  %v412_v57 = vld [vmem:[%s2263_s29 + $0x4c0] sm:$0xff] }
  0x4f   : > { %v395_v53 = vld [vmem:[%s2263_s29 + $0x438] sm:$0xff]  ;;  %v426_v54 = vld [vmem:[%s2263_s29 + $0x530] sm:$0xff]  ;;  %v413_v58 = vld [vmem:[%s2263_s29 + $0x4c8] sm:$0xff] }
  0x50   : > { %1932 = vmatpush3.bf16.msra.mxu0 %v1931_v49  ;;  %v1983_v49 = vpack.c.bf16 %v393_v41, %v392_v40  ;;  %v427_v56 = vld [vmem:[%s2263_s29 + $0x538] sm:$0xff]  ;;  %v444_v59 = vld [vmem:[%s2263_s29 + $0x5c0] sm:$0xff]  ;;  %v445_v60 = vld [vmem:[%s2263_s29 + $0x5c8] sm:$0xff] }
  0x51   : > { %1964 = vmatpush3.bf16.msra.mxu1 %v1963_v50  ;;  %1934 = vmatprep.subr.bf16.mxu0 %v1933_v51  ;;  %v2015_v50 = vpack.c.bf16 %v425_v44, %v424_v42  ;;  %v1985_v51 = vpack.c.bf16 %v411_v46, %v410_v45  ;;  %v396_v0 = vld [vmem:[%s2263_s29 + $0x440] sm:$0xff]  ;;  %v397_v1 = vld [vmem:[%s2263_s29 + $0x448] sm:$0xff]  ;;  %v414_v5 = vld [vmem:[%s2263_s29 + $0x4d0] sm:$0xff] }
  0x52   : > { %1966 = vmatprep.subr.bf16.mxu1 %v1965_v55  ;;  %v2017_v55 = vpack.c.bf16 %v443_v48, %v442_v47  ;;  %v428_v2 = vld [vmem:[%s2263_s29 + $0x540] sm:$0xff]  ;;  %v429_v4 = vld [vmem:[%s2263_s29 + $0x548] sm:$0xff]  ;;  %v415_v6 = vld [vmem:[%s2263_s29 + $0x4d8] sm:$0xff] }
  0x53   : > { %v446_v7 = vld [vmem:[%s2263_s29 + $0x5d0] sm:$0xff]  ;;  %v447_v8 = vld [vmem:[%s2263_s29 + $0x5d8] sm:$0xff]  ;;  %v416_v17 = vld [vmem:[%s2263_s29 + $0x4e0] sm:$0xff] }
  0x54   : > { %1936 = vmatpush3.bf16.msra.mxu0 %v1935_v61  ;;  %v1987_v61 = vpack.c.bf16 %v395_v53, %v394_v52  ;;  %v398_v12 = vld [vmem:[%s2263_s29 + $0x450] sm:$0xff]  ;;  %v399_v13 = vld [vmem:[%s2263_s29 + $0x458] sm:$0xff]  ;;  %v417_v18 = vld [vmem:[%s2263_s29 + $0x4e8] sm:$0xff] }
  0x55   : > { %1968 = vmatpush3.bf16.msra.mxu1 %v1967_v62  ;;  %1938 = vmatprep.subr.bf16.mxu0 %v1937_v63  ;;  %v2019_v62 = vpack.c.bf16 %v427_v56, %v426_v54  ;;  %v1989_v63 = vpack.c.bf16 %v413_v58, %v412_v57  ;;  %v430_v14 = vld [vmem:[%s2263_s29 + $0x550] sm:$0xff]  ;;  %v431_v16 = vld [vmem:[%s2263_s29 + $0x558] sm:$0xff]  ;;  %v448_v19 = vld [vmem:[%s2263_s29 + $0x5e0] sm:$0xff] }
  0x56   : > { %1970 = vmatprep.subr.bf16.mxu1 %v1969_v3  ;;  %v2021_v3 = vpack.c.bf16 %v445_v60, %v444_v59  ;;  %v449_v20 = vld [vmem:[%s2263_s29 + $0x5e8] sm:$0xff]  ;;  %v432_v26 = vld [vmem:[%s2263_s29 + $0x560] sm:$0xff]  ;;  %v419_v30 = vld [vmem:[%s2263_s29 + $0x4f8] sm:$0xff] }
  0x57   : > { %v2029_v27 = vpack.c.bf16 %v449_v20, %v448_v19  ;;  %v433_v28 = vld [vmem:[%s2263_s29 + $0x568] sm:$0xff]  ;;  %v450_v31 = vld [vmem:[%s2263_s29 + $0x5f0] sm:$0xff]  ;;  %v451_v32 = vld [vmem:[%s2263_s29 + $0x5f8] sm:$0xff] }
  0x58   : > { %1940 = vmatpush3.bf16.msra.mxu0 %v1939_v9  ;;  %v1991_v9 = vpack.c.bf16 %v397_v1, %v396_v0  ;;  %v2031_v34 = vpack.c.bf16 %v433_v28, %v432_v26  ;;  %v435_v40 = vld [vmem:[%s2263_s29 + $0x578] sm:$0xff]  ;;  %v468_v41 = vld [vmem:[%s2263_s29 + $0x680] sm:$0xff]  ;;  %v469_v42 = vld [vmem:[%s2263_s29 + $0x688] sm:$0xff] }
  0x59   : > { %1972 = vmatpush3.bf16.msra.mxu1 %v1971_v10  ;;  %1974 = vmatprep.subr.bf16.mxu0 %v1973_v11  ;;  %v2023_v10 = vpack.c.bf16 %v429_v4, %v428_v2  ;;  %v1993_v11 = vpack.c.bf16 %v415_v6, %v414_v5  ;;  %v501_v44 = vld [vmem:[%s2263_s29 + $0x788] sm:$0xff]  ;;  %v2037_v47 = vpack.c.bf16 %v469_v42, %v468_v41  ;;  %v452_v48 = vld [vmem:[%s2263_s29 + $0x600] sm:$0xff]  ;;  %v470_v53 = vld [vmem:[%s2263_s29 + $0x690] sm:$0xff] }
  0x5a   : > { %2006 = vmatprep.subr.bf16.mxu1 %v2005_v15  ;;  %v2025_v15 = vpack.c.bf16 %v447_v8, %v446_v7  ;;  %v485_v52 = vld [vmem:[%s2263_s29 + $0x708] sm:$0xff]  ;;  %v471_v54 = vld [vmem:[%s2263_s29 + $0x698] sm:$0xff]  ;;  %v248_v57 = vld [vmem:[%s2258_s25 + $0x40] sm:$0xff] }
  0x5b   : > { %785 = vmatmul.mubr.f32.vlgmr.msra.gmra.mrb[2].mxu0 %v244_v21  ;;  %v1995_v21 = vpack.c.bf16 %v399_v13, %v398_v12  ;;  %v503_v56 = vld [vmem:[%s2263_s29 + $0x798] sm:$0xff]  ;;  %v250_v59 = vld [vmem:[%s2258_s25 + $0x50] sm:$0xff]  ;;  %v473_v4 = vld [vmem:[%s2263_s29 + $0x6a8] sm:$0xff] }
  0x5c   : > { %1976 = vmatpush3.bf16.msra.mxu0 %v1975_v22  ;;  %855 = vmatmul.mubr.f32.vlgmr.msra.gmra.mrb[2].mxu1 %v246_v23  ;;  %v2027_v22 = vpack.c.bf16 %v431_v16, %v430_v14  ;;  %v1997_v23 = vpack.c.bf16 %v417_v18, %v416_v17  ;;  %v486_v0 = vld [vmem:[%s2263_s29 + $0x710] sm:$0xff]  ;;  %v487_v2 = vld [vmem:[%s2263_s29 + $0x718] sm:$0xff]  ;;  %v504_v5 = vld [vmem:[%s2263_s29 + $0x7a0] sm:$0xff] }
  0x5d   : > { %2008 = vmatpush3.bf16.msra.mxu1 %v2007_v24  ;;  %1978 = vmatprep.subr.bf16.mxu0 %v1977_v25  ;;  %v400_v24 = vld [vmem:[%s2263_s29 + $0x460] sm:$0xff]  ;;  %v401_v25 = vld [vmem:[%s2263_s29 + $0x468] sm:$0xff]  ;;  %v474_v17 = vld [vmem:[%s2263_s29 + $0x6b0] sm:$0xff] }
  0x5e   : > { %2010 = vmatprep.subr.bf16.mxu1 %v2009_v29  ;;  %924 = vmatprep.mubr.f32.mxu0 %v249_v35  ;;  %v418_v29 = vld [vmem:[%s2263_s29 + $0x4f0] sm:$0xff]  ;;  %v1999_v33 = vpack.c.bf16 %v401_v25, %v400_v24  ;;  %v505_v6 = vld [vmem:[%s2263_s29 + $0x7a8] sm:$0xff]  ;;  %v456_v12 = vld [vmem:[%s2263_s29 + $0x620] sm:$0xff] }
  0x5f   : > { %994 = vmatprep.mubr.f32.mxu1 %v251_v37  ;;  %v2001_v35 = vpack.c.bf16 %v419_v30, %v418_v29  ;;  %v403_v37 = vld [vmem:[%s2263_s29 + $0x478] sm:$0xff]  ;;  %v253_v7 = vld [vmem:[%s2258_s25 + $0x68] sm:$0xff]  ;;  %v488_v14 = vld [vmem:[%s2263_s29 + $0x720] sm:$0xff] }
  0x60   : > { %1980 = vmatpush3.bf16.msra.mxu0 %v1979_v36  ;;  %v402_v36 = vld [vmem:[%s2263_s29 + $0x470] sm:$0xff]  ;;  %v457_v13 = vld [vmem:[%s2263_s29 + $0x628] sm:$0xff]  ;;  %v475_v18 = vld [vmem:[%s2263_s29 + $0x6b8] sm:$0xff] }
  0x61   : > { %2012 = vmatpush3.bf16.msra.mxu1 %v2011_v38  ;;  %1982 = vmatprep.subr.bf16.mxu0 %v1981_v39  ;;  %v434_v38 = vld [vmem:[%s2263_s29 + $0x570] sm:$0xff]  ;;  %v2033_v39 = vpack.c.bf16 %v451_v32, %v450_v31  ;;  %v2003_v45 = vpack.c.bf16 %v403_v37, %v402_v36  ;;  %v489_v16 = vld [vmem:[%s2263_s29 + $0x728] sm:$0xff]  ;;  %v507_v20 = vld [vmem:[%s2263_s29 + $0x7b8] sm:$0xff] }
  0x62   : > { %2014 = vmatprep.subr.bf16.mxu1 %v2013_v43  ;;  %v500_v43 = vld [vmem:[%s2263_s29 + $0x780] sm:$0xff]  ;;  %v2035_v46 = vpack.c.bf16 %v435_v40, %v434_v38  ;;  %v506_v19 = vld [vmem:[%s2263_s29 + $0x7b0] sm:$0xff]  ;;  %v459_v25 = vld [vmem:[%s2263_s29 + $0x638] sm:$0xff] }
  0x63   : > { %v458_v24 = vld [vmem:[%s2263_s29 + $0x630] sm:$0xff]  ;;  %v491_v28 = vld [vmem:[%s2263_s29 + $0x738] sm:$0xff]  ;;  %v476_v29 = vld [vmem:[%s2263_s29 + $0x6c0] sm:$0xff] }
  0x64   : > { %1984 = vmatpush3.bf16.msra.mxu0 %v1983_v49  ;;  %v453_v49 = vld [vmem:[%s2263_s29 + $0x608] sm:$0xff]  ;;  %v490_v26 = vld [vmem:[%s2263_s29 + $0x730] sm:$0xff]  ;;  %v508_v31 = vld [vmem:[%s2263_s29 + $0x7c0] sm:$0xff] }
  0x65   : > { %2016 = vmatpush3.bf16.msra.mxu1 %v2015_v50  ;;  %1986 = vmatprep.subr.bf16.mxu0 %v1985_v51  ;;  %v484_v50 = vld [vmem:[%s2263_s29 + $0x700] sm:$0xff]  ;;  %v2069_v51 = vpack.c.bf16 %v501_v44, %v500_v43  ;;  %v2039_v58 = vpack.c.bf16 %v453_v49, %v452_v48  ;;  %v477_v30 = vld [vmem:[%s2263_s29 + $0x6c8] sm:$0xff]  ;;  %v478_v41 = vld [vmem:[%s2263_s29 + $0x6d0] sm:$0xff] }
  0x66   : > { %2018 = vmatprep.subr.bf16.mxu1 %v2017_v55  ;;  %v502_v55 = vld [vmem:[%s2263_s29 + $0x790] sm:$0xff]  ;;  %v2071_v60 = vpack.c.bf16 %v485_v52, %v484_v50  ;;  %v509_v32 = vld [vmem:[%s2263_s29 + $0x7c8] sm:$0xff]  ;;  %v460_v36 = vld [vmem:[%s2263_s29 + $0x640] sm:$0xff] }
  0x67   : > { %v2073_v1 = vpack.c.bf16 %v503_v56, %v502_v55  ;;  %v461_v37 = vld [vmem:[%s2263_s29 + $0x648] sm:$0xff]  ;;  %v492_v38 = vld [vmem:[%s2263_s29 + $0x740] sm:$0xff]  ;;  %v479_v42 = vld [vmem:[%s2263_s29 + $0x6d8] sm:$0xff] }
  0x68   : > { %1988 = vmatpush3.bf16.msra.mxu0 %v1987_v61  ;;  %v2041_v61 = vpack.c.bf16 %v471_v54, %v470_v53  ;;  %v493_v40 = vld [vmem:[%s2263_s29 + $0x748] sm:$0xff]  ;;  %v510_v43 = vld [vmem:[%s2263_s29 + $0x7d0] sm:$0xff]  ;;  %v511_v44 = vld [vmem:[%s2263_s29 + $0x7d8] sm:$0xff] }
  0x69   : > { %2020 = vmatpush3.bf16.msra.mxu1 %v2019_v62  ;;  %1990 = vmatprep.subr.bf16.mxu0 %v1989_v63  ;;  %v454_v62 = vld [vmem:[%s2263_s29 + $0x610] sm:$0xff]  ;;  %v455_v63 = vld [vmem:[%s2263_s29 + $0x618] sm:$0xff]  ;;  %v480_v53 = vld [vmem:[%s2263_s29 + $0x6e0] sm:$0xff] }
  0x6a   : > { %2022 = vmatprep.subr.bf16.mxu1 %v2021_v3  ;;  %v472_v3 = vld [vmem:[%s2263_s29 + $0x6a0] sm:$0xff]  ;;  %v2043_v8 = vpack.c.bf16 %v455_v63, %v454_v62  ;;  %v462_v48 = vld [vmem:[%s2263_s29 + $0x650] sm:$0xff]  ;;  %v463_v49 = vld [vmem:[%s2263_s29 + $0x658] sm:$0xff] }
  0x6b   : > { %v494_v50 = vld [vmem:[%s2263_s29 + $0x750] sm:$0xff]  ;;  %v495_v52 = vld [vmem:[%s2263_s29 + $0x758] sm:$0xff]  ;;  %v481_v54 = vld [vmem:[%s2263_s29 + $0x6e8] sm:$0xff] }
  0x6c   : > { %1992 = vmatpush3.bf16.msra.mxu0 %v1991_v9  ;;  %v255_v9 = vld [vmem:[%s2258_s25 + $0x78] sm:$0xff]  ;;  %v512_v55 = vld [vmem:[%s2263_s29 + $0x7e0] sm:$0xff]  ;;  %v513_v56 = vld [vmem:[%s2263_s29 + $0x7e8] sm:$0xff] }
  0x6d   : > { %2024 = vmatpush3.bf16.msra.mxu1 %v2023_v10  ;;  %1994 = vmatprep.subr.bf16.mxu0 %v1993_v11  ;;  %v2075_v10 = vpack.c.bf16 %v487_v2, %v486_v0  ;;  %v2045_v11 = vpack.c.bf16 %v473_v4, %v472_v3  ;;  %v496_v62 = vld [vmem:[%s2263_s29 + $0x760] sm:$0xff]  ;;  %v2093_v63 = vpack.c.bf16 %v513_v56, %v512_v55  ;;  %v497_v0 = vld [vmem:[%s2263_s29 + $0x768] sm:$0xff]  ;;  %v483_v2 = vld [vmem:[%s2263_s29 + $0x6f8] sm:$0xff] }
  0x6e   : > { %2026 = vmatprep.subr.bf16.mxu1 %v2025_v15  ;;  %v2077_v15 = vpack.c.bf16 %v505_v6, %v504_v5  ;;  %v514_v3 = vld [vmem:[%s2263_s29 + $0x7f0] sm:$0xff]  ;;  %v515_v4 = vld [vmem:[%s2263_s29 + $0x7f8] sm:$0xff]  ;;  %v2095_v6 = vpack.c.bf16 %v497_v0, %v496_v62 }
  0x6f   : > { %v570_v55 = vld [vmem:[%s2263_s29 + $0x9b0] sm:$0xff]  ;;  %v571_v56 = vld [vmem:[%s2263_s29 + $0x9b8] sm:$0xff] }
  0x70   : > { %1996 = vmatpush3.bf16.msra.mxu0 %v1995_v21  ;;  %v2047_v21 = vpack.c.bf16 %v457_v13, %v456_v12  ;;  %v499_v12 = vld [vmem:[%s2263_s29 + $0x778] sm:$0xff]  ;;  %v532_v13 = vld [vmem:[%s2263_s29 + $0x880] sm:$0xff]  ;;  %v554_v62 = vld [vmem:[%s2263_s29 + $0x930] sm:$0xff] }
  0x71   : > { %2028 = vmatpush3.bf16.msra.mxu1 %v2027_v22  ;;  %1998 = vmatprep.subr.bf16.mxu0 %v1997_v23  ;;  %v2079_v22 = vpack.c.bf16 %v489_v16, %v488_v14  ;;  %v2049_v23 = vpack.c.bf16 %v475_v18, %v474_v17  ;;  %v533_v14 = vld [vmem:[%s2263_s29 + $0x888] sm:$0xff]  ;;  %v555_v0 = vld [vmem:[%s2263_s29 + $0x938] sm:$0xff] }
  0x72   : > { %2030 = vmatprep.subr.bf16.mxu1 %v2029_v27  ;;  %v2081_v27 = vpack.c.bf16 %v507_v20, %v506_v19  ;;  %v565_v16 = vld [vmem:[%s2263_s29 + $0x988] sm:$0xff]  ;;  %v2101_v19 = vpack.c.bf16 %v533_v14, %v532_v13  ;;  %v516_v20 = vld [vmem:[%s2263_s29 + $0x800] sm:$0xff]  ;;  %v542_v13 = vld [vmem:[%s2263_s29 + $0x8d0] sm:$0xff] }
  0x73   : > { %v543_v14 = vld [vmem:[%s2263_s29 + $0x8d8] sm:$0xff] }
  0x74   : > { %2000 = vmatpush3.bf16.msra.mxu0 %v1999_v33  ;;  %v2051_v33 = vpack.c.bf16 %v459_v25, %v458_v24  ;;  %v549_v24 = vld [vmem:[%s2263_s29 + $0x908] sm:$0xff]  ;;  %v534_v25 = vld [vmem:[%s2263_s29 + $0x890] sm:$0xff] }
  0x75   : > { %2032 = vmatpush3.bf16.msra.mxu1 %v2031_v34  ;;  %2002 = vmatprep.subr.bf16.mxu0 %v2001_v35  ;;  %v2083_v34 = vpack.c.bf16 %v491_v28, %v490_v26  ;;  %v2053_v35 = vpack.c.bf16 %v477_v30, %v476_v29  ;;  %v535_v26 = vld [vmem:[%s2263_s29 + $0x898] sm:$0xff]  ;;  %v252_v29 = vld [vmem:[%s2258_s25 + $0x60] sm:$0xff] }
  0x76   : > { %2034 = vmatprep.subr.bf16.mxu1 %v2033_v39  ;;  %v2085_v39 = vpack.c.bf16 %v509_v32, %v508_v31  ;;  %v567_v28 = vld [vmem:[%s2263_s29 + $0x998] sm:$0xff]  ;;  %v254_v31 = vld [vmem:[%s2258_s25 + $0x70] sm:$0xff] }
  0x78   : > { %2004 = vmatpush3.bf16.msra.mxu0 %v2003_v45  ;;  %v2055_v45 = vpack.c.bf16 %v461_v37, %v460_v36  ;;  %v550_v36 = vld [vmem:[%s2263_s29 + $0x910] sm:$0xff] }
  0x79   : > { %2036 = vmatpush3.bf16.msra.mxu1 %v2035_v46  ;;  %2038 = vmatprep.subr.bf16.mxu0 %v2037_v47  ;;  %v2087_v46 = vpack.c.bf16 %v493_v40, %v492_v38  ;;  %v2057_v47 = vpack.c.bf16 %v479_v42, %v478_v41  ;;  %v551_v38 = vld [vmem:[%s2263_s29 + $0x918] sm:$0xff]  ;;  %v537_v40 = vld [vmem:[%s2263_s29 + $0x8a8] sm:$0xff]  ;;  %v568_v41 = vld [vmem:[%s2263_s29 + $0x9a0] sm:$0xff] }
  0x7a   : > { %2070 = vmatprep.subr.bf16.mxu1 %v2069_v51  ;;  %v2089_v51 = vpack.c.bf16 %v511_v44, %v510_v43  ;;  %v569_v42 = vld [vmem:[%s2263_s29 + $0x9a8] sm:$0xff] }
  0x7b   : > { %925 = vmatmul.mubr.f32.vlgmr.msra.gmra.mrb[4].mxu0 %v248_v57  ;;  %v2059_v57 = vpack.c.bf16 %v463_v49, %v462_v48  ;;  %v257_v43 = vld [vmem:[%s2258_s25 + $0x88] sm:$0xff]  ;;  %v520_v48 = vld [vmem:[%s2263_s29 + $0x820] sm:$0xff] }
  0x7c   : > { %2040 = vmatpush3.bf16.msra.mxu0 %v2039_v58  ;;  %995 = vmatmul.mubr.f32.vlgmr.msra.gmra.mrb[4].mxu1 %v250_v59  ;;  %v2091_v58 = vpack.c.bf16 %v495_v52, %v494_v50  ;;  %v2061_v59 = vpack.c.bf16 %v481_v54, %v480_v53  ;;  %v521_v49 = vld [vmem:[%s2263_s29 + $0x828] sm:$0xff]  ;;  %v552_v50 = vld [vmem:[%s2263_s29 + $0x920] sm:$0xff]  ;;  %v538_v53 = vld [vmem:[%s2263_s29 + $0x8b0] sm:$0xff] }
  0x7d   : > { %2072 = vmatpush3.bf16.msra.mxu1 %v2071_v60  ;;  %2042 = vmatprep.subr.bf16.mxu0 %v2041_v61  ;;  %v464_v60 = vld [vmem:[%s2263_s29 + $0x660] sm:$0xff]  ;;  %v465_v61 = vld [vmem:[%s2263_s29 + $0x668] sm:$0xff]  ;;  %v539_v54 = vld [vmem:[%s2263_s29 + $0x8b8] sm:$0xff] }
  0x7e   : > { %2074 = vmatprep.subr.bf16.mxu1 %v2073_v1  ;;  %1064 = vmatprep.mubr.f32.mxu0 %v253_v7  ;;  %v482_v1 = vld [vmem:[%s2263_s29 + $0x6f0] sm:$0xff]  ;;  %v2063_v5 = vpack.c.bf16 %v465_v61, %v464_v60  ;;  %v553_v52 = vld [vmem:[%s2263_s29 + $0x928] sm:$0xff]  ;;  %v523_v61 = vld [vmem:[%s2263_s29 + $0x838] sm:$0xff] }
  0x7f   : > { %1134 = vmatprep.mubr.f32.mxu1 %v255_v9  ;;  %v2065_v7 = vpack.c.bf16 %v483_v2, %v482_v1  ;;  %v467_v9 = vld [vmem:[%s2263_s29 + $0x678] sm:$0xff]  ;;  %v522_v60 = vld [vmem:[%s2263_s29 + $0x830] sm:$0xff]  ;;  %v540_v1 = vld [vmem:[%s2263_s29 + $0x8c0] sm:$0xff] }
  0x80   : > { %2044 = vmatpush3.bf16.msra.mxu0 %v2043_v8  ;;  %v466_v8 = vld [vmem:[%s2263_s29 + $0x670] sm:$0xff]  ;;  %v541_v2 = vld [vmem:[%s2263_s29 + $0x8c8] sm:$0xff] }
  0x81   : > { %2076 = vmatpush3.bf16.msra.mxu1 %v2075_v10  ;;  %2046 = vmatprep.subr.bf16.mxu0 %v2045_v11  ;;  %v498_v10 = vld [vmem:[%s2263_s29 + $0x770] sm:$0xff]  ;;  %v2097_v11 = vpack.c.bf16 %v515_v4, %v514_v3  ;;  %v2067_v17 = vpack.c.bf16 %v467_v9, %v466_v8  ;;  %v572_v3 = vld [vmem:[%s2263_s29 + $0x9c0] sm:$0xff]  ;;  %v573_v4 = vld [vmem:[%s2263_s29 + $0x9c8] sm:$0xff] }
  0x82   : > { %2078 = vmatprep.subr.bf16.mxu1 %v2077_v15  ;;  %v564_v15 = vld [vmem:[%s2263_s29 + $0x980] sm:$0xff]  ;;  %v2099_v18 = vpack.c.bf16 %v499_v12, %v498_v10  ;;  %v525_v9 = vld [vmem:[%s2263_s29 + $0x848] sm:$0xff] }
  0x83   : > { %v524_v8 = vld [vmem:[%s2263_s29 + $0x840] sm:$0xff]  ;;  %v557_v12 = vld [vmem:[%s2263_s29 + $0x948] sm:$0xff] }
  0x84   : > { %2048 = vmatpush3.bf16.msra.mxu0 %v2047_v21  ;;  %v517_v21 = vld [vmem:[%s2263_s29 + $0x808] sm:$0xff]  ;;  %v556_v10 = vld [vmem:[%s2263_s29 + $0x940] sm:$0xff] }
  0x85   : > { %2080 = vmatpush3.bf16.msra.mxu1 %v2079_v22  ;;  %2050 = vmatprep.subr.bf16.mxu0 %v2049_v23  ;;  %v548_v22 = vld [vmem:[%s2263_s29 + $0x900] sm:$0xff]  ;;  %v2133_v23 = vpack.c.bf16 %v565_v16, %v564_v15  ;;  %v2103_v30 = vpack.c.bf16 %v517_v21, %v516_v20  ;;  %v574_v15 = vld [vmem:[%s2263_s29 + $0x9d0] sm:$0xff]  ;;  %v575_v16 = vld [vmem:[%s2263_s29 + $0x9d8] sm:$0xff] }
  0x86   : > { %2082 = vmatprep.subr.bf16.mxu1 %v2081_v27  ;;  %v566_v27 = vld [vmem:[%s2263_s29 + $0x990] sm:$0xff]  ;;  %v2135_v32 = vpack.c.bf16 %v549_v24, %v548_v22  ;;  %v527_v21 = vld [vmem:[%s2263_s29 + $0x858] sm:$0xff] }
  0x87   : > { %v2137_v37 = vpack.c.bf16 %v567_v28, %v566_v27  ;;  %v526_v20 = vld [vmem:[%s2263_s29 + $0x850] sm:$0xff]  ;;  %v559_v24 = vld [vmem:[%s2263_s29 + $0x958] sm:$0xff]  ;;  %v576_v27 = vld [vmem:[%s2263_s29 + $0x9e0] sm:$0xff] }
  0x88   : > { %2052 = vmatpush3.bf16.msra.mxu0 %v2051_v33  ;;  %v2105_v33 = vpack.c.bf16 %v535_v26, %v534_v25  ;;  %v558_v22 = vld [vmem:[%s2263_s29 + $0x950] sm:$0xff]  ;;  %v544_v25 = vld [vmem:[%s2263_s29 + $0x8e0] sm:$0xff]  ;;  %v545_v26 = vld [vmem:[%s2263_s29 + $0x8e8] sm:$0xff] }
  0x89   : > { %2084 = vmatpush3.bf16.msra.mxu1 %v2083_v34  ;;  %2054 = vmatprep.subr.bf16.mxu0 %v2053_v35  ;;  %v518_v34 = vld [vmem:[%s2263_s29 + $0x810] sm:$0xff]  ;;  %v519_v35 = vld [vmem:[%s2263_s29 + $0x818] sm:$0xff]  ;;  %v577_v28 = vld [vmem:[%s2263_s29 + $0x9e8] sm:$0xff] }
  0x8a   : > { %2086 = vmatprep.subr.bf16.mxu1 %v2085_v39  ;;  %v536_v39 = vld [vmem:[%s2263_s29 + $0x8a0] sm:$0xff]  ;;  %v2107_v44 = vpack.c.bf16 %v519_v35, %v518_v34  ;;  %v2157_v35 = vpack.c.bf16 %v577_v28, %v576_v27 }
  0x8b   : > { %v560_v34 = vld [vmem:[%s2263_s29 + $0x960] sm:$0xff] }
  0x8c   : > { %2056 = vmatpush3.bf16.msra.mxu0 %v2055_v45  ;;  %v259_v45 = vld [vmem:[%s2258_s25 + $0x98] sm:$0xff]  ;;  %v239_v27 = vld [vmem:[#allocation2] sm:$0xff] }
  0x8d   : > { %2088 = vmatpush3.bf16.msra.mxu1 %v2087_v46  ;;  %2058 = vmatprep.subr.bf16.mxu0 %v2057_v47  ;;  %v2139_v46 = vpack.c.bf16 %v551_v38, %v550_v36  ;;  %v2109_v47 = vpack.c.bf16 %v537_v40, %v536_v39  ;;  %v561_v36 = vld [vmem:[%s2263_s29 + $0x968] sm:$0xff]  ;;  %v547_v38 = vld [vmem:[%s2263_s29 + $0x8f8] sm:$0xff]  ;;  %v578_v39 = vld [vmem:[%s2263_s29 + $0x9f0] sm:$0xff] }
  0x8e   : > { %2090 = vmatprep.subr.bf16.mxu1 %v2089_v51  ;;  %v2141_v51 = vpack.c.bf16 %v569_v42, %v568_v41  ;;  %v579_v40 = vld [vmem:[%s2263_s29 + $0x9f8] sm:$0xff]  ;;  %v2159_v42 = vpack.c.bf16 %v561_v36, %v560_v34  ;;  %v2212_v36 = vmov (!%p1438_p6), 0.0  }
  0x90   : > { %2060 = vmatpush3.bf16.msra.mxu0 %v2059_v57  ;;  %v2111_v57 = vpack.c.bf16 %v521_v49, %v520_v48  ;;  %v563_v48 = vld [vmem:[%s2263_s29 + $0x978] sm:$0xff] }
  0x91   : > { %2092 = vmatpush3.bf16.msra.mxu1 %v2091_v58  ;;  %2062 = vmatprep.subr.bf16.mxu0 %v2061_v59  ;;  %v2143_v58 = vpack.c.bf16 %v553_v52, %v552_v50  ;;  %v2113_v59 = vpack.c.bf16 %v539_v54, %v538_v53  ;;  %v258_v52 = vld [vmem:[%s2258_s25 + $0x90] sm:$0xff] }
  0x92   : > { %2094 = vmatprep.subr.bf16.mxu1 %v2093_v63  ;;  %v2145_v63 = vpack.c.bf16 %v571_v56, %v570_v55 }
  0x94   : > { %2064 = vmatpush3.bf16.msra.mxu0 %v2063_v5  ;;  %v2115_v5 = vpack.c.bf16 %v523_v61, %v522_v60 }
  0x95   : > { %2096 = vmatpush3.bf16.msra.mxu1 %v2095_v6  ;;  %2066 = vmatprep.subr.bf16.mxu0 %v2065_v7  ;;  %v2147_v6 = vpack.c.bf16 %v555_v0, %v554_v62  ;;  %v2117_v7 = vpack.c.bf16 %v541_v2, %v540_v1 }
  0x96   : > { %2098 = vmatprep.subr.bf16.mxu1 %v2097_v11  ;;  %v2149_v11 = vpack.c.bf16 %v573_v4, %v572_v3 }
  0x98   : > { %2068 = vmatpush3.bf16.msra.mxu0 %v2067_v17  ;;  %v2119_v17 = vpack.c.bf16 %v525_v9, %v524_v8 }
  0x99   : > { %2100 = vmatpush3.bf16.msra.mxu1 %v2099_v18  ;;  %2102 = vmatprep.subr.bf16.mxu0 %v2101_v19  ;;  %v2151_v18 = vpack.c.bf16 %v557_v12, %v556_v10  ;;  %v2121_v19 = vpack.c.bf16 %v543_v14, %v542_v13 }
  0x9a   : > { %2134 = vmatprep.subr.bf16.mxu1 %v2133_v23  ;;  %v2153_v23 = vpack.c.bf16 %v575_v16, %v574_v15 }
  0x9b   : > { %1065 = vmatmul.mubr.f32.vlgmr.msra.gmra.mrb[6].mxu0 %v252_v29  ;;  %v2123_v29 = vpack.c.bf16 %v527_v21, %v526_v20 }
  0x9c   : > { %2104 = vmatpush3.bf16.msra.mxu0 %v2103_v30  ;;  %1135 = vmatmul.mubr.f32.vlgmr.msra.gmra.mrb[6].mxu1 %v254_v31  ;;  %v2155_v30 = vpack.c.bf16 %v559_v24, %v558_v22  ;;  %v2125_v31 = vpack.c.bf16 %v545_v26, %v544_v25 }
  0x9d   : > { %2136 = vmatpush3.bf16.msra.mxu1 %v2135_v32  ;;  %2106 = vmatprep.subr.bf16.mxu0 %v2105_v33  ;;  %v528_v32 = vld [vmem:[%s2263_s29 + $0x860] sm:$0xff]  ;;  %v529_v33 = vld [vmem:[%s2263_s29 + $0x868] sm:$0xff] }
  0x9e   : > { %2138 = vmatprep.subr.bf16.mxu1 %v2137_v37  ;;  %1204 = vmatprep.mubr.f32.mxu0 %v257_v43  ;;  %v546_v37 = vld [vmem:[%s2263_s29 + $0x8f0] sm:$0xff]  ;;  %v2127_v41 = vpack.c.bf16 %v529_v33, %v528_v32  ;;  %v2210_v33 = vmov (!%p1438_p6), 0.0|0.0  }
  0x9f   : > { %1274 = vmatprep.mubr.f32.mxu1 %v259_v45  ;;  %v2129_v43 = vpack.c.bf16 %v547_v38, %v546_v37  ;;  %v531_v45 = vld [vmem:[%s2263_s29 + $0x878] sm:$0xff]  ;;  %v1298_v32 = vld [vmem:[%s2670_s3 + $0x10] sm:$0xff] (!%p1438_p6)  ;;  %v1300_v38 = vld [vmem:[%s2670_s3 + $0x20] sm:$0xff] (!%p1438_p6) }
  0xa0   : > { %2108 = vmatpush3.bf16.msra.mxu0 %v2107_v44  ;;  %v530_v44 = vld [vmem:[%s2263_s29 + $0x870] sm:$0xff] }
  0xa1   : > { %2140 = vmatpush3.bf16.msra.mxu1 %v2139_v46  ;;  %2110 = vmatprep.subr.bf16.mxu0 %v2109_v47  ;;  %v2161_v46 = vpack.c.bf16 %v579_v40, %v578_v39  ;;  %v562_v47 = vld [vmem:[%s2263_s29 + $0x970] sm:$0xff]  ;;  %v2131_v49 = vpack.c.bf16 %v531_v45, %v530_v44  ;;  %v1301_v39 = vld [vmem:[%s2670_s3 + $0x28] sm:$0xff] (!%p1438_p6)  ;;  %v1304_v44 = vld [vmem:[%s2670_s3 + $0x40] sm:$0xff] (!%p1438_p6) }
  0xa2   : > { %2142 = vmatprep.subr.bf16.mxu1 %v2141_v51  ;;  %v2163_v50 = vpack.c.bf16 %v563_v48, %v562_v47  ;;  %v256_v51 = vld [vmem:[%s2258_s25 + $0x80] sm:$0xff]  ;;  %v2172_v40 = vpack.c.bf16 (!%p1438_p6), %v1301_v39, %v1300_v38  ;;  %v1305_v45 = vld [vmem:[%s2670_s3 + $0x48] sm:$0xff] (!%p1438_p6)  ;;  %v1306_v47 = vld [vmem:[%s2670_s3 + $0x50] sm:$0xff] (!%p1438_p6) }
  0xa3   : > { %v1307_v48 = vld [vmem:[%s2670_s3 + $0x58] sm:$0xff] (!%p1438_p6) }
  0xa4   : > { %2112 = vmatpush3.bf16.msra.mxu0 %v2111_v57 }
  0xa5   : > { %2144 = vmatpush3.bf16.msra.mxu1 %v2143_v58  ;;  %2114 = vmatprep.subr.bf16.mxu0 %v2113_v59 }
  0xa6   : > { %2146 = vmatprep.subr.bf16.mxu1 %v2145_v63 }
  0xa8   : > { %2116 = vmatpush3.bf16.msra.mxu0 %v2115_v5 }
  0xa9   : > { %2148 = vmatpush3.bf16.msra.mxu1 %v2147_v6  ;;  %2118 = vmatprep.subr.bf16.mxu0 %v2117_v7 }
  0xaa   : > { %2150 = vmatprep.subr.bf16.mxu1 %v2149_v11 }
  0xac   : > { %2120 = vmatpush3.bf16.msra.mxu0 %v2119_v17 }
  0xad   : > { %2152 = vmatpush3.bf16.msra.mxu1 %v2151_v18  ;;  %2122 = vmatprep.subr.bf16.mxu0 %v2121_v19 }
  0xae   : > { %2154 = vmatprep.subr.bf16.mxu1 %v2153_v23 }
  0xb0   : > { %2124 = vmatpush3.bf16.msra.mxu0 %v2123_v29 }
  0xb1   : > { %2156 = vmatpush3.bf16.msra.mxu1 %v2155_v30  ;;  %2126 = vmatprep.subr.bf16.mxu0 %v2125_v31  ;;  %v1296_v30 = vld [vmem:[%s2670_s3] sm:$0xff] (!%p1438_p6)  ;;  %v1297_v31 = vld [vmem:[%s2670_s3 + $0x8] sm:$0xff] (!%p1438_p6) }
  0xb2   : > { %2158 = vmatprep.subr.bf16.mxu1 %v2157_v35  ;;  %v2166_v34 = vpack.c.bf16 (!%p1438_p6), %v1297_v31, %v1296_v30  ;;  %v1299_v35 = vld [vmem:[%s2670_s3 + $0x18] sm:$0xff] (!%p1438_p6) }
  0xb3   : > { %v2169_v37 = vpack.c.bf16 (!%p1438_p6), %v1299_v35, %v1298_v32 }
  0xb4   : > { %2128 = vmatpush3.bf16.msra.mxu0 %v2127_v41  ;;  %v1302_v41 = vld [vmem:[%s2670_s3 + $0x30] sm:$0xff] (!%p1438_p6) }
  0xb5   : > { %2160 = vmatpush3.bf16.msra.mxu1 %v2159_v42  ;;  %2130 = vmatprep.subr.bf16.mxu0 %v2129_v43  ;;  %v1303_v42 = vld [vmem:[%s2670_s3 + $0x38] sm:$0xff] (!%p1438_p6) }
  0xb6   : > { %2162 = vmatprep.subr.bf16.mxu1 %v2161_v46  ;;  %v2175_v43 = vpack.c.bf16 (!%p1438_p6), %v1303_v42, %v1302_v41  ;;  %v2178_v46 = vpack.c.bf16 (!%p1438_p6), %v1305_v45, %v1304_v44 }
  0xb8   : > { %2132 = vmatpush3.bf16.msra.mxu0 %v2131_v49  ;;  %v2181_v49 = vpack.c.bf16 (!%p1438_p6), %v1307_v48, %v1306_v47 }
  0xb9   : > { %2164 = vmatpush3.bf16.msra.mxu1 %v2163_v50  ;;  %2165 = vmatprep.subr.bf16.mxu0 (!%p1438_p6), %v2210_v33  ;;  %v1308_v50 = vld [vmem:[%s2670_s3 + $0x60] sm:$0xff] (!%p1438_p6) }
  0xbb   : > { %1205 = vmatmul.mubr.f32.vlgmr.msra.gmra.mrb[8].mxu0 %v256_v51  ;;  %v1309_v51 = vld [vmem:[%s2670_s3 + $0x68] sm:$0xff] (!%p1438_p6) }
  0xbc   : > { %1275 = vmatmul.mubr.f32.vlgmr.msra.gmra.mrb[8].mxu1 %v258_v52  ;;  %1842 = vmatprep.mubr.msk.f32.mxu0 (!%p1438_p6), %vm2211_vm0, %v2212_v36  ;;  %v2184_v52 = vpack.c.bf16 (!%p1438_p6), %v1309_v51, %v1308_v50 }
  0xbd   : > { %2167 = vmatpush3.bf16.msra.mxu0 (!%p1438_p6), %v2166_v34 }
  0xbe   : > { %2168 = vmatprep.subr.bf16.mxu0 (!%p1438_p6), %v2210_v33 }
  0xc1   : > { %2170 = vmatpush3.bf16.msra.mxu0 (!%p1438_p6), %v2169_v37 }
  0xc2   : > { %2171 = vmatprep.subr.bf16.mxu0 (!%p1438_p6), %v2210_v33 }
  0xc5   : > { %2173 = vmatpush3.bf16.msra.mxu0 (!%p1438_p6), %v2172_v40 }
  0xc6   : > { %2174 = vmatprep.subr.bf16.mxu0 (!%p1438_p6), %v2210_v33 }
  0xc9   : > { %2176 = vmatpush3.bf16.msra.mxu0 (!%p1438_p6), %v2175_v43 }
  0xca   : > { %2177 = vmatprep.subr.bf16.mxu0 (!%p1438_p6), %v2210_v33 }
  0xcd   : > { %2179 = vmatpush3.bf16.msra.mxu0 (!%p1438_p6), %v2178_v46 }
  0xce   : > { %2180 = vmatprep.subr.bf16.mxu0 (!%p1438_p6), %v2210_v33 }
  0xd1   : > { %2182 = vmatpush3.bf16.msra.mxu0 (!%p1438_p6), %v2181_v49 }
  0xd2   : > { %2183 = vmatprep.subr.bf16.mxu0 (!%p1438_p6), %v2210_v33 }
  0xd5   : > { %2185 = vmatpush3.bf16.msra.mxu0 (!%p1438_p6), %v2184_v52 }
  0xd6   : > { %2186 = vmatprep.subr.bf16.mxu0 (!%p1438_p6), %v2210_v33 }
 0x10e   : > { %v1475_v53 = vpop.f32.mrb[0].mxu0 }
 0x10f   : > { %v1510_v54 = vpop.f32.mrb[0].mxu1  ;;  %v1476_v55 = vpop.f32.mrb[1].mxu0 }
 0x110   : > { %v1477_v56 = vadd.f32 %v1476_v55, %v1475_v53  ;;  %v1511_v57 = vpop.f32.mrb[1].mxu1  ;;  %v1310_v55 = vld [vmem:[%s2670_s3 + $0x70] sm:$0xff] (!%p1438_p6) }
 0x111   : > { %v1512_v58 = vadd.f32 %v1511_v57, %v1510_v54  ;;  %v1439_v54 = vld [vmem:[%s2669_s2] ss:$0 sm:$0xff] (!%p1438_p6) }
 0x113   : > { %v717_v59 = vadd.f32 %v1512_v58, %v1477_v56  ;;  %v1311_v56 = vld [vmem:[%s2670_s3 + $0x78] sm:$0xff] (!%p1438_p6) }
 0x114   : > { %v2187_v58 = vpack.c.bf16 (!%p1438_p6), %v1311_v56, %v1310_v55 }
 0x116   : > { %2188 = vmatpush3.bf16.msra.mxu0 (!%p1438_p6), %v2187_v58 }
 0x12e   : > { %v1545_v60 = vpop.f32.mrb[2].mxu0 }
 0x12f   : > { %v1546_v61 = vpop.f32.mrb[3].mxu0  ;;  %v1580_v62 = vpop.f32.mrb[2].mxu1 }
 0x130   : > { %v1547_v63 = vadd.f32 %v1546_v61, %v1545_v60  ;;  %v1581_v0 = vpop.f32.mrb[3].mxu1  ;;  %v1440_v60 = vld [vmem:[%s2671_s4] ss:$0 sm:$0xff] (!%p1438_p6) }
 0x131   : > { %v1582_v1 = vadd.f32 %v1581_v0, %v1580_v62 }
 0x132   : > { %v787_v2 = vadd.f32 %v1547_v63, %v717_v59 }
 0x134   : > { %v857_v3 = vadd.f32 %v1582_v1, %v787_v2 }
 0x14e   : > { %v1615_v4 = vpop.f32.mrb[4].mxu0 }
 0x14f   : > { %v1616_v5 = vpop.f32.mrb[5].mxu0  ;;  %v1650_v6 = vpop.f32.mrb[4].mxu1 }
 0x150   : > { %v1617_v7 = vadd.f32 %v1616_v5, %v1615_v4  ;;  %v1651_v8 = vpop.f32.mrb[5].mxu1 }
 0x151   : > { %v1652_v9 = vadd.f32 %v1651_v8, %v1650_v6 }
 0x152   : > { %v927_v10 = vadd.f32 %v1617_v7, %v857_v3 }
 0x154   : > { %v997_v11 = vadd.f32 %v1652_v9, %v927_v10 }
 0x16e   : > { %v1685_v12 = vpop.f32.mrb[6].mxu0 }
 0x16f   : > { %v1686_v13 = vpop.f32.mrb[7].mxu0  ;;  %v1720_v14 = vpop.f32.mrb[6].mxu1 }
 0x170   : > { %v1687_v15 = vadd.f32 %v1686_v13, %v1685_v12  ;;  %v1721_v16 = vpop.f32.mrb[7].mxu1 }
 0x171   : > { %v1722_v17 = vadd.f32 %v1721_v16, %v1720_v14 }
 0x172   : > { %v1067_v18 = vadd.f32 %v1687_v15, %v997_v11 }
 0x174   : > { %v1137_v19 = vadd.f32 %v1722_v17, %v1067_v18 }
 0x18e   : > { %v1755_v20 = vpop.f32.mrb[8].mxu0 }
 0x18f   : > { %v1756_v21 = vpop.f32.mrb[9].mxu0  ;;  %v1790_v22 = vpop.f32.mrb[8].mxu1 }
 0x190   : > { %v1757_v23 = vadd.f32 %v1756_v21, %v1755_v20  ;;  %v1791_v24 = vpop.f32.mrb[9].mxu1 }
 0x191   : > { %v1792_v25 = vadd.f32 %v1791_v24, %v1790_v22 }
 0x192   : > { %v1207_v26 = vadd.f32 %v1757_v23, %v1137_v19  ;;  %1285 = sbr.rel (%p1438_p6) target bundleno = 635 (0x27b), region = 48 }
 0x194   : > { %v1277_v28 = vadd.f32 %v1792_v25, %v1207_v26 }
 0x196   : > { %v1280_v29 = vadd.f32 %v1277_v28, %v239_v27 }
 0x198   : > { %1281 = vst [vmem:[#allocation2] sm:$0xff] %v1280_v29 }
 0x19f   : > { %v1286_v53 = vld [vmem:[#allocation2] sm:$0xff] }
 0x1a0   : > { %v1294_v57 = vadd.f32 %v1439_v54, %v1286_v53 }
 0x1a2   : > { %v1295_v59 = vmax.f32 %v1294_v57, 0.0 }
 0x1a4   : > { %1843 = vmatmul.mubr.f32.vlgmr.msra.gmra.mrb[0].mxu0 %v1295_v59 }
 0x277   : > { %v1385_v61 = vpop.f32.mrb[0].mxu0 }
 0x278   : > { %v1386_v62 = vadd.f32 %v1440_v60, %v1385_v61  ;;  %v1844_v63 = vpop.f32.mrb[1].mxu0 }
 0x27a   : > { %1390 = vst.msk [vmem:[%s2672_s5] sm:$0xff] %vm1389_vm1, %v1386_v62 }
 0x27b PF: > { %s15_s18 = sadd.s32 1, %s2207_s18  }
 0x27c   : > { %p12_p7 = scmp.ge.s32.totalorder %s15_s18, 7  }
 0x27e   :  { %14 = sbr.rel (!%p12_p7) target bundleno = 1 (0x1), region = 77 }

</bundles_post_ra>
